<compile_context>
chip_gen: v5e
topology: v5e:2x2
jax: 0.10.0
libtpu: 0.0.40
codegen_flags: <defaults>
</compile_context>

<pallas_src>
import jax
import jax.numpy as jnp
from jax.experimental import pallas as pl
from jax.experimental.pallas import tpu as pltpu

F_PAD = 128          # conv channels padded to one full lane register
K = 3                # all convs are 3x3 (spda_dmc config)


def _round_up(x, m):
    return (x + m - 1) // m * m


# ----------------------------------------------------------------------------
# Wrapper-side patch extraction (first, stride-2 conv only; input is tiny).
# ----------------------------------------------------------------------------
def _im2col(x, k, stride):
    """x: (N, C, H, W) -> (N, OH*OW, C*k*k); feature order (c, kh, kw) matches
    PyTorch Conv2d weight.reshape(F, C*k*k)."""
    N, C, H, W = x.shape
    OH = (H - k) // stride + 1
    OW = (W - k) // stride + 1
    cols = []
    for kh in range(k):
        for kw in range(k):
            cols.append(x[:, :, kh:kh + stride * OH:stride, kw:kw + stride * OW:stride])
    p = jnp.stack(cols, axis=2)                       # (N, C, k*k, OH, OW)
    p = p.reshape(N, C * k * k, OH, OW)
    p = p.transpose(0, 2, 3, 1).reshape(N, OH * OW, C * k * k)
    return p, OH, OW


# ----------------------------------------------------------------------------
# Fused encoder kernel (one grid step == B_TILE batch elements)
# ----------------------------------------------------------------------------
def _make_encoder_kernel(*, b_tile, Rp, M1p, L_total, TAIL, CHUNK,
                         OH3, OW3, out_dim, ODp):
    max_off = (K - 1) * Rp + (K - 1)
    # Static safety checks: VMEM refs have no runtime bounds check.
    assert Rp % 8 == 0 and M1p % 8 == 0 and L_total == b_tile * M1p
    assert TAIL % 8 == 0 and TAIL >= max_off
    assert (OH1v := (OH3 - 1) * Rp + (OW3 - 1) + (b_tile - 1) * M1p) < L_total, OH1v

    def kernel(p_ref, w1_ref, b1_ref, w2_ref, b2_ref, w3_ref, b3_ref,
               wp_ref, pb_ref, g_ref, bt_ref, o_ref, a1_ref, a2_ref, a3_ref):
        f32, bf16 = jnp.float32, jnp.bfloat16

        # Zero the halo tails once: tap slices for the last sample read up to
        # max_off rows past L_total; keeping them deterministic means no stale
        # VMEM (possibly NaN) is ever read, even into never-used garbage rows.
        zero_tail = jnp.zeros((TAIL, F_PAD), bf16)
        a1_ref[pl.ds(L_total, TAIL), :] = zero_tail
        a2_ref[pl.ds(L_total, TAIL), :] = zero_tail

        # ---- conv1 (stride 2, wrapper-side patches) + ReLU -> bf16 raster.
        b1v = b1_ref[...]
        for s in range(0, L_total, CHUNK):
            m = min(CHUNK, L_total - s)
            y = jnp.dot(p_ref[pl.ds(s, m), :], w1_ref[...],
                        preferred_element_type=f32)
            a1_ref[pl.ds(s, m), :] = jnp.maximum(y + b1v, 0.0).astype(bf16)

        # ---- stride-1 3x3 conv + ReLU on the stacked row raster.
        # For tap (kh, kw) the slice starting at row r0 + kh*Rp + kw satisfies
        # slice[r] == act[sample, oh+kh, ow+kw] whenever r == b*M1p + oh*Rp+ow,
        # so one dot per tap covers every sample/output position; "halo" rows
        # hold finite values never read by any valid output.  Chunked over rows
        # so the f32 accumulator stays register-resident.
        def conv3x3(src_ref, w_ref, b_ref, dst_ref):
            bv = b_ref[...]
            for s in range(0, L_total, CHUNK):
                m = min(CHUNK, L_total - s)
                acc = jnp.zeros((m, F_PAD), f32)
                for kh in range(K):
                    for kw in range(K):
                        t = src_ref[pl.ds(s + kh * Rp + kw, m), :]
                        acc = acc + jnp.dot(t, w_ref[kh * K + kw],
                                            preferred_element_type=f32)
                dst_ref[pl.ds(s, m), :] = (
                    jnp.maximum(acc + bv, 0.0).astype(dst_ref.dtype))

        conv3x3(a1_ref, w2_ref, b2_ref, a2_ref)   # conv2 (shared_cnn)
        conv3x3(a2_ref, w3_ref, b3_ref, a3_ref)   # conv3 (head_cnn)

        # ---- projection Linear: one (b_tile,128)x(128,ODp) dot per valid
        # raster position; samples gathered with a sublane-strided slice
        # (stride = per-sample row pitch, a multiple of 8; a3 kept f32).
        h = jnp.zeros((b_tile, ODp), f32)
        for i in range(OH3):
            for j in range(OW3):
                rows = a3_ref[pl.ds(i * Rp + j, b_tile, stride=M1p), :]
                h = h + jnp.dot(rows.astype(bf16), wp_ref[i * OW3 + j],
                                preferred_element_type=f32)
        h = h + pb_ref[...]

        # ---- LayerNorm(eps=1e-5) + Tanh in f32; lanes >= out_dim are zero
        # padding (wp/pb/g/bt pad lanes are zero -> padded outputs are tanh(0)=0).
        lane = jax.lax.broadcasted_iota(jnp.int32, (1, ODp), 1)
        mask = (lane < out_dim).astype(f32)
        inv_d = 1.0 / out_dim
        mu = jnp.sum(h, axis=-1, keepdims=True) * inv_d
        hc = (h - mu) * mask
        var = jnp.sum(hc * hc, axis=-1, keepdims=True) * inv_d
        o_ref[...] = jnp.tanh(hc * jax.lax.rsqrt(var + 1e-5)
                              * g_ref[...] + bt_ref[...])

    return kernel


def encoder_forward(prep, x, detach=False, b_tile=8):
    """x: (N, C, H, W) float32, NCHW (PyTorch layout)."""
    # TODO(synk): `detach` (x.detach() before the projection) only affects
    # gradients; the forward pass is identical, so it is a no-op here.  Any
    # future custom_vjp backward must honor the detach-before-projection.
    del detach
    assert b_tile % 8 == 0, "b_tile must be a multiple of 8 (sublane-aligned output block)"
    N, C, H, W = x.shape
    OH1, OW1 = (H - K) // 2 + 1, (W - K) // 2 + 1
    OH2, OW2 = OH1 - (K - 1), OW1 - (K - 1)
    OH3, OW3 = OH2 - (K - 1), OW2 - (K - 1)
    assert OH3 == K and OW3 == K, "projection weight expects a 3x3 head output"

    ckk = C * K * K
    CKKp = prep["w1"].shape[0]
    assert ckk <= CKKp
    out_dim = prep["g"].shape[1]          # true out_dim (g/bt/pb kept unpadded)
    ODp = prep["wp"].shape[2]             # lane-padded out_dim (multiple of 128)

    Rp = _round_up(OW1, 8)                # 8-aligned raster row pitch
    M1p = OH1 * Rp                        # per-sample raster rows (mult. of 8)
    L_total = b_tile * M1p                # rows processed per grid step
    TAIL = _round_up((K - 1) * Rp + (K - 1), 8)
    CHUNK = min(128, L_total)

    # Static range checks (see kernel halo/tap slices).
    assert (OH1 - 1) * Rp + (OW1 - 1) < M1p
    assert (OH3 - 1) * Rp + (OW3 - 1) + (b_tile - 1) * M1p < L_total

    # Pad the batch to a whole number of tiles (zeros; sliced off at the end).
    Np = _round_up(N, b_tile)
    if Np != N:
        x = jnp.pad(x, ((0, Np - N), (0, 0), (0, 0), (0, 0)))
    num_tiles = Np // b_tile

    # im2col for the stride-2 first conv, laid out as a lane-dense, pitch-padded
    # row raster: row oh*Rp+ow holds patch (oh, ow); pad rows/lanes are zero.
    # TODO(synk): at production DMC sizes (e.g. 84x84), move conv1 in-kernel
    # (stride-2 tap slices over a padded input raster) to avoid HBM im2col traffic.
    patches, _, _ = _im2col(x, K, 2)                      # (Np, OH1*OW1, ckk)
    patches = patches.reshape(Np, OH1, OW1, ckk)
    patches = jnp.pad(patches, ((0, 0), (0, 0), (0, Rp - OW1), (0, CKKp - ckk)))
    patches = patches.reshape(Np * M1p, CKKp).astype(jnp.bfloat16)

    # Pad LN/bias vectors to full 128-lane rows (zero pads -> tanh(0)=0 lanes).
    pad_od = lambda v: jnp.pad(v, ((0, 0), (0, ODp - out_dim)))
    pb, g, bt = pad_od(prep["pb"]), pad_od(prep["g"]), pad_od(prep["bt"])

    kernel = _make_encoder_kernel(
        b_tile=b_tile, Rp=Rp, M1p=M1p, L_total=L_total, TAIL=TAIL,
        CHUNK=CHUNK, OH3=OH3, OW3=OW3, out_dim=out_dim, ODp=ODp)

    rep2 = lambda t: (0, 0)                   # weights resident across the grid
    rep3 = lambda t: (0, 0, 0)

    out = pl.pallas_call(
        kernel,
        out_shape=jax.ShapeDtypeStruct((Np, ODp), jnp.float32),
        grid=(num_tiles,),
        in_specs=[
            pl.BlockSpec((L_total, CKKp), lambda t: (t, 0)),     # patches slab
            pl.BlockSpec((CKKp, F_PAD), rep2),                   # w1
            pl.BlockSpec((1, F_PAD), rep2),                      # b1
            pl.BlockSpec((K * K, F_PAD, F_PAD), rep3),           # w2
            pl.BlockSpec((1, F_PAD), rep2),                      # b2
            pl.BlockSpec((K * K, F_PAD, F_PAD), rep3),           # w3
            pl.BlockSpec((1, F_PAD), rep2),                      # b3
            pl.BlockSpec((K * K, F_PAD, ODp), rep3),             # wp
            pl.BlockSpec((1, ODp), rep2),                        # pb
            pl.BlockSpec((1, ODp), rep2),                        # ln gamma
            pl.BlockSpec((1, ODp), rep2),                        # ln beta
        ],
        out_specs=pl.BlockSpec((b_tile, ODp), lambda t: (t, 0)),
        scratch_shapes=[
            pltpu.VMEM((L_total + TAIL, F_PAD), jnp.bfloat16),   # conv1 raster
            pltpu.VMEM((L_total + TAIL, F_PAD), jnp.bfloat16),   # conv2 raster
            pltpu.VMEM((L_total, F_PAD), jnp.float32),           # conv3 raster
        ],
        compiler_params=pltpu.CompilerParams(
            dimension_semantics=("parallel",)),     # shard tiles across v7x TCs
    )(patches, prep["w1"], prep["b1"], prep["w2"], prep["b2"],
      prep["w3"], prep["b3"], prep["wp"], pb, g, bt)
    return out[:N, :out_dim]


# ----------------------------------------------------------------------------
# One-time parameter preparation (outside the jitted forward)
# ----------------------------------------------------------------------------
def prepare_params(params):
    """PyTorch-layout params -> kernel layout: pre-flattened, pre-transposed,
    channel/lane-padded, bf16 MXU operands (biases / LN params stay f32)."""
    def conv1_w(w):                                   # (F, C, 3, 3)
        F, C, k, _ = w.shape
        assert F <= F_PAD
        ckk = C * k * k
        ckk_p = _round_up(ckk, 128)
        wf = w.reshape(F, ckk).T                      # (ckk, F), order (c, kh, kw)
        return jnp.pad(wf, ((0, ckk_p - ckk), (0, F_PAD - F))).astype(jnp.bfloat16)

    def conv_w(w):                                    # (F, Cin, 3, 3) -> (9,128,128)
        F, Cin, k, _ = w.shape
        assert F <= F_PAD and Cin <= F_PAD
        wt = jnp.transpose(w, (2, 3, 1, 0)).reshape(k * k, Cin, F)
        return jnp.pad(wt, ((0, 0), (0, F_PAD - Cin), (0, F_PAD - F))).astype(jnp.bfloat16)

    def conv_b(b):
        return jnp.pad(b, (0, F_PAD - b.shape[0])).reshape(1, F_PAD).astype(jnp.float32)

    F = params["s_w1"].shape[0]
    p_w = params["p_w"]                               # (out_dim, F*3*3), torch layout
    out_dim, feat = p_w.shape
    assert feat == F * K * K, "projection expects head_cnn output flattened to F*3*3"
    od_p = _round_up(out_dim, 128)
    wp = p_w.reshape(out_dim, F, K, K)                # (d, c, h, w)
    wp = jnp.transpose(wp, (2, 3, 1, 0)).reshape(K * K, F, out_dim)   # (h*w, c, d)
    wp = jnp.pad(wp, ((0, 0), (0, F_PAD - F), (0, od_p - out_dim))).astype(jnp.bfloat16)

    return {
        "w1": conv1_w(params["s_w1"]), "b1": conv_b(params["s_b1"]),
        "w2": conv_w(params["s_w2"]),  "b2": conv_b(params["s_b2"]),
        "w3": conv_w(params["h_w1"]),  "b3": conv_b(params["h_b1"]),
        "wp": wp,
        # pb/g/bt stay UNPADDED f32: their shape tells the forward the true
        # out_dim; the forward zero-pads them to the lane-padded width.
        "pb": params["p_b"].reshape(1, out_dim).astype(jnp.float32),
        "g":  params["ln_g"].reshape(1, out_dim).astype(jnp.float32),
        "bt": params["ln_b"].reshape(1, out_dim).astype(jnp.float32),
    }


def make_params(key, in_c, num_filters, out_dim, feat_dim):
    ks = jax.random.split(key, 8)
    f = num_filters
    init = lambda k, shp, scale: scale * jax.random.normal(k, shp, jnp.float32)
    return {
        "s_w1": init(ks[0], (f, in_c, 3, 3), 0.1),
        "s_b1": init(ks[1], (f,), 0.01),
        "s_w2": init(ks[2], (f, f, 3, 3), 0.05),
        "s_b2": init(ks[3], (f,), 0.01),
        "h_w1": init(ks[4], (f, f, 3, 3), 0.05),
        "h_b1": init(ks[5], (f,), 0.01),
        "p_w": init(ks[6], (out_dim, feat_dim), 0.05),   # torch Linear layout (out, in)
        "p_b": init(ks[7], (out_dim,), 0.01),
        "ln_g": jnp.ones((out_dim,), jnp.float32),
        "ln_b": jnp.zeros((out_dim,), jnp.float32),
    }


# ----------------------------------------------------------------------------
# Pure-JAX f32 reference (independent code path) for a sanity check
# ----------------------------------------------------------------------------
def encoder_reference(params, x):
    def conv_relu(x, w, b, stride):
        N = x.shape[0]
        F = w.shape[0]
        p, OH, OW = _im2col(x, K, stride)             # (N, OH*OW, C*K*K)
        y = jnp.einsum("nmk,fk->nmf", p, w.reshape(F, -1)) + b
        y = jnp.maximum(y, 0.0)
        return y.reshape(N, OH, OW, F).transpose(0, 3, 1, 2)

    x = conv_relu(x, params["s_w1"], params["s_b1"], 2)
    x = conv_relu(x, params["s_w2"], params["s_b2"], 1)
    x = conv_relu(x, params["h_w1"], params["h_b1"], 1)
    h = x.reshape(x.shape[0], -1) @ params["p_w"].T + params["p_b"]
    mu = h.mean(-1, keepdims=True)
    var = ((h - mu) ** 2).mean(-1, keepdims=True)
    hn = (h - mu) * jax.lax.rsqrt(var + 1e-5)
    return jnp.tanh(hn * params["ln_g"] + params["ln_b"])


if __name__ == "__main__":
    N, C, H, W = 2, 4, 16, 16
    num_filters = 32
    out_dim = 32
    # spatial sizes: 16 --(3x3,s2)--> 7 --(3x3,s1)--> 5 --(3x3,s1)--> 3
    feat_dim = num_filters * 3 * 3

    key = jax.random.PRNGKey(0)
    kx, kp = jax.random.split(key)
    x = jax.random.normal(kx, (N, C, H, W), jnp.float32)
    params = make_params(kp, C, num_filters, out_dim, feat_dim)
    prep = prepare_params(params)

    fwd = jax.jit(encoder_forward)
    out = fwd(prep, x)
    jax.block_until_ready(out)
    assert out.shape == (N, out_dim), out.shape
    assert bool(jnp.all(jnp.isfinite(out)))

    # Sanity-check against a pure-JAX f32 reference (bf16 MXU operands => loose tol).
    ref = encoder_reference(params, x)
    err = float(jnp.max(jnp.abs(out - ref)))
    assert err < 0.15, f"max abs err vs f32 reference: {err}"
    print("KERNEL_OK")
</pallas_src>

<mosaic_0001>
module attributes {stable_mosaic.version = 11 : i64} {
  func.func @kernel(%arg0: i32, %arg1: memref<448x128xbf16, #tpu.memory_space<vmem>>, %arg2: memref<128x128xbf16, #tpu.memory_space<vmem>>, %arg3: memref<1x128xf32, #tpu.memory_space<vmem>>, %arg4: memref<9x128x128xbf16, #tpu.memory_space<vmem>>, %arg5: memref<1x128xf32, #tpu.memory_space<vmem>>, %arg6: memref<9x128x128xbf16, #tpu.memory_space<vmem>>, %arg7: memref<1x128xf32, #tpu.memory_space<vmem>>, %arg8: memref<9x128x128xbf16, #tpu.memory_space<vmem>>, %arg9: memref<1x128xf32, #tpu.memory_space<vmem>>, %arg10: memref<1x128xf32, #tpu.memory_space<vmem>>, %arg11: memref<1x128xf32, #tpu.memory_space<vmem>>, %arg12: memref<8x128xf32, #tpu.memory_space<vmem>>, %arg13: memref<472x128xbf16, #tpu.memory_space<vmem>>, %arg14: memref<472x128xbf16, #tpu.memory_space<vmem>>, %arg15: memref<448x128xf32, #tpu.memory_space<vmem>>) attributes {dimension_semantics = [#tpu.dimension_semantics<parallel>], iteration_bounds = array<i64: 1>, scalar_prefetch = 0 : i64, scratch_operands = 3 : i64, tpu.core_type = #tpu.core_type<tc>, window_params = [{transform_indices = @transform_0, window_bounds = array<i64: 448, 128>}, {pipeline_mode = #tpu.pipeline_mode<synchronous>, transform_indices = @transform_1, window_bounds = array<i64: 128, 128>}, {pipeline_mode = #tpu.pipeline_mode<synchronous>, transform_indices = @transform_2, window_bounds = array<i64: 1, 128>}, {pipeline_mode = #tpu.pipeline_mode<synchronous>, transform_indices = @transform_3, window_bounds = array<i64: 9, 128, 128>}, {pipeline_mode = #tpu.pipeline_mode<synchronous>, transform_indices = @transform_4, window_bounds = array<i64: 1, 128>}, {pipeline_mode = #tpu.pipeline_mode<synchronous>, transform_indices = @transform_5, window_bounds = array<i64: 9, 128, 128>}, {pipeline_mode = #tpu.pipeline_mode<synchronous>, transform_indices = @transform_6, window_bounds = array<i64: 1, 128>}, {pipeline_mode = #tpu.pipeline_mode<synchronous>, transform_indices = @transform_7, window_bounds = array<i64: 9, 128, 128>}, {pipeline_mode = #tpu.pipeline_mode<synchronous>, transform_indices = @transform_8, window_bounds = array<i64: 1, 128>}, {pipeline_mode = #tpu.pipeline_mode<synchronous>, transform_indices = @transform_9, window_bounds = array<i64: 1, 128>}, {pipeline_mode = #tpu.pipeline_mode<synchronous>, transform_indices = @transform_10, window_bounds = array<i64: 1, 128>}, {transform_indices = @transform_11, window_bounds = array<i64: 8, 128>}]} {
    %cst = arith.constant 0.000000e+00 : bf16
    %0 = vector.broadcast %cst : bf16 to vector<24x128xbf16>
    %c448 = arith.constant 448 : index
    %c0 = arith.constant 0 : index
    %1 = vector.load %arg13[%c448, %c0] : memref<472x128xbf16, #tpu.memory_space<vmem>>, vector<24x128xbf16>
    tpu.vector_store %arg13[%c448, %c0], %0 {strides = array<i32>} : memref<472x128xbf16, #tpu.memory_space<vmem>>, vector<24x128xbf16>,
    %c448_0 = arith.constant 448 : index
    %c0_1 = arith.constant 0 : index
    %2 = vector.load %arg14[%c448_0, %c0_1] : memref<472x128xbf16, #tpu.memory_space<vmem>>, vector<24x128xbf16>
    tpu.vector_store %arg14[%c448_0, %c0_1], %0 {strides = array<i32>} : memref<472x128xbf16, #tpu.memory_space<vmem>>, vector<24x128xbf16>,
    %c0_2 = arith.constant 0 : index
    %c0_3 = arith.constant 0 : index
    %3 = vector.load %arg3[%c0_2, %c0_3] : memref<1x128xf32, #tpu.memory_space<vmem>>, vector<1x128xf32>
    %c0_4 = arith.constant 0 : index
    %c0_5 = arith.constant 0 : index
    %4 = vector.load %arg1[%c0_4, %c0_5] : memref<448x128xbf16, #tpu.memory_space<vmem>>, vector<128x128xbf16>
    %c0_6 = arith.constant 0 : index
    %c0_7 = arith.constant 0 : index
    %5 = vector.load %arg2[%c0_6, %c0_7] : memref<128x128xbf16, #tpu.memory_space<vmem>>, vector<128x128xbf16>
    %cst_8 = arith.constant dense<0.000000e+00> : vector<128x128xf32>
    %6 = tpu.matmul %4, %5, %cst_8 {dimension_numbers = #tpu.dot_dimension_numbers<[1], [0], [0], [1], [0, 0, 1, 1], [], []>} : vector<128x128xbf16>, vector<128x128xbf16>, vector<128x128xf32> -> vector<128x128xf32>
    %7 = vector.broadcast %3 : vector<1x128xf32> to vector<128x128xf32>
    %8 = arith.addf %6, %7 : vector<128x128xf32>
    %cst_9 = arith.constant 0.000000e+00 : f32
    %9 = vector.broadcast %cst_9 : f32 to vector<128x128xf32>
    %10 = arith.maximumf %8, %9 : vector<128x128xf32>
    %11 = arith.truncf %10 : vector<128x128xf32> to vector<128x128xbf16>
    %c0_10 = arith.constant 0 : index
    %c0_11 = arith.constant 0 : index
    %12 = vector.load %arg13[%c0_10, %c0_11] : memref<472x128xbf16, #tpu.memory_space<vmem>>, vector<128x128xbf16>
    tpu.vector_store %arg13[%c0_10, %c0_11], %11 {strides = array<i32>} : memref<472x128xbf16, #tpu.memory_space<vmem>>, vector<128x128xbf16>,
    %c128 = arith.constant 128 : index
    %c0_12 = arith.constant 0 : index
    %13 = vector.load %arg1[%c128, %c0_12] : memref<448x128xbf16, #tpu.memory_space<vmem>>, vector<128x128xbf16>
    %c0_13 = arith.constant 0 : index
    %c0_14 = arith.constant 0 : index
    %14 = vector.load %arg2[%c0_13, %c0_14] : memref<128x128xbf16, #tpu.memory_space<vmem>>, vector<128x128xbf16>
    %cst_15 = arith.constant dense<0.000000e+00> : vector<128x128xf32>
    %15 = tpu.matmul %13, %14, %cst_15 {dimension_numbers = #tpu.dot_dimension_numbers<[1], [0], [0], [1], [0, 0, 1, 1], [], []>} : vector<128x128xbf16>, vector<128x128xbf16>, vector<128x128xf32> -> vector<128x128xf32>
    %16 = vector.broadcast %3 : vector<1x128xf32> to vector<128x128xf32>
    %17 = arith.addf %15, %16 : vector<128x128xf32>
    %cst_16 = arith.constant 0.000000e+00 : f32
    %18 = vector.broadcast %cst_16 : f32 to vector<128x128xf32>
    %19 = arith.maximumf %17, %18 : vector<128x128xf32>
    %20 = arith.truncf %19 : vector<128x128xf32> to vector<128x128xbf16>
    %c128_17 = arith.constant 128 : index
    %c0_18 = arith.constant 0 : index
    %21 = vector.load %arg13[%c128_17, %c0_18] : memref<472x128xbf16, #tpu.memory_space<vmem>>, vector<128x128xbf16>
    tpu.vector_store %arg13[%c128_17, %c0_18], %20 {strides = array<i32>} : memref<472x128xbf16, #tpu.memory_space<vmem>>, vector<128x128xbf16>,
    %c256 = arith.constant 256 : index
    %c0_19 = arith.constant 0 : index
    %22 = vector.load %arg1[%c256, %c0_19] : memref<448x128xbf16, #tpu.memory_space<vmem>>, vector<128x128xbf16>
    %c0_20 = arith.constant 0 : index
    %c0_21 = arith.constant 0 : index
    %23 = vector.load %arg2[%c0_20, %c0_21] : memref<128x128xbf16, #tpu.memory_space<vmem>>, vector<128x128xbf16>
    %cst_22 = arith.constant dense<0.000000e+00> : vector<128x128xf32>
    %24 = tpu.matmul %22, %23, %cst_22 {dimension_numbers = #tpu.dot_dimension_numbers<[1], [0], [0], [1], [0, 0, 1, 1], [], []>} : vector<128x128xbf16>, vector<128x128xbf16>, vector<128x128xf32> -> vector<128x128xf32>
    %25 = vector.broadcast %3 : vector<1x128xf32> to vector<128x128xf32>
    %26 = arith.addf %24, %25 : vector<128x128xf32>
    %cst_23 = arith.constant 0.000000e+00 : f32
    %27 = vector.broadcast %cst_23 : f32 to vector<128x128xf32>
    %28 = arith.maximumf %26, %27 : vector<128x128xf32>
    %29 = arith.truncf %28 : vector<128x128xf32> to vector<128x128xbf16>
    %c256_24 = arith.constant 256 : index
    %c0_25 = arith.constant 0 : index
    %30 = vector.load %arg13[%c256_24, %c0_25] : memref<472x128xbf16, #tpu.memory_space<vmem>>, vector<128x128xbf16>
    tpu.vector_store %arg13[%c256_24, %c0_25], %29 {strides = array<i32>} : memref<472x128xbf16, #tpu.memory_space<vmem>>, vector<128x128xbf16>,
    %c384 = arith.constant 384 : index
    %c0_26 = arith.constant 0 : index
    %31 = vector.load %arg1[%c384, %c0_26] : memref<448x128xbf16, #tpu.memory_space<vmem>>, vector<64x128xbf16>
    %c0_27 = arith.constant 0 : index
    %c0_28 = arith.constant 0 : index
    %32 = vector.load %arg2[%c0_27, %c0_28] : memref<128x128xbf16, #tpu.memory_space<vmem>>, vector<128x128xbf16>
    %cst_29 = arith.constant dense<0.000000e+00> : vector<64x128xf32>
    %33 = tpu.matmul %31, %32, %cst_29 {dimension_numbers = #tpu.dot_dimension_numbers<[1], [0], [0], [1], [0, 0, 1, 1], [], []>} : vector<64x128xbf16>, vector<128x128xbf16>, vector<64x128xf32> -> vector<64x128xf32>
    %34 = vector.broadcast %3 : vector<1x128xf32> to vector<64x128xf32>
    %35 = arith.addf %33, %34 : vector<64x128xf32>
    %cst_30 = arith.constant 0.000000e+00 : f32
    %36 = vector.broadcast %cst_30 : f32 to vector<64x128xf32>
    %37 = arith.maximumf %35, %36 : vector<64x128xf32>
    %38 = arith.truncf %37 : vector<64x128xf32> to vector<64x128xbf16>
    %c384_31 = arith.constant 384 : index
    %c0_32 = arith.constant 0 : index
    %39 = vector.load %arg13[%c384_31, %c0_32] : memref<472x128xbf16, #tpu.memory_space<vmem>>, vector<64x128xbf16>
    tpu.vector_store %arg13[%c384_31, %c0_32], %38 {strides = array<i32>} : memref<472x128xbf16, #tpu.memory_space<vmem>>, vector<64x128xbf16>,
    %c0_33 = arith.constant 0 : index
    %c0_34 = arith.constant 0 : index
    %40 = vector.load %arg5[%c0_33, %c0_34] : memref<1x128xf32, #tpu.memory_space<vmem>>, vector<1x128xf32>
    %cst_35 = arith.constant 0.000000e+00 : f32
    %41 = vector.broadcast %cst_35 : f32 to vector<128x128xf32>
    %c0_36 = arith.constant 0 : index
    %c0_37 = arith.constant 0 : index
    %42 = vector.load %arg13[%c0_36, %c0_37] : memref<472x128xbf16, #tpu.memory_space<vmem>>, vector<128x128xbf16>
    %c0_38 = arith.constant 0 : index
    %c0_39 = arith.constant 0 : index
    %c0_40 = arith.constant 0 : index
    %43 = vector.load %arg4[%c0_38, %c0_39, %c0_40] : memref<9x128x128xbf16, #tpu.memory_space<vmem>>, vector<1x128x128xbf16>
    %44 = vector.shape_cast %43 : vector<1x128x128xbf16> to vector<128x128xbf16>
    %cst_41 = arith.constant dense<0.000000e+00> : vector<128x128xf32>
    %45 = tpu.matmul %42, %44, %cst_41 {dimension_numbers = #tpu.dot_dimension_numbers<[1], [0], [0], [1], [0, 0, 1, 1], [], []>} : vector<128x128xbf16>, vector<128x128xbf16>, vector<128x128xf32> -> vector<128x128xf32>
    %46 = arith.addf %41, %45 : vector<128x128xf32>
    %c1 = arith.constant 1 : index
    %c0_42 = arith.constant 0 : index
    %47 = vector.load %arg13[%c1, %c0_42] : memref<472x128xbf16, #tpu.memory_space<vmem>>, vector<128x128xbf16>
    %c1_43 = arith.constant 1 : index
    %c0_44 = arith.constant 0 : index
    %c0_45 = arith.constant 0 : index
    %48 = vector.load %arg4[%c1_43, %c0_44, %c0_45] : memref<9x128x128xbf16, #tpu.memory_space<vmem>>, vector<1x128x128xbf16>
    %49 = vector.shape_cast %48 : vector<1x128x128xbf16> to vector<128x128xbf16>
    %cst_46 = arith.constant dense<0.000000e+00> : vector<128x128xf32>
    %50 = tpu.matmul %47, %49, %cst_46 {dimension_numbers = #tpu.dot_dimension_numbers<[1], [0], [0], [1], [0, 0, 1, 1], [], []>} : vector<128x128xbf16>, vector<128x128xbf16>, vector<128x128xf32> -> vector<128x128xf32>
    %51 = arith.addf %46, %50 : vector<128x128xf32>
    %c2 = arith.constant 2 : index
    %c0_47 = arith.constant 0 : index
    %52 = vector.load %arg13[%c2, %c0_47] : memref<472x128xbf16, #tpu.memory_space<vmem>>, vector<128x128xbf16>
    %c2_48 = arith.constant 2 : index
    %c0_49 = arith.constant 0 : index
    %c0_50 = arith.constant 0 : index
    %53 = vector.load %arg4[%c2_48, %c0_49, %c0_50] : memref<9x128x128xbf16, #tpu.memory_space<vmem>>, vector<1x128x128xbf16>
    %54 = vector.shape_cast %53 : vector<1x128x128xbf16> to vector<128x128xbf16>
    %cst_51 = arith.constant dense<0.000000e+00> : vector<128x128xf32>
    %55 = tpu.matmul %52, %54, %cst_51 {dimension_numbers = #tpu.dot_dimension_numbers<[1], [0], [0], [1], [0, 0, 1, 1], [], []>} : vector<128x128xbf16>, vector<128x128xbf16>, vector<128x128xf32> -> vector<128x128xf32>
    %56 = arith.addf %51, %55 : vector<128x128xf32>
    %c8 = arith.constant 8 : index
    %c0_52 = arith.constant 0 : index
    %57 = vector.load %arg13[%c8, %c0_52] : memref<472x128xbf16, #tpu.memory_space<vmem>>, vector<128x128xbf16>
    %c3 = arith.constant 3 : index
    %c0_53 = arith.constant 0 : index
    %c0_54 = arith.constant 0 : index
    %58 = vector.load %arg4[%c3, %c0_53, %c0_54] : memref<9x128x128xbf16, #tpu.memory_space<vmem>>, vector<1x128x128xbf16>
    %59 = vector.shape_cast %58 : vector<1x128x128xbf16> to vector<128x128xbf16>
    %cst_55 = arith.constant dense<0.000000e+00> : vector<128x128xf32>
    %60 = tpu.matmul %57, %59, %cst_55 {dimension_numbers = #tpu.dot_dimension_numbers<[1], [0], [0], [1], [0, 0, 1, 1], [], []>} : vector<128x128xbf16>, vector<128x128xbf16>, vector<128x128xf32> -> vector<128x128xf32>
    %61 = arith.addf %56, %60 : vector<128x128xf32>
    %c9 = arith.constant 9 : index
    %c0_56 = arith.constant 0 : index
    %62 = vector.load %arg13[%c9, %c0_56] : memref<472x128xbf16, #tpu.memory_space<vmem>>, vector<128x128xbf16>
    %c4 = arith.constant 4 : index
    %c0_57 = arith.constant 0 : index
    %c0_58 = arith.constant 0 : index
    %63 = vector.load %arg4[%c4, %c0_57, %c0_58] : memref<9x128x128xbf16, #tpu.memory_space<vmem>>, vector<1x128x128xbf16>
    %64 = vector.shape_cast %63 : vector<1x128x128xbf16> to vector<128x128xbf16>
    %cst_59 = arith.constant dense<0.000000e+00> : vector<128x128xf32>
    %65 = tpu.matmul %62, %64, %cst_59 {dimension_numbers = #tpu.dot_dimension_numbers<[1], [0], [0], [1], [0, 0, 1, 1], [], []>} : vector<128x128xbf16>, vector<128x128xbf16>, vector<128x128xf32> -> vector<128x128xf32>
    %66 = arith.addf %61, %65 : vector<128x128xf32>
    %c10 = arith.constant 10 : index
    %c0_60 = arith.constant 0 : index
    %67 = vector.load %arg13[%c10, %c0_60] : memref<472x128xbf16, #tpu.memory_space<vmem>>, vector<128x128xbf16>
    %c5 = arith.constant 5 : index
    %c0_61 = arith.constant 0 : index
    %c0_62 = arith.constant 0 : index
    %68 = vector.load %arg4[%c5, %c0_61, %c0_62] : memref<9x128x128xbf16, #tpu.memory_space<vmem>>, vector<1x128x128xbf16>
    %69 = vector.shape_cast %68 : vector<1x128x128xbf16> to vector<128x128xbf16>
    %cst_63 = arith.constant dense<0.000000e+00> : vector<128x128xf32>
    %70 = tpu.matmul %67, %69, %cst_63 {dimension_numbers = #tpu.dot_dimension_numbers<[1], [0], [0], [1], [0, 0, 1, 1], [], []>} : vector<128x128xbf16>, vector<128x128xbf16>, vector<128x128xf32> -> vector<128x128xf32>
    %71 = arith.addf %66, %70 : vector<128x128xf32>
    %c16 = arith.constant 16 : index
    %c0_64 = arith.constant 0 : index
    %72 = vector.load %arg13[%c16, %c0_64] : memref<472x128xbf16, #tpu.memory_space<vmem>>, vector<128x128xbf16>
    %c6 = arith.constant 6 : index
    %c0_65 = arith.constant 0 : index
    %c0_66 = arith.constant 0 : index
    %73 = vector.load %arg4[%c6, %c0_65, %c0_66] : memref<9x128x128xbf16, #tpu.memory_space<vmem>>, vector<1x128x128xbf16>
    %74 = vector.shape_cast %73 : vector<1x128x128xbf16> to vector<128x128xbf16>
    %cst_67 = arith.constant dense<0.000000e+00> : vector<128x128xf32>
    %75 = tpu.matmul %72, %74, %cst_67 {dimension_numbers = #tpu.dot_dimension_numbers<[1], [0], [0], [1], [0, 0, 1, 1], [], []>} : vector<128x128xbf16>, vector<128x128xbf16>, vector<128x128xf32> -> vector<128x128xf32>
    %76 = arith.addf %71, %75 : vector<128x128xf32>
    %c17 = arith.constant 17 : index
    %c0_68 = arith.constant 0 : index
    %77 = vector.load %arg13[%c17, %c0_68] : memref<472x128xbf16, #tpu.memory_space<vmem>>, vector<128x128xbf16>
    %c7 = arith.constant 7 : index
    %c0_69 = arith.constant 0 : index
    %c0_70 = arith.constant 0 : index
    %78 = vector.load %arg4[%c7, %c0_69, %c0_70] : memref<9x128x128xbf16, #tpu.memory_space<vmem>>, vector<1x128x128xbf16>
    %79 = vector.shape_cast %78 : vector<1x128x128xbf16> to vector<128x128xbf16>
    %cst_71 = arith.constant dense<0.000000e+00> : vector<128x128xf32>
    %80 = tpu.matmul %77, %79, %cst_71 {dimension_numbers = #tpu.dot_dimension_numbers<[1], [0], [0], [1], [0, 0, 1, 1], [], []>} : vector<128x128xbf16>, vector<128x128xbf16>, vector<128x128xf32> -> vector<128x128xf32>
    %81 = arith.addf %76, %80 : vector<128x128xf32>
    %c18 = arith.constant 18 : index
    %c0_72 = arith.constant 0 : index
    %82 = vector.load %arg13[%c18, %c0_72] : memref<472x128xbf16, #tpu.memory_space<vmem>>, vector<128x128xbf16>
    %c8_73 = arith.constant 8 : index
    %c0_74 = arith.constant 0 : index
    %c0_75 = arith.constant 0 : index
    %83 = vector.load %arg4[%c8_73, %c0_74, %c0_75] : memref<9x128x128xbf16, #tpu.memory_space<vmem>>, vector<1x128x128xbf16>
    %84 = vector.shape_cast %83 : vector<1x128x128xbf16> to vector<128x128xbf16>
    %cst_76 = arith.constant dense<0.000000e+00> : vector<128x128xf32>
    %85 = tpu.matmul %82, %84, %cst_76 {dimension_numbers = #tpu.dot_dimension_numbers<[1], [0], [0], [1], [0, 0, 1, 1], [], []>} : vector<128x128xbf16>, vector<128x128xbf16>, vector<128x128xf32> -> vector<128x128xf32>
    %86 = arith.addf %81, %85 : vector<128x128xf32>
    %87 = vector.broadcast %40 : vector<1x128xf32> to vector<128x128xf32>
    %88 = arith.addf %86, %87 : vector<128x128xf32>
    %cst_77 = arith.constant 0.000000e+00 : f32
    %89 = vector.broadcast %cst_77 : f32 to vector<128x128xf32>
    %90 = arith.maximumf %88, %89 : vector<128x128xf32>
    %91 = arith.truncf %90 : vector<128x128xf32> to vector<128x128xbf16>
    %c0_78 = arith.constant 0 : index
    %c0_79 = arith.constant 0 : index
    %92 = vector.load %arg14[%c0_78, %c0_79] : memref<472x128xbf16, #tpu.memory_space<vmem>>, vector<128x128xbf16>
    tpu.vector_store %arg14[%c0_78, %c0_79], %91 {strides = array<i32>} : memref<472x128xbf16, #tpu.memory_space<vmem>>, vector<128x128xbf16>,
    %cst_80 = arith.constant 0.000000e+00 : f32
    %93 = vector.broadcast %cst_80 : f32 to vector<128x128xf32>
    %c128_81 = arith.constant 128 : index
    %c0_82 = arith.constant 0 : index
    %94 = vector.load %arg13[%c128_81, %c0_82] : memref<472x128xbf16, #tpu.memory_space<vmem>>, vector<128x128xbf16>
    %c0_83 = arith.constant 0 : index
    %c0_84 = arith.constant 0 : index
    %c0_85 = arith.constant 0 : index
    %95 = vector.load %arg4[%c0_83, %c0_84, %c0_85] : memref<9x128x128xbf16, #tpu.memory_space<vmem>>, vector<1x128x128xbf16>
    %96 = vector.shape_cast %95 : vector<1x128x128xbf16> to vector<128x128xbf16>
    %cst_86 = arith.constant dense<0.000000e+00> : vector<128x128xf32>
    %97 = tpu.matmul %94, %96, %cst_86 {dimension_numbers = #tpu.dot_dimension_numbers<[1], [0], [0], [1], [0, 0, 1, 1], [], []>} : vector<128x128xbf16>, vector<128x128xbf16>, vector<128x128xf32> -> vector<128x128xf32>
    %98 = arith.addf %93, %97 : vector<128x128xf32>
    %c129 = arith.constant 129 : index
    %c0_87 = arith.constant 0 : index
    %99 = vector.load %arg13[%c129, %c0_87] : memref<472x128xbf16, #tpu.memory_space<vmem>>, vector<128x128xbf16>
    %c1_88 = arith.constant 1 : index
    %c0_89 = arith.constant 0 : index
    %c0_90 = arith.constant 0 : index
    %100 = vector.load %arg4[%c1_88, %c0_89, %c0_90] : memref<9x128x128xbf16, #tpu.memory_space<vmem>>, vector<1x128x128xbf16>
    %101 = vector.shape_cast %100 : vector<1x128x128xbf16> to vector<128x128xbf16>
    %cst_91 = arith.constant dense<0.000000e+00> : vector<128x128xf32>
    %102 = tpu.matmul %99, %101, %cst_91 {dimension_numbers = #tpu.dot_dimension_numbers<[1], [0], [0], [1], [0, 0, 1, 1], [], []>} : vector<128x128xbf16>, vector<128x128xbf16>, vector<128x128xf32> -> vector<128x128xf32>
    %103 = arith.addf %98, %102 : vector<128x128xf32>
    %c130 = arith.constant 130 : index
    %c0_92 = arith.constant 0 : index
    %104 = vector.load %arg13[%c130, %c0_92] : memref<472x128xbf16, #tpu.memory_space<vmem>>, vector<128x128xbf16>
    %c2_93 = arith.constant 2 : index
    %c0_94 = arith.constant 0 : index
    %c0_95 = arith.constant 0 : index
    %105 = vector.load %arg4[%c2_93, %c0_94, %c0_95] : memref<9x128x128xbf16, #tpu.memory_space<vmem>>, vector<1x128x128xbf16>
    %106 = vector.shape_cast %105 : vector<1x128x128xbf16> to vector<128x128xbf16>
    %cst_96 = arith.constant dense<0.000000e+00> : vector<128x128xf32>
    %107 = tpu.matmul %104, %106, %cst_96 {dimension_numbers = #tpu.dot_dimension_numbers<[1], [0], [0], [1], [0, 0, 1, 1], [], []>} : vector<128x128xbf16>, vector<128x128xbf16>, vector<128x128xf32> -> vector<128x128xf32>
    %108 = arith.addf %103, %107 : vector<128x128xf32>
    %c136 = arith.constant 136 : index
    %c0_97 = arith.constant 0 : index
    %109 = vector.load %arg13[%c136, %c0_97] : memref<472x128xbf16, #tpu.memory_space<vmem>>, vector<128x128xbf16>
    %c3_98 = arith.constant 3 : index
    %c0_99 = arith.constant 0 : index
    %c0_100 = arith.constant 0 : index
    %110 = vector.load %arg4[%c3_98, %c0_99, %c0_100] : memref<9x128x128xbf16, #tpu.memory_space<vmem>>, vector<1x128x128xbf16>
    %111 = vector.shape_cast %110 : vector<1x128x128xbf16> to vector<128x128xbf16>
    %cst_101 = arith.constant dense<0.000000e+00> : vector<128x128xf32>
    %112 = tpu.matmul %109, %111, %cst_101 {dimension_numbers = #tpu.dot_dimension_numbers<[1], [0], [0], [1], [0, 0, 1, 1], [], []>} : vector<128x128xbf16>, vector<128x128xbf16>, vector<128x128xf32> -> vector<128x128xf32>
    %113 = arith.addf %108, %112 : vector<128x128xf32>
    %c137 = arith.constant 137 : index
    %c0_102 = arith.constant 0 : index
    %114 = vector.load %arg13[%c137, %c0_102] : memref<472x128xbf16, #tpu.memory_space<vmem>>, vector<128x128xbf16>
    %c4_103 = arith.constant 4 : index
    %c0_104 = arith.constant 0 : index
    %c0_105 = arith.constant 0 : index
    %115 = vector.load %arg4[%c4_103, %c0_104, %c0_105] : memref<9x128x128xbf16, #tpu.memory_space<vmem>>, vector<1x128x128xbf16>
    %116 = vector.shape_cast %115 : vector<1x128x128xbf16> to vector<128x128xbf16>
    %cst_106 = arith.constant dense<0.000000e+00> : vector<128x128xf32>
    %117 = tpu.matmul %114, %116, %cst_106 {dimension_numbers = #tpu.dot_dimension_numbers<[1], [0], [0], [1], [0, 0, 1, 1], [], []>} : vector<128x128xbf16>, vector<128x128xbf16>, vector<128x128xf32> -> vector<128x128xf32>
    %118 = arith.addf %113, %117 : vector<128x128xf32>
    %c138 = arith.constant 138 : index
    %c0_107 = arith.constant 0 : index
    %119 = vector.load %arg13[%c138, %c0_107] : memref<472x128xbf16, #tpu.memory_space<vmem>>, vector<128x128xbf16>
    %c5_108 = arith.constant 5 : index
    %c0_109 = arith.constant 0 : index
    %c0_110 = arith.constant 0 : index
    %120 = vector.load %arg4[%c5_108, %c0_109, %c0_110] : memref<9x128x128xbf16, #tpu.memory_space<vmem>>, vector<1x128x128xbf16>
    %121 = vector.shape_cast %120 : vector<1x128x128xbf16> to vector<128x128xbf16>
    %cst_111 = arith.constant dense<0.000000e+00> : vector<128x128xf32>
    %122 = tpu.matmul %119, %121, %cst_111 {dimension_numbers = #tpu.dot_dimension_numbers<[1], [0], [0], [1], [0, 0, 1, 1], [], []>} : vector<128x128xbf16>, vector<128x128xbf16>, vector<128x128xf32> -> vector<128x128xf32>
    %123 = arith.addf %118, %122 : vector<128x128xf32>
    %c144 = arith.constant 144 : index
    %c0_112 = arith.constant 0 : index
    %124 = vector.load %arg13[%c144, %c0_112] : memref<472x128xbf16, #tpu.memory_space<vmem>>, vector<128x128xbf16>
    %c6_113 = arith.constant 6 : index
    %c0_114 = arith.constant 0 : index
    %c0_115 = arith.constant 0 : index
    %125 = vector.load %arg4[%c6_113, %c0_114, %c0_115] : memref<9x128x128xbf16, #tpu.memory_space<vmem>>, vector<1x128x128xbf16>
    %126 = vector.shape_cast %125 : vector<1x128x128xbf16> to vector<128x128xbf16>
    %cst_116 = arith.constant dense<0.000000e+00> : vector<128x128xf32>
    %127 = tpu.matmul %124, %126, %cst_116 {dimension_numbers = #tpu.dot_dimension_numbers<[1], [0], [0], [1], [0, 0, 1, 1], [], []>} : vector<128x128xbf16>, vector<128x128xbf16>, vector<128x128xf32> -> vector<128x128xf32>
    %128 = arith.addf %123, %127 : vector<128x128xf32>
    %c145 = arith.constant 145 : index
    %c0_117 = arith.constant 0 : index
    %129 = vector.load %arg13[%c145, %c0_117] : memref<472x128xbf16, #tpu.memory_space<vmem>>, vector<128x128xbf16>
    %c7_118 = arith.constant 7 : index
    %c0_119 = arith.constant 0 : index
    %c0_120 = arith.constant 0 : index
    %130 = vector.load %arg4[%c7_118, %c0_119, %c0_120] : memref<9x128x128xbf16, #tpu.memory_space<vmem>>, vector<1x128x128xbf16>
    %131 = vector.shape_cast %130 : vector<1x128x128xbf16> to vector<128x128xbf16>
    %cst_121 = arith.constant dense<0.000000e+00> : vector<128x128xf32>
    %132 = tpu.matmul %129, %131, %cst_121 {dimension_numbers = #tpu.dot_dimension_numbers<[1], [0], [0], [1], [0, 0, 1, 1], [], []>} : vector<128x128xbf16>, vector<128x128xbf16>, vector<128x128xf32> -> vector<128x128xf32>
    %133 = arith.addf %128, %132 : vector<128x128xf32>
    %c146 = arith.constant 146 : index
    %c0_122 = arith.constant 0 : index
    %134 = vector.load %arg13[%c146, %c0_122] : memref<472x128xbf16, #tpu.memory_space<vmem>>, vector<128x128xbf16>
    %c8_123 = arith.constant 8 : index
    %c0_124 = arith.constant 0 : index
    %c0_125 = arith.constant 0 : index
    %135 = vector.load %arg4[%c8_123, %c0_124, %c0_125] : memref<9x128x128xbf16, #tpu.memory_space<vmem>>, vector<1x128x128xbf16>
    %136 = vector.shape_cast %135 : vector<1x128x128xbf16> to vector<128x128xbf16>
    %cst_126 = arith.constant dense<0.000000e+00> : vector<128x128xf32>
    %137 = tpu.matmul %134, %136, %cst_126 {dimension_numbers = #tpu.dot_dimension_numbers<[1], [0], [0], [1], [0, 0, 1, 1], [], []>} : vector<128x128xbf16>, vector<128x128xbf16>, vector<128x128xf32> -> vector<128x128xf32>
    %138 = arith.addf %133, %137 : vector<128x128xf32>
    %139 = vector.broadcast %40 : vector<1x128xf32> to vector<128x128xf32>
    %140 = arith.addf %138, %139 : vector<128x128xf32>
    %cst_127 = arith.constant 0.000000e+00 : f32
    %141 = vector.broadcast %cst_127 : f32 to vector<128x128xf32>
    %142 = arith.maximumf %140, %141 : vector<128x128xf32>
    %143 = arith.truncf %142 : vector<128x128xf32> to vector<128x128xbf16>
    %c128_128 = arith.constant 128 : index
    %c0_129 = arith.constant 0 : index
    %144 = vector.load %arg14[%c128_128, %c0_129] : memref<472x128xbf16, #tpu.memory_space<vmem>>, vector<128x128xbf16>
    tpu.vector_store %arg14[%c128_128, %c0_129], %143 {strides = array<i32>} : memref<472x128xbf16, #tpu.memory_space<vmem>>, vector<128x128xbf16>,
    %cst_130 = arith.constant 0.000000e+00 : f32
    %145 = vector.broadcast %cst_130 : f32 to vector<128x128xf32>
    %c256_131 = arith.constant 256 : index
    %c0_132 = arith.constant 0 : index
    %146 = vector.load %arg13[%c256_131, %c0_132] : memref<472x128xbf16, #tpu.memory_space<vmem>>, vector<128x128xbf16>
    %c0_133 = arith.constant 0 : index
    %c0_134 = arith.constant 0 : index
    %c0_135 = arith.constant 0 : index
    %147 = vector.load %arg4[%c0_133, %c0_134, %c0_135] : memref<9x128x128xbf16, #tpu.memory_space<vmem>>, vector<1x128x128xbf16>
    %148 = vector.shape_cast %147 : vector<1x128x128xbf16> to vector<128x128xbf16>
    %cst_136 = arith.constant dense<0.000000e+00> : vector<128x128xf32>
    %149 = tpu.matmul %146, %148, %cst_136 {dimension_numbers = #tpu.dot_dimension_numbers<[1], [0], [0], [1], [0, 0, 1, 1], [], []>} : vector<128x128xbf16>, vector<128x128xbf16>, vector<128x128xf32> -> vector<128x128xf32>
    %150 = arith.addf %145, %149 : vector<128x128xf32>
    %c257 = arith.constant 257 : index
    %c0_137 = arith.constant 0 : index
    %151 = vector.load %arg13[%c257, %c0_137] : memref<472x128xbf16, #tpu.memory_space<vmem>>, vector<128x128xbf16>
    %c1_138 = arith.constant 1 : index
    %c0_139 = arith.constant 0 : index
    %c0_140 = arith.constant 0 : index
    %152 = vector.load %arg4[%c1_138, %c0_139, %c0_140] : memref<9x128x128xbf16, #tpu.memory_space<vmem>>, vector<1x128x128xbf16>
    %153 = vector.shape_cast %152 : vector<1x128x128xbf16> to vector<128x128xbf16>
    %cst_141 = arith.constant dense<0.000000e+00> : vector<128x128xf32>
    %154 = tpu.matmul %151, %153, %cst_141 {dimension_numbers = #tpu.dot_dimension_numbers<[1], [0], [0], [1], [0, 0, 1, 1], [], []>} : vector<128x128xbf16>, vector<128x128xbf16>, vector<128x128xf32> -> vector<128x128xf32>
    %155 = arith.addf %150, %154 : vector<128x128xf32>
    %c258 = arith.constant 258 : index
    %c0_142 = arith.constant 0 : index
    %156 = vector.load %arg13[%c258, %c0_142] : memref<472x128xbf16, #tpu.memory_space<vmem>>, vector<128x128xbf16>
    %c2_143 = arith.constant 2 : index
    %c0_144 = arith.constant 0 : index
    %c0_145 = arith.constant 0 : index
    %157 = vector.load %arg4[%c2_143, %c0_144, %c0_145] : memref<9x128x128xbf16, #tpu.memory_space<vmem>>, vector<1x128x128xbf16>
    %158 = vector.shape_cast %157 : vector<1x128x128xbf16> to vector<128x128xbf16>
    %cst_146 = arith.constant dense<0.000000e+00> : vector<128x128xf32>
    %159 = tpu.matmul %156, %158, %cst_146 {dimension_numbers = #tpu.dot_dimension_numbers<[1], [0], [0], [1], [0, 0, 1, 1], [], []>} : vector<128x128xbf16>, vector<128x128xbf16>, vector<128x128xf32> -> vector<128x128xf32>
    %160 = arith.addf %155, %159 : vector<128x128xf32>
    %c264 = arith.constant 264 : index
    %c0_147 = arith.constant 0 : index
    %161 = vector.load %arg13[%c264, %c0_147] : memref<472x128xbf16, #tpu.memory_space<vmem>>, vector<128x128xbf16>
    %c3_148 = arith.constant 3 : index
    %c0_149 = arith.constant 0 : index
    %c0_150 = arith.constant 0 : index
    %162 = vector.load %arg4[%c3_148, %c0_149, %c0_150] : memref<9x128x128xbf16, #tpu.memory_space<vmem>>, vector<1x128x128xbf16>
    %163 = vector.shape_cast %162 : vector<1x128x128xbf16> to vector<128x128xbf16>
    %cst_151 = arith.constant dense<0.000000e+00> : vector<128x128xf32>
    %164 = tpu.matmul %161, %163, %cst_151 {dimension_numbers = #tpu.dot_dimension_numbers<[1], [0], [0], [1], [0, 0, 1, 1], [], []>} : vector<128x128xbf16>, vector<128x128xbf16>, vector<128x128xf32> -> vector<128x128xf32>
    %165 = arith.addf %160, %164 : vector<128x128xf32>
    %c265 = arith.constant 265 : index
    %c0_152 = arith.constant 0 : index
    %166 = vector.load %arg13[%c265, %c0_152] : memref<472x128xbf16, #tpu.memory_space<vmem>>, vector<128x128xbf16>
    %c4_153 = arith.constant 4 : index
    %c0_154 = arith.constant 0 : index
    %c0_155 = arith.constant 0 : index
    %167 = vector.load %arg4[%c4_153, %c0_154, %c0_155] : memref<9x128x128xbf16, #tpu.memory_space<vmem>>, vector<1x128x128xbf16>
    %168 = vector.shape_cast %167 : vector<1x128x128xbf16> to vector<128x128xbf16>
    %cst_156 = arith.constant dense<0.000000e+00> : vector<128x128xf32>
    %169 = tpu.matmul %166, %168, %cst_156 {dimension_numbers = #tpu.dot_dimension_numbers<[1], [0], [0], [1], [0, 0, 1, 1], [], []>} : vector<128x128xbf16>, vector<128x128xbf16>, vector<128x128xf32> -> vector<128x128xf32>
    %170 = arith.addf %165, %169 : vector<128x128xf32>
    %c266 = arith.constant 266 : index
    %c0_157 = arith.constant 0 : index
    %171 = vector.load %arg13[%c266, %c0_157] : memref<472x128xbf16, #tpu.memory_space<vmem>>, vector<128x128xbf16>
    %c5_158 = arith.constant 5 : index
    %c0_159 = arith.constant 0 : index
    %c0_160 = arith.constant 0 : index
    %172 = vector.load %arg4[%c5_158, %c0_159, %c0_160] : memref<9x128x128xbf16, #tpu.memory_space<vmem>>, vector<1x128x128xbf16>
    %173 = vector.shape_cast %172 : vector<1x128x128xbf16> to vector<128x128xbf16>
    %cst_161 = arith.constant dense<0.000000e+00> : vector<128x128xf32>
    %174 = tpu.matmul %171, %173, %cst_161 {dimension_numbers = #tpu.dot_dimension_numbers<[1], [0], [0], [1], [0, 0, 1, 1], [], []>} : vector<128x128xbf16>, vector<128x128xbf16>, vector<128x128xf32> -> vector<128x128xf32>
    %175 = arith.addf %170, %174 : vector<128x128xf32>
    %c272 = arith.constant 272 : index
    %c0_162 = arith.constant 0 : index
    %176 = vector.load %arg13[%c272, %c0_162] : memref<472x128xbf16, #tpu.memory_space<vmem>>, vector<128x128xbf16>
    %c6_163 = arith.constant 6 : index
    %c0_164 = arith.constant 0 : index
    %c0_165 = arith.constant 0 : index
    %177 = vector.load %arg4[%c6_163, %c0_164, %c0_165] : memref<9x128x128xbf16, #tpu.memory_space<vmem>>, vector<1x128x128xbf16>
    %178 = vector.shape_cast %177 : vector<1x128x128xbf16> to vector<128x128xbf16>
    %cst_166 = arith.constant dense<0.000000e+00> : vector<128x128xf32>
    %179 = tpu.matmul %176, %178, %cst_166 {dimension_numbers = #tpu.dot_dimension_numbers<[1], [0], [0], [1], [0, 0, 1, 1], [], []>} : vector<128x128xbf16>, vector<128x128xbf16>, vector<128x128xf32> -> vector<128x128xf32>
    %180 = arith.addf %175, %179 : vector<128x128xf32>
    %c273 = arith.constant 273 : index
    %c0_167 = arith.constant 0 : index
    %181 = vector.load %arg13[%c273, %c0_167] : memref<472x128xbf16, #tpu.memory_space<vmem>>, vector<128x128xbf16>
    %c7_168 = arith.constant 7 : index
    %c0_169 = arith.constant 0 : index
    %c0_170 = arith.constant 0 : index
    %182 = vector.load %arg4[%c7_168, %c0_169, %c0_170] : memref<9x128x128xbf16, #tpu.memory_space<vmem>>, vector<1x128x128xbf16>
    %183 = vector.shape_cast %182 : vector<1x128x128xbf16> to vector<128x128xbf16>
    %cst_171 = arith.constant dense<0.000000e+00> : vector<128x128xf32>
    %184 = tpu.matmul %181, %183, %cst_171 {dimension_numbers = #tpu.dot_dimension_numbers<[1], [0], [0], [1], [0, 0, 1, 1], [], []>} : vector<128x128xbf16>, vector<128x128xbf16>, vector<128x128xf32> -> vector<128x128xf32>
    %185 = arith.addf %180, %184 : vector<128x128xf32>
    %c274 = arith.constant 274 : index
    %c0_172 = arith.constant 0 : index
    %186 = vector.load %arg13[%c274, %c0_172] : memref<472x128xbf16, #tpu.memory_space<vmem>>, vector<128x128xbf16>
    %c8_173 = arith.constant 8 : index
    %c0_174 = arith.constant 0 : index
    %c0_175 = arith.constant 0 : index
    %187 = vector.load %arg4[%c8_173, %c0_174, %c0_175] : memref<9x128x128xbf16, #tpu.memory_space<vmem>>, vector<1x128x128xbf16>
    %188 = vector.shape_cast %187 : vector<1x128x128xbf16> to vector<128x128xbf16>
    %cst_176 = arith.constant dense<0.000000e+00> : vector<128x128xf32>
    %189 = tpu.matmul %186, %188, %cst_176 {dimension_numbers = #tpu.dot_dimension_numbers<[1], [0], [0], [1], [0, 0, 1, 1], [], []>} : vector<128x128xbf16>, vector<128x128xbf16>, vector<128x128xf32> -> vector<128x128xf32>
    %190 = arith.addf %185, %189 : vector<128x128xf32>
    %191 = vector.broadcast %40 : vector<1x128xf32> to vector<128x128xf32>
    %192 = arith.addf %190, %191 : vector<128x128xf32>
    %cst_177 = arith.constant 0.000000e+00 : f32
    %193 = vector.broadcast %cst_177 : f32 to vector<128x128xf32>
    %194 = arith.maximumf %192, %193 : vector<128x128xf32>
    %195 = arith.truncf %194 : vector<128x128xf32> to vector<128x128xbf16>
    %c256_178 = arith.constant 256 : index
    %c0_179 = arith.constant 0 : index
    %196 = vector.load %arg14[%c256_178, %c0_179] : memref<472x128xbf16, #tpu.memory_space<vmem>>, vector<128x128xbf16>
    tpu.vector_store %arg14[%c256_178, %c0_179], %195 {strides = array<i32>} : memref<472x128xbf16, #tpu.memory_space<vmem>>, vector<128x128xbf16>,
    %cst_180 = arith.constant 0.000000e+00 : f32
    %197 = vector.broadcast %cst_180 : f32 to vector<64x128xf32>
    %c384_181 = arith.constant 384 : index
    %c0_182 = arith.constant 0 : index
    %198 = vector.load %arg13[%c384_181, %c0_182] : memref<472x128xbf16, #tpu.memory_space<vmem>>, vector<64x128xbf16>
    %c0_183 = arith.constant 0 : index
    %c0_184 = arith.constant 0 : index
    %c0_185 = arith.constant 0 : index
    %199 = vector.load %arg4[%c0_183, %c0_184, %c0_185] : memref<9x128x128xbf16, #tpu.memory_space<vmem>>, vector<1x128x128xbf16>
    %200 = vector.shape_cast %199 : vector<1x128x128xbf16> to vector<128x128xbf16>
    %cst_186 = arith.constant dense<0.000000e+00> : vector<64x128xf32>
    %201 = tpu.matmul %198, %200, %cst_186 {dimension_numbers = #tpu.dot_dimension_numbers<[1], [0], [0], [1], [0, 0, 1, 1], [], []>} : vector<64x128xbf16>, vector<128x128xbf16>, vector<64x128xf32> -> vector<64x128xf32>
    %202 = arith.addf %197, %201 : vector<64x128xf32>
    %c385 = arith.constant 385 : index
    %c0_187 = arith.constant 0 : index
    %203 = vector.load %arg13[%c385, %c0_187] : memref<472x128xbf16, #tpu.memory_space<vmem>>, vector<64x128xbf16>
    %c1_188 = arith.constant 1 : index
    %c0_189 = arith.constant 0 : index
    %c0_190 = arith.constant 0 : index
    %204 = vector.load %arg4[%c1_188, %c0_189, %c0_190] : memref<9x128x128xbf16, #tpu.memory_space<vmem>>, vector<1x128x128xbf16>
    %205 = vector.shape_cast %204 : vector<1x128x128xbf16> to vector<128x128xbf16>
    %cst_191 = arith.constant dense<0.000000e+00> : vector<64x128xf32>
    %206 = tpu.matmul %203, %205, %cst_191 {dimension_numbers = #tpu.dot_dimension_numbers<[1], [0], [0], [1], [0, 0, 1, 1], [], []>} : vector<64x128xbf16>, vector<128x128xbf16>, vector<64x128xf32> -> vector<64x128xf32>
    %207 = arith.addf %202, %206 : vector<64x128xf32>
    %c386 = arith.constant 386 : index
    %c0_192 = arith.constant 0 : index
    %208 = vector.load %arg13[%c386, %c0_192] : memref<472x128xbf16, #tpu.memory_space<vmem>>, vector<64x128xbf16>
    %c2_193 = arith.constant 2 : index
    %c0_194 = arith.constant 0 : index
    %c0_195 = arith.constant 0 : index
    %209 = vector.load %arg4[%c2_193, %c0_194, %c0_195] : memref<9x128x128xbf16, #tpu.memory_space<vmem>>, vector<1x128x128xbf16>
    %210 = vector.shape_cast %209 : vector<1x128x128xbf16> to vector<128x128xbf16>
    %cst_196 = arith.constant dense<0.000000e+00> : vector<64x128xf32>
    %211 = tpu.matmul %208, %210, %cst_196 {dimension_numbers = #tpu.dot_dimension_numbers<[1], [0], [0], [1], [0, 0, 1, 1], [], []>} : vector<64x128xbf16>, vector<128x128xbf16>, vector<64x128xf32> -> vector<64x128xf32>
    %212 = arith.addf %207, %211 : vector<64x128xf32>
    %c392 = arith.constant 392 : index
    %c0_197 = arith.constant 0 : index
    %213 = vector.load %arg13[%c392, %c0_197] : memref<472x128xbf16, #tpu.memory_space<vmem>>, vector<64x128xbf16>
    %c3_198 = arith.constant 3 : index
    %c0_199 = arith.constant 0 : index
    %c0_200 = arith.constant 0 : index
    %214 = vector.load %arg4[%c3_198, %c0_199, %c0_200] : memref<9x128x128xbf16, #tpu.memory_space<vmem>>, vector<1x128x128xbf16>
    %215 = vector.shape_cast %214 : vector<1x128x128xbf16> to vector<128x128xbf16>
    %cst_201 = arith.constant dense<0.000000e+00> : vector<64x128xf32>
    %216 = tpu.matmul %213, %215, %cst_201 {dimension_numbers = #tpu.dot_dimension_numbers<[1], [0], [0], [1], [0, 0, 1, 1], [], []>} : vector<64x128xbf16>, vector<128x128xbf16>, vector<64x128xf32> -> vector<64x128xf32>
    %217 = arith.addf %212, %216 : vector<64x128xf32>
    %c393 = arith.constant 393 : index
    %c0_202 = arith.constant 0 : index
    %218 = vector.load %arg13[%c393, %c0_202] : memref<472x128xbf16, #tpu.memory_space<vmem>>, vector<64x128xbf16>
    %c4_203 = arith.constant 4 : index
    %c0_204 = arith.constant 0 : index
    %c0_205 = arith.constant 0 : index
    %219 = vector.load %arg4[%c4_203, %c0_204, %c0_205] : memref<9x128x128xbf16, #tpu.memory_space<vmem>>, vector<1x128x128xbf16>
    %220 = vector.shape_cast %219 : vector<1x128x128xbf16> to vector<128x128xbf16>
    %cst_206 = arith.constant dense<0.000000e+00> : vector<64x128xf32>
    %221 = tpu.matmul %218, %220, %cst_206 {dimension_numbers = #tpu.dot_dimension_numbers<[1], [0], [0], [1], [0, 0, 1, 1], [], []>} : vector<64x128xbf16>, vector<128x128xbf16>, vector<64x128xf32> -> vector<64x128xf32>
    %222 = arith.addf %217, %221 : vector<64x128xf32>
    %c394 = arith.constant 394 : index
    %c0_207 = arith.constant 0 : index
    %223 = vector.load %arg13[%c394, %c0_207] : memref<472x128xbf16, #tpu.memory_space<vmem>>, vector<64x128xbf16>
    %c5_208 = arith.constant 5 : index
    %c0_209 = arith.constant 0 : index
    %c0_210 = arith.constant 0 : index
    %224 = vector.load %arg4[%c5_208, %c0_209, %c0_210] : memref<9x128x128xbf16, #tpu.memory_space<vmem>>, vector<1x128x128xbf16>
    %225 = vector.shape_cast %224 : vector<1x128x128xbf16> to vector<128x128xbf16>
    %cst_211 = arith.constant dense<0.000000e+00> : vector<64x128xf32>
    %226 = tpu.matmul %223, %225, %cst_211 {dimension_numbers = #tpu.dot_dimension_numbers<[1], [0], [0], [1], [0, 0, 1, 1], [], []>} : vector<64x128xbf16>, vector<128x128xbf16>, vector<64x128xf32> -> vector<64x128xf32>
    %227 = arith.addf %222, %226 : vector<64x128xf32>
    %c400 = arith.constant 400 : index
    %c0_212 = arith.constant 0 : index
    %228 = vector.load %arg13[%c400, %c0_212] : memref<472x128xbf16, #tpu.memory_space<vmem>>, vector<64x128xbf16>
    %c6_213 = arith.constant 6 : index
    %c0_214 = arith.constant 0 : index
    %c0_215 = arith.constant 0 : index
    %229 = vector.load %arg4[%c6_213, %c0_214, %c0_215] : memref<9x128x128xbf16, #tpu.memory_space<vmem>>, vector<1x128x128xbf16>
    %230 = vector.shape_cast %229 : vector<1x128x128xbf16> to vector<128x128xbf16>
    %cst_216 = arith.constant dense<0.000000e+00> : vector<64x128xf32>
    %231 = tpu.matmul %228, %230, %cst_216 {dimension_numbers = #tpu.dot_dimension_numbers<[1], [0], [0], [1], [0, 0, 1, 1], [], []>} : vector<64x128xbf16>, vector<128x128xbf16>, vector<64x128xf32> -> vector<64x128xf32>
    %232 = arith.addf %227, %231 : vector<64x128xf32>
    %c401 = arith.constant 401 : index
    %c0_217 = arith.constant 0 : index
    %233 = vector.load %arg13[%c401, %c0_217] : memref<472x128xbf16, #tpu.memory_space<vmem>>, vector<64x128xbf16>
    %c7_218 = arith.constant 7 : index
    %c0_219 = arith.constant 0 : index
    %c0_220 = arith.constant 0 : index
    %234 = vector.load %arg4[%c7_218, %c0_219, %c0_220] : memref<9x128x128xbf16, #tpu.memory_space<vmem>>, vector<1x128x128xbf16>
    %235 = vector.shape_cast %234 : vector<1x128x128xbf16> to vector<128x128xbf16>
    %cst_221 = arith.constant dense<0.000000e+00> : vector<64x128xf32>
    %236 = tpu.matmul %233, %235, %cst_221 {dimension_numbers = #tpu.dot_dimension_numbers<[1], [0], [0], [1], [0, 0, 1, 1], [], []>} : vector<64x128xbf16>, vector<128x128xbf16>, vector<64x128xf32> -> vector<64x128xf32>
    %237 = arith.addf %232, %236 : vector<64x128xf32>
    %c402 = arith.constant 402 : index
    %c0_222 = arith.constant 0 : index
    %238 = vector.load %arg13[%c402, %c0_222] : memref<472x128xbf16, #tpu.memory_space<vmem>>, vector<64x128xbf16>
    %c8_223 = arith.constant 8 : index
    %c0_224 = arith.constant 0 : index
    %c0_225 = arith.constant 0 : index
    %239 = vector.load %arg4[%c8_223, %c0_224, %c0_225] : memref<9x128x128xbf16, #tpu.memory_space<vmem>>, vector<1x128x128xbf16>
    %240 = vector.shape_cast %239 : vector<1x128x128xbf16> to vector<128x128xbf16>
    %cst_226 = arith.constant dense<0.000000e+00> : vector<64x128xf32>
    %241 = tpu.matmul %238, %240, %cst_226 {dimension_numbers = #tpu.dot_dimension_numbers<[1], [0], [0], [1], [0, 0, 1, 1], [], []>} : vector<64x128xbf16>, vector<128x128xbf16>, vector<64x128xf32> -> vector<64x128xf32>
    %242 = arith.addf %237, %241 : vector<64x128xf32>
    %243 = vector.broadcast %40 : vector<1x128xf32> to vector<64x128xf32>
    %244 = arith.addf %242, %243 : vector<64x128xf32>
    %cst_227 = arith.constant 0.000000e+00 : f32
    %245 = vector.broadcast %cst_227 : f32 to vector<64x128xf32>
    %246 = arith.maximumf %244, %245 : vector<64x128xf32>
    %247 = arith.truncf %246 : vector<64x128xf32> to vector<64x128xbf16>
    %c384_228 = arith.constant 384 : index
    %c0_229 = arith.constant 0 : index
    %248 = vector.load %arg14[%c384_228, %c0_229] : memref<472x128xbf16, #tpu.memory_space<vmem>>, vector<64x128xbf16>
    tpu.vector_store %arg14[%c384_228, %c0_229], %247 {strides = array<i32>} : memref<472x128xbf16, #tpu.memory_space<vmem>>, vector<64x128xbf16>,
    %c0_230 = arith.constant 0 : index
    %c0_231 = arith.constant 0 : index
    %249 = vector.load %arg7[%c0_230, %c0_231] : memref<1x128xf32, #tpu.memory_space<vmem>>, vector<1x128xf32>
    %cst_232 = arith.constant 0.000000e+00 : f32
    %250 = vector.broadcast %cst_232 : f32 to vector<128x128xf32>
    %c0_233 = arith.constant 0 : index
    %c0_234 = arith.constant 0 : index
    %251 = vector.load %arg14[%c0_233, %c0_234] : memref<472x128xbf16, #tpu.memory_space<vmem>>, vector<128x128xbf16>
    %c0_235 = arith.constant 0 : index
    %c0_236 = arith.constant 0 : index
    %c0_237 = arith.constant 0 : index
    %252 = vector.load %arg6[%c0_235, %c0_236, %c0_237] : memref<9x128x128xbf16, #tpu.memory_space<vmem>>, vector<1x128x128xbf16>
    %253 = vector.shape_cast %252 : vector<1x128x128xbf16> to vector<128x128xbf16>
    %cst_238 = arith.constant dense<0.000000e+00> : vector<128x128xf32>
    %254 = tpu.matmul %251, %253, %cst_238 {dimension_numbers = #tpu.dot_dimension_numbers<[1], [0], [0], [1], [0, 0, 1, 1], [], []>} : vector<128x128xbf16>, vector<128x128xbf16>, vector<128x128xf32> -> vector<128x128xf32>
    %255 = arith.addf %250, %254 : vector<128x128xf32>
    %c1_239 = arith.constant 1 : index
    %c0_240 = arith.constant 0 : index
    %256 = vector.load %arg14[%c1_239, %c0_240] : memref<472x128xbf16, #tpu.memory_space<vmem>>, vector<128x128xbf16>
    %c1_241 = arith.constant 1 : index
    %c0_242 = arith.constant 0 : index
    %c0_243 = arith.constant 0 : index
    %257 = vector.load %arg6[%c1_241, %c0_242, %c0_243] : memref<9x128x128xbf16, #tpu.memory_space<vmem>>, vector<1x128x128xbf16>
    %258 = vector.shape_cast %257 : vector<1x128x128xbf16> to vector<128x128xbf16>
    %cst_244 = arith.constant dense<0.000000e+00> : vector<128x128xf32>
    %259 = tpu.matmul %256, %258, %cst_244 {dimension_numbers = #tpu.dot_dimension_numbers<[1], [0], [0], [1], [0, 0, 1, 1], [], []>} : vector<128x128xbf16>, vector<128x128xbf16>, vector<128x128xf32> -> vector<128x128xf32>
    %260 = arith.addf %255, %259 : vector<128x128xf32>
    %c2_245 = arith.constant 2 : index
    %c0_246 = arith.constant 0 : index
    %261 = vector.load %arg14[%c2_245, %c0_246] : memref<472x128xbf16, #tpu.memory_space<vmem>>, vector<128x128xbf16>
    %c2_247 = arith.constant 2 : index
    %c0_248 = arith.constant 0 : index
    %c0_249 = arith.constant 0 : index
    %262 = vector.load %arg6[%c2_247, %c0_248, %c0_249] : memref<9x128x128xbf16, #tpu.memory_space<vmem>>, vector<1x128x128xbf16>
    %263 = vector.shape_cast %262 : vector<1x128x128xbf16> to vector<128x128xbf16>
    %cst_250 = arith.constant dense<0.000000e+00> : vector<128x128xf32>
    %264 = tpu.matmul %261, %263, %cst_250 {dimension_numbers = #tpu.dot_dimension_numbers<[1], [0], [0], [1], [0, 0, 1, 1], [], []>} : vector<128x128xbf16>, vector<128x128xbf16>, vector<128x128xf32> -> vector<128x128xf32>
    %265 = arith.addf %260, %264 : vector<128x128xf32>
    %c8_251 = arith.constant 8 : index
    %c0_252 = arith.constant 0 : index
    %266 = vector.load %arg14[%c8_251, %c0_252] : memref<472x128xbf16, #tpu.memory_space<vmem>>, vector<128x128xbf16>
    %c3_253 = arith.constant 3 : index
    %c0_254 = arith.constant 0 : index
    %c0_255 = arith.constant 0 : index
    %267 = vector.load %arg6[%c3_253, %c0_254, %c0_255] : memref<9x128x128xbf16, #tpu.memory_space<vmem>>, vector<1x128x128xbf16>
    %268 = vector.shape_cast %267 : vector<1x128x128xbf16> to vector<128x128xbf16>
    %cst_256 = arith.constant dense<0.000000e+00> : vector<128x128xf32>
    %269 = tpu.matmul %266, %268, %cst_256 {dimension_numbers = #tpu.dot_dimension_numbers<[1], [0], [0], [1], [0, 0, 1, 1], [], []>} : vector<128x128xbf16>, vector<128x128xbf16>, vector<128x128xf32> -> vector<128x128xf32>
    %270 = arith.addf %265, %269 : vector<128x128xf32>
    %c9_257 = arith.constant 9 : index
    %c0_258 = arith.constant 0 : index
    %271 = vector.load %arg14[%c9_257, %c0_258] : memref<472x128xbf16, #tpu.memory_space<vmem>>, vector<128x128xbf16>
    %c4_259 = arith.constant 4 : index
    %c0_260 = arith.constant 0 : index
    %c0_261 = arith.constant 0 : index
    %272 = vector.load %arg6[%c4_259, %c0_260, %c0_261] : memref<9x128x128xbf16, #tpu.memory_space<vmem>>, vector<1x128x128xbf16>
    %273 = vector.shape_cast %272 : vector<1x128x128xbf16> to vector<128x128xbf16>
    %cst_262 = arith.constant dense<0.000000e+00> : vector<128x128xf32>
    %274 = tpu.matmul %271, %273, %cst_262 {dimension_numbers = #tpu.dot_dimension_numbers<[1], [0], [0], [1], [0, 0, 1, 1], [], []>} : vector<128x128xbf16>, vector<128x128xbf16>, vector<128x128xf32> -> vector<128x128xf32>
    %275 = arith.addf %270, %274 : vector<128x128xf32>
    %c10_263 = arith.constant 10 : index
    %c0_264 = arith.constant 0 : index
    %276 = vector.load %arg14[%c10_263, %c0_264] : memref<472x128xbf16, #tpu.memory_space<vmem>>, vector<128x128xbf16>
    %c5_265 = arith.constant 5 : index
    %c0_266 = arith.constant 0 : index
    %c0_267 = arith.constant 0 : index
    %277 = vector.load %arg6[%c5_265, %c0_266, %c0_267] : memref<9x128x128xbf16, #tpu.memory_space<vmem>>, vector<1x128x128xbf16>
    %278 = vector.shape_cast %277 : vector<1x128x128xbf16> to vector<128x128xbf16>
    %cst_268 = arith.constant dense<0.000000e+00> : vector<128x128xf32>
    %279 = tpu.matmul %276, %278, %cst_268 {dimension_numbers = #tpu.dot_dimension_numbers<[1], [0], [0], [1], [0, 0, 1, 1], [], []>} : vector<128x128xbf16>, vector<128x128xbf16>, vector<128x128xf32> -> vector<128x128xf32>
    %280 = arith.addf %275, %279 : vector<128x128xf32>
    %c16_269 = arith.constant 16 : index
    %c0_270 = arith.constant 0 : index
    %281 = vector.load %arg14[%c16_269, %c0_270] : memref<472x128xbf16, #tpu.memory_space<vmem>>, vector<128x128xbf16>
    %c6_271 = arith.constant 6 : index
    %c0_272 = arith.constant 0 : index
    %c0_273 = arith.constant 0 : index
    %282 = vector.load %arg6[%c6_271, %c0_272, %c0_273] : memref<9x128x128xbf16, #tpu.memory_space<vmem>>, vector<1x128x128xbf16>
    %283 = vector.shape_cast %282 : vector<1x128x128xbf16> to vector<128x128xbf16>
    %cst_274 = arith.constant dense<0.000000e+00> : vector<128x128xf32>
    %284 = tpu.matmul %281, %283, %cst_274 {dimension_numbers = #tpu.dot_dimension_numbers<[1], [0], [0], [1], [0, 0, 1, 1], [], []>} : vector<128x128xbf16>, vector<128x128xbf16>, vector<128x128xf32> -> vector<128x128xf32>
    %285 = arith.addf %280, %284 : vector<128x128xf32>
    %c17_275 = arith.constant 17 : index
    %c0_276 = arith.constant 0 : index
    %286 = vector.load %arg14[%c17_275, %c0_276] : memref<472x128xbf16, #tpu.memory_space<vmem>>, vector<128x128xbf16>
    %c7_277 = arith.constant 7 : index
    %c0_278 = arith.constant 0 : index
    %c0_279 = arith.constant 0 : index
    %287 = vector.load %arg6[%c7_277, %c0_278, %c0_279] : memref<9x128x128xbf16, #tpu.memory_space<vmem>>, vector<1x128x128xbf16>
    %288 = vector.shape_cast %287 : vector<1x128x128xbf16> to vector<128x128xbf16>
    %cst_280 = arith.constant dense<0.000000e+00> : vector<128x128xf32>
    %289 = tpu.matmul %286, %288, %cst_280 {dimension_numbers = #tpu.dot_dimension_numbers<[1], [0], [0], [1], [0, 0, 1, 1], [], []>} : vector<128x128xbf16>, vector<128x128xbf16>, vector<128x128xf32> -> vector<128x128xf32>
    %290 = arith.addf %285, %289 : vector<128x128xf32>
    %c18_281 = arith.constant 18 : index
    %c0_282 = arith.constant 0 : index
    %291 = vector.load %arg14[%c18_281, %c0_282] : memref<472x128xbf16, #tpu.memory_space<vmem>>, vector<128x128xbf16>
    %c8_283 = arith.constant 8 : index
    %c0_284 = arith.constant 0 : index
    %c0_285 = arith.constant 0 : index
    %292 = vector.load %arg6[%c8_283, %c0_284, %c0_285] : memref<9x128x128xbf16, #tpu.memory_space<vmem>>, vector<1x128x128xbf16>
    %293 = vector.shape_cast %292 : vector<1x128x128xbf16> to vector<128x128xbf16>
    %cst_286 = arith.constant dense<0.000000e+00> : vector<128x128xf32>
    %294 = tpu.matmul %291, %293, %cst_286 {dimension_numbers = #tpu.dot_dimension_numbers<[1], [0], [0], [1], [0, 0, 1, 1], [], []>} : vector<128x128xbf16>, vector<128x128xbf16>, vector<128x128xf32> -> vector<128x128xf32>
    %295 = arith.addf %290, %294 : vector<128x128xf32>
    %296 = vector.broadcast %249 : vector<1x128xf32> to vector<128x128xf32>
    %297 = arith.addf %295, %296 : vector<128x128xf32>
    %cst_287 = arith.constant 0.000000e+00 : f32
    %298 = vector.broadcast %cst_287 : f32 to vector<128x128xf32>
    %299 = arith.maximumf %297, %298 : vector<128x128xf32>
    %c0_288 = arith.constant 0 : index
    %c0_289 = arith.constant 0 : index
    %300 = vector.load %arg15[%c0_288, %c0_289] : memref<448x128xf32, #tpu.memory_space<vmem>>, vector<128x128xf32>
    tpu.vector_store %arg15[%c0_288, %c0_289], %299 {strides = array<i32>} : memref<448x128xf32, #tpu.memory_space<vmem>>, vector<128x128xf32>,
    %cst_290 = arith.constant 0.000000e+00 : f32
    %301 = vector.broadcast %cst_290 : f32 to vector<128x128xf32>
    %c128_291 = arith.constant 128 : index
    %c0_292 = arith.constant 0 : index
    %302 = vector.load %arg14[%c128_291, %c0_292] : memref<472x128xbf16, #tpu.memory_space<vmem>>, vector<128x128xbf16>
    %c0_293 = arith.constant 0 : index
    %c0_294 = arith.constant 0 : index
    %c0_295 = arith.constant 0 : index
    %303 = vector.load %arg6[%c0_293, %c0_294, %c0_295] : memref<9x128x128xbf16, #tpu.memory_space<vmem>>, vector<1x128x128xbf16>
    %304 = vector.shape_cast %303 : vector<1x128x128xbf16> to vector<128x128xbf16>
    %cst_296 = arith.constant dense<0.000000e+00> : vector<128x128xf32>
    %305 = tpu.matmul %302, %304, %cst_296 {dimension_numbers = #tpu.dot_dimension_numbers<[1], [0], [0], [1], [0, 0, 1, 1], [], []>} : vector<128x128xbf16>, vector<128x128xbf16>, vector<128x128xf32> -> vector<128x128xf32>
    %306 = arith.addf %301, %305 : vector<128x128xf32>
    %c129_297 = arith.constant 129 : index
    %c0_298 = arith.constant 0 : index
    %307 = vector.load %arg14[%c129_297, %c0_298] : memref<472x128xbf16, #tpu.memory_space<vmem>>, vector<128x128xbf16>
    %c1_299 = arith.constant 1 : index
    %c0_300 = arith.constant 0 : index
    %c0_301 = arith.constant 0 : index
    %308 = vector.load %arg6[%c1_299, %c0_300, %c0_301] : memref<9x128x128xbf16, #tpu.memory_space<vmem>>, vector<1x128x128xbf16>
    %309 = vector.shape_cast %308 : vector<1x128x128xbf16> to vector<128x128xbf16>
    %cst_302 = arith.constant dense<0.000000e+00> : vector<128x128xf32>
    %310 = tpu.matmul %307, %309, %cst_302 {dimension_numbers = #tpu.dot_dimension_numbers<[1], [0], [0], [1], [0, 0, 1, 1], [], []>} : vector<128x128xbf16>, vector<128x128xbf16>, vector<128x128xf32> -> vector<128x128xf32>
    %311 = arith.addf %306, %310 : vector<128x128xf32>
    %c130_303 = arith.constant 130 : index
    %c0_304 = arith.constant 0 : index
    %312 = vector.load %arg14[%c130_303, %c0_304] : memref<472x128xbf16, #tpu.memory_space<vmem>>, vector<128x128xbf16>
    %c2_305 = arith.constant 2 : index
    %c0_306 = arith.constant 0 : index
    %c0_307 = arith.constant 0 : index
    %313 = vector.load %arg6[%c2_305, %c0_306, %c0_307] : memref<9x128x128xbf16, #tpu.memory_space<vmem>>, vector<1x128x128xbf16>
    %314 = vector.shape_cast %313 : vector<1x128x128xbf16> to vector<128x128xbf16>
    %cst_308 = arith.constant dense<0.000000e+00> : vector<128x128xf32>
    %315 = tpu.matmul %312, %314, %cst_308 {dimension_numbers = #tpu.dot_dimension_numbers<[1], [0], [0], [1], [0, 0, 1, 1], [], []>} : vector<128x128xbf16>, vector<128x128xbf16>, vector<128x128xf32> -> vector<128x128xf32>
    %316 = arith.addf %311, %315 : vector<128x128xf32>
    %c136_309 = arith.constant 136 : index
    %c0_310 = arith.constant 0 : index
    %317 = vector.load %arg14[%c136_309, %c0_310] : memref<472x128xbf16, #tpu.memory_space<vmem>>, vector<128x128xbf16>
    %c3_311 = arith.constant 3 : index
    %c0_312 = arith.constant 0 : index
    %c0_313 = arith.constant 0 : index
    %318 = vector.load %arg6[%c3_311, %c0_312, %c0_313] : memref<9x128x128xbf16, #tpu.memory_space<vmem>>, vector<1x128x128xbf16>
    %319 = vector.shape_cast %318 : vector<1x128x128xbf16> to vector<128x128xbf16>
    %cst_314 = arith.constant dense<0.000000e+00> : vector<128x128xf32>
    %320 = tpu.matmul %317, %319, %cst_314 {dimension_numbers = #tpu.dot_dimension_numbers<[1], [0], [0], [1], [0, 0, 1, 1], [], []>} : vector<128x128xbf16>, vector<128x128xbf16>, vector<128x128xf32> -> vector<128x128xf32>
    %321 = arith.addf %316, %320 : vector<128x128xf32>
    %c137_315 = arith.constant 137 : index
    %c0_316 = arith.constant 0 : index
    %322 = vector.load %arg14[%c137_315, %c0_316] : memref<472x128xbf16, #tpu.memory_space<vmem>>, vector<128x128xbf16>
    %c4_317 = arith.constant 4 : index
    %c0_318 = arith.constant 0 : index
    %c0_319 = arith.constant 0 : index
    %323 = vector.load %arg6[%c4_317, %c0_318, %c0_319] : memref<9x128x128xbf16, #tpu.memory_space<vmem>>, vector<1x128x128xbf16>
    %324 = vector.shape_cast %323 : vector<1x128x128xbf16> to vector<128x128xbf16>
    %cst_320 = arith.constant dense<0.000000e+00> : vector<128x128xf32>
    %325 = tpu.matmul %322, %324, %cst_320 {dimension_numbers = #tpu.dot_dimension_numbers<[1], [0], [0], [1], [0, 0, 1, 1], [], []>} : vector<128x128xbf16>, vector<128x128xbf16>, vector<128x128xf32> -> vector<128x128xf32>
    %326 = arith.addf %321, %325 : vector<128x128xf32>
    %c138_321 = arith.constant 138 : index
    %c0_322 = arith.constant 0 : index
    %327 = vector.load %arg14[%c138_321, %c0_322] : memref<472x128xbf16, #tpu.memory_space<vmem>>, vector<128x128xbf16>
    %c5_323 = arith.constant 5 : index
    %c0_324 = arith.constant 0 : index
    %c0_325 = arith.constant 0 : index
    %328 = vector.load %arg6[%c5_323, %c0_324, %c0_325] : memref<9x128x128xbf16, #tpu.memory_space<vmem>>, vector<1x128x128xbf16>
    %329 = vector.shape_cast %328 : vector<1x128x128xbf16> to vector<128x128xbf16>
    %cst_326 = arith.constant dense<0.000000e+00> : vector<128x128xf32>
    %330 = tpu.matmul %327, %329, %cst_326 {dimension_numbers = #tpu.dot_dimension_numbers<[1], [0], [0], [1], [0, 0, 1, 1], [], []>} : vector<128x128xbf16>, vector<128x128xbf16>, vector<128x128xf32> -> vector<128x128xf32>
    %331 = arith.addf %326, %330 : vector<128x128xf32>
    %c144_327 = arith.constant 144 : index
    %c0_328 = arith.constant 0 : index
    %332 = vector.load %arg14[%c144_327, %c0_328] : memref<472x128xbf16, #tpu.memory_space<vmem>>, vector<128x128xbf16>
    %c6_329 = arith.constant 6 : index
    %c0_330 = arith.constant 0 : index
    %c0_331 = arith.constant 0 : index
    %333 = vector.load %arg6[%c6_329, %c0_330, %c0_331] : memref<9x128x128xbf16, #tpu.memory_space<vmem>>, vector<1x128x128xbf16>
    %334 = vector.shape_cast %333 : vector<1x128x128xbf16> to vector<128x128xbf16>
    %cst_332 = arith.constant dense<0.000000e+00> : vector<128x128xf32>
    %335 = tpu.matmul %332, %334, %cst_332 {dimension_numbers = #tpu.dot_dimension_numbers<[1], [0], [0], [1], [0, 0, 1, 1], [], []>} : vector<128x128xbf16>, vector<128x128xbf16>, vector<128x128xf32> -> vector<128x128xf32>
    %336 = arith.addf %331, %335 : vector<128x128xf32>
    %c145_333 = arith.constant 145 : index
    %c0_334 = arith.constant 0 : index
    %337 = vector.load %arg14[%c145_333, %c0_334] : memref<472x128xbf16, #tpu.memory_space<vmem>>, vector<128x128xbf16>
    %c7_335 = arith.constant 7 : index
    %c0_336 = arith.constant 0 : index
    %c0_337 = arith.constant 0 : index
    %338 = vector.load %arg6[%c7_335, %c0_336, %c0_337] : memref<9x128x128xbf16, #tpu.memory_space<vmem>>, vector<1x128x128xbf16>
    %339 = vector.shape_cast %338 : vector<1x128x128xbf16> to vector<128x128xbf16>
    %cst_338 = arith.constant dense<0.000000e+00> : vector<128x128xf32>
    %340 = tpu.matmul %337, %339, %cst_338 {dimension_numbers = #tpu.dot_dimension_numbers<[1], [0], [0], [1], [0, 0, 1, 1], [], []>} : vector<128x128xbf16>, vector<128x128xbf16>, vector<128x128xf32> -> vector<128x128xf32>
    %341 = arith.addf %336, %340 : vector<128x128xf32>
    %c146_339 = arith.constant 146 : index
    %c0_340 = arith.constant 0 : index
    %342 = vector.load %arg14[%c146_339, %c0_340] : memref<472x128xbf16, #tpu.memory_space<vmem>>, vector<128x128xbf16>
    %c8_341 = arith.constant 8 : index
    %c0_342 = arith.constant 0 : index
    %c0_343 = arith.constant 0 : index
    %343 = vector.load %arg6[%c8_341, %c0_342, %c0_343] : memref<9x128x128xbf16, #tpu.memory_space<vmem>>, vector<1x128x128xbf16>
    %344 = vector.shape_cast %343 : vector<1x128x128xbf16> to vector<128x128xbf16>
    %cst_344 = arith.constant dense<0.000000e+00> : vector<128x128xf32>
    %345 = tpu.matmul %342, %344, %cst_344 {dimension_numbers = #tpu.dot_dimension_numbers<[1], [0], [0], [1], [0, 0, 1, 1], [], []>} : vector<128x128xbf16>, vector<128x128xbf16>, vector<128x128xf32> -> vector<128x128xf32>
    %346 = arith.addf %341, %345 : vector<128x128xf32>
    %347 = vector.broadcast %249 : vector<1x128xf32> to vector<128x128xf32>
    %348 = arith.addf %346, %347 : vector<128x128xf32>
    %cst_345 = arith.constant 0.000000e+00 : f32
    %349 = vector.broadcast %cst_345 : f32 to vector<128x128xf32>
    %350 = arith.maximumf %348, %349 : vector<128x128xf32>
    %c128_346 = arith.constant 128 : index
    %c0_347 = arith.constant 0 : index
    %351 = vector.load %arg15[%c128_346, %c0_347] : memref<448x128xf32, #tpu.memory_space<vmem>>, vector<128x128xf32>
    tpu.vector_store %arg15[%c128_346, %c0_347], %350 {strides = array<i32>} : memref<448x128xf32, #tpu.memory_space<vmem>>, vector<128x128xf32>,
    %cst_348 = arith.constant 0.000000e+00 : f32
    %352 = vector.broadcast %cst_348 : f32 to vector<128x128xf32>
    %c256_349 = arith.constant 256 : index
    %c0_350 = arith.constant 0 : index
    %353 = vector.load %arg14[%c256_349, %c0_350] : memref<472x128xbf16, #tpu.memory_space<vmem>>, vector<128x128xbf16>
    %c0_351 = arith.constant 0 : index
    %c0_352 = arith.constant 0 : index
    %c0_353 = arith.constant 0 : index
    %354 = vector.load %arg6[%c0_351, %c0_352, %c0_353] : memref<9x128x128xbf16, #tpu.memory_space<vmem>>, vector<1x128x128xbf16>
    %355 = vector.shape_cast %354 : vector<1x128x128xbf16> to vector<128x128xbf16>
    %cst_354 = arith.constant dense<0.000000e+00> : vector<128x128xf32>
    %356 = tpu.matmul %353, %355, %cst_354 {dimension_numbers = #tpu.dot_dimension_numbers<[1], [0], [0], [1], [0, 0, 1, 1], [], []>} : vector<128x128xbf16>, vector<128x128xbf16>, vector<128x128xf32> -> vector<128x128xf32>
    %357 = arith.addf %352, %356 : vector<128x128xf32>
    %c257_355 = arith.constant 257 : index
    %c0_356 = arith.constant 0 : index
    %358 = vector.load %arg14[%c257_355, %c0_356] : memref<472x128xbf16, #tpu.memory_space<vmem>>, vector<128x128xbf16>
    %c1_357 = arith.constant 1 : index
    %c0_358 = arith.constant 0 : index
    %c0_359 = arith.constant 0 : index
    %359 = vector.load %arg6[%c1_357, %c0_358, %c0_359] : memref<9x128x128xbf16, #tpu.memory_space<vmem>>, vector<1x128x128xbf16>
    %360 = vector.shape_cast %359 : vector<1x128x128xbf16> to vector<128x128xbf16>
    %cst_360 = arith.constant dense<0.000000e+00> : vector<128x128xf32>
    %361 = tpu.matmul %358, %360, %cst_360 {dimension_numbers = #tpu.dot_dimension_numbers<[1], [0], [0], [1], [0, 0, 1, 1], [], []>} : vector<128x128xbf16>, vector<128x128xbf16>, vector<128x128xf32> -> vector<128x128xf32>
    %362 = arith.addf %357, %361 : vector<128x128xf32>
    %c258_361 = arith.constant 258 : index
    %c0_362 = arith.constant 0 : index
    %363 = vector.load %arg14[%c258_361, %c0_362] : memref<472x128xbf16, #tpu.memory_space<vmem>>, vector<128x128xbf16>
    %c2_363 = arith.constant 2 : index
    %c0_364 = arith.constant 0 : index
    %c0_365 = arith.constant 0 : index
    %364 = vector.load %arg6[%c2_363, %c0_364, %c0_365] : memref<9x128x128xbf16, #tpu.memory_space<vmem>>, vector<1x128x128xbf16>
    %365 = vector.shape_cast %364 : vector<1x128x128xbf16> to vector<128x128xbf16>
    %cst_366 = arith.constant dense<0.000000e+00> : vector<128x128xf32>
    %366 = tpu.matmul %363, %365, %cst_366 {dimension_numbers = #tpu.dot_dimension_numbers<[1], [0], [0], [1], [0, 0, 1, 1], [], []>} : vector<128x128xbf16>, vector<128x128xbf16>, vector<128x128xf32> -> vector<128x128xf32>
    %367 = arith.addf %362, %366 : vector<128x128xf32>
    %c264_367 = arith.constant 264 : index
    %c0_368 = arith.constant 0 : index
    %368 = vector.load %arg14[%c264_367, %c0_368] : memref<472x128xbf16, #tpu.memory_space<vmem>>, vector<128x128xbf16>
    %c3_369 = arith.constant 3 : index
    %c0_370 = arith.constant 0 : index
    %c0_371 = arith.constant 0 : index
    %369 = vector.load %arg6[%c3_369, %c0_370, %c0_371] : memref<9x128x128xbf16, #tpu.memory_space<vmem>>, vector<1x128x128xbf16>
    %370 = vector.shape_cast %369 : vector<1x128x128xbf16> to vector<128x128xbf16>
    %cst_372 = arith.constant dense<0.000000e+00> : vector<128x128xf32>
    %371 = tpu.matmul %368, %370, %cst_372 {dimension_numbers = #tpu.dot_dimension_numbers<[1], [0], [0], [1], [0, 0, 1, 1], [], []>} : vector<128x128xbf16>, vector<128x128xbf16>, vector<128x128xf32> -> vector<128x128xf32>
    %372 = arith.addf %367, %371 : vector<128x128xf32>
    %c265_373 = arith.constant 265 : index
    %c0_374 = arith.constant 0 : index
    %373 = vector.load %arg14[%c265_373, %c0_374] : memref<472x128xbf16, #tpu.memory_space<vmem>>, vector<128x128xbf16>
    %c4_375 = arith.constant 4 : index
    %c0_376 = arith.constant 0 : index
    %c0_377 = arith.constant 0 : index
    %374 = vector.load %arg6[%c4_375, %c0_376, %c0_377] : memref<9x128x128xbf16, #tpu.memory_space<vmem>>, vector<1x128x128xbf16>
    %375 = vector.shape_cast %374 : vector<1x128x128xbf16> to vector<128x128xbf16>
    %cst_378 = arith.constant dense<0.000000e+00> : vector<128x128xf32>
    %376 = tpu.matmul %373, %375, %cst_378 {dimension_numbers = #tpu.dot_dimension_numbers<[1], [0], [0], [1], [0, 0, 1, 1], [], []>} : vector<128x128xbf16>, vector<128x128xbf16>, vector<128x128xf32> -> vector<128x128xf32>
    %377 = arith.addf %372, %376 : vector<128x128xf32>
    %c266_379 = arith.constant 266 : index
    %c0_380 = arith.constant 0 : index
    %378 = vector.load %arg14[%c266_379, %c0_380] : memref<472x128xbf16, #tpu.memory_space<vmem>>, vector<128x128xbf16>
    %c5_381 = arith.constant 5 : index
    %c0_382 = arith.constant 0 : index
    %c0_383 = arith.constant 0 : index
    %379 = vector.load %arg6[%c5_381, %c0_382, %c0_383] : memref<9x128x128xbf16, #tpu.memory_space<vmem>>, vector<1x128x128xbf16>
    %380 = vector.shape_cast %379 : vector<1x128x128xbf16> to vector<128x128xbf16>
    %cst_384 = arith.constant dense<0.000000e+00> : vector<128x128xf32>
    %381 = tpu.matmul %378, %380, %cst_384 {dimension_numbers = #tpu.dot_dimension_numbers<[1], [0], [0], [1], [0, 0, 1, 1], [], []>} : vector<128x128xbf16>, vector<128x128xbf16>, vector<128x128xf32> -> vector<128x128xf32>
    %382 = arith.addf %377, %381 : vector<128x128xf32>
    %c272_385 = arith.constant 272 : index
    %c0_386 = arith.constant 0 : index
    %383 = vector.load %arg14[%c272_385, %c0_386] : memref<472x128xbf16, #tpu.memory_space<vmem>>, vector<128x128xbf16>
    %c6_387 = arith.constant 6 : index
    %c0_388 = arith.constant 0 : index
    %c0_389 = arith.constant 0 : index
    %384 = vector.load %arg6[%c6_387, %c0_388, %c0_389] : memref<9x128x128xbf16, #tpu.memory_space<vmem>>, vector<1x128x128xbf16>
    %385 = vector.shape_cast %384 : vector<1x128x128xbf16> to vector<128x128xbf16>
    %cst_390 = arith.constant dense<0.000000e+00> : vector<128x128xf32>
    %386 = tpu.matmul %383, %385, %cst_390 {dimension_numbers = #tpu.dot_dimension_numbers<[1], [0], [0], [1], [0, 0, 1, 1], [], []>} : vector<128x128xbf16>, vector<128x128xbf16>, vector<128x128xf32> -> vector<128x128xf32>
    %387 = arith.addf %382, %386 : vector<128x128xf32>
    %c273_391 = arith.constant 273 : index
    %c0_392 = arith.constant 0 : index
    %388 = vector.load %arg14[%c273_391, %c0_392] : memref<472x128xbf16, #tpu.memory_space<vmem>>, vector<128x128xbf16>
    %c7_393 = arith.constant 7 : index
    %c0_394 = arith.constant 0 : index
    %c0_395 = arith.constant 0 : index
    %389 = vector.load %arg6[%c7_393, %c0_394, %c0_395] : memref<9x128x128xbf16, #tpu.memory_space<vmem>>, vector<1x128x128xbf16>
    %390 = vector.shape_cast %389 : vector<1x128x128xbf16> to vector<128x128xbf16>
    %cst_396 = arith.constant dense<0.000000e+00> : vector<128x128xf32>
    %391 = tpu.matmul %388, %390, %cst_396 {dimension_numbers = #tpu.dot_dimension_numbers<[1], [0], [0], [1], [0, 0, 1, 1], [], []>} : vector<128x128xbf16>, vector<128x128xbf16>, vector<128x128xf32> -> vector<128x128xf32>
    %392 = arith.addf %387, %391 : vector<128x128xf32>
    %c274_397 = arith.constant 274 : index
    %c0_398 = arith.constant 0 : index
    %393 = vector.load %arg14[%c274_397, %c0_398] : memref<472x128xbf16, #tpu.memory_space<vmem>>, vector<128x128xbf16>
    %c8_399 = arith.constant 8 : index
    %c0_400 = arith.constant 0 : index
    %c0_401 = arith.constant 0 : index
    %394 = vector.load %arg6[%c8_399, %c0_400, %c0_401] : memref<9x128x128xbf16, #tpu.memory_space<vmem>>, vector<1x128x128xbf16>
    %395 = vector.shape_cast %394 : vector<1x128x128xbf16> to vector<128x128xbf16>
    %cst_402 = arith.constant dense<0.000000e+00> : vector<128x128xf32>
    %396 = tpu.matmul %393, %395, %cst_402 {dimension_numbers = #tpu.dot_dimension_numbers<[1], [0], [0], [1], [0, 0, 1, 1], [], []>} : vector<128x128xbf16>, vector<128x128xbf16>, vector<128x128xf32> -> vector<128x128xf32>
    %397 = arith.addf %392, %396 : vector<128x128xf32>
    %398 = vector.broadcast %249 : vector<1x128xf32> to vector<128x128xf32>
    %399 = arith.addf %397, %398 : vector<128x128xf32>
    %cst_403 = arith.constant 0.000000e+00 : f32
    %400 = vector.broadcast %cst_403 : f32 to vector<128x128xf32>
    %401 = arith.maximumf %399, %400 : vector<128x128xf32>
    %c256_404 = arith.constant 256 : index
    %c0_405 = arith.constant 0 : index
    %402 = vector.load %arg15[%c256_404, %c0_405] : memref<448x128xf32, #tpu.memory_space<vmem>>, vector<128x128xf32>
    tpu.vector_store %arg15[%c256_404, %c0_405], %401 {strides = array<i32>} : memref<448x128xf32, #tpu.memory_space<vmem>>, vector<128x128xf32>,
    %cst_406 = arith.constant 0.000000e+00 : f32
    %403 = vector.broadcast %cst_406 : f32 to vector<64x128xf32>
    %c384_407 = arith.constant 384 : index
    %c0_408 = arith.constant 0 : index
    %404 = vector.load %arg14[%c384_407, %c0_408] : memref<472x128xbf16, #tpu.memory_space<vmem>>, vector<64x128xbf16>
    %c0_409 = arith.constant 0 : index
    %c0_410 = arith.constant 0 : index
    %c0_411 = arith.constant 0 : index
    %405 = vector.load %arg6[%c0_409, %c0_410, %c0_411] : memref<9x128x128xbf16, #tpu.memory_space<vmem>>, vector<1x128x128xbf16>
    %406 = vector.shape_cast %405 : vector<1x128x128xbf16> to vector<128x128xbf16>
    %cst_412 = arith.constant dense<0.000000e+00> : vector<64x128xf32>
    %407 = tpu.matmul %404, %406, %cst_412 {dimension_numbers = #tpu.dot_dimension_numbers<[1], [0], [0], [1], [0, 0, 1, 1], [], []>} : vector<64x128xbf16>, vector<128x128xbf16>, vector<64x128xf32> -> vector<64x128xf32>
    %408 = arith.addf %403, %407 : vector<64x128xf32>
    %c385_413 = arith.constant 385 : index
    %c0_414 = arith.constant 0 : index
    %409 = vector.load %arg14[%c385_413, %c0_414] : memref<472x128xbf16, #tpu.memory_space<vmem>>, vector<64x128xbf16>
    %c1_415 = arith.constant 1 : index
    %c0_416 = arith.constant 0 : index
    %c0_417 = arith.constant 0 : index
    %410 = vector.load %arg6[%c1_415, %c0_416, %c0_417] : memref<9x128x128xbf16, #tpu.memory_space<vmem>>, vector<1x128x128xbf16>
    %411 = vector.shape_cast %410 : vector<1x128x128xbf16> to vector<128x128xbf16>
    %cst_418 = arith.constant dense<0.000000e+00> : vector<64x128xf32>
    %412 = tpu.matmul %409, %411, %cst_418 {dimension_numbers = #tpu.dot_dimension_numbers<[1], [0], [0], [1], [0, 0, 1, 1], [], []>} : vector<64x128xbf16>, vector<128x128xbf16>, vector<64x128xf32> -> vector<64x128xf32>
    %413 = arith.addf %408, %412 : vector<64x128xf32>
    %c386_419 = arith.constant 386 : index
    %c0_420 = arith.constant 0 : index
    %414 = vector.load %arg14[%c386_419, %c0_420] : memref<472x128xbf16, #tpu.memory_space<vmem>>, vector<64x128xbf16>
    %c2_421 = arith.constant 2 : index
    %c0_422 = arith.constant 0 : index
    %c0_423 = arith.constant 0 : index
    %415 = vector.load %arg6[%c2_421, %c0_422, %c0_423] : memref<9x128x128xbf16, #tpu.memory_space<vmem>>, vector<1x128x128xbf16>
    %416 = vector.shape_cast %415 : vector<1x128x128xbf16> to vector<128x128xbf16>
    %cst_424 = arith.constant dense<0.000000e+00> : vector<64x128xf32>
    %417 = tpu.matmul %414, %416, %cst_424 {dimension_numbers = #tpu.dot_dimension_numbers<[1], [0], [0], [1], [0, 0, 1, 1], [], []>} : vector<64x128xbf16>, vector<128x128xbf16>, vector<64x128xf32> -> vector<64x128xf32>
    %418 = arith.addf %413, %417 : vector<64x128xf32>
    %c392_425 = arith.constant 392 : index
    %c0_426 = arith.constant 0 : index
    %419 = vector.load %arg14[%c392_425, %c0_426] : memref<472x128xbf16, #tpu.memory_space<vmem>>, vector<64x128xbf16>
    %c3_427 = arith.constant 3 : index
    %c0_428 = arith.constant 0 : index
    %c0_429 = arith.constant 0 : index
    %420 = vector.load %arg6[%c3_427, %c0_428, %c0_429] : memref<9x128x128xbf16, #tpu.memory_space<vmem>>, vector<1x128x128xbf16>
    %421 = vector.shape_cast %420 : vector<1x128x128xbf16> to vector<128x128xbf16>
    %cst_430 = arith.constant dense<0.000000e+00> : vector<64x128xf32>
    %422 = tpu.matmul %419, %421, %cst_430 {dimension_numbers = #tpu.dot_dimension_numbers<[1], [0], [0], [1], [0, 0, 1, 1], [], []>} : vector<64x128xbf16>, vector<128x128xbf16>, vector<64x128xf32> -> vector<64x128xf32>
    %423 = arith.addf %418, %422 : vector<64x128xf32>
    %c393_431 = arith.constant 393 : index
    %c0_432 = arith.constant 0 : index
    %424 = vector.load %arg14[%c393_431, %c0_432] : memref<472x128xbf16, #tpu.memory_space<vmem>>, vector<64x128xbf16>
    %c4_433 = arith.constant 4 : index
    %c0_434 = arith.constant 0 : index
    %c0_435 = arith.constant 0 : index
    %425 = vector.load %arg6[%c4_433, %c0_434, %c0_435] : memref<9x128x128xbf16, #tpu.memory_space<vmem>>, vector<1x128x128xbf16>
    %426 = vector.shape_cast %425 : vector<1x128x128xbf16> to vector<128x128xbf16>
    %cst_436 = arith.constant dense<0.000000e+00> : vector<64x128xf32>
    %427 = tpu.matmul %424, %426, %cst_436 {dimension_numbers = #tpu.dot_dimension_numbers<[1], [0], [0], [1], [0, 0, 1, 1], [], []>} : vector<64x128xbf16>, vector<128x128xbf16>, vector<64x128xf32> -> vector<64x128xf32>
    %428 = arith.addf %423, %427 : vector<64x128xf32>
    %c394_437 = arith.constant 394 : index
    %c0_438 = arith.constant 0 : index
    %429 = vector.load %arg14[%c394_437, %c0_438] : memref<472x128xbf16, #tpu.memory_space<vmem>>, vector<64x128xbf16>
    %c5_439 = arith.constant 5 : index
    %c0_440 = arith.constant 0 : index
    %c0_441 = arith.constant 0 : index
    %430 = vector.load %arg6[%c5_439, %c0_440, %c0_441] : memref<9x128x128xbf16, #tpu.memory_space<vmem>>, vector<1x128x128xbf16>
    %431 = vector.shape_cast %430 : vector<1x128x128xbf16> to vector<128x128xbf16>
    %cst_442 = arith.constant dense<0.000000e+00> : vector<64x128xf32>
    %432 = tpu.matmul %429, %431, %cst_442 {dimension_numbers = #tpu.dot_dimension_numbers<[1], [0], [0], [1], [0, 0, 1, 1], [], []>} : vector<64x128xbf16>, vector<128x128xbf16>, vector<64x128xf32> -> vector<64x128xf32>
    %433 = arith.addf %428, %432 : vector<64x128xf32>
    %c400_443 = arith.constant 400 : index
    %c0_444 = arith.constant 0 : index
    %434 = vector.load %arg14[%c400_443, %c0_444] : memref<472x128xbf16, #tpu.memory_space<vmem>>, vector<64x128xbf16>
    %c6_445 = arith.constant 6 : index
    %c0_446 = arith.constant 0 : index
    %c0_447 = arith.constant 0 : index
    %435 = vector.load %arg6[%c6_445, %c0_446, %c0_447] : memref<9x128x128xbf16, #tpu.memory_space<vmem>>, vector<1x128x128xbf16>
    %436 = vector.shape_cast %435 : vector<1x128x128xbf16> to vector<128x128xbf16>
    %cst_448 = arith.constant dense<0.000000e+00> : vector<64x128xf32>
    %437 = tpu.matmul %434, %436, %cst_448 {dimension_numbers = #tpu.dot_dimension_numbers<[1], [0], [0], [1], [0, 0, 1, 1], [], []>} : vector<64x128xbf16>, vector<128x128xbf16>, vector<64x128xf32> -> vector<64x128xf32>
    %438 = arith.addf %433, %437 : vector<64x128xf32>
    %c401_449 = arith.constant 401 : index
    %c0_450 = arith.constant 0 : index
    %439 = vector.load %arg14[%c401_449, %c0_450] : memref<472x128xbf16, #tpu.memory_space<vmem>>, vector<64x128xbf16>
    %c7_451 = arith.constant 7 : index
    %c0_452 = arith.constant 0 : index
    %c0_453 = arith.constant 0 : index
    %440 = vector.load %arg6[%c7_451, %c0_452, %c0_453] : memref<9x128x128xbf16, #tpu.memory_space<vmem>>, vector<1x128x128xbf16>
    %441 = vector.shape_cast %440 : vector<1x128x128xbf16> to vector<128x128xbf16>
    %cst_454 = arith.constant dense<0.000000e+00> : vector<64x128xf32>
    %442 = tpu.matmul %439, %441, %cst_454 {dimension_numbers = #tpu.dot_dimension_numbers<[1], [0], [0], [1], [0, 0, 1, 1], [], []>} : vector<64x128xbf16>, vector<128x128xbf16>, vector<64x128xf32> -> vector<64x128xf32>
    %443 = arith.addf %438, %442 : vector<64x128xf32>
    %c402_455 = arith.constant 402 : index
    %c0_456 = arith.constant 0 : index
    %444 = vector.load %arg14[%c402_455, %c0_456] : memref<472x128xbf16, #tpu.memory_space<vmem>>, vector<64x128xbf16>
    %c8_457 = arith.constant 8 : index
    %c0_458 = arith.constant 0 : index
    %c0_459 = arith.constant 0 : index
    %445 = vector.load %arg6[%c8_457, %c0_458, %c0_459] : memref<9x128x128xbf16, #tpu.memory_space<vmem>>, vector<1x128x128xbf16>
    %446 = vector.shape_cast %445 : vector<1x128x128xbf16> to vector<128x128xbf16>
    %cst_460 = arith.constant dense<0.000000e+00> : vector<64x128xf32>
    %447 = tpu.matmul %444, %446, %cst_460 {dimension_numbers = #tpu.dot_dimension_numbers<[1], [0], [0], [1], [0, 0, 1, 1], [], []>} : vector<64x128xbf16>, vector<128x128xbf16>, vector<64x128xf32> -> vector<64x128xf32>
    %448 = arith.addf %443, %447 : vector<64x128xf32>
    %449 = vector.broadcast %249 : vector<1x128xf32> to vector<64x128xf32>
    %450 = arith.addf %448, %449 : vector<64x128xf32>
    %cst_461 = arith.constant 0.000000e+00 : f32
    %451 = vector.broadcast %cst_461 : f32 to vector<64x128xf32>
    %452 = arith.maximumf %450, %451 : vector<64x128xf32>
    %c384_462 = arith.constant 384 : index
    %c0_463 = arith.constant 0 : index
    %453 = vector.load %arg15[%c384_462, %c0_463] : memref<448x128xf32, #tpu.memory_space<vmem>>, vector<64x128xf32>
    tpu.vector_store %arg15[%c384_462, %c0_463], %452 {strides = array<i32>} : memref<448x128xf32, #tpu.memory_space<vmem>>, vector<64x128xf32>,
    %cst_464 = arith.constant 0.000000e+00 : f32
    %454 = vector.broadcast %cst_464 : f32 to vector<8x128xf32>
    %c0_465 = arith.constant 0 : index
    %c0_466 = arith.constant 0 : index
    %455 = tpu.strided_load %arg15[%c0_465, %c0_466] {strides = array<i32: 56, 1>} : memref<448x128xf32, #tpu.memory_space<vmem>>, vector<8x128xf32>
    %456 = arith.truncf %455 : vector<8x128xf32> to vector<8x128xbf16>
    %c0_467 = arith.constant 0 : index
    %c0_468 = arith.constant 0 : index
    %c0_469 = arith.constant 0 : index
    %457 = vector.load %arg8[%c0_467, %c0_468, %c0_469] : memref<9x128x128xbf16, #tpu.memory_space<vmem>>, vector<1x128x128xbf16>
    %458 = vector.shape_cast %457 : vector<1x128x128xbf16> to vector<128x128xbf16>
    %cst_470 = arith.constant dense<0.000000e+00> : vector<8x128xf32>
    %459 = tpu.matmul %456, %458, %cst_470 {dimension_numbers = #tpu.dot_dimension_numbers<[1], [0], [0], [1], [0, 0, 1, 1], [], []>} : vector<8x128xbf16>, vector<128x128xbf16>, vector<8x128xf32> -> vector<8x128xf32>
    %460 = arith.addf %454, %459 : vector<8x128xf32>
    %c1_471 = arith.constant 1 : index
    %c0_472 = arith.constant 0 : index
    %461 = tpu.strided_load %arg15[%c1_471, %c0_472] {strides = array<i32: 56, 1>} : memref<448x128xf32, #tpu.memory_space<vmem>>, vector<8x128xf32>
    %462 = arith.truncf %461 : vector<8x128xf32> to vector<8x128xbf16>
    %c1_473 = arith.constant 1 : index
    %c0_474 = arith.constant 0 : index
    %c0_475 = arith.constant 0 : index
    %463 = vector.load %arg8[%c1_473, %c0_474, %c0_475] : memref<9x128x128xbf16, #tpu.memory_space<vmem>>, vector<1x128x128xbf16>
    %464 = vector.shape_cast %463 : vector<1x128x128xbf16> to vector<128x128xbf16>
    %cst_476 = arith.constant dense<0.000000e+00> : vector<8x128xf32>
    %465 = tpu.matmul %462, %464, %cst_476 {dimension_numbers = #tpu.dot_dimension_numbers<[1], [0], [0], [1], [0, 0, 1, 1], [], []>} : vector<8x128xbf16>, vector<128x128xbf16>, vector<8x128xf32> -> vector<8x128xf32>
    %466 = arith.addf %460, %465 : vector<8x128xf32>
    %c2_477 = arith.constant 2 : index
    %c0_478 = arith.constant 0 : index
    %467 = tpu.strided_load %arg15[%c2_477, %c0_478] {strides = array<i32: 56, 1>} : memref<448x128xf32, #tpu.memory_space<vmem>>, vector<8x128xf32>
    %468 = arith.truncf %467 : vector<8x128xf32> to vector<8x128xbf16>
    %c2_479 = arith.constant 2 : index
    %c0_480 = arith.constant 0 : index
    %c0_481 = arith.constant 0 : index
    %469 = vector.load %arg8[%c2_479, %c0_480, %c0_481] : memref<9x128x128xbf16, #tpu.memory_space<vmem>>, vector<1x128x128xbf16>
    %470 = vector.shape_cast %469 : vector<1x128x128xbf16> to vector<128x128xbf16>
    %cst_482 = arith.constant dense<0.000000e+00> : vector<8x128xf32>
    %471 = tpu.matmul %468, %470, %cst_482 {dimension_numbers = #tpu.dot_dimension_numbers<[1], [0], [0], [1], [0, 0, 1, 1], [], []>} : vector<8x128xbf16>, vector<128x128xbf16>, vector<8x128xf32> -> vector<8x128xf32>
    %472 = arith.addf %466, %471 : vector<8x128xf32>
    %c8_483 = arith.constant 8 : index
    %c0_484 = arith.constant 0 : index
    %473 = tpu.strided_load %arg15[%c8_483, %c0_484] {strides = array<i32: 56, 1>} : memref<448x128xf32, #tpu.memory_space<vmem>>, vector<8x128xf32>
    %474 = arith.truncf %473 : vector<8x128xf32> to vector<8x128xbf16>
    %c3_485 = arith.constant 3 : index
    %c0_486 = arith.constant 0 : index
    %c0_487 = arith.constant 0 : index
    %475 = vector.load %arg8[%c3_485, %c0_486, %c0_487] : memref<9x128x128xbf16, #tpu.memory_space<vmem>>, vector<1x128x128xbf16>
    %476 = vector.shape_cast %475 : vector<1x128x128xbf16> to vector<128x128xbf16>
    %cst_488 = arith.constant dense<0.000000e+00> : vector<8x128xf32>
    %477 = tpu.matmul %474, %476, %cst_488 {dimension_numbers = #tpu.dot_dimension_numbers<[1], [0], [0], [1], [0, 0, 1, 1], [], []>} : vector<8x128xbf16>, vector<128x128xbf16>, vector<8x128xf32> -> vector<8x128xf32>
    %478 = arith.addf %472, %477 : vector<8x128xf32>
    %c9_489 = arith.constant 9 : index
    %c0_490 = arith.constant 0 : index
    %479 = tpu.strided_load %arg15[%c9_489, %c0_490] {strides = array<i32: 56, 1>} : memref<448x128xf32, #tpu.memory_space<vmem>>, vector<8x128xf32>
    %480 = arith.truncf %479 : vector<8x128xf32> to vector<8x128xbf16>
    %c4_491 = arith.constant 4 : index
    %c0_492 = arith.constant 0 : index
    %c0_493 = arith.constant 0 : index
    %481 = vector.load %arg8[%c4_491, %c0_492, %c0_493] : memref<9x128x128xbf16, #tpu.memory_space<vmem>>, vector<1x128x128xbf16>
    %482 = vector.shape_cast %481 : vector<1x128x128xbf16> to vector<128x128xbf16>
    %cst_494 = arith.constant dense<0.000000e+00> : vector<8x128xf32>
    %483 = tpu.matmul %480, %482, %cst_494 {dimension_numbers = #tpu.dot_dimension_numbers<[1], [0], [0], [1], [0, 0, 1, 1], [], []>} : vector<8x128xbf16>, vector<128x128xbf16>, vector<8x128xf32> -> vector<8x128xf32>
    %484 = arith.addf %478, %483 : vector<8x128xf32>
    %c10_495 = arith.constant 10 : index
    %c0_496 = arith.constant 0 : index
    %485 = tpu.strided_load %arg15[%c10_495, %c0_496] {strides = array<i32: 56, 1>} : memref<448x128xf32, #tpu.memory_space<vmem>>, vector<8x128xf32>
    %486 = arith.truncf %485 : vector<8x128xf32> to vector<8x128xbf16>
    %c5_497 = arith.constant 5 : index
    %c0_498 = arith.constant 0 : index
    %c0_499 = arith.constant 0 : index
    %487 = vector.load %arg8[%c5_497, %c0_498, %c0_499] : memref<9x128x128xbf16, #tpu.memory_space<vmem>>, vector<1x128x128xbf16>
    %488 = vector.shape_cast %487 : vector<1x128x128xbf16> to vector<128x128xbf16>
    %cst_500 = arith.constant dense<0.000000e+00> : vector<8x128xf32>
    %489 = tpu.matmul %486, %488, %cst_500 {dimension_numbers = #tpu.dot_dimension_numbers<[1], [0], [0], [1], [0, 0, 1, 1], [], []>} : vector<8x128xbf16>, vector<128x128xbf16>, vector<8x128xf32> -> vector<8x128xf32>
    %490 = arith.addf %484, %489 : vector<8x128xf32>
    %c16_501 = arith.constant 16 : index
    %c0_502 = arith.constant 0 : index
    %491 = tpu.strided_load %arg15[%c16_501, %c0_502] {strides = array<i32: 56, 1>} : memref<448x128xf32, #tpu.memory_space<vmem>>, vector<8x128xf32>
    %492 = arith.truncf %491 : vector<8x128xf32> to vector<8x128xbf16>
    %c6_503 = arith.constant 6 : index
    %c0_504 = arith.constant 0 : index
    %c0_505 = arith.constant 0 : index
    %493 = vector.load %arg8[%c6_503, %c0_504, %c0_505] : memref<9x128x128xbf16, #tpu.memory_space<vmem>>, vector<1x128x128xbf16>
    %494 = vector.shape_cast %493 : vector<1x128x128xbf16> to vector<128x128xbf16>
    %cst_506 = arith.constant dense<0.000000e+00> : vector<8x128xf32>
    %495 = tpu.matmul %492, %494, %cst_506 {dimension_numbers = #tpu.dot_dimension_numbers<[1], [0], [0], [1], [0, 0, 1, 1], [], []>} : vector<8x128xbf16>, vector<128x128xbf16>, vector<8x128xf32> -> vector<8x128xf32>
    %496 = arith.addf %490, %495 : vector<8x128xf32>
    %c17_507 = arith.constant 17 : index
    %c0_508 = arith.constant 0 : index
    %497 = tpu.strided_load %arg15[%c17_507, %c0_508] {strides = array<i32: 56, 1>} : memref<448x128xf32, #tpu.memory_space<vmem>>, vector<8x128xf32>
    %498 = arith.truncf %497 : vector<8x128xf32> to vector<8x128xbf16>
    %c7_509 = arith.constant 7 : index
    %c0_510 = arith.constant 0 : index
    %c0_511 = arith.constant 0 : index
    %499 = vector.load %arg8[%c7_509, %c0_510, %c0_511] : memref<9x128x128xbf16, #tpu.memory_space<vmem>>, vector<1x128x128xbf16>
    %500 = vector.shape_cast %499 : vector<1x128x128xbf16> to vector<128x128xbf16>
    %cst_512 = arith.constant dense<0.000000e+00> : vector<8x128xf32>
    %501 = tpu.matmul %498, %500, %cst_512 {dimension_numbers = #tpu.dot_dimension_numbers<[1], [0], [0], [1], [0, 0, 1, 1], [], []>} : vector<8x128xbf16>, vector<128x128xbf16>, vector<8x128xf32> -> vector<8x128xf32>
    %502 = arith.addf %496, %501 : vector<8x128xf32>
    %c18_513 = arith.constant 18 : index
    %c0_514 = arith.constant 0 : index
    %503 = tpu.strided_load %arg15[%c18_513, %c0_514] {strides = array<i32: 56, 1>} : memref<448x128xf32, #tpu.memory_space<vmem>>, vector<8x128xf32>
    %504 = arith.truncf %503 : vector<8x128xf32> to vector<8x128xbf16>
    %c8_515 = arith.constant 8 : index
    %c0_516 = arith.constant 0 : index
    %c0_517 = arith.constant 0 : index
    %505 = vector.load %arg8[%c8_515, %c0_516, %c0_517] : memref<9x128x128xbf16, #tpu.memory_space<vmem>>, vector<1x128x128xbf16>
    %506 = vector.shape_cast %505 : vector<1x128x128xbf16> to vector<128x128xbf16>
    %cst_518 = arith.constant dense<0.000000e+00> : vector<8x128xf32>
    %507 = tpu.matmul %504, %506, %cst_518 {dimension_numbers = #tpu.dot_dimension_numbers<[1], [0], [0], [1], [0, 0, 1, 1], [], []>} : vector<8x128xbf16>, vector<128x128xbf16>, vector<8x128xf32> -> vector<8x128xf32>
    %508 = arith.addf %502, %507 : vector<8x128xf32>
    %c0_519 = arith.constant 0 : index
    %c0_520 = arith.constant 0 : index
    %509 = vector.load %arg9[%c0_519, %c0_520] : memref<1x128xf32, #tpu.memory_space<vmem>>, vector<1x128xf32>
    %510 = vector.broadcast %509 : vector<1x128xf32> to vector<8x128xf32>
    %511 = arith.addf %508, %510 : vector<8x128xf32>
    %512 = tpu.iota {dimensions = array<i32: 1>} : vector<1x128xi32>
    %c32_i32 = arith.constant 32 : i32
    %513 = vector.broadcast %c32_i32 : i32 to vector<1x128xi32>
    %514 = arith.cmpi slt, %512, %513 : vector<1x128xi32>
    %515 = arith.extui %514 : vector<1x128xi1> to vector<1x128xi32>
    %516 = arith.sitofp %515 : vector<1x128xi32> to vector<1x128xf32>
    %cst_521 = arith.constant dense<0.000000e+00> : vector<8xf32>
    %517 = vector.multi_reduction <add>, %511, %cst_521 [1] : vector<8x128xf32> to vector<8xf32>
    %518 = vector.shape_cast %517 : vector<8xf32> to vector<8x1xf32>
    %cst_522 = arith.constant 3.125000e-02 : f32
    %519 = vector.broadcast %cst_522 : f32 to vector<8x1xf32>
    %520 = arith.mulf %518, %519 : vector<8x1xf32>
    %521 = vector.broadcast %520 : vector<8x1xf32> to vector<8x128xf32>
    %522 = arith.subf %511, %521 : vector<8x128xf32>
    %523 = vector.broadcast %516 : vector<1x128xf32> to vector<8x128xf32>
    %524 = arith.mulf %522, %523 : vector<8x128xf32>
    %525 = arith.mulf %524, %524 : vector<8x128xf32>
    %cst_523 = arith.constant dense<0.000000e+00> : vector<8xf32>
    %526 = vector.multi_reduction <add>, %525, %cst_523 [1] : vector<8x128xf32> to vector<8xf32>
    %527 = vector.shape_cast %526 : vector<8xf32> to vector<8x1xf32>
    %cst_524 = arith.constant 3.125000e-02 : f32
    %528 = vector.broadcast %cst_524 : f32 to vector<8x1xf32>
    %529 = arith.mulf %527, %528 : vector<8x1xf32>
    %cst_525 = arith.constant 9.99999974E-6 : f32
    %530 = vector.broadcast %cst_525 : f32 to vector<8x1xf32>
    %531 = arith.addf %529, %530 : vector<8x1xf32>
    %532 = math.rsqrt %531 : vector<8x1xf32>
    %533 = vector.broadcast %532 : vector<8x1xf32> to vector<8x128xf32>
    %534 = arith.mulf %524, %533 : vector<8x128xf32>
    %c0_526 = arith.constant 0 : index
    %c0_527 = arith.constant 0 : index
    %535 = vector.load %arg10[%c0_526, %c0_527] : memref<1x128xf32, #tpu.memory_space<vmem>>, vector<1x128xf32>
    %536 = vector.broadcast %535 : vector<1x128xf32> to vector<8x128xf32>
    %537 = arith.mulf %534, %536 : vector<8x128xf32>
    %c0_528 = arith.constant 0 : index
    %c0_529 = arith.constant 0 : index
    %538 = vector.load %arg11[%c0_528, %c0_529] : memref<1x128xf32, #tpu.memory_space<vmem>>, vector<1x128xf32>
    %539 = vector.broadcast %538 : vector<1x128xf32> to vector<8x128xf32>
    %540 = arith.addf %537, %539 : vector<8x128xf32>
    %541 = math.tanh %540 : vector<8x128xf32>
    %c0_530 = arith.constant 0 : index
    %c0_531 = arith.constant 0 : index
    %542 = vector.load %arg12[%c0_530, %c0_531] : memref<8x128xf32, #tpu.memory_space<vmem>>, vector<8x128xf32>
    tpu.vector_store %arg12[%c0_530, %c0_531], %541 {strides = array<i32>} : memref<8x128xf32, #tpu.memory_space<vmem>>, vector<8x128xf32>,
    return
  }
  func.func @transform_0(%arg0: i32) -> (i32, i32) {
    %c0_i32 = arith.constant 0 : i32
    %c0_i32_0 = arith.constant 0 : i32
    return %arg0, %c0_i32 : i32, i32
  }
  func.func @transform_1(%arg0: i32) -> (i32, i32) {
    %c0_i32 = arith.constant 0 : i32
    %c0_i32_0 = arith.constant 0 : i32
    %c0_i32_1 = arith.constant 0 : i32
    return %c0_i32, %c0_i32_0 : i32, i32
  }
  func.func @transform_2(%arg0: i32) -> (i32, i32) {
    %c0_i32 = arith.constant 0 : i32
    %c0_i32_0 = arith.constant 0 : i32
    %c0_i32_1 = arith.constant 0 : i32
    return %c0_i32, %c0_i32_0 : i32, i32
  }
  func.func @transform_3(%arg0: i32) -> (i32, i32, i32) {
    %c0_i32 = arith.constant 0 : i32
    %c0_i32_0 = arith.constant 0 : i32
    %c0_i32_1 = arith.constant 0 : i32
    %c0_i32_2 = arith.constant 0 : i32
    return %c0_i32, %c0_i32_0, %c0_i32_1 : i32, i32, i32
  }
  func.func @transform_4(%arg0: i32) -> (i32, i32) {
    %c0_i32 = arith.constant 0 : i32
    %c0_i32_0 = arith.constant 0 : i32
    %c0_i32_1 = arith.constant 0 : i32
    return %c0_i32, %c0_i32_0 : i32, i32
  }
  func.func @transform_5(%arg0: i32) -> (i32, i32, i32) {
    %c0_i32 = arith.constant 0 : i32
    %c0_i32_0 = arith.constant 0 : i32
    %c0_i32_1 = arith.constant 0 : i32
    %c0_i32_2 = arith.constant 0 : i32
    return %c0_i32, %c0_i32_0, %c0_i32_1 : i32, i32, i32
  }
  func.func @transform_6(%arg0: i32) -> (i32, i32) {
    %c0_i32 = arith.constant 0 : i32
    %c0_i32_0 = arith.constant 0 : i32
    %c0_i32_1 = arith.constant 0 : i32
    return %c0_i32, %c0_i32_0 : i32, i32
  }
  func.func @transform_7(%arg0: i32) -> (i32, i32, i32) {
    %c0_i32 = arith.constant 0 : i32
    %c0_i32_0 = arith.constant 0 : i32
    %c0_i32_1 = arith.constant 0 : i32
    %c0_i32_2 = arith.constant 0 : i32
    return %c0_i32, %c0_i32_0, %c0_i32_1 : i32, i32, i32
  }
  func.func @transform_8(%arg0: i32) -> (i32, i32) {
    %c0_i32 = arith.constant 0 : i32
    %c0_i32_0 = arith.constant 0 : i32
    %c0_i32_1 = arith.constant 0 : i32
    return %c0_i32, %c0_i32_0 : i32, i32
  }
  func.func @transform_9(%arg0: i32) -> (i32, i32) {
    %c0_i32 = arith.constant 0 : i32
    %c0_i32_0 = arith.constant 0 : i32
    %c0_i32_1 = arith.constant 0 : i32
    return %c0_i32, %c0_i32_0 : i32, i32
  }
  func.func @transform_10(%arg0: i32) -> (i32, i32) {
    %c0_i32 = arith.constant 0 : i32
    %c0_i32_0 = arith.constant 0 : i32
    %c0_i32_1 = arith.constant 0 : i32
    return %c0_i32, %c0_i32_0 : i32, i32
  }
  func.func @transform_11(%arg0: i32) -> (i32, i32) {
    %c0_i32 = arith.constant 0 : i32
    %c0_i32_0 = arith.constant 0 : i32
    return %arg0, %c0_i32 : i32, i32
  }
}

</mosaic_0001>

<bundles_post_ra>
// kernel: encoder_forward.1
= control target key start
LH: loop header
LB: loop body
LE: loop exit
PB: predicated region body
PF: predicated region fallthrough
CT: control target
= control target key end

     0   :  { %vm1267_vm0 = vcmask 1046528   ;;  %vm967_vm1 = vsmask.f32 7424  ;;  %s26491_s1 = inlined_call_operand.vmem [shape: bf16[128,128], index: 1, kind: input, shape index: {}]   ;;  %s26492_s2 = inlined_call_operand.vmem [shape: f32[1,128], index: 2, kind: input, shape index: {}]   ;;  %s26493_s0 = inlined_call_operand.vmem [shape: bf16[448,128], index: 0, kind: input, shape index: {}]   ;;  %s26494_s3 = inlined_call_operand.vmem [shape: bf16[9,128,128], index: 3, kind: input, shape index: {}]   ;;  %s26495_s4 = inlined_call_operand.vmem [shape: f32[1,128], index: 4, kind: input, shape index: {}]   ;;  %s26496_s5 = inlined_call_operand.vmem [shape: bf16[9,128,128], index: 5, kind: input, shape index: {}]   ;;  %s26497_s6 = inlined_call_operand.vmem [shape: f32[1,128], index: 6, kind: input, shape index: {}]   ;;  %s26498_s7 = inlined_call_operand.vmem [shape: bf16[9,128,128], index: 7, kind: input, shape index: {}]   ;;  %s26499_s8 = inlined_call_operand.vmem [shape: f32[1,128], index: 8, kind: input, shape index: {}]   ;;  %s26500_s9 = inlined_call_operand.vmem [shape: f32[1,128], index: 9, kind: input, shape index: {}]   ;;  %s26501_s10 = inlined_call_operand.vmem [shape: f32[1,128], index: 10, kind: input, shape index: {}]   ;;  %s26502_s11 = inlined_call_operand.vmem [shape: f32[8,128], index: 11, kind: output, shape index: {}]  }
   0x1   :  { %v18674_v0 = vld [vmem:[%s26491_s1 + $0x38] sm:$0xff]  ;;  %v18673_v3 = vld [vmem:[%s26491_s1 + $0x30] sm:$0xff]  ;;  %v18672_v6 = vld [vmem:[%s26491_s1 + $0x28] sm:$0xff] }
   0x2   :  { %v18690_v1 = vld [vmem:[%s26491_s1 + $0x38] sm:$0xff]  ;;  %177 = vmatpush.bf16.msra.mxu0 %v18674_v0  ;;  %v18689_v4 = vld [vmem:[%s26491_s1 + $0x30] sm:$0xff]  ;;  %v18688_v7 = vld [vmem:[%s26491_s1 + $0x28] sm:$0xff] }
   0x3   :  { %v18706_v2 = vld [vmem:[%s26491_s1 + $0x38] sm:$0xff]  ;;  %402 = vmatpush.bf16.msra.mxu1 %v18690_v1  ;;  %v18705_v5 = vld [vmem:[%s26491_s1 + $0x30] sm:$0xff]  ;;  %v18704_v8 = vld [vmem:[%s26491_s1 + $0x28] sm:$0xff] }
   0x4   :  { %627 = vmatpush.bf16.msra.mxu2 %v18706_v2  ;;  %v18671_v9 = vld [vmem:[%s26491_s1 + $0x20] sm:$0xff]  ;;  %v18670_v12 = vld [vmem:[%s26491_s1 + $0x18] sm:$0xff]  ;;  %v18669_v15 = vld [vmem:[%s26491_s1 + $0x10] sm:$0xff] }
   0x5   :  { %v18687_v10 = vld [vmem:[%s26491_s1 + $0x20] sm:$0xff]  ;;  %v18686_v13 = vld [vmem:[%s26491_s1 + $0x18] sm:$0xff]  ;;  %v18685_v16 = vld [vmem:[%s26491_s1 + $0x10] sm:$0xff] }
   0x6   :  { %178 = vmatpush.bf16.msra.mxu0 %v18673_v3  ;;  %v18703_v11 = vld [vmem:[%s26491_s1 + $0x20] sm:$0xff]  ;;  %v18702_v14 = vld [vmem:[%s26491_s1 + $0x18] sm:$0xff]  ;;  %v18701_v17 = vld [vmem:[%s26491_s1 + $0x10] sm:$0xff] }
   0x7   :  { %403 = vmatpush.bf16.msra.mxu1 %v18689_v4  ;;  %v18668_v18 = vld [vmem:[%s26491_s1 + $0x8] sm:$0xff]  ;;  %v18667_v21 = vld [vmem:[%s26491_s1] sm:$0xff]  ;;  %v18718_v23 = vld [vmem:[%s26491_s1 + $0x38] sm:$0xff] }
   0x8   :  { %628 = vmatpush.bf16.msra.mxu2 %v18705_v5  ;;  %v18684_v19 = vld [vmem:[%s26491_s1 + $0x8] sm:$0xff]  ;;  %v18683_v22 = vld [vmem:[%s26491_s1] sm:$0xff]  ;;  %820 = vmatpush.bf16.msra.mxu3 %v18718_v23  ;;  %v18717_v28 = vld [vmem:[%s26491_s1 + $0x30] sm:$0xff] }
   0x9   :  { %v18700_v20 = vld [vmem:[%s26491_s1 + $0x8] sm:$0xff]  ;;  %v18699_v24 = vld [vmem:[%s26491_s1] sm:$0xff]  ;;  %v18714_v31 = vld [vmem:[%s26491_s1 + $0x18] sm:$0xff] }
   0xa   :  { %179 = vmatpush.bf16.msra.mxu0 %v18672_v6  ;;  %v18659_v25 = vld [vmem:[%s26493_s0] sm:$0xff]  ;;  %v18716_v29 = vld [vmem:[%s26491_s1 + $0x28] sm:$0xff]  ;;  %v18713_v35 = vld [vmem:[%s26491_s1 + $0x10] sm:$0xff] }
   0xb   :  { %404 = vmatpush.bf16.msra.mxu1 %v18688_v7  ;;  %v18675_v26 = vld [vmem:[%s26493_s0 + $0x40] sm:$0xff]  ;;  %v18660_v32 = vld [vmem:[%s26493_s0 + $0x8] sm:$0xff]  ;;  %v18726_v36 = vld [vmem:[%s26494_s3 + $0x38] sm:$0xff] }
   0xc   :  { %629 = vmatpush.bf16.msra.mxu2 %v18704_v8  ;;  %v18691_v27 = vld [vmem:[%s26493_s0 + $0x80] sm:$0xff]  ;;  %821 = vmatpush.bf16.msra.mxu3 %v18717_v28  ;;  %v18676_v33 = vld [vmem:[%s26493_s0 + $0x48] sm:$0xff]  ;;  %v18661_v40 = vld [vmem:[%s26493_s0 + $0x10] sm:$0xff] }
   0xd   :  { %v18715_v30 = vld [vmem:[%s26491_s1 + $0x20] sm:$0xff]  ;;  %v18692_v34 = vld [vmem:[%s26493_s0 + $0x88] sm:$0xff]  ;;  %v18677_v41 = vld [vmem:[%s26493_s0 + $0x50] sm:$0xff] }
   0xe   :  { %180 = vmatpush.bf16.msra.mxu0 %v18671_v9  ;;  %v18712_v37 = vld [vmem:[%s26491_s1 + $0x8] sm:$0xff]  ;;  %v18711_v38 = vld [vmem:[%s26491_s1] sm:$0xff]  ;;  %v18693_v42 = vld [vmem:[%s26493_s0 + $0x90] sm:$0xff] }
   0xf   :  { %405 = vmatpush.bf16.msra.mxu1 %v18687_v10  ;;  %v18707_v39 = vld [vmem:[%s26493_s0 + $0xc0] sm:$0xff]  ;;  %v18725_v43 = vld [vmem:[%s26494_s3 + $0x30] sm:$0xff]  ;;  %v18708_v44 = vld [vmem:[%s26493_s0 + $0xc8] sm:$0xff] }
  0x10   :  { %630 = vmatpush.bf16.msra.mxu2 %v18703_v11  ;;  %822 = vmatpush.bf16.msra.mxu3 %v18716_v29  ;;  %v18662_v45 = vld [vmem:[%s26493_s0 + $0x18] sm:$0xff]  ;;  %v18724_v48 = vld [vmem:[%s26494_s3 + $0x28] sm:$0xff]  ;;  %v18709_v49 = vld [vmem:[%s26493_s0 + $0xd0] sm:$0xff] }
  0x11   :  { %v18678_v46 = vld [vmem:[%s26493_s0 + $0x58] sm:$0xff]  ;;  %v18663_v50 = vld [vmem:[%s26493_s0 + $0x20] sm:$0xff]  ;;  %v18664_v58 = vld [vmem:[%s26493_s0 + $0x28] sm:$0xff] }
  0x12   :  { %181 = vmatpush.bf16.msra.mxu0 %v18670_v12  ;;  %v18694_v47 = vld [vmem:[%s26493_s0 + $0x98] sm:$0xff]  ;;  %v18679_v51 = vld [vmem:[%s26493_s0 + $0x60] sm:$0xff]  ;;  %v18680_v59 = vld [vmem:[%s26493_s0 + $0x68] sm:$0xff] }
  0x13   :  { %406 = vmatpush.bf16.msra.mxu1 %v18686_v13  ;;  %v18695_v52 = vld [vmem:[%s26493_s0 + $0xa0] sm:$0xff]  ;;  %v18750_v54 = vld [vmem:[%s26494_s3 + $0xf8] sm:$0xff]  ;;  %v18696_v60 = vld [vmem:[%s26493_s0 + $0xa8] sm:$0xff] }
  0x14   :  { %631 = vmatpush.bf16.msra.mxu2 %v18702_v14  ;;  %823 = vmatpush.bf16.msra.mxu3 %v18715_v30  ;;  %v18723_v53 = vld [vmem:[%s26494_s3 + $0x20] sm:$0xff]  ;;  %v18734_v55 = vld [vmem:[%s26494_s3 + $0x78] sm:$0xff]  ;;  %v18733_v61 = vld [vmem:[%s26494_s3 + $0x70] sm:$0xff] }
  0x15   :  { %v18742_v56 = vld [vmem:[%s26494_s3 + $0xb8] sm:$0xff]  ;;  %v18749_v63 = vld [vmem:[%s26494_s3 + $0xf0] sm:$0xff]  ;;  %v18732_v1 = vld [vmem:[%s26494_s3 + $0x68] sm:$0xff] }
  0x16   :  { %182 = vmatpush.bf16.msra.mxu0 %v18669_v15  ;;  %v18710_v57 = vld [vmem:[%s26493_s0 + $0xd8] sm:$0xff]  ;;  %v18741_v0 = vld [vmem:[%s26494_s3 + $0xb0] sm:$0xff]  ;;  %v18731_v5 = vld [vmem:[%s26494_s3 + $0x60] sm:$0xff] }
  0x17   :  { %407 = vmatpush.bf16.msra.mxu1 %v18685_v16  ;;  %v18722_v62 = vld [vmem:[%s26494_s3 + $0x18] sm:$0xff]  ;;  %v18665_v2 = vld [vmem:[%s26493_s0 + $0x30] sm:$0xff]  ;;  %v18720_v7 = vld [vmem:[%s26494_s3 + $0x8] sm:$0xff] }
  0x18   :  { %632 = vmatpush.bf16.msra.mxu2 %v18701_v17  ;;  %824 = vmatpush.bf16.msra.mxu3 %v18714_v31  ;;  %v18681_v3 = vld [vmem:[%s26493_s0 + $0x70] sm:$0xff]  ;;  %v18740_v8 = vld [vmem:[%s26494_s3 + $0xa8] sm:$0xff]  ;;  %v18719_v10 = vld [vmem:[%s26494_s3] sm:$0xff] }
  0x19   :  { %v18697_v4 = vld [vmem:[%s26493_s0 + $0xb0] sm:$0xff]  ;;  %v18748_v9 = vld [vmem:[%s26494_s3 + $0xe8] sm:$0xff]  ;;  %v18739_v11 = vld [vmem:[%s26494_s3 + $0xa0] sm:$0xff] }
  0x1a   :  { %183 = vmatpush.bf16.msra.mxu0 %v18668_v18  ;;  %v18721_v6 = vld [vmem:[%s26494_s3 + $0x10] sm:$0xff]  ;;  %v18666_v12 = vld [vmem:[%s26493_s0 + $0x38] sm:$0xff]  ;;  %v18747_v14 = vld [vmem:[%s26494_s3 + $0xe0] sm:$0xff] }
  0x1b   :  { %408 = vmatpush.bf16.msra.mxu1 %v18684_v19  ;;  %v18682_v13 = vld [vmem:[%s26493_s0 + $0x78] sm:$0xff]  ;;  %v18729_v19 = vld [vmem:[%s26494_s3 + $0x50] sm:$0xff]  ;;  %v18744_v23 = vld [vmem:[%s26494_s3 + $0xc8] sm:$0xff] }
  0x1c   :  { %633 = vmatpush.bf16.msra.mxu2 %v18700_v20  ;;  %825 = vmatpush.bf16.msra.mxu3 %v18713_v35  ;;  %v18698_v15 = vld [vmem:[%s26493_s0 + $0xb8] sm:$0xff]  ;;  %v18737_v20 = vld [vmem:[%s26494_s3 + $0x90] sm:$0xff]  ;;  %v18727_v29 = vld [vmem:[%s26494_s3 + $0x40] sm:$0xff] }
  0x1d   :  { %v18730_v16 = vld [vmem:[%s26494_s3 + $0x58] sm:$0xff]  ;;  %v21356_v30 = vld [vmem:[%s26492_s2] ss:$0 sm:$0xff] }
  0x1e   :  { %184 = vmatpush.bf16.msra.mxu0 %v18667_v21  ;;  %v18738_v17 = vld [vmem:[%s26494_s3 + $0x98] sm:$0xff]  ;;  %v18745_v21 = vld [vmem:[%s26494_s3 + $0xd0] sm:$0xff] }
  0x1f   :  { %409 = vmatpush.bf16.msra.mxu1 %v18683_v22  ;;  %v18746_v18 = vld [vmem:[%s26494_s3 + $0xd8] sm:$0xff]  ;;  %v18736_v22 = vld [vmem:[%s26494_s3 + $0x88] sm:$0xff] }
  0x20   :  { %634 = vmatpush.bf16.msra.mxu2 %v18699_v24  ;;  %826 = vmatpush.bf16.msra.mxu3 %v18712_v37  ;;  %v18728_v24 = vld [vmem:[%s26494_s3 + $0x48] sm:$0xff] }
  0x21   :  { %185 = vmatmul.bf16.vlgmr.msra.gmra.mxu0 %v18659_v25  ;;  %v18735_v25 = vld [vmem:[%s26494_s3 + $0x80] sm:$0xff] }
  0x22   :  { %410 = vmatmul.bf16.vlgmr.msra.gmra.mxu1 %v18675_v26  ;;  %1197 = vmatpush.bf16.msrb.mxu0 %v18726_v36  ;;  %v18743_v26 = vld [vmem:[%s26494_s3 + $0xc0] sm:$0xff] }
  0x23   :  { %635 = vmatmul.bf16.vlgmr.msra.gmra.mxu2 %v18691_v27  ;;  %1341 = vmatpush.bf16.msrb.mxu1 %v18742_v56 }
  0x24   :  { %827 = vmatpush.bf16.msra.mxu3 %v18711_v38  ;;  %1490 = vmatpush.bf16.msrb.mxu2 %v18750_v54 }
  0x26   :  { %1198 = vmatpush.bf16.msrb.mxu0 %v18725_v43 }
  0x27   :  { %828 = vmatmul.bf16.vlgmr.msra.gmra.mxu3 %v18707_v39  ;;  %1342 = vmatpush.bf16.msrb.mxu1 %v18741_v0 }
  0x28   :  { %1092 = vmatpush.bf16.msrb.mxu3 %v18734_v55  ;;  %1491 = vmatpush.bf16.msrb.mxu2 %v18749_v63  ;;  %v18766_v55 = vld [vmem:[%s26494_s3 + $0x178] sm:$0xff] }
  0x2a   :  { %1199 = vmatpush.bf16.msrb.mxu0 %v18724_v48 }
  0x2b   :  { %1343 = vmatpush.bf16.msrb.mxu1 %v18740_v8 }
  0x2c   :  { %1093 = vmatpush.bf16.msrb.mxu3 %v18733_v61  ;;  %1492 = vmatpush.bf16.msrb.mxu2 %v18748_v9 }
  0x2e   :  { %1200 = vmatpush.bf16.msrb.mxu0 %v18723_v53 }
  0x2f   :  { %1344 = vmatpush.bf16.msrb.mxu1 %v18739_v11 }
  0x30   :  { %1094 = vmatpush.bf16.msrb.mxu3 %v18732_v1  ;;  %1493 = vmatpush.bf16.msrb.mxu2 %v18747_v14 }
  0x31   :  { %190 = vmatmul.bf16.gmra.mxu0 %v18660_v32 }
  0x32   :  { %415 = vmatmul.bf16.gmra.mxu1 %v18676_v33  ;;  %1201 = vmatpush.bf16.msrb.mxu0 %v18722_v62 }
  0x33   :  { %640 = vmatmul.bf16.gmra.mxu2 %v18692_v34  ;;  %1345 = vmatpush.bf16.msrb.mxu1 %v18738_v17 }
  0x34   :  { %1095 = vmatpush.bf16.msrb.mxu3 %v18731_v5  ;;  %1494 = vmatpush.bf16.msrb.mxu2 %v18746_v18 }
  0x36   :  { %1202 = vmatpush.bf16.msrb.mxu0 %v18721_v6 }
  0x37   :  { %833 = vmatmul.bf16.gmra.mxu3 %v18708_v44  ;;  %1346 = vmatpush.bf16.msrb.mxu1 %v18737_v20  ;;  %v18757_v20 = vld [vmem:[%s26494_s3 + $0x130] sm:$0xff] }
  0x38   :  { %1096 = vmatpush.bf16.msrb.mxu3 %v18730_v16  ;;  %1495 = vmatpush.bf16.msrb.mxu2 %v18745_v21 }
  0x3a   :  { %1203 = vmatpush.bf16.msrb.mxu0 %v18720_v7 }
  0x3b   :  { %1347 = vmatpush.bf16.msrb.mxu1 %v18736_v22 }
  0x3c   :  { %1097 = vmatpush.bf16.msrb.mxu3 %v18729_v19  ;;  %1496 = vmatpush.bf16.msrb.mxu2 %v18744_v23 }
  0x3e   :  { %1204 = vmatpush.bf16.msrb.mxu0 %v18719_v10 }
  0x3f   :  { %1348 = vmatpush.bf16.msrb.mxu1 %v18735_v25 }
  0x40   :  { %1098 = vmatpush.bf16.msrb.mxu3 %v18728_v24  ;;  %1497 = vmatpush.bf16.msrb.mxu2 %v18743_v26 }
  0x41   :  { %195 = vmatmul.bf16.gmra.mxu0 %v18661_v40 }
  0x42   :  { %420 = vmatmul.bf16.gmra.mxu1 %v18677_v41  ;;  %1915 = vmatpush.bf16.msra.mxu0 %v18766_v55  ;;  %v18756_v55 = vld [vmem:[%s26494_s3 + $0x128] sm:$0xff] }
  0x43   :  { %645 = vmatmul.bf16.gmra.mxu2 %v18693_v42 }
  0x44   :  { %1099 = vmatpush.bf16.msrb.mxu3 %v18727_v29 }
  0x47   :  { %838 = vmatmul.bf16.gmra.mxu3 %v18709_v49 }
  0x51   :  { %200 = vmatmul.bf16.gmra.mxu0 %v18662_v45 }
  0x52   :  { %425 = vmatmul.bf16.gmra.mxu1 %v18678_v46 }
  0x53   :  { %650 = vmatmul.bf16.gmra.mxu2 %v18694_v47 }
  0x57   :  { %843 = vmatmul.bf16.gmra.mxu3 %v18710_v57 }
  0x61   :  { %205 = vmatmul.bf16.gmra.mxu0 %v18663_v50  ;;  %v18758_v50 = vld [vmem:[%s26494_s3 + $0x138] sm:$0xff] }
  0x62   :  { %430 = vmatmul.bf16.gmra.mxu1 %v18679_v51  ;;  %1756 = vmatpush.bf16.msra.mxu3 %v18758_v50 }
  0x63   :  { %655 = vmatmul.bf16.gmra.mxu2 %v18695_v52 }
  0x66   :  { %1757 = vmatpush.bf16.msra.mxu3 %v18757_v20 }
  0x6a   :  { %1758 = vmatpush.bf16.msra.mxu3 %v18756_v55 }
  0x71   :  { %210 = vmatmul.bf16.gmra.mxu0 %v18664_v58 }
  0x72   :  { %435 = vmatmul.bf16.gmra.mxu1 %v18680_v59 }
  0x73   :  { %660 = vmatmul.bf16.gmra.mxu2 %v18696_v60 }
  0x81   :  { %215 = vmatmul.bf16.gmra.mxu0 %v18665_v2 }
  0x82   :  { %440 = vmatmul.bf16.gmra.mxu1 %v18681_v3 }
  0x83   :  { %665 = vmatmul.bf16.gmra.mxu2 %v18697_v4 }
  0x91   :  { %220 = vmatmul.bf16.gmra.mxu0 %v18666_v12 }
  0x92   :  { %445 = vmatmul.bf16.gmra.mxu1 %v18682_v13 }
  0x93   :  { %670 = vmatmul.bf16.gmra.mxu2 %v18698_v15 }
  0x9e   :  { %v186_v27 = vpop.f32.mrf.mxu0 }
  0x9f   :  { %v411_v28 = vpop.f32.mrf.mxu1  ;;  %v187_v32 = vadd.f32 %v21356_v30, %v186_v27 }
  0xa0   :  { %v412_v31 = vadd.f32 %v21356_v30, %v411_v28 }
  0xa1   :  { %v226_v39 = vmax.f32 %v187_v32, 0.0 }
  0xa2   :  { %v451_v36 = vmax.f32 %v412_v31, 0.0 }
  0xa6   :  { %v636_v33 = vpop.f32.mrf.mxu2  ;;  %v188_v34 = vpop.f32.mrf.mxu0 }
  0xa7   :  { %v413_v35 = vpop.f32.mrf.mxu1  ;;  %v189_v37 = vadd.f32 %v21356_v30, %v188_v34  ;;  %v637_v42 = vadd.f32 %v21356_v30, %v636_v33  ;;  %v18765_v33 = vld [vmem:[%s26494_s3 + $0x170] sm:$0xff] }
  0xa8   :  { %v414_v38 = vadd.f32 %v21356_v30, %v413_v35  ;;  %1916 = vmatpush.bf16.msra.mxu0 %v18765_v33 }
  0xa9   :  { %v227_v40 = vmax.f32 %v189_v37, 0.0  ;;  %v676_v46 = vmax.f32 %v637_v42, 0.0 }
  0xaa   :  { %v452_v41 = vmax.f32 %v414_v38, 0.0  ;;  %v829_v23 = vpop.f32.mrf.mxu3 }
  0xab   :  { %v19418_v43 = vpack.c.bf16 %v227_v40, %v226_v39 }
  0xac   :  { %v19458_v44 = vpack.c.bf16 %v452_v41, %v451_v36 }
  0xad   :  { %19419 = vst [vmem:[#allocation2] sm:$0xff] %v19418_v43   ;;  %1205 = vmatmul.bf16.vlgmr.msrb.gmra.mxu0 %v19418_v43  ;;  %v19558_v62 = vunpack.c.h.b16 %v19418_v43  ;;  %v971_v1 = vshll.u32 %v19418_v43, 16  ;;  %v969_v16 = vshrl.u32 %v19418_v43, 16 }
  0xae   :  { %v638_v45 = vpop.f32.mrf.mxu2  ;;  %20150 = vst [vmem:[#allocation2 + $0x40] sm:$0xff] %v19458_v44   ;;  %v191_v48 = vpop.f32.mrf.mxu0 }
  0xaf   :  { %v639_v47 = vadd.f32 %v21356_v30, %v638_v45  ;;  %v416_v49 = vpop.f32.mrf.mxu1  ;;  %v192_v56 = vadd.f32 %v21356_v30, %v191_v48  ;;  %v973_v9 = vrot.slane %v971_v1, 1 }
  0xb0   :  { %v417_v53 = vadd.f32 %v21356_v30, %v416_v49 }
  0xb1   :  { %v677_v51 = vmax.f32 %v639_v47, 0.0  ;;  %v228_v2 = vmax.f32 %v192_v56, 0.0  ;;  %v974_v25 = vor.u32 %v973_v9, %v969_v16 }
  0xb2   :  { %v453_v61 = vmax.f32 %v417_v53, 0.0  ;;  %v831_v41 = vpop.f32.mrf.mxu3 }
  0xb3   :  { %v19498_v52 = vpack.c.bf16 %v677_v51, %v676_v46 }
  0xb4   :  { %v1246_v54 = vld [vmem:[#allocation2] sm:$0xe] }
  0xb5   :  { %20158 = vst [vmem:[#allocation2 + $0x80] sm:$0xff] %v19498_v52   ;;  %v1265_v58 = vunpack.c.l.b16 %v1246_v54 }
  0xb6   :  { %v641_v57 = vpop.f32.mrf.mxu2  ;;  %v193_v59 = vpop.f32.mrf.mxu0 }
  0xb7   :  { %v418_v60 = vpop.f32.mrf.mxu1  ;;  %v194_v63 = vadd.f32 %v21356_v30, %v193_v59  ;;  %v1266_v5 = vpack.c.b16 %v19558_v62, %v1265_v58  ;;  %v642_v6 = vadd.f32 %v21356_v30, %v641_v57 }
  0xb8   :  { %v419_v0 = vadd.f32 %v21356_v30, %v418_v60  ;;  %v830_v60 = vadd.f32 %v21356_v30, %v829_v23 }
  0xb9   :  { %v229_v3 = vmax.f32 %v194_v63, 0.0  ;;  %v1268_v11 = vrot.slane %v1266_v5, 1  ;;  %v678_v15 = vmax.f32 %v642_v6, 0.0 }
  0xba   :  { %v454_v4 = vmax.f32 %v419_v0, 0.0  ;;  %v834_v58 = vpop.f32.mrf.mxu3  ;;  %v849_v1 = vmax.f32 %v830_v60, 0.0 }
  0xbb   :  { %v21375_v7 = vpack.c.bf16 %v229_v3, %v228_v2  ;;  %v832_v2 = vadd.f32 %v21356_v30, %v831_v41  ;;  %v18764_v3 = vld [vmem:[%s26494_s3 + $0x168] sm:$0xff] }
  0xbc   :  { %v19463_v8 = vpack.c.bf16 %v454_v4, %v453_v61  ;;  %1917 = vmatpush.bf16.msra.mxu0 %v18764_v3 }
  0xbd   :  { %20143 = vst [vmem:[#allocation2 + $0x8] sm:$0xff] %v21375_v7   ;;  %1210 = vmatmul.bf16.gmra.mxu0 %v21375_v7  ;;  %v1269_v12 = vrot.slane %v21375_v7, 1  ;;  %v21381_v13 = vunpack.c.l.b16 %v21375_v7  ;;  %v976_v14 = vshll.u32 %v21375_v7, 16  ;;  %v980_v27 = vshrl.u32 %v21375_v7, 16 }
  0xbe   :  { %v643_v10 = vpop.f32.mrf.mxu2  ;;  %20151 = vst [vmem:[#allocation2 + $0x48] sm:$0xff] %v19463_v8   ;;  %v196_v18 = vpop.f32.mrf.mxu0  ;;  %v850_v9 = vmax.f32 %v832_v2, 0.0 }
  0xbf   :  { %v644_v17 = vadd.f32 %v21356_v30, %v643_v10  ;;  %v421_v19 = vpop.f32.mrf.mxu1  ;;  %v1270_v21 = vsel %vm1267_vm0, %v1268_v11, %v1269_v12  ;;  %v1426_v22 = vpack.c.b16 %v21381_v13, %v19558_v62  ;;  %v978_v26 = vrot.slane %v976_v14, 1 }
  0xc0   :  { %1349 = vmatmul.bf16.vlgmr.msrb.gmra.mxu1 %v1270_v21  ;;  %v422_v31 = vadd.f32 %v21356_v30, %v421_v19  ;;  %v197_v34 = vadd.f32 %v21356_v30, %v196_v18 }
  0xc1   :  { %v679_v24 = vmax.f32 %v644_v17, 0.0  ;;  %1498 = vmatmul.bf16.vlgmr.msrb.gmra.mxu2 %v1426_v22  ;;  %v979_v29 = vsel %vm967_vm1, %v974_v25, %v978_v26  ;;  %v21393_v32 = vor.u32 %v980_v27, %v978_v26 }
  0xc2   :  { %1100 = vmatmul.bf16.vlgmr.msrb.gmra.mxu3 %v979_v29  ;;  %v455_v38 = vmax.f32 %v422_v31, 0.0  ;;  %v230_v42 = vmax.f32 %v197_v34, 0.0  ;;  %v836_v14 = vpop.f32.mrf.mxu3  ;;  %v18755_v31 = vld [vmem:[%s26494_s3 + $0x120] sm:$0xff] }
  0xc3   :  { %v19503_v28 = vpack.c.bf16 %v679_v24, %v678_v15  ;;  %v19538_v15 = vpack.c.bf16 %v850_v9, %v849_v1  ;;  %1759 = vmatpush.bf16.msra.mxu3 %v18755_v31 }
  0xc5   :  { %20159 = vst [vmem:[#allocation2 + $0x88] sm:$0xff] %v19503_v28  }
  0xc6   :  { %v646_v35 = vpop.f32.mrf.mxu2  ;;  %v198_v36 = vpop.f32.mrf.mxu0  ;;  %20166 = vst [vmem:[#allocation2 + $0xc0] sm:$0xff] %v19538_v15  }
  0xc7   :  { %v423_v37 = vpop.f32.mrf.mxu1  ;;  %v199_v39 = vadd.f32 %v21356_v30, %v198_v36  ;;  %v647_v45 = vadd.f32 %v21356_v30, %v646_v35 }
  0xc8   :  { %v424_v40 = vadd.f32 %v21356_v30, %v423_v37 }
  0xc9   :  { %v231_v43 = vmax.f32 %v199_v39, 0.0  ;;  %v680_v51 = vmax.f32 %v647_v45, 0.0  ;;  %v18763_v45 = vld [vmem:[%s26494_s3 + $0x160] sm:$0xff] }
  0xca   :  { %v456_v44 = vmax.f32 %v424_v40, 0.0  ;;  %v839_v36 = vpop.f32.mrf.mxu3  ;;  %1918 = vmatpush.bf16.msra.mxu0 %v18763_v45 }
  0xcb   :  { %v21402_v46 = vpack.c.bf16 %v231_v43, %v230_v42 }
  0xcc   :  { %v19468_v47 = vpack.c.bf16 %v456_v44, %v455_v38  ;;  %v835_v38 = vadd.f32 %v21356_v30, %v834_v58  ;;  %v837_v44 = vadd.f32 %v21356_v30, %v836_v14 }
  0xcd   :  { %20144 = vst [vmem:[#allocation2 + $0x10] sm:$0xff] %v21402_v46   ;;  %1215 = vmatmul.bf16.gmra.mxu0 %v21402_v46  ;;  %v1271_v49 = vrot.slane %v21402_v46, 1  ;;  %v984_v50 = vshll.u32 %v21402_v46, 16  ;;  %v988_v24 = vshrl.u32 %v21402_v46, 16 }
  0xce   :  { %v648_v48 = vpop.f32.mrf.mxu2  ;;  %20152 = vst [vmem:[#allocation2 + $0x50] sm:$0xff] %v19468_v47   ;;  %v201_v53 = vpop.f32.mrf.mxu0  ;;  %v851_v43 = vmax.f32 %v835_v38, 0.0 }
  0xcf   :  { %v649_v52 = vadd.f32 %v21356_v30, %v648_v48  ;;  %v426_v54 = vpop.f32.mrf.mxu1  ;;  %v1272_v56 = vsel %vm1267_vm0, %v1269_v12, %v1271_v49  ;;  %v986_v57 = vrot.slane %v984_v50, 1  ;;  %v202_v4 = vadd.f32 %v21356_v30, %v201_v53 }
  0xd0   :  { %1354 = vmatmul.bf16.gmra.mxu1 %v1272_v56  ;;  %v427_v63 = vadd.f32 %v21356_v30, %v426_v54 }
  0xd1   :  { %v681_v59 = vmax.f32 %v649_v52, 0.0  ;;  %v987_v61 = vsel %vm967_vm1, %v21393_v32, %v986_v57  ;;  %v232_v16 = vmax.f32 %v202_v4, 0.0  ;;  %v990_v34 = vor.u32 %v988_v24, %v986_v57 }
  0xd2   :  { %1105 = vmatmul.bf16.gmra.mxu3 %v987_v61  ;;  %v457_v10 = vmax.f32 %v427_v63, 0.0  ;;  %v852_v52 = vmax.f32 %v837_v44, 0.0  ;;  %v841_v57 = vpop.f32.mrf.mxu3 }
  0xd3   :  { %v19508_v62 = vpack.c.bf16 %v681_v59, %v680_v51  ;;  %v840_v59 = vadd.f32 %v21356_v30, %v839_v36  ;;  %v842_v2 = vadd.f32 %v21356_v30, %v841_v57 }
  0xd4   :  { %v20573_v0 = vld [vmem:[#allocation2 + $0xc] sm:$0xff]   ;;  %v19543_v58 = vpack.c.bf16 %v852_v52, %v851_v43 }
  0xd5   :  { %20160 = vst [vmem:[#allocation2 + $0x90] sm:$0xff] %v19508_v62   ;;  %1503 = vmatmul.bf16.gmra.mxu2 %v20573_v0  ;;  %v853_v1 = vmax.f32 %v840_v59, 0.0 }
  0xd6   :  { %v651_v5 = vpop.f32.mrf.mxu2  ;;  %v203_v6 = vpop.f32.mrf.mxu0  ;;  %20167 = vst [vmem:[#allocation2 + $0xc8] sm:$0xff] %v19543_v58  }
  0xd7   :  { %v428_v8 = vpop.f32.mrf.mxu1  ;;  %v204_v11 = vadd.f32 %v21356_v30, %v203_v6  ;;  %v652_v19 = vadd.f32 %v21356_v30, %v651_v5  ;;  %v854_v6 = vmax.f32 %v842_v2, 0.0  ;;  %v18788_v2 = vld [vmem:[%s26494_s3 + $0x1f0] sm:$0xff] }
  0xd8   :  { %v429_v12 = vadd.f32 %v21356_v30, %v428_v8 }
  0xd9   :  { %v233_v17 = vmax.f32 %v204_v11, 0.0  ;;  %v682_v26 = vmax.f32 %v652_v19, 0.0  ;;  %v18754_v19 = vld [vmem:[%s26494_s3 + $0x118] sm:$0xff] }
  0xda   :  { %v458_v18 = vmax.f32 %v429_v12, 0.0  ;;  %1760 = vmatpush.bf16.msra.mxu3 %v18754_v19  ;;  %v18773_v19 = vld [vmem:[%s26494_s3 + $0x1b0] sm:$0xff] }
  0xdb   :  { %v21425_v20 = vpack.c.bf16 %v233_v17, %v232_v16 }
  0xdc   :  { %v19473_v21 = vpack.c.bf16 %v458_v18, %v457_v10  ;;  %v18789_v18 = vld [vmem:[%s26494_s3 + $0x1f8] sm:$0xff] }
  0xdd   :  { %20145 = vst [vmem:[#allocation2 + $0x18] sm:$0xff] %v21425_v20   ;;  %1220 = vmatmul.bf16.gmra.mxu0 %v21425_v20  ;;  %v1273_v23 = vrot.slane %v21425_v20, 1  ;;  %v992_v25 = vshll.u32 %v21425_v20, 16  ;;  %v996_v11 = vshrl.u32 %v21425_v20, 16  ;;  %2330 = vmatpush.bf16.msra.mxu2 %v18789_v18 }
  0xde   :  { %v653_v22 = vpop.f32.mrf.mxu2  ;;  %20153 = vst [vmem:[#allocation2 + $0x58] sm:$0xff] %v19473_v21   ;;  %v206_v28 = vpop.f32.mrf.mxu0  ;;  %v19548_v21 = vpack.c.bf16 %v854_v6, %v853_v1 }
  0xdf   :  { %v654_v27 = vadd.f32 %v21356_v30, %v653_v22  ;;  %v431_v29 = vpop.f32.mrf.mxu1  ;;  %v1274_v33 = vsel %vm1267_vm0, %v1271_v49, %v1273_v23  ;;  %v994_v35 = vrot.slane %v992_v25, 1  ;;  %v207_v47 = vadd.f32 %v21356_v30, %v206_v28  ;;  %v21447_v49 = vld [vmem:[#allocation2 + $0x10] sm:$0xff] }
  0xe0   :  { %1359 = vmatmul.bf16.gmra.mxu1 %v1274_v33  ;;  %v432_v41 = vadd.f32 %v21356_v30, %v431_v29  ;;  %v2417_v63 = vrot.slane %v21447_v49, 1  ;;  %20168 = vst [vmem:[#allocation2 + $0xd0] sm:$0xff] %v19548_v21   ;;  %v18787_v21 = vld [vmem:[%s26494_s3 + $0x1e8] sm:$0xff] }
  0xe1   :  { %v683_v37 = vmax.f32 %v654_v27, 0.0  ;;  %v995_v39 = vsel %vm967_vm1, %v990_v34, %v994_v35  ;;  %v234_v60 = vmax.f32 %v207_v47, 0.0  ;;  %v998_v24 = vor.u32 %v996_v11, %v994_v35  ;;  %v18762_v34 = vld [vmem:[%s26494_s3 + $0x158] sm:$0xff]  ;;  %2331 = vmatpush.bf16.msra.mxu2 %v18788_v2 }
  0xe2   :  { %1110 = vmatmul.bf16.gmra.mxu3 %v995_v39  ;;  %v459_v54 = vmax.f32 %v432_v41, 0.0  ;;  %1919 = vmatpush.bf16.msra.mxu0 %v18762_v34 }
  0xe3   :  { %v19513_v40 = vpack.c.bf16 %v683_v37, %v682_v26  ;;  %v844_v26 = vpop.f32.mrf.mxu3 }
  0xe4   :  { %v20575_v42 = vld [vmem:[#allocation2 + $0x14] sm:$0xff]  }
  0xe5   :  { %20161 = vst [vmem:[#allocation2 + $0x98] sm:$0xff] %v19513_v40   ;;  %1508 = vmatmul.bf16.gmra.mxu2 %v20575_v42  ;;  %v21449_v53 = vld [vmem:[#allocation2 + $0x18] sm:$0xff]  ;;  %v845_v42 = vadd.f32 %v21356_v30, %v844_v26  ;;  %v18760_v26 = vld [vmem:[%s26494_s3 + $0x148] sm:$0xff] }
  0xe6   :  { %v656_v48 = vpop.f32.mrf.mxu2  ;;  %v208_v50 = vpop.f32.mrf.mxu0  ;;  %v2419_v3 = vrot.slane %v21449_v53, 1  ;;  %2332 = vmatpush.bf16.msra.mxu2 %v18787_v21 }
  0xe7   :  { %v433_v51 = vpop.f32.mrf.mxu1  ;;  %v209_v55 = vadd.f32 %v21356_v30, %v208_v50  ;;  %v657_v0 = vadd.f32 %v21356_v30, %v656_v48  ;;  %v855_v50 = vmax.f32 %v845_v42, 0.0 }
  0xe8   :  { %v434_v56 = vadd.f32 %v21356_v30, %v433_v51  ;;  %v21465_v8 = vsel %vm1267_vm0, %v2417_v63, %v2419_v3 }
  0xe9   :  { %v235_v61 = vmax.f32 %v209_v55, 0.0  ;;  %v684_v14 = vmax.f32 %v657_v0, 0.0 }
  0xea   :  { %v460_v62 = vmax.f32 %v434_v56, 0.0 }
  0xeb   :  { %v21458_v4 = vpack.c.bf16 %v235_v61, %v234_v60  ;;  %v846_v43 = vpop.f32.mrf.mxu3 }
  0xec   :  { %v19478_v5 = vpack.c.bf16 %v460_v62, %v459_v54  ;;  %v847_v44 = vadd.f32 %v21356_v30, %v846_v43 }
  0xed   :  { %20146 = vst [vmem:[#allocation2 + $0x20] sm:$0xff] %v21458_v4   ;;  %1225 = vmatmul.bf16.gmra.mxu0 %v21458_v4  ;;  %v1275_v10 = vrot.slane %v21458_v4, 1  ;;  %v1000_v12 = vshll.u32 %v21458_v4, 16  ;;  %v1004_v59 = vshrl.u32 %v21458_v4, 16 }
  0xee   :  { %v658_v9 = vpop.f32.mrf.mxu2  ;;  %20154 = vst [vmem:[#allocation2 + $0x60] sm:$0xff] %v19478_v5   ;;  %v211_v16 = vpop.f32.mrf.mxu0  ;;  %v856_v52 = vmax.f32 %v847_v44, 0.0  ;;  %v18753_v5 = vld [vmem:[%s26494_s3 + $0x110] sm:$0xff] }
  0xef   :  { %v659_v15 = vadd.f32 %v21356_v30, %v658_v9  ;;  %v436_v17 = vpop.f32.mrf.mxu1  ;;  %v1276_v22 = vsel %vm1267_vm0, %v1273_v23, %v1275_v10  ;;  %v1002_v25 = vrot.slane %v1000_v12, 1  ;;  %v18774_v23 = vld [vmem:[%s26494_s3 + $0x1b8] sm:$0xff]  ;;  %v212_v35 = vadd.f32 %v21356_v30, %v211_v16  ;;  %1761 = vmatpush.bf16.msra.mxu3 %v18753_v5  ;;  %v18761_v16 = vld [vmem:[%s26494_s3 + $0x150] sm:$0xff] }
  0xf0   :  { %1364 = vmatmul.bf16.gmra.mxu1 %v1276_v22  ;;  %v437_v31 = vadd.f32 %v21356_v30, %v436_v17  ;;  %v19553_v56 = vpack.c.bf16 %v856_v52, %v855_v50  ;;  %1920 = vmatpush.bf16.msra.mxu0 %v18761_v16  ;;  %v18786_v52 = vld [vmem:[%s26494_s3 + $0x1e0] sm:$0xff] }
  0xf1   :  { %v685_v27 = vmax.f32 %v659_v15, 0.0  ;;  %v1003_v28 = vsel %vm967_vm1, %v998_v24, %v1002_v25  ;;  %2064 = vmatpush.bf16.msra.mxu1 %v18774_v23  ;;  %v236_v45 = vmax.f32 %v212_v35, 0.0  ;;  %v1006_v9 = vor.u32 %v1004_v59, %v1002_v25  ;;  %2333 = vmatpush.bf16.msra.mxu2 %v18786_v52 }
  0xf2   :  { %1115 = vmatmul.bf16.gmra.mxu3 %v1003_v28  ;;  %v461_v39 = vmax.f32 %v437_v31, 0.0  ;;  %20169 = vst [vmem:[#allocation2 + $0xd8] sm:$0xff] %v19553_v56   ;;  %v18772_v31 = vld [vmem:[%s26494_s3 + $0x1a8] sm:$0xff] }
  0xf3   :  { %v19518_v29 = vpack.c.bf16 %v685_v27, %v684_v14 }
  0xf4   :  { %v20577_v33 = vld [vmem:[#allocation2 + $0x1c] sm:$0xff]   ;;  %1921 = vmatpush.bf16.msra.mxu0 %v18760_v26 }
  0xf5   :  { %20162 = vst [vmem:[#allocation2 + $0xa0] sm:$0xff] %v19518_v29   ;;  %1513 = vmatmul.bf16.gmra.mxu2 %v20577_v33  ;;  %v21519_v14 = vld [vmem:[#allocation2 + $0x20] sm:$0xff]  ;;  %2065 = vmatpush.bf16.msra.mxu1 %v18773_v19  ;;  %v18752_v29 = vld [vmem:[%s26494_s3 + $0x108] sm:$0xff]  ;;  %v18785_v26 = vld [vmem:[%s26494_s3 + $0x1d8] sm:$0xff] }
  0xf6   :  { %v661_v36 = vpop.f32.mrf.mxu2  ;;  %v213_v37 = vpop.f32.mrf.mxu0  ;;  %v2421_v22 = vrot.slane %v21519_v14, 1  ;;  %1762 = vmatpush.bf16.msra.mxu3 %v18752_v29  ;;  %2334 = vmatpush.bf16.msra.mxu2 %v18785_v26  ;;  %v18813_v26 = vld [vmem:[%s26494_s3 + $0x78] sm:$0xff] }
  0xf7   :  { %v438_v38 = vpop.f32.mrf.mxu1  ;;  %v214_v40 = vadd.f32 %v21356_v30, %v213_v37  ;;  %v662_v51 = vadd.f32 %v21356_v30, %v661_v36  ;;  %v2145_v36 = vld [vmem:[#allocation2 + $0x48] sm:$0x1] }
  0xf8   :  { %v439_v41 = vadd.f32 %v21356_v30, %v438_v38  ;;  %v21547_v33 = vsel %vm1267_vm0, %v2419_v3, %v2421_v22  ;;  %v2196_v44 = vunpack.c.l.b16 %v2145_v36 }
  0xf9   :  { %v237_v47 = vmax.f32 %v214_v40, 0.0  ;;  %v686_v61 = vmax.f32 %v662_v51, 0.0  ;;  %v18759_v40 = vld [vmem:[%s26494_s3 + $0x140] sm:$0xff]  ;;  %2066 = vmatpush.bf16.msra.mxu1 %v18772_v31 }
  0xfa   :  { %v462_v48 = vmax.f32 %v439_v41, 0.0  ;;  %1922 = vmatpush.bf16.msra.mxu0 %v18759_v40  ;;  %v21580_v2 = vpack.c.b16 %v2196_v44, %v2196_v44  ;;  %v18767_v44 = vld [vmem:[%s26494_s3 + $0x180] sm:$0xff] }
  0xfb   :  { %v21498_v54 = vpack.c.bf16 %v237_v47, %v236_v45  ;;  %v18771_v45 = vld [vmem:[%s26494_s3 + $0x1a0] sm:$0xff] }
  0xfc   :  { %v19483_v55 = vpack.c.bf16 %v462_v48, %v461_v39  ;;  %v2431_v16 = vrot.slane %v21580_v2, 1 }
  0xfd   :  { %20147 = vst [vmem:[#allocation2 + $0x28] sm:$0xff] %v21498_v54   ;;  %1230 = vmatmul.bf16.gmra.mxu0 %v21498_v54  ;;  %v1277_v58 = vrot.slane %v21498_v54, 1  ;;  %v1008_v60 = vshll.u32 %v21498_v54, 16  ;;  %v1012_v50 = vshrl.u32 %v21498_v54, 16  ;;  %2067 = vmatpush.bf16.msra.mxu1 %v18771_v45 }
  0xfe   :  { %v663_v57 = vpop.f32.mrf.mxu2  ;;  %20155 = vst [vmem:[#allocation2 + $0x68] sm:$0xff] %v19483_v55   ;;  %v216_v0 = vpop.f32.mrf.mxu0  ;;  %2837 = vmatpush.bf16.msrb.mxu0 %v18813_v26 }
  0xff   :  { %v664_v62 = vadd.f32 %v21356_v30, %v663_v57  ;;  %v441_v1 = vpop.f32.mrf.mxu1  ;;  %v1278_v6 = vsel %vm1267_vm0, %v1275_v10, %v1277_v58  ;;  %v21517_v11 = vrot.slane %v1008_v60, 1  ;;  %v217_v24 = vadd.f32 %v21356_v30, %v216_v0 }
 0x100   :  { %1369 = vmatmul.bf16.gmra.mxu1 %v1278_v6  ;;  %v442_v10 = vadd.f32 %v21356_v30, %v441_v1  ;;  %v21578_v1 = vld [vmem:[#allocation2 + $0x40] sm:$0xff]  ;;  %v18770_v6 = vld [vmem:[%s26494_s3 + $0x198] sm:$0xff] }
 0x101   :  { %v687_v12 = vmax.f32 %v664_v62, 0.0  ;;  %v1011_v15 = vsel %vm967_vm1, %v1006_v9, %v21517_v11  ;;  %v238_v37 = vmax.f32 %v217_v24, 0.0  ;;  %v1014_v62 = vor.u32 %v1012_v50, %v21517_v11  ;;  %2068 = vmatpush.bf16.msra.mxu1 %v18770_v6  ;;  %v1821_v6 = vld [vmem:[#allocation2 + $0x4] sm:$0xe] }
 0x102   :  { %1120 = vmatmul.bf16.gmra.mxu3 %v1011_v15  ;;  %v463_v23 = vmax.f32 %v442_v10, 0.0  ;;  %v18769_v10 = vld [vmem:[%s26494_s3 + $0x190] sm:$0xff] }
 0x103   :  { %v19523_v17 = vpack.c.bf16 %v687_v12, %v686_v61 }
 0x104   :  { %v20579_v18 = vld [vmem:[#allocation2 + $0x24] sm:$0xff]  }
 0x105   :  { %20163 = vst [vmem:[#allocation2 + $0xa8] sm:$0xff] %v19523_v17   ;;  %1518 = vmatmul.bf16.gmra.mxu2 %v20579_v18  ;;  %v21555_v3 = vld [vmem:[#allocation2 + $0x28] sm:$0xff]  ;;  %2069 = vmatpush.bf16.msra.mxu1 %v18769_v10  ;;  %v18797_v10 = vld [vmem:[%s26494_s3 + $0x238] sm:$0xff] }
 0x106   :  { %v666_v25 = vpop.f32.mrf.mxu2  ;;  %v218_v27 = vpop.f32.mrf.mxu0  ;;  %v2423_v60 = vrot.slane %v21555_v3, 1 }
 0x107   :  { %v443_v28 = vpop.f32.mrf.mxu1  ;;  %v219_v34 = vadd.f32 %v21356_v30, %v218_v27  ;;  %v667_v41 = vadd.f32 %v21356_v30, %v666_v25  ;;  %v18751_v25 = vld [vmem:[%s26494_s3 + $0x100] sm:$0xff] }
 0x108   :  { %v444_v35 = vadd.f32 %v21356_v30, %v443_v28  ;;  %v21586_v9 = vsel %vm1267_vm0, %v2421_v22, %v2423_v60  ;;  %1763 = vmatpush.bf16.msra.mxu3 %v18751_v25 }
 0x109   :  { %v239_v38 = vmax.f32 %v219_v34, 0.0  ;;  %v688_v55 = vmax.f32 %v667_v41, 0.0  ;;  %v18784_v34 = vld [vmem:[%s26494_s3 + $0x1d0] sm:$0xff] }
 0x10a   :  { %v464_v39 = vmax.f32 %v444_v35, 0.0  ;;  %2335 = vmatpush.bf16.msra.mxu2 %v18784_v34 }
 0x10b   :  { %v21557_v42 = vpack.c.bf16 %v239_v38, %v238_v37 }
 0x10c   :  { %v19488_v43 = vpack.c.bf16 %v464_v39, %v463_v23  ;;  %v18768_v23 = vld [vmem:[%s26494_s3 + $0x188] sm:$0xff]  ;;  %2489 = vmatpush.bf16.msrb.mxu3 %v18797_v10 }
 0x10d   :  { %20148 = vst [vmem:[#allocation2 + $0x30] sm:$0xff] %v21557_v42   ;;  %1235 = vmatmul.bf16.gmra.mxu0 %v21557_v42  ;;  %v1279_v48 = vrot.slane %v21557_v42, 1  ;;  %v1016_v51 = vshll.u32 %v21557_v42, 16  ;;  %2070 = vmatpush.bf16.msra.mxu1 %v18768_v23 }
 0x10e   :  { %v668_v47 = vpop.f32.mrf.mxu2  ;;  %20156 = vst [vmem:[#allocation2 + $0x70] sm:$0xff] %v19488_v43   ;;  %v221_v57 = vpop.f32.mrf.mxu0  ;;  %v18783_v43 = vld [vmem:[%s26494_s3 + $0x1c8] sm:$0xff] }
 0x10f   :  { %v669_v56 = vadd.f32 %v21356_v30, %v668_v47  ;;  %v446_v59 = vpop.f32.mrf.mxu1  ;;  %v1280_v61 = vsel %vm1267_vm0, %v1277_v58, %v1279_v48  ;;  %v1018_v0 = vrot.slane %v1016_v51, 1  ;;  %v2429_v58 = vrot.slane %v21578_v1, 1  ;;  %2336 = vmatpush.bf16.msra.mxu2 %v18783_v43 }
 0x110   :  { %1374 = vmatmul.bf16.gmra.mxu1 %v1280_v61  ;;  %v447_v15 = vadd.f32 %v21356_v30, %v446_v59  ;;  %v222_v18 = vadd.f32 %v21356_v30, %v221_v57  ;;  %v1020_v51 = vshrl.u32 %v21557_v42, 16 }
 0x111   :  { %v689_v5 = vmax.f32 %v669_v56, 0.0  ;;  %v1019_v12 = vsel %vm967_vm1, %v1014_v62, %v1018_v0  ;;  %v21599_v21 = vsel %vm1267_vm0, %v2429_v58, %v2431_v16  ;;  %2071 = vmatpush.bf16.msra.mxu1 %v18767_v44  ;;  %v18782_v62 = vld [vmem:[%s26494_s3 + $0x1c0] sm:$0xff] }
 0x112   :  { %1125 = vmatmul.bf16.gmra.mxu3 %v1019_v12  ;;  %v465_v28 = vmax.f32 %v447_v15, 0.0  ;;  %v240_v35 = vmax.f32 %v222_v18, 0.0  ;;  %v1022_v59 = vor.u32 %v1020_v51, %v1018_v0  ;;  %v906_v12 = vld [vmem:[#allocation2 + $0x40] sm:$0x1]  ;;  %v21643_v15 = vld [vmem:[#allocation2 + $0xc] sm:$0xff]   ;;  %v21668_v51 = vld [vmem:[#allocation2 + $0x14] sm:$0xff]  }
 0x113   :  { %v19528_v11 = vpack.c.bf16 %v689_v5, %v688_v55  ;;  %v957_v0 = vunpack.c.l.b16 %v906_v12  ;;  %2337 = vmatpush.bf16.msra.mxu2 %v18782_v62  ;;  %v1843_v18 = vrot.slane %v21643_v15, 1  ;;  %v2214_v62 = vshll.u32 %v21447_v49, 16 }
 0x114   :  { %v20581_v17 = vld [vmem:[#allocation2 + $0x2c] sm:$0xff]  }
 0x115   :  { %20164 = vst [vmem:[#allocation2 + $0xb0] sm:$0xff] %v19528_v11   ;;  %1523 = vmatmul.bf16.gmra.mxu2 %v20581_v17  ;;  %v21607_v27 = vld [vmem:[#allocation2 + $0x30] sm:$0xff] }
 0x116   :  { %v671_v19 = vpop.f32.mrf.mxu2  ;;  %v223_v22 = vpop.f32.mrf.mxu0  ;;  %v2425_v39 = vrot.slane %v21607_v27, 1 }
 0x117   :  { %v448_v24 = vpop.f32.mrf.mxu1  ;;  %v224_v29 = vadd.f32 %v21356_v30, %v223_v22  ;;  %v672_v38 = vadd.f32 %v21356_v30, %v671_v19  ;;  %v966_v19 = vpack.c.b16 %v957_v0, %v957_v0  ;;  %v21683_v0 = vld [vmem:[#allocation2 + $0x1c] sm:$0xff]  }
 0x118   :  { %v449_v31 = vadd.f32 %v21356_v30, %v448_v24  ;;  %v21628_v45 = vsel %vm1267_vm0, %v2423_v60, %v2425_v39 }
 0x119   :  { %v241_v36 = vmax.f32 %v224_v29, 0.0  ;;  %v690_v55 = vmax.f32 %v672_v38, 0.0  ;;  %v1032_v23 = vshll.u32 %v966_v19, 16  ;;  %v1555_v38 = vld [vmem:[#allocation2 + $0x4] sm:$0xf] }
 0x11a   :  { %v466_v37 = vmax.f32 %v449_v31, 0.0  ;;  %v1606_v44 = vunpack.c.l.b16 %v1555_v38  ;;  %v1644_v38 = vshrl.u32 %v21643_v15, 16 }
 0x11b   :  { %v21619_v40 = vpack.c.bf16 %v241_v36, %v240_v35  ;;  %v1283_v35 = vrot.slane %v966_v19, 1  ;;  %v18795_v19 = vld [vmem:[%s26494_s3 + $0x228] sm:$0xff] }
 0x11c   :  { %v19493_v41 = vpack.c.bf16 %v466_v37, %v465_v28 }
 0x11d   :  { %20149 = vst [vmem:[#allocation2 + $0x38] sm:$0xff] %v21619_v40   ;;  %1240 = vmatmul.bf16.gmra.mxu0 %v21619_v40  ;;  %v1281_v50 = vrot.slane %v21619_v40, 1  ;;  %v1024_v52 = vshll.u32 %v21619_v40, 16  ;;  %v1028_v31 = vshrl.u32 %v21619_v40, 16 }
 0x11e   :  { %v673_v47 = vpop.f32.mrf.mxu2  ;;  %20157 = vst [vmem:[#allocation2 + $0x78] sm:$0xff] %v19493_v41  }
 0x11f   :  { %v674_v56 = vadd.f32 %v21356_v30, %v673_v47  ;;  %v1282_v57 = vsel %vm1267_vm0, %v1279_v48, %v1281_v50  ;;  %v1026_v60 = vrot.slane %v1024_v52, 1  ;;  %v1840_v48 = vunpack.c.l.b16 %v1821_v6 }
 0x120   :  { %1379 = vmatmul.bf16.gmra.mxu1 %v1282_v57  ;;  %v1284_v37 = vsel %vm1267_vm0, %v1281_v50, %v1283_v35  ;;  %v1623_v52 = vpack.c.b16 %v21381_v13, %v1606_v44  ;;  %v1845_v50 = vrot.slane %v21668_v51, 1  ;;  %v1640_v57 = vshll.u32 %v21643_v15, 16 }
 0x121   :  { %v691_v61 = vmax.f32 %v674_v56, 0.0  ;;  %v1027_v5 = vsel %vm967_vm1, %v1022_v59, %v1026_v60  ;;  %v1841_v17 = vpack.c.b16 %v21381_v13, %v1840_v48  ;;  %v1030_v36 = vor.u32 %v1028_v31, %v1026_v60  ;;  %v18812_v59 = vld [vmem:[%s26494_s3 + $0x70] sm:$0xff] }
 0x122   :  { %1130 = vmatmul.bf16.gmra.mxu3 %v1027_v5  ;;  %v1846_v60 = vsel %vm1267_vm0, %v1843_v18, %v1845_v50  ;;  %2838 = vmatpush.bf16.msrb.mxu0 %v18812_v59  ;;  %v1633_v5 = vshrl.u32 %v1623_v52, 16  ;;  %v1642_v6 = vrot.slane %v1640_v57, 1  ;;  %v1648_v31 = vshll.u32 %v21668_v51, 16 }
 0x123   :  { %v19533_v11 = vpack.c.bf16 %v691_v61, %v690_v55  ;;  %v1842_v25 = vrot.slane %v1841_v17, 1  ;;  %v1635_v55 = vshll.u32 %v1623_v52, 16 }
 0x124   :  { %v20583_v30 = vld [vmem:[#allocation2 + $0x34] sm:$0xff]   ;;  %v20584_v47 = vld [vmem:[#allocation2 + $0x3c] sm:$0xff]  ;;  %v1646_v44 = vor.u32 %v1644_v38, %v1642_v6 }
 0x125   :  { %20165 = vst [vmem:[#allocation2 + $0xb8] sm:$0xff] %v19533_v11   ;;  %v21645_v16 = vld [vmem:[#allocation2 + $0x38] sm:$0xff]  ;;  %1528 = vmatmul.bf16.gmra.mxu2 %v20583_v30  ;;  %v1844_v29 = vsel %vm1267_vm0, %v1842_v25, %v1843_v18  ;;  %v1637_v61 = vrot.slane %v1635_v55, 1  ;;  %v2216_v11 = vrot.slane %v2214_v62, 1  ;;  %v1847_v25 = vrot.slane %v21683_v0, 1 }
 0x126   :  { %v2427_v22 = vrot.slane %v21645_v16, 1 }
 0x127   :  { %v1638_v12 = vor.u32 %v1637_v61, %v1633_v5  ;;  %v2217_v17 = vsel %vm967_vm1, %v21393_v32, %v2216_v11  ;;  %v18811_v32 = vld [vmem:[%s26494_s3 + $0x68] sm:$0xff]  ;;  %v1848_v35 = vsel %vm1267_vm0, %v1845_v50, %v1847_v25 }
 0x128   :  { %v21657_v28 = vsel %vm1267_vm0, %v2425_v39, %v2427_v22  ;;  %v21664_v34 = vsel %vm1267_vm0, %v2427_v22, %v2429_v58  ;;  %v1034_v39 = vrot.slane %v1032_v23, 1  ;;  %v18796_v58 = vld [vmem:[%s26494_s3 + $0x230] sm:$0xff]  ;;  %2839 = vmatpush.bf16.msrb.mxu0 %v18811_v32  ;;  %v21709_v61 = vld [vmem:[#allocation2 + $0x24] sm:$0xff]  }
 0x129   :  { %2490 = vmatpush.bf16.msrb.mxu3 %v18796_v58  ;;  %v1643_v48 = vsel %vm967_vm1, %v1638_v12, %v1642_v6  ;;  %v2218_v58 = vshrl.u32 %v21447_v49, 16  ;;  %v1849_v5 = vrot.slane %v21709_v61, 1 }
 0x12a   :  { %v1206_v24 = vpop.f32.mrf.mxu0  ;;  %v1035_v41 = vsel %vm967_vm1, %v1030_v36, %v1034_v39  ;;  %v1650_v39 = vrot.slane %v1648_v31, 1 }
 0x12b   :  { %v2220_v59 = vor.u32 %v2218_v58, %v2216_v11 }
 0x12c   :  { %v1651_v50 = vsel %vm967_vm1, %v1646_v44, %v1650_v39 }
 0x12d   :  { %1923 = vmatmul.bf16.vlgmr.msra.gmra.mxu0 %v1844_v29  ;;  %2491 = vmatpush.bf16.msrb.mxu3 %v18795_v19 }
 0x130   :  { %1384 = vmatmul.bf16.gmra.mxu1 %v1284_v37 }
 0x132   :  { %v1208_v43 = vpop.f32.mrf.mxu0  ;;  %1135 = vmatmul.bf16.gmra.mxu3 %v1035_v41 }
 0x135   :  { %1533 = vmatmul.bf16.gmra.mxu2 %v20584_v47 }
 0x13a   :  { %v1211_v56 = vpop.f32.mrf.mxu0 }
 0x13d   :  { %v1350_v13 = vpop.f32.mrf.mxu1  ;;  %1928 = vmatmul.bf16.gmra.mxu0 %v1846_v60 }
 0x140   :  { %2072 = vmatmul.bf16.vlgmr.msra.gmra.mxu1 %v21375_v7 }
 0x142   :  { %v1213_v30 = vpop.f32.mrf.mxu0  ;;  %1764 = vmatmul.bf16.vlgmr.msra.gmra.mxu3 %v1643_v48  ;;  %v1656_v48 = vshll.u32 %v21683_v0, 16 }
 0x144   :  { %v1499_v22 = vpop.f32.mrf.mxu2 }
 0x145   :  { %v1352_v10 = vpop.f32.mrf.mxu1  ;;  %2338 = vmatmul.bf16.vlgmr.msra.gmra.mxu2 %v2217_v17  ;;  %v1101_v18 = vpop.f32.mrf.mxu3  ;;  %v18810_v17 = vld [vmem:[%s26494_s3 + $0x60] sm:$0xff] }
 0x146   :  { %v1207_v7 = vadd.f32 %v1206_v24, %v1101_v18  ;;  %v2222_v24 = vshll.u32 %v21449_v53, 16  ;;  %v1850_v18 = vsel %vm1267_vm0, %v1847_v25, %v1849_v5  ;;  %2840 = vmatpush.bf16.msrb.mxu0 %v18810_v17  ;;  %v18821_v25 = vld [vmem:[%s26494_s3 + $0xb8] sm:$0xff] }
 0x147   :  { %3084 = vmatpush.bf16.msrb.mxu2 %v18821_v25 }
 0x148   :  { %v1390_v26 = vadd.f32 %v1350_v13, %v1207_v7  ;;  %v2224_v55 = vrot.slane %v2222_v24, 1  ;;  %v18794_v13 = vld [vmem:[%s26494_s3 + $0x220] sm:$0xff]  ;;  %v1652_v7 = vshrl.u32 %v21668_v51, 16  ;;  %v2226_v24 = vshrl.u32 %v21449_v53, 16 }
 0x149   :  { %2492 = vmatpush.bf16.msrb.mxu3 %v18794_v13 }
 0x14a   :  { %v21691_v29 = vpop.f32.mrf.mxu0  ;;  %v21697_v23 = vadd.f32 %v1499_v22, %v1390_v26  ;;  %v2225_v15 = vsel %vm967_vm1, %v2220_v59, %v2224_v55  ;;  %v1658_v26 = vrot.slane %v1656_v48, 1  ;;  %v1654_v32 = vor.u32 %v1652_v7, %v1650_v39  ;;  %v18805_v59 = vld [vmem:[%s26494_s3 + $0x38] sm:$0xff] }
 0x14b   :  { %v2228_v44 = vor.u32 %v2226_v24, %v2224_v55  ;;  %2942 = vmatpush.bf16.msrb.mxu1 %v18805_v59  ;;  %v1660_v48 = vshrl.u32 %v21683_v0, 16  ;;  %v2234_v7 = vshrl.u32 %v21519_v14, 16  ;;  %v18792_v24 = vld [vmem:[%s26494_s3 + $0x210] sm:$0xff]  ;;  %v2246_v59 = vshll.u32 %v21607_v27, 16 }
 0x14c   :  { %v1501_v47 = vpop.f32.mrf.mxu2 }
 0x14d   :  { %v1355_v36 = vpop.f32.mrf.mxu1  ;;  %1933 = vmatmul.bf16.gmra.mxu0 %v1848_v35  ;;  %v1103_v37 = vpop.f32.mrf.mxu3 }
 0x14e   :  { %v1209_v41 = vadd.f32 %v1208_v43, %v1103_v37 }
 0x150   :  { %2077 = vmatmul.bf16.gmra.mxu1 %v21402_v46  ;;  %v1391_v52 = vadd.f32 %v1352_v10, %v1209_v41  ;;  %v1659_v41 = vsel %vm967_vm1, %v1654_v32, %v1658_v26 }
 0x152   :  { %v21704_v57 = vpop.f32.mrf.mxu0  ;;  %1769 = vmatmul.bf16.gmra.mxu3 %v1651_v50  ;;  %v21707_v60 = vadd.f32 %v1501_v47, %v1391_v52  ;;  %v18793_v47 = vld [vmem:[%s26494_s3 + $0x218] sm:$0xff] }
 0x153   :  { %2493 = vmatpush.bf16.msrb.mxu3 %v18793_v47 }
 0x155   :  { %v1357_v43 = vpop.f32.mrf.mxu1  ;;  %2343 = vmatmul.bf16.gmra.mxu2 %v2225_v15  ;;  %v1106_v46 = vpop.f32.mrf.mxu3 }
 0x156   :  { %v1212_v62 = vadd.f32 %v1211_v56, %v1106_v46  ;;  %v2230_v56 = vshll.u32 %v21519_v14, 16  ;;  %v18809_v46 = vld [vmem:[%s26494_s3 + $0x58] sm:$0xff] }
 0x157   :  { %2841 = vmatpush.bf16.msrb.mxu0 %v18809_v46  ;;  %2494 = vmatpush.bf16.msrb.mxu3 %v18792_v24  ;;  %v1668_v46 = vshrl.u32 %v21709_v61, 16  ;;  %v18803_v24 = vld [vmem:[%s26494_s3 + $0x28] sm:$0xff] }
 0x158   :  { %v1504_v6 = vpop.f32.mrf.mxu2  ;;  %v1392_v12 = vadd.f32 %v1355_v36, %v1212_v62  ;;  %v2232_v37 = vrot.slane %v2230_v56, 1 }
 0x15a   :  { %v21716_v11 = vpop.f32.mrf.mxu0  ;;  %v21722_v10 = vadd.f32 %v1504_v6, %v1392_v12  ;;  %v2238_v6 = vshll.u32 %v21555_v3, 16  ;;  %v2236_v0 = vor.u32 %v2234_v7, %v2232_v37 }
 0x15d   :  { %v1360_v19 = vpop.f32.mrf.mxu1  ;;  %1938 = vmatmul.bf16.gmra.mxu0 %v1850_v18  ;;  %v1108_v22 = vpop.f32.mrf.mxu3 }
 0x15e   :  { %v1214_v31 = vadd.f32 %v1213_v30, %v1108_v22  ;;  %v2233_v30 = vsel %vm967_vm1, %v2228_v44, %v2232_v37 }
 0x160   :  { %2082 = vmatmul.bf16.gmra.mxu1 %v21425_v20  ;;  %v1506_v35 = vpop.f32.mrf.mxu2  ;;  %v1393_v36 = vadd.f32 %v1357_v43, %v1214_v31  ;;  %v21737_v20 = vld [vmem:[#allocation2 + $0x2c] sm:$0xff]   ;;  %v1664_v43 = vshll.u32 %v21709_v61, 16  ;;  %v2240_v31 = vrot.slane %v2238_v6, 1 }
 0x161   :  { %v1851_v58 = vrot.slane %v21737_v20, 1  ;;  %v1672_v47 = vshll.u32 %v21737_v20, 16 }
 0x162   :  { %v21732_v38 = vpop.f32.mrf.mxu0  ;;  %1774 = vmatmul.bf16.gmra.mxu3 %v1659_v41  ;;  %v21735_v51 = vadd.f32 %v1506_v35, %v1393_v36  ;;  %v1666_v17 = vrot.slane %v1664_v43, 1 }
 0x164   :  { %v1670_v6 = vor.u32 %v1668_v46, %v1666_v17 }
 0x165   :  { %v1362_v39 = vpop.f32.mrf.mxu1  ;;  %2348 = vmatmul.bf16.gmra.mxu2 %v2233_v30  ;;  %v1111_v53 = vpop.f32.mrf.mxu3  ;;  %v18804_v30 = vld [vmem:[%s26494_s3 + $0x30] sm:$0xff] }
 0x166   :  { %v1217_v52 = vadd.f32 %v21691_v29, %v1111_v53  ;;  %v1852_v29 = vsel %vm1267_vm0, %v1849_v5, %v1851_v58  ;;  %v18820_v5 = vld [vmem:[%s26494_s3 + $0xb0] sm:$0xff]  ;;  %2943 = vmatpush.bf16.msrb.mxu1 %v18804_v30 }
 0x167   :  { %3085 = vmatpush.bf16.msrb.mxu2 %v18820_v5 }
 0x168   :  { %v1509_v55 = vpop.f32.mrf.mxu2  ;;  %v1394_v50 = vadd.f32 %v1360_v19, %v1217_v52  ;;  %v1662_v19 = vor.u32 %v1660_v48, %v1658_v26  ;;  %v2241_v26 = vsel %vm967_vm1, %v2236_v0, %v2240_v31  ;;  %v18808_v52 = vld [vmem:[%s26494_s3 + $0x50] sm:$0xff] }
 0x169   :  { %2842 = vmatpush.bf16.msrb.mxu0 %v18808_v52 }
 0x16a   :  { %v21748_v15 = vpop.f32.mrf.mxu0  ;;  %v21754_v13 = vadd.f32 %v1509_v55, %v1394_v50  ;;  %v1667_v35 = vsel %vm967_vm1, %v1662_v19, %v1666_v17  ;;  %v21795_v19 = vld [vmem:[#allocation2 + $0x40] sm:$0xff]   ;;  %2944 = vmatpush.bf16.msrb.mxu1 %v18803_v24  ;;  %v18816_v24 = vld [vmem:[%s26494_s3 + $0x90] sm:$0xff] }
 0x16d   :  { %v1365_v62 = vpop.f32.mrf.mxu1  ;;  %1943 = vmatmul.bf16.gmra.mxu0 %v1852_v29  ;;  %v1113_v12 = vpop.f32.mrf.mxu3  ;;  %v1674_v29 = vrot.slane %v1672_v47, 1 }
 0x16e   :  { %v1219_v18 = vadd.f32 %v21704_v57, %v1113_v12 }
 0x16f   :  { %v1675_v61 = vsel %vm967_vm1, %v1670_v6, %v1674_v29 }
 0x170   :  { %2087 = vmatmul.bf16.gmra.mxu1 %v21458_v4  ;;  %v1511_v56 = vpop.f32.mrf.mxu2  ;;  %v1395_v22 = vadd.f32 %v1362_v39, %v1219_v18  ;;  %v21770_v4 = vld [vmem:[#allocation2 + $0x34] sm:$0xff]   ;;  %v21015_v39 = vmov 0   ;;  %v2248_v18 = vrot.slane %v2246_v59, 1  ;;  %v1676_v59 = vshrl.u32 %v21737_v20, 16  ;;  %v18818_v20 = vld [vmem:[%s26494_s3 + $0xa0] sm:$0xff] }
 0x171   :  { %v1853_v41 = vrot.slane %v21770_v4, 1  ;;  %39 = vst [vmem:[#allocation2 + $0xe0] sm:$0xf] %v21015_v39  ;;  %v1680_v30 = vshll.u32 %v21770_v4, 16 }
 0x172   :  { %v21765_v32 = vpop.f32.mrf.mxu0  ;;  %1779 = vmatmul.bf16.gmra.mxu3 %v1667_v35  ;;  %v21768_v57 = vadd.f32 %v1511_v56, %v1395_v22  ;;  %40 = vst [vmem:[#allocation2 + $0xe4] sm:$0xf] %v21015_v39  ;;  %v18819_v56 = vld [vmem:[%s26494_s3 + $0xa8] sm:$0xff]  ;;  %v1678_v6 = vor.u32 %v1676_v59, %v1674_v29 }
 0x173   :  { %41 = vst [vmem:[#allocation2 + $0xe8] sm:$0xf] %v21015_v39  ;;  %v1854_v55 = vsel %vm1267_vm0, %v1851_v58, %v1853_v41  ;;  %v2242_v58 = vshrl.u32 %v21555_v3, 16  ;;  %3086 = vmatpush.bf16.msrb.mxu2 %v18819_v56  ;;  %v1621_v3 = vunpack.c.l.b16 %v21795_v19 }
 0x174   :  { %42 = vst [vmem:[#allocation3 + $0xe0] sm:$0xf] %v21015_v39 }
 0x175   :  { %v1367_v36 = vpop.f32.mrf.mxu1  ;;  %2353 = vmatmul.bf16.gmra.mxu2 %v2241_v26  ;;  %v1116_v14 = vpop.f32.mrf.mxu3  ;;  %43 = vst [vmem:[#allocation3 + $0xe4] sm:$0xf] %v21015_v39  ;;  %v2244_v7 = vor.u32 %v2242_v58, %v2240_v31  ;;  %v18791_v26 = vld [vmem:[%s26494_s3 + $0x208] sm:$0xff]  ;;  %v2250_v58 = vshrl.u32 %v21607_v27, 16  ;;  %v18801_v27 = vld [vmem:[%s26494_s3 + $0x18] sm:$0xff] }
 0x176   :  { %v1222_v25 = vadd.f32 %v21716_v11, %v1116_v14  ;;  %44 = vst [vmem:[#allocation3 + $0xe8] sm:$0xf] %v21015_v39  ;;  %2495 = vmatpush.bf16.msrb.mxu3 %v18791_v26 }
 0x177   :  { %v2249_v17 = vsel %vm967_vm1, %v2244_v7, %v2248_v18  ;;  %3087 = vmatpush.bf16.msrb.mxu2 %v18818_v20 }
 0x178   :  { %v1514_v37 = vpop.f32.mrf.mxu2  ;;  %v1396_v44 = vadd.f32 %v1365_v62, %v1222_v25  ;;  %v18807_v25 = vld [vmem:[%s26494_s3 + $0x48] sm:$0xff] }
 0x179   :  { %2843 = vmatpush.bf16.msrb.mxu0 %v18807_v25 }
 0x17a   :  { %v21781_v53 = vpop.f32.mrf.mxu0  ;;  %v21787_v11 = vadd.f32 %v1514_v37, %v1396_v44 }
 0x17d   :  { %v1370_v50 = vpop.f32.mrf.mxu1  ;;  %1948 = vmatmul.bf16.gmra.mxu0 %v1854_v55  ;;  %v1118_v43 = vpop.f32.mrf.mxu3  ;;  %v2254_v55 = vshll.u32 %v21645_v16, 16 }
 0x17e   :  { %v1224_v62 = vadd.f32 %v21732_v38, %v1118_v43  ;;  %v19614_v38 = vunpack.c.h.b16 %v21619_v40  ;;  %v1682_v43 = vrot.slane %v1680_v30, 1 }
 0x17f   :  { %v2256_v56 = vrot.slane %v2254_v55, 1  ;;  %v1684_v55 = vshrl.u32 %v21770_v4, 16  ;;  %v2262_v4 = vshll.u32 %v21578_v1, 16 }
 0x180   :  { %2092 = vmatmul.bf16.gmra.mxu1 %v21498_v54  ;;  %v1516_v12 = vpop.f32.mrf.mxu2  ;;  %v1397_v48 = vadd.f32 %v1367_v36, %v1224_v62  ;;  %v21808_v0 = vpack.c.b16 %v1621_v3, %v19614_v38  ;;  %v1571_v62 = vld [vmem:[#allocation2 + $0x44] sm:$0x1] }
 0x181   :  { %v1622_v38 = vunpack.c.l.b16 %v1571_v62 }
 0x182   :  { %v21800_v22 = vpop.f32.mrf.mxu0  ;;  %1784 = vmatmul.bf16.gmra.mxu3 %v1675_v61  ;;  %v21804_v54 = vadd.f32 %v1516_v12, %v1397_v48  ;;  %v1855_v44 = vrot.slane %v21808_v0, 1  ;;  %v18802_v12 = vld [vmem:[%s26494_s3 + $0x20] sm:$0xff] }
 0x183   :  { %2945 = vmatpush.bf16.msrb.mxu1 %v18802_v12 }
 0x184   :  { %v1856_v47 = vsel %vm1267_vm0, %v1853_v41, %v1855_v44 }
 0x185   :  { %v1372_v5 = vpop.f32.mrf.mxu1  ;;  %2358 = vmatmul.bf16.gmra.mxu2 %v2249_v17  ;;  %v1121_v35 = vpop.f32.mrf.mxu3 }
 0x186   :  { %v1227_v36 = vadd.f32 %v21748_v15, %v1121_v35  ;;  %v18806_v15 = vld [vmem:[%s26494_s3 + $0x40] sm:$0xff]  ;;  %v18817_v35 = vld [vmem:[%s26494_s3 + $0x98] sm:$0xff] }
 0x187   :  { %2844 = vmatpush.bf16.msrb.mxu0 %v18806_v15  ;;  %2946 = vmatpush.bf16.msrb.mxu1 %v18801_v27 }
 0x188   :  { %v1519_v31 = vpop.f32.mrf.mxu2  ;;  %v1398_v14 = vadd.f32 %v1370_v50, %v1227_v36  ;;  %3088 = vmatpush.bf16.msrb.mxu2 %v18817_v35  ;;  %v18800_v36 = vld [vmem:[%s26494_s3 + $0x10] sm:$0xff] }
 0x18a   :  { %v21820_v37 = vpop.f32.mrf.mxu0  ;;  %v21827_v39 = vadd.f32 %v1519_v31, %v1398_v14 }
 0x18b   :  { %2947 = vmatpush.bf16.msrb.mxu1 %v18800_v36 }
 0x18c   :  { %3089 = vmatpush.bf16.msrb.mxu2 %v18816_v24 }
 0x18d   :  { %v1375_v52 = vpop.f32.mrf.mxu1  ;;  %1953 = vmatmul.bf16.gmra.mxu0 %v1856_v47  ;;  %v1123_v50 = vpop.f32.mrf.mxu3 }
 0x18e   :  { %v1229_v46 = vadd.f32 %v21765_v32, %v1123_v50  ;;  %v1683_v32 = vsel %vm967_vm1, %v1678_v6, %v1682_v43  ;;  %v18815_v50 = vld [vmem:[%s26494_s3 + $0x88] sm:$0xff]  ;;  %v1686_v6 = vor.u32 %v1684_v55, %v1682_v43 }
 0x190   :  { %2097 = vmatmul.bf16.gmra.mxu1 %v21557_v42  ;;  %v1521_v41 = vpop.f32.mrf.mxu2  ;;  %v1399_v48 = vadd.f32 %v1372_v5, %v1229_v46  ;;  %v2252_v42 = vor.u32 %v2250_v58, %v2248_v18  ;;  %v21850_v5 = vpack.c.b16 %v1622_v38, %v1622_v38  ;;  %v18790_v18 = vld [vmem:[%s26494_s3 + $0x200] sm:$0xff]  ;;  %3090 = vmatpush.bf16.msrb.mxu2 %v18815_v50  ;;  %v1692_v50 = vshrl.u32 %v21808_v0, 16 }
 0x191   :  { %2496 = vmatpush.bf16.msrb.mxu3 %v18790_v18  ;;  %v21879_v46 = vld [vmem:[#allocation2 + $0x40] sm:$0xff]  }
 0x192   :  { %v21841_v61 = vpop.f32.mrf.mxu0  ;;  %1789 = vmatmul.bf16.gmra.mxu3 %v1683_v32  ;;  %v21844_v29 = vadd.f32 %v1521_v41, %v1399_v48  ;;  %v2257_v7 = vsel %vm967_vm1, %v2252_v42, %v2256_v56  ;;  %v1857_v30 = vrot.slane %v21850_v5, 1  ;;  %v2716_v48 = vshll.u32 %v21879_v46, 16  ;;  %v18798_v58 = vld [vmem:[%s26494_s3] sm:$0xff]  ;;  %v21895_v42 = vld [vmem:[#allocation2 + $0x48] sm:$0xff]  }
 0x194   :  { %v1858_v47 = vsel %vm1267_vm0, %v1855_v44, %v1857_v30  ;;  %v2258_v44 = vshrl.u32 %v21645_v16, 16 }
 0x195   :  { %v1377_v3 = vpop.f32.mrf.mxu1  ;;  %2363 = vmatmul.bf16.gmra.mxu2 %v2257_v7  ;;  %v1126_v17 = vpop.f32.mrf.mxu3  ;;  %v2714_v7 = vshrl.u32 %v21879_v46, 16 }
 0x196   :  { %v1232_v26 = vadd.f32 %v21781_v53, %v1126_v17  ;;  %v18799_v53 = vld [vmem:[%s26494_s3 + $0x8] sm:$0xff]  ;;  %v2260_v43 = vor.u32 %v2258_v44, %v2256_v56  ;;  %v2718_v17 = vrot.slane %v2716_v48, 1  ;;  %v2721_v56 = vshll.u32 %v21895_v42, 16 }
 0x197   :  { %2948 = vmatpush.bf16.msrb.mxu1 %v18799_v53 }
 0x198   :  { %v1524_v31 = vpop.f32.mrf.mxu2  ;;  %v1400_v14 = vadd.f32 %v1375_v52, %v1232_v26  ;;  %v1688_v52 = vshll.u32 %v21808_v0, 16  ;;  %v18829_v26 = vld [vmem:[%s26494_s3 + $0xf8] sm:$0xff] }
 0x199   :  { %3232 = vmatpush.bf16.msra.mxu3 %v18829_v26  ;;  %v19662_v26 = vunpack.c.h.b16 %v21879_v46 }
 0x19a   :  { %v21865_v25 = vpop.f32.mrf.mxu0  ;;  %v21871_v15 = vadd.f32 %v1524_v31, %v1400_v14  ;;  %v1690_v41 = vrot.slane %v1688_v52, 1  ;;  %v2719_v31 = vor.u32 %v2718_v17, %v2714_v7  ;;  %v2723_v14 = vrot.slane %v2721_v56, 1  ;;  %v18828_v7 = vld [vmem:[%s26494_s3 + $0xf0] sm:$0xff] }
 0x19b   :  { %2949 = vmatpush.bf16.msrb.mxu1 %v18798_v58 }
 0x19c   :  { %v1691_v38 = vsel %vm967_vm1, %v1686_v6, %v1690_v41  ;;  %v2724_v52 = vsel %vm967_vm1, %v2719_v31, %v2723_v14  ;;  %v2266_v6 = vshrl.u32 %v21578_v1, 16  ;;  %v1694_v44 = vor.u32 %v1692_v50, %v1690_v41  ;;  %v20220_v31 = vld [vmem:[#allocation2 + $0x8] sm:$0xf0] }
 0x19d   :  { %v1380_v59 = vpop.f32.mrf.mxu1  ;;  %1958 = vmatmul.bf16.gmra.mxu0 %v1858_v47  ;;  %v1128_v62 = vpop.f32.mrf.mxu3  ;;  %v18837_v47 = vld [vmem:[%s26494_s3 + $0x138] sm:$0xff]  ;;  %3233 = vmatpush.bf16.msra.mxu3 %v18828_v7 }
 0x19e   :  { %v1234_v12 = vadd.f32 %v21800_v22, %v1128_v62  ;;  %v18814_v22 = vld [vmem:[%s26494_s3 + $0x80] sm:$0xff]  ;;  %v1696_v62 = vshll.u32 %v21850_v5, 16  ;;  %3497 = vmatpush.bf16.msra.mxu0 %v18837_v47  ;;  %v18836_v47 = vld [vmem:[%s26494_s3 + $0x130] sm:$0xff] }
 0x19f   :  { %3091 = vmatpush.bf16.msrb.mxu2 %v18814_v22 }
 0x1a0   :  { %2102 = vmatmul.bf16.gmra.mxu1 %v21619_v40  ;;  %v1526_v20 = vpop.f32.mrf.mxu2  ;;  %v1401_v32 = vadd.f32 %v1377_v3, %v1234_v12  ;;  %v2264_v40 = vrot.slane %v2262_v4, 1  ;;  %v1698_v48 = vrot.slane %v1696_v62, 1 }
 0x1a2   :  { %v21892_v16 = vpop.f32.mrf.mxu0  ;;  %1794 = vmatmul.bf16.gmra.mxu3 %v1691_v38  ;;  %v21897_v27 = vadd.f32 %v1526_v20, %v1401_v32  ;;  %v2265_v3 = vsel %vm967_vm1, %v2260_v43, %v2264_v40  ;;  %v2268_v32 = vor.u32 %v2266_v6, %v2264_v40  ;;  %v21920_v43 = vld [vmem:[#allocation2 + $0x50] sm:$0xff]   ;;  %v1699_v5 = vsel %vm967_vm1, %v1694_v44, %v1698_v48  ;;  %v2991_v40 = vld [vmem:[#allocation2 + $0x40] sm:$0xe] }
 0x1a3   :  { %3498 = vmatpush.bf16.msra.mxu0 %v18836_v47  ;;  %v3012_v48 = vrot.slane %v21895_v42, 1  ;;  %v3014_v47 = vrot.slane %v21920_v43, 1 }
 0x1a5   :  { %v1382_v18 = vpop.f32.mrf.mxu1  ;;  %2368 = vmatmul.bf16.gmra.mxu2 %v2265_v3  ;;  %v1131_v35 = vpop.f32.mrf.mxu3 }
 0x1a6   :  { %v1237_v36 = vadd.f32 %v21820_v37, %v1131_v35 }
 0x1a8   :  { %v1529_v24 = vpop.f32.mrf.mxu2  ;;  %v1402_v30 = vadd.f32 %v1380_v59, %v1237_v36  ;;  %v2270_v59 = vshll.u32 %v21580_v2, 16  ;;  %v2725_v2 = vshrl.u32 %v21895_v42, 16  ;;  %v3009_v36 = vunpack.c.l.b16 %v2991_v40 }
 0x1aa   :  { %v21906_v53 = vpop.f32.mrf.mxu0  ;;  %v21911_v55 = vadd.f32 %v1529_v24, %v1402_v30  ;;  %v2272_v0 = vrot.slane %v2270_v59, 1  ;;  %v2727_v56 = vor.u32 %v2725_v2, %v2723_v14  ;;  %v20221_v24 = vld [vmem:[#allocation2 + $0x8] sm:$0xe]  ;;  %v3010_v62 = vpack.c.b16 %v19662_v26, %v3009_v36 }
 0x1ab   :  { %v20222_v14 = vor.u32 %v20221_v24, %v20220_v31 }
 0x1ad   :  { %v1385_v37 = vpop.f32.mrf.mxu1  ;;  %2845 = vmatmul.bf16.vlgmr.msrb.gmra.mxu0 %v2724_v52  ;;  %v1133_v12 = vpop.f32.mrf.mxu3  ;;  %v2416_v59 = vrot.slane %v20222_v14, 1 }
 0x1ae   :  { %v1239_v4 = vadd.f32 %v21841_v61, %v1133_v12  ;;  %v2729_v61 = vshll.u32 %v21920_v43, 16 }
 0x1b0   :  { %2107 = vmatmul.bf16.gmra.mxu1 %v21795_v19  ;;  %v1531_v58 = vpop.f32.mrf.mxu2  ;;  %v1403_v20 = vadd.f32 %v1382_v18, %v1239_v4  ;;  %v2273_v19 = vsel %vm967_vm1, %v2268_v32, %v2272_v0  ;;  %v2731_v3 = vrot.slane %v2729_v61, 1  ;;  %v3011_v4 = vrot.slane %v3010_v62, 1 }
 0x1b1   :  { %v2418_v32 = vsel %vm1267_vm0, %v2416_v59, %v2417_v63 }
 0x1b2   :  { %v21923_v22 = vpop.f32.mrf.mxu0  ;;  %1799 = vmatmul.bf16.gmra.mxu3 %v1699_v5  ;;  %v21925_v1 = vadd.f32 %v1531_v58, %v1403_v20  ;;  %v21948_v58 = vld [vmem:[#allocation2 + $0x58] sm:$0xff]   ;;  %v3013_v2 = vsel %vm1267_vm0, %v3011_v4, %v3012_v48 }
 0x1b3   :  { %v2737_v5 = vshll.u32 %v21948_v58, 16  ;;  %v2741_v62 = vshrl.u32 %v21948_v58, 16 }
 0x1b5   :  { %v1387_v41 = vpop.f32.mrf.mxu1  ;;  %2373 = vmatmul.bf16.gmra.mxu2 %v2273_v19  ;;  %v1136_v38 = vpop.f32.mrf.mxu3  ;;  %v2739_v63 = vrot.slane %v2737_v5, 1 }
 0x1b6   :  { %v1242_v17 = vadd.f32 %v21865_v25, %v1136_v38  ;;  %v2732_v25 = vsel %vm967_vm1, %v2727_v56, %v2731_v3  ;;  %v18835_v56 = vld [vmem:[%s26494_s3 + $0x128] sm:$0xff] }
 0x1b7   :  { %3499 = vmatpush.bf16.msra.mxu0 %v18835_v56  ;;  %v2743_v4 = vor.u32 %v2741_v62, %v2739_v63 }
 0x1b8   :  { %v1534_v18 = vpop.f32.mrf.mxu2  ;;  %v1404_v35 = vadd.f32 %v1385_v37, %v1242_v17 }
 0x1ba   :  { %v21935_v30 = vpop.f32.mrf.mxu0  ;;  %v21940_v52 = vadd.f32 %v1534_v18, %v1404_v35 }
 0x1bd   :  { %v2073_v50 = vpop.f32.mrf.mxu1  ;;  %2850 = vmatmul.bf16.gmra.mxu0 %v2732_v25  ;;  %v1138_v37 = vpop.f32.mrf.mxu3  ;;  %v21975_v25 = vld [vmem:[#allocation2 + $0x60] sm:$0xff]  }
 0x1be   :  { %v1244_v6 = vadd.f32 %v21892_v16, %v1138_v37  ;;  %v2733_v16 = vshrl.u32 %v21920_v43, 16  ;;  %v2745_v37 = vshll.u32 %v21975_v25, 16 }
 0x1c0   :  { %2950 = vmatmul.bf16.vlgmr.msrb.gmra.mxu1 %v21879_v46  ;;  %v1536_v12 = vpop.f32.mrf.mxu2  ;;  %v1405_v44 = vadd.f32 %v1387_v41, %v1244_v6  ;;  %v18827_v41 = vld [vmem:[%s26494_s3 + $0xe8] sm:$0xff]  ;;  %v2735_v38 = vor.u32 %v2733_v16, %v2731_v3 }
 0x1c1   :  { %3234 = vmatpush.bf16.msra.mxu3 %v18827_v41 }
 0x1c2   :  { %v1931_v20 = vpop.f32.mrf.mxu0  ;;  %2497 = vmatmul.bf16.vlgmr.msrb.gmra.mxu3 %v2418_v32  ;;  %v21953_v0 = vadd.f32 %v1536_v12, %v1405_v44  ;;  %v2740_v35 = vsel %vm967_vm1, %v2735_v38, %v2739_v63  ;;  %v18826_v12 = vld [vmem:[%s26494_s3 + $0xe0] sm:$0xff]  ;;  %v3016_v63 = vrot.slane %v21948_v58, 1 }
 0x1c5   :  { %v2075_v61 = vpop.f32.mrf.mxu1  ;;  %3092 = vmatmul.bf16.vlgmr.msrb.gmra.mxu2 %v3013_v2  ;;  %v1765_v19 = vpop.f32.mrf.mxu3  ;;  %3235 = vmatpush.bf16.msra.mxu3 %v18826_v12 }
 0x1c6   :  { %v1805_v49 = vadd.f32 %v1765_v19, %v21697_v23 }
 0x1c8   :  { %v2339_v40 = vpop.f32.mrf.mxu2  ;;  %v1964_v7 = vadd.f32 %v21906_v53, %v1805_v49 }
 0x1ca   :  { %v21963_v17 = vpop.f32.mrf.mxu0  ;;  %v2113_v18 = vadd.f32 %v2073_v50, %v1964_v7  ;;  %v18853_v7 = vld [vmem:[%s26494_s3 + $0x1b8] sm:$0xff] }
 0x1cb   :  { %3803 = vmatpush.bf16.msra.mxu2 %v18853_v7  ;;  %v18824_v7 = vld [vmem:[%s26494_s3 + $0xd0] sm:$0xff] }
 0x1cc   :  { %v21969_v31 = vadd.f32 %v2339_v40, %v2113_v18  ;;  %v22001_v40 = vld [vmem:[#allocation2 + $0x68] sm:$0xff]  }
 0x1cd   :  { %v2078_v36 = vpop.f32.mrf.mxu1  ;;  %2855 = vmatmul.bf16.gmra.mxu0 %v2740_v35  ;;  %v1767_v23 = vpop.f32.mrf.mxu3  ;;  %v2753_v35 = vshll.u32 %v22001_v40, 16 }
 0x1ce   :  { %v1806_v3 = vadd.f32 %v1767_v23, %v21707_v60  ;;  %v3015_v60 = vsel %vm1267_vm0, %v3012_v48, %v3014_v47  ;;  %v18834_v48 = vld [vmem:[%s26494_s3 + $0x120] sm:$0xff] }
 0x1cf   :  { %3500 = vmatpush.bf16.msra.mxu0 %v18834_v48  ;;  %v22034_v48 = vld [vmem:[#allocation2 + $0x70] sm:$0xff]  }
 0x1d0   :  { %2955 = vmatmul.bf16.gmra.mxu1 %v21895_v42  ;;  %v2341_v53 = vpop.f32.mrf.mxu2  ;;  %v1965_v24 = vadd.f32 %v21923_v22, %v1806_v3 }
 0x1d2   :  { %v21977_v14 = vpop.f32.mrf.mxu0  ;;  %2502 = vmatmul.bf16.gmra.mxu3 %v21465_v8  ;;  %v2114_v50 = vadd.f32 %v2075_v61, %v1965_v24  ;;  %v2747_v8 = vrot.slane %v2745_v37, 1 }
 0x1d4   :  { %v21983_v59 = vadd.f32 %v2341_v53, %v2114_v50  ;;  %v2748_v61 = vsel %vm967_vm1, %v2743_v4, %v2747_v8  ;;  %v18825_v53 = vld [vmem:[%s26494_s3 + $0xd8] sm:$0xff]  ;;  %v2755_v50 = vrot.slane %v2753_v35, 1 }
 0x1d5   :  { %v2080_v6 = vpop.f32.mrf.mxu1  ;;  %3097 = vmatmul.bf16.gmra.mxu2 %v3015_v60  ;;  %v1770_v22 = vpop.f32.mrf.mxu3  ;;  %3236 = vmatpush.bf16.msra.mxu3 %v18825_v53 }
 0x1d6   :  { %v1807_v44 = vadd.f32 %v1770_v22, %v21722_v10 }
 0x1d8   :  { %v2344_v32 = vpop.f32.mrf.mxu2  ;;  %v1966_v16 = vadd.f32 %v21935_v30, %v1807_v44 }
 0x1d9   :  { %3237 = vmatpush.bf16.msra.mxu3 %v18824_v7 }
 0x1da   :  { %v21990_v5 = vpop.f32.mrf.mxu0  ;;  %v2115_v2 = vadd.f32 %v2078_v36, %v1966_v16  ;;  %v3018_v16 = vrot.slane %v21975_v25, 1 }
 0x1dc   :  { %v21996_v41 = vadd.f32 %v2344_v32, %v2115_v2  ;;  %v18852_v2 = vld [vmem:[%s26494_s3 + $0x1b0] sm:$0xff] }
 0x1dd   :  { %v2083_v19 = vpop.f32.mrf.mxu1  ;;  %2860 = vmatmul.bf16.gmra.mxu0 %v2748_v61  ;;  %v1772_v10 = vpop.f32.mrf.mxu3  ;;  %3804 = vmatpush.bf16.msra.mxu2 %v18852_v2 }
 0x1de   :  { %v1808_v49 = vadd.f32 %v1772_v10, %v21735_v51  ;;  %v2749_v51 = vshrl.u32 %v21975_v25, 16  ;;  %v2761_v10 = vshll.u32 %v22034_v48, 16 }
 0x1e0   :  { %2960 = vmatmul.bf16.gmra.mxu1 %v21920_v43  ;;  %v2346_v30 = vpop.f32.mrf.mxu2  ;;  %v1967_v38 = vadd.f32 %v1931_v20, %v1808_v49  ;;  %v3017_v20 = vsel %vm1267_vm0, %v3014_v47, %v3016_v63  ;;  %v18845_v47 = vld [vmem:[%s26494_s3 + $0x178] sm:$0xff] }
 0x1e1   :  { %3655 = vmatpush.bf16.msra.mxu1 %v18845_v47  ;;  %v3020_v47 = vrot.slane %v22001_v40, 1 }
 0x1e2   :  { %v22006_v56 = vpop.f32.mrf.mxu0  ;;  %2507 = vmatmul.bf16.gmra.mxu3 %v21547_v33  ;;  %v2116_v18 = vadd.f32 %v2080_v6, %v1967_v38  ;;  %v2751_v33 = vor.u32 %v2749_v51, %v2747_v8  ;;  %v18833_v6 = vld [vmem:[%s26494_s3 + $0x118] sm:$0xff]  ;;  %v2763_v51 = vrot.slane %v2761_v10, 1 }
 0x1e3   :  { %3501 = vmatpush.bf16.msra.mxu0 %v18833_v6  ;;  %v18851_v6 = vld [vmem:[%s26494_s3 + $0x1a8] sm:$0xff] }
 0x1e4   :  { %v22012_v23 = vadd.f32 %v2346_v30, %v2116_v18  ;;  %3805 = vmatpush.bf16.msra.mxu2 %v18851_v6 }
 0x1e5   :  { %v2085_v36 = vpop.f32.mrf.mxu1  ;;  %3102 = vmatmul.bf16.gmra.mxu2 %v3017_v20  ;;  %v1775_v3 = vpop.f32.mrf.mxu3 }
 0x1e6   :  { %v1809_v24 = vadd.f32 %v1775_v3, %v21754_v13  ;;  %v2756_v13 = vsel %vm967_vm1, %v2751_v33, %v2755_v50  ;;  %v18832_v3 = vld [vmem:[%s26494_s3 + $0x110] sm:$0xff] }
 0x1e7   :  { %3502 = vmatpush.bf16.msra.mxu0 %v18832_v3 }
 0x1e8   :  { %v2349_v62 = vpop.f32.mrf.mxu2  ;;  %v1968_v37 = vadd.f32 %v21963_v17, %v1809_v24 }
 0x1ea   :  { %v22022_v60 = vpop.f32.mrf.mxu0  ;;  %v2117_v22 = vadd.f32 %v2083_v19, %v1968_v37 }
 0x1ec   :  { %v22028_v44 = vadd.f32 %v2349_v62, %v2117_v22 }
 0x1ed   :  { %v2088_v12 = vpop.f32.mrf.mxu1  ;;  %2865 = vmatmul.bf16.gmra.mxu0 %v2756_v13  ;;  %v1777_v17 = vpop.f32.mrf.mxu3  ;;  %v22073_v13 = vld [vmem:[#allocation2 + $0x78] sm:$0xff]  }
 0x1ee   :  { %v1810_v4 = vadd.f32 %v1777_v17, %v21768_v57  ;;  %v2757_v57 = vshrl.u32 %v22001_v40, 16  ;;  %v2765_v17 = vshrl.u32 %v22034_v48, 16  ;;  %v2769_v2 = vshll.u32 %v22073_v13, 16 }
 0x1f0   :  { %2965 = vmatmul.bf16.gmra.mxu1 %v21948_v58  ;;  %v2351_v8 = vpop.f32.mrf.mxu2  ;;  %v1969_v32 = vadd.f32 %v21977_v14, %v1810_v4  ;;  %v3019_v14 = vsel %vm1267_vm0, %v3016_v63, %v3018_v16  ;;  %v18844_v63 = vld [vmem:[%s26494_s3 + $0x170] sm:$0xff]  ;;  %v2771_v7 = vrot.slane %v2769_v2, 1 }
 0x1f1   :  { %3656 = vmatpush.bf16.msra.mxu1 %v18844_v63 }
 0x1f2   :  { %v22039_v61 = vpop.f32.mrf.mxu0  ;;  %2512 = vmatmul.bf16.gmra.mxu3 %v21586_v9  ;;  %v2118_v19 = vadd.f32 %v2085_v36, %v1969_v32  ;;  %v2759_v9 = vor.u32 %v2757_v57, %v2755_v50  ;;  %v2767_v57 = vor.u32 %v2765_v17, %v2763_v51  ;;  %v3297_v17 = vld [vmem:[#allocation2 + $0x44] sm:$0xf] }
 0x1f4   :  { %v22045_v30 = vadd.f32 %v2351_v8, %v2118_v19 }
 0x1f5   :  { %v2090_v49 = vpop.f32.mrf.mxu1  ;;  %3107 = vmatmul.bf16.gmra.mxu2 %v3019_v14  ;;  %v1780_v38 = vpop.f32.mrf.mxu3 }
 0x1f6   :  { %v1811_v18 = vadd.f32 %v1780_v38, %v21787_v11  ;;  %v2764_v11 = vsel %vm967_vm1, %v2759_v9, %v2763_v51 }
 0x1f8   :  { %v2354_v35 = vpop.f32.mrf.mxu2  ;;  %v1970_v20 = vadd.f32 %v21990_v5, %v1811_v18  ;;  %v2653_v18 = vld [vmem:[#allocation2 + $0x80] sm:$0x1] }
 0x1f9   :  { %v2703_v63 = vunpack.c.l.b16 %v2653_v18  ;;  %v18848_v18 = vld [vmem:[%s26494_s3 + $0x190] sm:$0xff] }
 0x1fa   :  { %v22055_v36 = vpop.f32.mrf.mxu0  ;;  %v2119_v53 = vadd.f32 %v2088_v12, %v1970_v20  ;;  %v22075_v12 = vld [vmem:[#allocation2 + $0x7c] sm:$0xf] }
 0x1fc   :  { %v22061_v33 = vadd.f32 %v2354_v35, %v2119_v53 }
 0x1fd   :  { %v2093_v24 = vpop.f32.mrf.mxu1  ;;  %2870 = vmatmul.bf16.gmra.mxu0 %v2764_v11  ;;  %v1782_v5 = vpop.f32.mrf.mxu3 }
 0x1fe   :  { %v1812_v50 = vadd.f32 %v1782_v5, %v21804_v54  ;;  %v3022_v5 = vrot.slane %v22034_v48, 1 }
 0x200   :  { %2970 = vmatmul.bf16.gmra.mxu1 %v21975_v25  ;;  %v2356_v62 = vpop.f32.mrf.mxu2  ;;  %v1971_v37 = vadd.f32 %v22006_v56, %v1812_v50  ;;  %v3021_v56 = vsel %vm1267_vm0, %v3018_v16, %v3020_v47  ;;  %v18843_v16 = vld [vmem:[%s26494_s3 + $0x168] sm:$0xff]  ;;  %v18850_v50 = vld [vmem:[%s26494_s3 + $0x1a0] sm:$0xff]  ;;  %v3023_v6 = vsel %vm1267_vm0, %v3020_v47, %v3022_v5  ;;  %v18849_v47 = vld [vmem:[%s26494_s3 + $0x198] sm:$0xff] }
 0x201   :  { %3657 = vmatpush.bf16.msra.mxu1 %v18843_v16  ;;  %3806 = vmatpush.bf16.msra.mxu2 %v18850_v50 }
 0x202   :  { %v22070_v22 = vpop.f32.mrf.mxu0  ;;  %2517 = vmatmul.bf16.gmra.mxu3 %v21628_v45  ;;  %v2120_v54 = vadd.f32 %v2090_v49, %v1971_v37  ;;  %v18823_v45 = vld [vmem:[%s26494_s3 + $0xc8] sm:$0xff]  ;;  %v22113_v37 = vpack.c.b16 %v2703_v63, %v2703_v63 }
 0x203   :  { %3238 = vmatpush.bf16.msra.mxu3 %v18823_v45  ;;  %v18831_v49 = vld [vmem:[%s26494_s3 + $0x108] sm:$0xff]  ;;  %v18841_v45 = vld [vmem:[%s26494_s3 + $0x158] sm:$0xff] }
 0x204   :  { %v22079_v8 = vadd.f32 %v2356_v62, %v2120_v54  ;;  %3503 = vmatpush.bf16.msra.mxu0 %v18831_v49  ;;  %v2777_v2 = vshll.u32 %v22113_v37, 16  ;;  %v18840_v49 = vld [vmem:[%s26494_s3 + $0x150] sm:$0xff]  ;;  %v18847_v63 = vld [vmem:[%s26494_s3 + $0x188] sm:$0xff] }
 0x205   :  { %v2095_v4 = vpop.f32.mrf.mxu1  ;;  %3112 = vmatmul.bf16.gmra.mxu2 %v3021_v56  ;;  %v1785_v32 = vpop.f32.mrf.mxu3 }
 0x206   :  { %v1813_v19 = vadd.f32 %v1785_v32, %v21827_v39  ;;  %v18830_v39 = vld [vmem:[%s26494_s3 + $0x100] sm:$0xff]  ;;  %3807 = vmatpush.bf16.msra.mxu2 %v18849_v47 }
 0x208   :  { %v2359_v10 = vpop.f32.mrf.mxu2  ;;  %v1972_v14 = vadd.f32 %v22022_v60, %v1813_v19  ;;  %v2772_v60 = vsel %vm967_vm1, %v2767_v57, %v2771_v7  ;;  %3504 = vmatpush.bf16.msra.mxu0 %v18830_v39  ;;  %v22132_v57 = vunpack.c.l.b16 %v21895_v42 }
 0x20a   :  { %v22093_v38 = vpop.f32.mrf.mxu0  ;;  %v2121_v9 = vadd.f32 %v2093_v24, %v1972_v14  ;;  %v18842_v24 = vld [vmem:[%s26494_s3 + $0x160] sm:$0xff]  ;;  %3808 = vmatpush.bf16.msra.mxu2 %v18848_v18  ;;  %v18876_v18 = vld [vmem:[%s26494_s3 + $0x238] sm:$0xff] }
 0x20b   :  { %3658 = vmatpush.bf16.msra.mxu1 %v18842_v24 }
 0x20c   :  { %v22099_v35 = vadd.f32 %v2359_v10, %v2121_v9  ;;  %v3347_v10 = vunpack.c.l.b16 %v3297_v17  ;;  %4226 = vmatpush.bf16.msrb.mxu0 %v18876_v18 }
 0x20d   :  { %v2098_v51 = vpop.f32.mrf.mxu1  ;;  %2875 = vmatmul.bf16.gmra.mxu0 %v2772_v60  ;;  %v1787_v20 = vpop.f32.mrf.mxu3 }
 0x20e   :  { %v1814_v3 = vadd.f32 %v1787_v20, %v21844_v29  ;;  %v3364_v60 = vpack.c.b16 %v22132_v57, %v3347_v10  ;;  %3809 = vmatpush.bf16.msra.mxu2 %v18847_v63  ;;  %v18868_v10 = vld [vmem:[%s26494_s3 + $0x1f8] sm:$0xff] }
 0x20f   :  { %3659 = vmatpush.bf16.msra.mxu1 %v18841_v45  ;;  %v22185_v63 = vld [vmem:[#allocation2 + $0x54] sm:$0xff]  }
 0x210   :  { %2975 = vmatmul.bf16.gmra.mxu1 %v22001_v40  ;;  %v2361_v53 = vpop.f32.mrf.mxu2  ;;  %v1973_v11 = vadd.f32 %v22039_v61, %v1814_v3  ;;  %v2773_v61 = vshrl.u32 %v22073_v13, 16  ;;  %v3376_v24 = vshll.u32 %v3364_v60, 16 }
 0x212   :  { %v22111_v62 = vpop.f32.mrf.mxu0  ;;  %2522 = vmatmul.bf16.gmra.mxu3 %v21657_v28  ;;  %v2122_v29 = vadd.f32 %v2095_v4, %v1973_v11  ;;  %v18822_v28 = vld [vmem:[%s26494_s3 + $0xc0] sm:$0xff]  ;;  %v2775_v19 = vor.u32 %v2773_v61, %v2771_v7  ;;  %v2779_v7 = vrot.slane %v2777_v2, 1  ;;  %v22155_v11 = vld [vmem:[#allocation2 + $0x4c] sm:$0xff]   ;;  %v3374_v2 = vshrl.u32 %v3364_v60, 16 }
 0x213   :  { %3239 = vmatpush.bf16.msra.mxu3 %v18822_v28  ;;  %3660 = vmatpush.bf16.msra.mxu1 %v18840_v49  ;;  %v18838_v61 = vld [vmem:[%s26494_s3 + $0x140] sm:$0xff]  ;;  %v3378_v45 = vrot.slane %v3376_v24, 1 }
 0x214   :  { %v22118_v56 = vadd.f32 %v2361_v53, %v2122_v29  ;;  %v2780_v9 = vsel %vm967_vm1, %v2775_v19, %v2779_v7 }
 0x215   :  { %v2100_v54 = vpop.f32.mrf.mxu1  ;;  %3117 = vmatmul.bf16.gmra.mxu2 %v3023_v6  ;;  %v1790_v32 = vpop.f32.mrf.mxu3  ;;  %v18846_v6 = vld [vmem:[%s26494_s3 + $0x180] sm:$0xff] }
 0x216   :  { %v1815_v4 = vadd.f32 %v1790_v32, %v21871_v15  ;;  %3810 = vmatpush.bf16.msra.mxu2 %v18846_v6  ;;  %v3389_v6 = vshll.u32 %v22185_v63, 16 }
 0x217   :  { %4068 = vmatpush.bf16.msrb.mxu3 %v18868_v10 }
 0x218   :  { %v2364_v14 = vpop.f32.mrf.mxu2  ;;  %v1974_v16 = vadd.f32 %v22055_v36, %v1815_v4  ;;  %v18839_v36 = vld [vmem:[%s26494_s3 + $0x148] sm:$0xff] }
 0x219   :  { %3661 = vmatpush.bf16.msra.mxu1 %v18839_v36 }
 0x21a   :  { %v22141_v15 = vpop.f32.mrf.mxu0  ;;  %v2123_v39 = vadd.f32 %v2098_v51, %v1974_v16 }
 0x21c   :  { %v22151_v3 = vadd.f32 %v2364_v14, %v2123_v39 }
 0x21d   :  { %v2103_v20 = vpop.f32.mrf.mxu1  ;;  %2880 = vmatmul.bf16.gmra.mxu0 %v2780_v9  ;;  %v1792_v53 = vpop.f32.mrf.mxu3  ;;  %3662 = vmatpush.bf16.msra.mxu1 %v18838_v61  ;;  %v3385_v61 = vshrl.u32 %v22155_v11, 16 }
 0x21e   :  { %v1816_v51 = vadd.f32 %v1792_v53, %v21897_v27  ;;  %v3024_v27 = vrot.slane %v22073_v13, 1 }
 0x220   :  { %2980 = vmatmul.bf16.gmra.mxu1 %v22034_v48  ;;  %v2366_v50 = vpop.f32.mrf.mxu2  ;;  %v1975_v29 = vadd.f32 %v22070_v22, %v1816_v51  ;;  %v3381_v22 = vshll.u32 %v22155_v11, 16  ;;  %v3025_v28 = vsel %vm1267_vm0, %v3022_v5, %v3024_v27 }
 0x222   :  { %v22164_v17 = vpop.f32.mrf.mxu0  ;;  %2527 = vmatmul.bf16.gmra.mxu3 %v21664_v34  ;;  %v2124_v32 = vadd.f32 %v2100_v54, %v1975_v29  ;;  %v3379_v54 = vor.u32 %v3378_v45, %v3374_v2  ;;  %v3383_v14 = vrot.slane %v3381_v22, 1 }
 0x224   :  { %v22170_v4 = vadd.f32 %v2366_v50, %v2124_v32  ;;  %v3384_v39 = vsel %vm967_vm1, %v3379_v54, %v3383_v14 }
 0x225   :  { %v2105_v47 = vpop.f32.mrf.mxu1  ;;  %3122 = vmatmul.bf16.gmra.mxu2 %v3025_v28  ;;  %v1795_v19 = vpop.f32.mrf.mxu3  ;;  %v3391_v28 = vrot.slane %v3389_v6, 1 }
 0x226   :  { %v1817_v34 = vadd.f32 %v1795_v19, %v21911_v55 }
 0x228   :  { %v2369_v16 = vpop.f32.mrf.mxu2  ;;  %v1976_v49 = vadd.f32 %v22093_v38, %v1817_v34  ;;  %v3562_v38 = vld [vmem:[#allocation2 + $0x44] sm:$0xe]  ;;  %v3583_v34 = vrot.slane %v22155_v11, 1 }
 0x229   :  { %v3580_v50 = vunpack.c.l.b16 %v3562_v38  ;;  %v3168_v38 = vpack.c.b16 %v22132_v57, %v19662_v26 }
 0x22a   :  { %v2846_v5 = vpop.f32.mrf.mxu0  ;;  %v2125_v7 = vadd.f32 %v2103_v20, %v1976_v49  ;;  %v3026_v20 = vrot.slane %v22113_v37, 1  ;;  %v3387_v37 = vor.u32 %v3385_v61, %v3383_v14 }
 0x22b   :  { %v3581_v22 = vpack.c.b16 %v22132_v57, %v3580_v50 }
 0x22c   :  { %v22181_v60 = vadd.f32 %v2369_v16, %v2125_v7  ;;  %v3392_v54 = vsel %vm967_vm1, %v3387_v37, %v3391_v28 }
 0x22d   :  { %v2108_v9 = vpop.f32.mrf.mxu1  ;;  %3505 = vmatmul.bf16.vlgmr.msra.gmra.mxu0 %v3384_v39  ;;  %v1797_v36 = vpop.f32.mrf.mxu3  ;;  %v3582_v10 = vrot.slane %v3581_v22, 1  ;;  %v22208_v39 = vld [vmem:[#allocation2 + $0x5c] sm:$0xff]  }
 0x22e   :  { %v1818_v55 = vadd.f32 %v1797_v36, %v21925_v1  ;;  %v3027_v1 = vsel %vm1267_vm0, %v3024_v27, %v3026_v20 }
 0x230   :  { %2985 = vmatmul.bf16.gmra.mxu1 %v22073_v13  ;;  %v2371_v53 = vpop.f32.mrf.mxu2  ;;  %v1977_v51 = vadd.f32 %v22111_v62, %v1818_v55 }
 0x232   :  { %v2848_v24 = vpop.f32.mrf.mxu0  ;;  %2532 = vmatmul.bf16.gmra.mxu3 %v21599_v21  ;;  %v2126_v29 = vadd.f32 %v2105_v47, %v1977_v51  ;;  %v18867_v21 = vld [vmem:[%s26494_s3 + $0x1f0] sm:$0xff] }
 0x233   :  { %4069 = vmatpush.bf16.msrb.mxu3 %v18867_v21 }
 0x234   :  { %v22193_v2 = vadd.f32 %v2371_v53, %v2126_v29 }
 0x235   :  { %v2110_v32 = vpop.f32.mrf.mxu1  ;;  %3127 = vmatmul.bf16.gmra.mxu2 %v3027_v1  ;;  %v1800_v45 = vpop.f32.mrf.mxu3 }
 0x236   :  { %v1819_v62 = vadd.f32 %v1800_v45, %v21940_v52  ;;  %v18875_v52 = vld [vmem:[%s26494_s3 + $0x230] sm:$0xff] }
 0x237   :  { %4227 = vmatpush.bf16.msrb.mxu0 %v18875_v52 }
 0x238   :  { %v2374_v47 = vpop.f32.mrf.mxu2  ;;  %v1978_v19 = vadd.f32 %v22141_v15, %v1819_v62  ;;  %v3584_v15 = vsel %vm1267_vm0, %v3582_v10, %v3583_v34  ;;  %v20617_v10 = vld [vmem:[#allocation2 + $0x4c] sm:$0xff]  }
 0x23a   :  { %v2851_v27 = vpop.f32.mrf.mxu0  ;;  %v2127_v14 = vadd.f32 %v2108_v9, %v1978_v19 }
 0x23c   :  { %v22210_v11 = vadd.f32 %v2374_v47, %v2127_v14  ;;  %v22240_v47 = vld [vmem:[#allocation2 + $0x64] sm:$0xff]  }
 0x23d   :  { %v2951_v16 = vpop.f32.mrf.mxu1  ;;  %3510 = vmatmul.bf16.gmra.mxu0 %v3392_v54  ;;  %v1802_v49 = vpop.f32.mrf.mxu3 }
 0x23e   :  { %v2952_v18 = vadd.f32 %v2951_v16, %v2846_v5  ;;  %v1820_v7 = vadd.f32 %v1802_v49, %v21953_v0  ;;  %v3393_v5 = vshrl.u32 %v22185_v63, 16  ;;  %v3397_v0 = vshll.u32 %v22208_v39, 16 }
 0x240   :  { %3663 = vmatmul.bf16.vlgmr.msra.gmra.mxu1 %v3584_v15  ;;  %v2376_v36 = vpop.f32.mrf.mxu2  ;;  %v1979_v55 = vadd.f32 %v22164_v17, %v1820_v7  ;;  %v18866_v17 = vld [vmem:[%s26494_s3 + $0x1e8] sm:$0xff]  ;;  %v3395_v29 = vor.u32 %v3393_v5, %v3391_v28  ;;  %v3399_v46 = vrot.slane %v3397_v0, 1  ;;  %v18865_v15 = vld [vmem:[%s26494_s3 + $0x1e0] sm:$0xff] }
 0x241   :  { %4070 = vmatpush.bf16.msrb.mxu3 %v18866_v17 }
 0x242   :  { %v2853_v53 = vpop.f32.mrf.mxu0  ;;  %3240 = vmatmul.bf16.vlgmr.msra.gmra.mxu3 %v3168_v38  ;;  %v2128_v50 = vadd.f32 %v2110_v32, %v1979_v55  ;;  %v18874_v32 = vld [vmem:[%s26494_s3 + $0x228] sm:$0xff]  ;;  %v3400_v45 = vsel %vm967_vm1, %v3395_v29, %v3399_v46 }
 0x243   :  { %4228 = vmatpush.bf16.msrb.mxu0 %v18874_v32  ;;  %v20619_v32 = vld [vmem:[#allocation2 + $0x54] sm:$0xff]  }
 0x244   :  { %v22222_v61 = vadd.f32 %v2376_v36, %v2128_v50 }
 0x245   :  { %v2953_v9 = vpop.f32.mrf.mxu1  ;;  %3811 = vmatmul.bf16.vlgmr.msra.gmra.mxu2 %v21895_v42  ;;  %v2498_v51 = vpop.f32.mrf.mxu3  ;;  %v22230_v42 = vld [vmem:[%s26495_s4] ss:$0 sm:$0xff]  ;;  %4071 = vmatpush.bf16.msrb.mxu3 %v18865_v15 }
 0x246   :  { %v2954_v20 = vadd.f32 %v2953_v9, %v2848_v24  ;;  %v2538_v1 = vadd.f32 %v2498_v51, %v21969_v31  ;;  %v3585_v24 = vrot.slane %v22185_v63, 1  ;;  %v3587_v51 = vrot.slane %v22208_v39, 1 }
 0x248   :  { %v3093_v26 = vpop.f32.mrf.mxu2  ;;  %v2557_v31 = vadd.f32 %v22230_v42, %v2538_v1  ;;  %v3586_v28 = vsel %vm1267_vm0, %v3583_v34, %v3585_v24 }
 0x249   :  { %v22224_v57 = vadd.f32 %v3093_v26, %v2952_v18  ;;  %v3405_v18 = vshll.u32 %v22240_v47, 16  ;;  %v3588_v26 = vsel %vm1267_vm0, %v3585_v24, %v3587_v51 }
 0x24a   :  { %v2856_v6 = vpop.f32.mrf.mxu0  ;;  %v2573_v16 = vmax.f32 %v2557_v31, 0.0 }
 0x24b   :  { %v3407_v55 = vrot.slane %v3405_v18, 1 }
 0x24d   :  { %v2956_v62 = vpop.f32.mrf.mxu1  ;;  %3515 = vmatmul.bf16.gmra.mxu0 %v3400_v45  ;;  %v2500_v22 = vpop.f32.mrf.mxu3 }
 0x24e   :  { %v2957_v21 = vadd.f32 %v2956_v62, %v2851_v27  ;;  %v2539_v37 = vadd.f32 %v2500_v22, %v21983_v59  ;;  %v3401_v27 = vshrl.u32 %v22208_v39, 16 }
 0x250   :  { %3668 = vmatmul.bf16.gmra.mxu1 %v3586_v28  ;;  %v3095_v63 = vpop.f32.mrf.mxu2  ;;  %v2558_v19 = vadd.f32 %v22230_v42, %v2539_v37  ;;  %v3403_v36 = vor.u32 %v3401_v27, %v3399_v46 }
 0x251   :  { %v22243_v52 = vadd.f32 %v3095_v63, %v2954_v20  ;;  %v18884_v63 = vld [vmem:[%s26494_s3 + $0x38] sm:$0xff] }
 0x252   :  { %v2858_v54 = vpop.f32.mrf.mxu0  ;;  %v2574_v49 = vmax.f32 %v2558_v19, 0.0  ;;  %3245 = vmatmul.bf16.gmra.mxu3 %v20617_v10  ;;  %v18864_v19 = vld [vmem:[%s26494_s3 + $0x1d8] sm:$0xff]  ;;  %4676 = vmatpush.bf16.msrb.mxu2 %v18884_v63  ;;  %v18871_v63 = vld [vmem:[%s26494_s3 + $0x210] sm:$0xff] }
 0x253   :  { %4072 = vmatpush.bf16.msrb.mxu3 %v18864_v19 }
 0x254   :  { %v19622_v59 = vpack.c.bf16 %v2574_v49, %v2573_v16 }
 0x255   :  { %v2958_v14 = vpop.f32.mrf.mxu1  ;;  %3816 = vmatmul.bf16.gmra.mxu2 %v21920_v43  ;;  %v2503_v34 = vpop.f32.mrf.mxu3  ;;  %v18873_v43 = vld [vmem:[%s26494_s3 + $0x220] sm:$0xff] }
 0x256   :  { %v2959_v7 = vadd.f32 %v2958_v14, %v2853_v53  ;;  %19623 = vst [vmem:[#allocation3] sm:$0xff] %v19622_v59   ;;  %v2540_v9 = vadd.f32 %v2503_v34, %v21996_v41  ;;  %v3408_v53 = vsel %vm967_vm1, %v3403_v36, %v3407_v55  ;;  %4229 = vmatpush.bf16.msrb.mxu0 %v18873_v43  ;;  %v22262_v41 = vld [vmem:[#allocation2 + $0x6c] sm:$0xff]   ;;  %v3589_v59 = vrot.slane %v22240_v47, 1  ;;  %v18872_v14 = vld [vmem:[%s26494_s3 + $0x218] sm:$0xff] }
 0x257   :  { %v3413_v31 = vshll.u32 %v22262_v41, 16  ;;  %v20621_v43 = vld [vmem:[#allocation2 + $0x5c] sm:$0xff]  }
 0x258   :  { %v3098_v38 = vpop.f32.mrf.mxu2  ;;  %v2559_v29 = vadd.f32 %v22230_v42, %v2540_v9 }
 0x259   :  { %v22251_v5 = vadd.f32 %v3098_v38, %v2957_v21  ;;  %v3415_v16 = vrot.slane %v3413_v31, 1 }
 0x25a   :  { %v2861_v0 = vpop.f32.mrf.mxu0  ;;  %v2575_v22 = vmax.f32 %v2559_v29, 0.0  ;;  %4230 = vmatpush.bf16.msrb.mxu0 %v18872_v14 }
 0x25d   :  { %v2961_v20 = vpop.f32.mrf.mxu1  ;;  %3520 = vmatmul.bf16.gmra.mxu0 %v3408_v53  ;;  %v2505_v50 = vpop.f32.mrf.mxu3 }
 0x25e   :  { %v2962_v17 = vadd.f32 %v2961_v20, %v2856_v6  ;;  %v2541_v46 = vadd.f32 %v2505_v50, %v22012_v23  ;;  %v3409_v6 = vshrl.u32 %v22240_v47, 16  ;;  %v22293_v50 = vld [vmem:[#allocation2 + $0x74] sm:$0xff]   ;;  %4231 = vmatpush.bf16.msrb.mxu0 %v18871_v63 }
 0x260   :  { %3673 = vmatmul.bf16.gmra.mxu1 %v3588_v26  ;;  %v3100_v39 = vpop.f32.mrf.mxu2  ;;  %v2560_v1 = vadd.f32 %v22230_v42, %v2541_v46  ;;  %v3411_v10 = vor.u32 %v3409_v6, %v3407_v55 }
 0x261   :  { %v22265_v45 = vadd.f32 %v3100_v39, %v2959_v7  ;;  %v3421_v39 = vshll.u32 %v22293_v50, 16 }
 0x262   :  { %v2863_v62 = vpop.f32.mrf.mxu0  ;;  %v2576_v21 = vmax.f32 %v2560_v1, 0.0  ;;  %3250 = vmatmul.bf16.gmra.mxu3 %v20619_v32  ;;  %v3416_v34 = vsel %vm967_vm1, %v3411_v10, %v3415_v16  ;;  %v18883_v1 = vld [vmem:[%s26494_s3 + $0x30] sm:$0xff] }
 0x263   :  { %v18863_v32 = vld [vmem:[%s26494_s3 + $0x1d0] sm:$0xff]  ;;  %4677 = vmatpush.bf16.msrb.mxu2 %v18883_v1  ;;  %v3423_v31 = vrot.slane %v3421_v39, 1 }
 0x264   :  { %v19627_v23 = vpack.c.bf16 %v2576_v21, %v2575_v22  ;;  %4073 = vmatpush.bf16.msrb.mxu3 %v18863_v32  ;;  %v3593_v32 = vrot.slane %v22293_v50, 1 }
 0x265   :  { %v2963_v37 = vpop.f32.mrf.mxu1  ;;  %3821 = vmatmul.bf16.gmra.mxu2 %v21948_v58  ;;  %v2508_v24 = vpop.f32.mrf.mxu3  ;;  %v18892_v58 = vld [vmem:[%s26494_s3 + $0x78] sm:$0xff] }
 0x266   :  { %v2964_v28 = vadd.f32 %v2963_v37, %v2858_v54  ;;  %20223 = vst [vmem:[#allocation3 + $0x8] sm:$0xff] %v19627_v23   ;;  %v2542_v54 = vadd.f32 %v2508_v24, %v22028_v44  ;;  %4571 = vmatpush.bf16.msrb.mxu1 %v18892_v58  ;;  %v3590_v44 = vsel %vm1267_vm0, %v3587_v51, %v3589_v59  ;;  %v3591_v37 = vrot.slane %v22262_v41, 1  ;;  %v22311_v24 = vld [vmem:[#allocation2 + $0x80] sm:$0xff]  }
 0x268   :  { %v3103_v49 = vpop.f32.mrf.mxu2  ;;  %v2561_v55 = vadd.f32 %v22230_v42, %v2542_v54 }
 0x269   :  { %v22276_v27 = vadd.f32 %v3103_v49, %v2962_v17 }
 0x26a   :  { %v2866_v18 = vpop.f32.mrf.mxu0  ;;  %v2577_v17 = vmax.f32 %v2561_v55, 0.0 }
 0x26d   :  { %v2966_v7 = vpop.f32.mrf.mxu1  ;;  %3525 = vmatmul.bf16.gmra.mxu0 %v3416_v34  ;;  %v2510_v15 = vpop.f32.mrf.mxu3 }
 0x26e   :  { %v2967_v36 = vadd.f32 %v2966_v7, %v2861_v0  ;;  %v2543_v38 = vadd.f32 %v2510_v15, %v22045_v30  ;;  %v3417_v0 = vshrl.u32 %v22262_v41, 16  ;;  %v3592_v41 = vsel %vm1267_vm0, %v3589_v59, %v3591_v37  ;;  %v20623_v7 = vld [vmem:[#allocation2 + $0x64] sm:$0xff]  }
 0x270   :  { %3678 = vmatmul.bf16.gmra.mxu1 %v3590_v44  ;;  %v3105_v47 = vpop.f32.mrf.mxu2  ;;  %v2562_v9 = vadd.f32 %v22230_v42, %v2543_v38  ;;  %v3419_v22 = vor.u32 %v3417_v0, %v3415_v16  ;;  %v3425_v38 = vshrl.u32 %v22293_v50, 16 }
 0x271   :  { %v22291_v53 = vadd.f32 %v3105_v47, %v2964_v28  ;;  %v21010_v28 = vld [vmem:[#allocation2 + $0x7c] sm:$0xf0]  }
 0x272   :  { %v2868_v20 = vpop.f32.mrf.mxu0  ;;  %v2578_v29 = vmax.f32 %v2562_v9, 0.0  ;;  %3255 = vmatmul.bf16.gmra.mxu3 %v20621_v43  ;;  %v3424_v19 = vsel %vm967_vm1, %v3419_v22, %v3423_v31  ;;  %v22321_v54 = vor.u32 %v21010_v28, %v22075_v12  ;;  %v18882_v9 = vld [vmem:[%s26494_s3 + $0x28] sm:$0xff]  ;;  %v3594_v28 = vsel %vm1267_vm0, %v3591_v37, %v3593_v32 }
 0x273   :  { %v18862_v43 = vld [vmem:[%s26494_s3 + $0x1c8] sm:$0xff]  ;;  %4678 = vmatpush.bf16.msrb.mxu2 %v18882_v9 }
 0x274   :  { %v19632_v46 = vpack.c.bf16 %v2578_v29, %v2577_v17  ;;  %v3427_v17 = vor.u32 %v3425_v38, %v3423_v31  ;;  %4074 = vmatpush.bf16.msrb.mxu3 %v18862_v43  ;;  %v3595_v9 = vrot.slane %v22321_v54, 1 }
 0x275   :  { %v2968_v26 = vpop.f32.mrf.mxu1  ;;  %3826 = vmatmul.bf16.gmra.mxu2 %v21975_v25  ;;  %v2513_v30 = vpop.f32.mrf.mxu3 }
 0x276   :  { %v2969_v51 = vadd.f32 %v2968_v26, %v2863_v62  ;;  %20224 = vst [vmem:[#allocation3 + $0x10] sm:$0xff] %v19632_v46   ;;  %v18891_v62 = vld [vmem:[%s26494_s3 + $0x70] sm:$0xff]  ;;  %v2544_v23 = vadd.f32 %v2513_v30, %v22061_v33  ;;  %v3313_v30 = vld [vmem:[#allocation2 + $0x84] sm:$0x1] }
 0x277   :  { %4572 = vmatpush.bf16.msrb.mxu1 %v18891_v62  ;;  %v3363_v31 = vunpack.c.l.b16 %v3313_v30  ;;  %v3596_v30 = vsel %vm1267_vm0, %v3593_v32, %v3595_v9  ;;  %v18878_v32 = vld [vmem:[%s26494_s3 + $0x8] sm:$0xff] }
 0x278   :  { %v3108_v21 = vpop.f32.mrf.mxu2  ;;  %v2563_v58 = vadd.f32 %v22230_v42, %v2544_v23 }
 0x279   :  { %v22304_v6 = vadd.f32 %v3108_v21, %v2967_v36 }
 0x27a   :  { %v2871_v25 = vpop.f32.mrf.mxu0  ;;  %v2579_v55 = vmax.f32 %v2563_v58, 0.0 }
 0x27d   :  { %v2971_v10 = vpop.f32.mrf.mxu1  ;;  %3530 = vmatmul.bf16.gmra.mxu0 %v3424_v19  ;;  %v2515_v16 = vpop.f32.mrf.mxu3 }
 0x27e   :  { %v2972_v49 = vadd.f32 %v2971_v10, %v2866_v18  ;;  %v2545_v33 = vadd.f32 %v2515_v16, %v22079_v8  ;;  %v3429_v8 = vshll.u32 %v22321_v54, 16  ;;  %v20625_v10 = vld [vmem:[#allocation2 + $0x6c] sm:$0xff]   ;;  %v22355_v16 = vpack.c.b16 %v3363_v31, %v3363_v31 }
 0x280   :  { %3683 = vmatmul.bf16.gmra.mxu1 %v3592_v41  ;;  %v3110_v14 = vpop.f32.mrf.mxu2  ;;  %v2564_v34 = vadd.f32 %v22230_v42, %v2545_v33  ;;  %v3431_v29 = vrot.slane %v3429_v8, 1 }
 0x281   :  { %v22324_v15 = vadd.f32 %v3110_v14, %v2969_v51  ;;  %v18870_v51 = vld [vmem:[%s26494_s3 + $0x208] sm:$0xff]  ;;  %v3433_v14 = vshrl.u32 %v22321_v54, 16 }
 0x282   :  { %v2873_v36 = vpop.f32.mrf.mxu0  ;;  %v2580_v18 = vmax.f32 %v2564_v34, 0.0  ;;  %3260 = vmatmul.bf16.gmra.mxu3 %v20623_v7  ;;  %v3432_v39 = vsel %vm967_vm1, %v3427_v17, %v3431_v29  ;;  %4232 = vmatpush.bf16.msrb.mxu0 %v18870_v51  ;;  %v3437_v34 = vshll.u32 %v22355_v16, 16  ;;  %v18889_v7 = vld [vmem:[%s26494_s3 + $0x60] sm:$0xff]  ;;  %v20281_v51 = vld [vmem:[#allocation2 + $0x48] sm:$0xf0] }
 0x284   :  { %v19637_v44 = vpack.c.bf16 %v2580_v18, %v2579_v55  ;;  %v18881_v55 = vld [vmem:[%s26494_s3 + $0x20] sm:$0xff]  ;;  %v3435_v18 = vor.u32 %v3433_v14, %v3431_v29  ;;  %v18887_v29 = vld [vmem:[%s26494_s3 + $0x50] sm:$0xff] }
 0x285   :  { %v2973_v59 = vpop.f32.mrf.mxu1  ;;  %3831 = vmatmul.bf16.gmra.mxu2 %v22001_v40  ;;  %v2518_v12 = vpop.f32.mrf.mxu3  ;;  %v18890_v40 = vld [vmem:[%s26494_s3 + $0x68] sm:$0xff] }
 0x286   :  { %v2974_v47 = vadd.f32 %v2973_v59, %v2868_v20  ;;  %20225 = vst [vmem:[#allocation3 + $0x18] sm:$0xff] %v19637_v44   ;;  %v2546_v20 = vadd.f32 %v2518_v12, %v22099_v35  ;;  %4573 = vmatpush.bf16.msrb.mxu1 %v18890_v40  ;;  %v18869_v35 = vld [vmem:[%s26494_s3 + $0x200] sm:$0xff]  ;;  %4679 = vmatpush.bf16.msrb.mxu2 %v18881_v55  ;;  %v3439_v59 = vrot.slane %v3437_v34, 1  ;;  %v18880_v12 = vld [vmem:[%s26494_s3 + $0x18] sm:$0xff] }
 0x287   :  { %4233 = vmatpush.bf16.msrb.mxu0 %v18869_v35  ;;  %v18908_v34 = vld [vmem:[%s26494_s3 + $0xf8] sm:$0xff] }
 0x288   :  { %v3113_v0 = vpop.f32.mrf.mxu2  ;;  %v2565_v62 = vadd.f32 %v22230_v42, %v2546_v20  ;;  %v3440_v43 = vsel %vm967_vm1, %v3435_v18, %v3439_v59  ;;  %v18879_v20 = vld [vmem:[%s26494_s3 + $0x10] sm:$0xff] }
 0x289   :  { %v22335_v46 = vadd.f32 %v3113_v0, %v2972_v49 }
 0x28a   :  { %v2876_v26 = vpop.f32.mrf.mxu0  ;;  %v2581_v49 = vmax.f32 %v2565_v62, 0.0  ;;  %4574 = vmatpush.bf16.msrb.mxu1 %v18889_v7  ;;  %4680 = vmatpush.bf16.msrb.mxu2 %v18880_v12 }
 0x28b   :  { %4966 = vmatpush.bf16.msra.mxu0 %v18908_v34 }
 0x28d   :  { %v2976_v1 = vpop.f32.mrf.mxu1  ;;  %3535 = vmatmul.bf16.gmra.mxu0 %v3432_v39  ;;  %v2520_v22 = vpop.f32.mrf.mxu3 }
 0x28e   :  { %v2977_v21 = vadd.f32 %v2976_v1, %v2871_v25  ;;  %v2547_v23 = vadd.f32 %v2520_v22, %v22118_v56  ;;  %v20627_v22 = vld [vmem:[#allocation2 + $0x74] sm:$0xff]   ;;  %4681 = vmatpush.bf16.msrb.mxu2 %v18879_v20 }
 0x290   :  { %3688 = vmatmul.bf16.gmra.mxu1 %v3594_v28  ;;  %v3115_v63 = vpop.f32.mrf.mxu2  ;;  %v2566_v19 = vadd.f32 %v22230_v42, %v2547_v23 }
 0x291   :  { %v22353_v50 = vadd.f32 %v3115_v63, %v2974_v47 }
 0x292   :  { %v2878_v25 = vpop.f32.mrf.mxu0  ;;  %v2582_v58 = vmax.f32 %v2566_v19, 0.0  ;;  %3265 = vmatmul.bf16.gmra.mxu3 %v20625_v10  ;;  %4682 = vmatpush.bf16.msrb.mxu2 %v18878_v32 }
 0x294   :  { %v19642_v33 = vpack.c.bf16 %v2582_v58, %v2581_v49  ;;  %v22399_v49 = vld [vmem:[#allocation2 + $0x50] sm:$0xff]  ;;  %v18885_v58 = vld [vmem:[%s26494_s3 + $0x40] sm:$0xff] }
 0x295   :  { %v2978_v41 = vpop.f32.mrf.mxu1  ;;  %3836 = vmatmul.bf16.gmra.mxu2 %v22034_v48  ;;  %v2523_v56 = vpop.f32.mrf.mxu3  ;;  %v18861_v48 = vld [vmem:[%s26494_s3 + $0x1c0] sm:$0xff] }
 0x296   :  { %v2979_v37 = vadd.f32 %v2978_v41, %v2873_v36  ;;  %20226 = vst [vmem:[#allocation3 + $0x20] sm:$0xff] %v19642_v33   ;;  %v18888_v36 = vld [vmem:[%s26494_s3 + $0x58] sm:$0xff]  ;;  %4075 = vmatpush.bf16.msrb.mxu3 %v18861_v48  ;;  %v2548_v47 = vadd.f32 %v2523_v56, %v22151_v3  ;;  %v18877_v33 = vld [vmem:[%s26494_s3] sm:$0xff]  ;;  %v3597_v48 = vrot.slane %v22355_v16, 1 }
 0x297   :  { %4575 = vmatpush.bf16.msrb.mxu1 %v18888_v36  ;;  %v18900_v41 = vld [vmem:[%s26494_s3 + $0xb8] sm:$0xff]  ;;  %4683 = vmatpush.bf16.msrb.mxu2 %v18877_v33 }
 0x298   :  { %v3118_v38 = vpop.f32.mrf.mxu2  ;;  %v2567_v3 = vadd.f32 %v22230_v42, %v2548_v47  ;;  %v3598_v47 = vsel %vm1267_vm0, %v3595_v9, %v3597_v48 }
 0x299   :  { %v22372_v8 = vadd.f32 %v3118_v38, %v2977_v21  ;;  %v20282_v21 = vld [vmem:[#allocation2 + $0x48] sm:$0xe] }
 0x29a   :  { %v2881_v44 = vpop.f32.mrf.mxu0  ;;  %v2583_v62 = vmax.f32 %v2567_v3, 0.0  ;;  %v20283_v23 = vor.u32 %v20282_v21, %v20281_v51  ;;  %4818 = vmatpush.bf16.msra.mxu3 %v18900_v41  ;;  %v20280_v3 = vld [vmem:[#allocation2 + $0x48] sm:$0xff]  }
 0x29b   :  { %4576 = vmatpush.bf16.msrb.mxu1 %v18887_v29  ;;  %v20628_v29 = vld [vmem:[#allocation2 + $0x7c] sm:$0xff] }
 0x29c   :  { %v4153_v56 = vrot.slane %v20283_v23, 1  ;;  %v3945_v23 = vshrl.u32 %v20280_v3, 16 }
 0x29d   :  { %v2981_v17 = vpop.f32.mrf.mxu1  ;;  %3540 = vmatmul.bf16.gmra.mxu0 %v3440_v43  ;;  %v2525_v0 = vpop.f32.mrf.mxu3  ;;  %v22424_v43 = vld [vmem:[#allocation2 + $0x80] sm:$0xff]  }
 0x29e   :  { %v2982_v40 = vadd.f32 %v2981_v17, %v2876_v26  ;;  %v2549_v54 = vadd.f32 %v2525_v0, %v22170_v4  ;;  %v18886_v26 = vld [vmem:[%s26494_s3 + $0x48] sm:$0xff]  ;;  %v4448_v21 = vshrl.u32 %v22424_v43, 16 }
 0x29f   :  { %4577 = vmatpush.bf16.msrb.mxu1 %v18886_v26 }
 0x2a0   :  { %3693 = vmatmul.bf16.gmra.mxu1 %v3596_v30  ;;  %v3120_v39 = vpop.f32.mrf.mxu2  ;;  %v2568_v1 = vadd.f32 %v22230_v42, %v2549_v54 }
 0x2a1   :  { %v22393_v31 = vadd.f32 %v3120_v39, %v2979_v37  ;;  %v22435_v39 = vld [vmem:[#allocation2 + $0x88] sm:$0xff]  }
 0x2a2   :  { %v2883_v35 = vpop.f32.mrf.mxu0  ;;  %v2584_v4 = vmax.f32 %v2568_v1, 0.0  ;;  %3270 = vmatmul.bf16.gmra.mxu3 %v20627_v22  ;;  %v3947_v1 = vshll.u32 %v20280_v3, 16  ;;  %v18899_v22 = vld [vmem:[%s26494_s3 + $0xb0] sm:$0xff] }
 0x2a3   :  { %4578 = vmatpush.bf16.msrb.mxu1 %v18885_v58  ;;  %4819 = vmatpush.bf16.msra.mxu3 %v18899_v22  ;;  %v3956_v22 = vshrl.u32 %v22399_v49, 16 }
 0x2a4   :  { %v19647_v28 = vpack.c.bf16 %v2584_v4, %v2583_v62  ;;  %v4455_v62 = vshll.u32 %v22435_v39, 16 }
 0x2a5   :  { %v2983_v63 = vpop.f32.mrf.mxu1  ;;  %3841 = vmatmul.bf16.gmra.mxu2 %v22073_v13  ;;  %v2528_v19 = vpop.f32.mrf.mxu3  ;;  %v4154_v13 = vrot.slane %v22399_v49, 1 }
 0x2a6   :  { %v2984_v10 = vadd.f32 %v2983_v63, %v2878_v25  ;;  %20227 = vst [vmem:[#allocation3 + $0x28] sm:$0xff] %v19647_v28   ;;  %v2550_v7 = vadd.f32 %v2528_v19, %v22181_v60  ;;  %v3949_v28 = vrot.slane %v3947_v1, 1  ;;  %v3952_v63 = vshll.u32 %v22399_v49, 16  ;;  %v18907_v19 = vld [vmem:[%s26494_s3 + $0xf0] sm:$0xff] }
 0x2a7   :  { %v4155_v55 = vsel %vm1267_vm0, %v4153_v56, %v4154_v13  ;;  %v4457_v33 = vrot.slane %v4455_v62, 1  ;;  %4967 = vmatpush.bf16.msra.mxu0 %v18907_v19 }
 0x2a8   :  { %v3123_v25 = vpop.f32.mrf.mxu2  ;;  %v2569_v59 = vadd.f32 %v22230_v42, %v2550_v7  ;;  %v3950_v34 = vor.u32 %v3949_v28, %v3945_v23  ;;  %v3954_v7 = vrot.slane %v3952_v63, 1 }
 0x2a9   :  { %v22411_v37 = vadd.f32 %v3123_v25, %v2982_v40 }
 0x2aa   :  { %v22413_v14 = vpop.f32.mrf.mxu0  ;;  %v2585_v16 = vmax.f32 %v2569_v59, 0.0  ;;  %v3955_v59 = vsel %vm967_vm1, %v3950_v34, %v3954_v7  ;;  %v3958_v19 = vor.u32 %v3956_v22, %v3954_v7  ;;  %v22506_v7 = vld [vmem:[#allocation2 + $0x68] sm:$0xff] }
 0x2ad   :  { %v2986_v18 = vpop.f32.mrf.mxu1  ;;  %4234 = vmatmul.bf16.vlgmr.msrb.gmra.mxu0 %v4155_v55  ;;  %v2530_v38 = vpop.f32.mrf.mxu3 }
 0x2ae   :  { %v2987_v36 = vadd.f32 %v2986_v18, %v2881_v44  ;;  %v2551_v12 = vadd.f32 %v2530_v38, %v22193_v2  ;;  %v4450_v44 = vshll.u32 %v22424_v43, 16  ;;  %v22432_v2 = vld [vmem:[#allocation2 + $0x58] sm:$0xff] }
 0x2af   :  { %v4156_v4 = vrot.slane %v22432_v2, 1 }
 0x2b0   :  { %3698 = vmatmul.bf16.gmra.mxu1 %v3598_v47  ;;  %v3125_v60 = vpop.f32.mrf.mxu2  ;;  %v2570_v17 = vadd.f32 %v22230_v42, %v2551_v12  ;;  %v4452_v26 = vrot.slane %v4450_v44, 1  ;;  %v4459_v44 = vshrl.u32 %v22435_v39, 16 }
 0x2b1   :  { %v22427_v0 = vadd.f32 %v3125_v60, %v2984_v10  ;;  %v4157_v41 = vsel %vm1267_vm0, %v4154_v13, %v4156_v4  ;;  %v22464_v60 = vld [vmem:[#allocation2 + $0x60] sm:$0xff] }
 0x2b2   :  { %v22429_v40 = vpop.f32.mrf.mxu0  ;;  %v2586_v20 = vmax.f32 %v2570_v17, 0.0  ;;  %3275 = vmatmul.bf16.gmra.mxu3 %v20628_v29  ;;  %v4453_v58 = vor.u32 %v4452_v26, %v4448_v21  ;;  %v22466_v17 = vld [vmem:[#allocation2 + $0x90] sm:$0xff]   ;;  %v3960_v21 = vshll.u32 %v22432_v2, 16  ;;  %v4461_v26 = vor.u32 %v4459_v44, %v4457_v33 }
 0x2b3   :  { %v4463_v3 = vshll.u32 %v22466_v17, 16  ;;  %v3968_v22 = vshll.u32 %v22464_v60, 16 }
 0x2b4   :  { %v19652_v9 = vpack.c.bf16 %v2586_v20, %v2585_v16  ;;  %v4458_v48 = vsel %vm967_vm1, %v4453_v58, %v4457_v33  ;;  %v3962_v49 = vrot.slane %v3960_v21, 1 }
 0x2b5   :  { %v2988_v54 = vpop.f32.mrf.mxu1  ;;  %3846 = vmatmul.bf16.gmra.mxu2 %v22311_v24  ;;  %v2533_v30 = vpop.f32.mrf.mxu3  ;;  %v4465_v62 = vrot.slane %v4463_v3, 1 }
 0x2b6   :  { %v2989_v51 = vadd.f32 %v2988_v54, %v2883_v35  ;;  %20228 = vst [vmem:[#allocation3 + $0x30] sm:$0xff] %v19652_v9   ;;  %v2552_v10 = vadd.f32 %v2533_v30, %v22210_v11  ;;  %v4158_v9 = vrot.slane %v22464_v60, 1 }
 0x2b8   :  { %v3128_v32 = vpop.f32.mrf.mxu2  ;;  %v2571_v55 = vadd.f32 %v22230_v42, %v2552_v10  ;;  %v4159_v23 = vsel %vm1267_vm0, %v4156_v4, %v4158_v9 }
 0x2b9   :  { %v22443_v24 = vadd.f32 %v3128_v32, %v2987_v36  ;;  %v8253_v32 = vld [vmem:[#allocation3 + $0x4] sm:$0xe] }
 0x2ba   :  { %v22445_v35 = vpop.f32.mrf.mxu0  ;;  %v2587_v12 = vmax.f32 %v2571_v55, 0.0  ;;  %v8272_v10 = vunpack.c.l.b16 %v8253_v32  ;;  %v3963_v55 = vsel %vm967_vm1, %v3958_v19, %v3962_v49 }
 0x2bd   :  { %v22453_v56 = vpop.f32.mrf.mxu1  ;;  %4239 = vmatmul.bf16.gmra.mxu0 %v4157_v41  ;;  %v2535_v25 = vpop.f32.mrf.mxu3  ;;  %v4466_v41 = vsel %vm967_vm1, %v4461_v26, %v4465_v62 }
 0x2be   :  { %v2553_v18 = vadd.f32 %v2535_v25, %v22222_v61 }
 0x2c0   :  { %4579 = vmatmul.bf16.vlgmr.msrb.gmra.mxu1 %v4458_v48  ;;  %v3130_v38 = vpop.f32.mrf.mxu2  ;;  %v2572_v11 = vadd.f32 %v22230_v42, %v2553_v18  ;;  %v18898_v42 = vld [vmem:[%s26494_s3 + $0xa8] sm:$0xff]  ;;  %v20909_v18 = vld [vmem:[#allocation3 + $0xc] sm:$0xff]  }
 0x2c1   :  { %v22459_v36 = vadd.f32 %v3130_v38, %v2989_v51  ;;  %4820 = vmatpush.bf16.msra.mxu3 %v18898_v42  ;;  %v20384_v51 = vld [vmem:[#allocation3 + $0x8] sm:$0xff]   ;;  %v8275_v38 = vrot.slane %v20909_v18, 1  ;;  %v4160_v42 = vrot.slane %v22506_v7, 1 }
 0x2c2   :  { %v22461_v13 = vpop.f32.mrf.mxu0  ;;  %v2588_v47 = vmax.f32 %v2572_v11, 0.0  ;;  %4076 = vmatmul.bf16.vlgmr.msrb.gmra.mxu3 %v3955_v59  ;;  %v22491_v28 = vunpack.c.l.b16 %v20384_v51  ;;  %v22508_v48 = vld [vmem:[#allocation2 + $0x98] sm:$0xff]   ;;  %v3964_v51 = vshrl.u32 %v22432_v2, 16 }
 0x2c3   :  { %v4161_v26 = vsel %vm1267_vm0, %v4158_v9, %v4160_v42  ;;  %v18924_v9 = vld [vmem:[%s26494_s3 + $0x178] sm:$0xff] }
 0x2c4   :  { %v19657_v61 = vpack.c.bf16 %v2588_v47, %v2587_v12  ;;  %26526 = vst [vmem:[#allocation5_spill] sm:$0xff] %v22491_v28  ;;  %v8273_v33 = vpack.c.b16 %v22491_v28, %v8272_v10  ;;  %5389 = vmatpush.bf16.msra.mxu2 %v18924_v9  ;;  %v18904_v9 = vld [vmem:[%s26494_s3 + $0xd8] sm:$0xff] }
 0x2c5   :  { %v22468_v29 = vpop.f32.mrf.mxu1  ;;  %4684 = vmatmul.bf16.vlgmr.msrb.gmra.mxu2 %v22424_v43  ;;  %v3241_v16 = vpop.f32.mrf.mxu3 }
 0x2c6   :  { %20229 = vst [vmem:[#allocation3 + $0x38] sm:$0xff] %v19657_v61   ;;  %v3281_v20 = vadd.f32 %v3241_v16, %v22224_v57  ;;  %v18906_v57 = vld [vmem:[%s26494_s3 + $0xe8] sm:$0xff]  ;;  %v4467_v61 = vshrl.u32 %v22466_v17, 16  ;;  %v4471_v16 = vshll.u32 %v22508_v48, 16 }
 0x2c7   :  { %4968 = vmatpush.bf16.msra.mxu0 %v18906_v57 }
 0x2c8   :  { %v22478_v54 = vpop.f32.mrf.mxu2  ;;  %v22481_v30 = vadd.f32 %v22413_v14, %v3281_v20  ;;  %v4469_v21 = vor.u32 %v4467_v61, %v4465_v62  ;;  %v4473_v57 = vrot.slane %v4471_v16, 1 }
 0x2ca   :  { %v22483_v1 = vpop.f32.mrf.mxu0  ;;  %v4474_v2 = vsel %vm967_vm1, %v4469_v21, %v4473_v57 }
 0x2cd   :  { %v22493_v14 = vpop.f32.mrf.mxu1  ;;  %4244 = vmatmul.bf16.gmra.mxu0 %v4159_v23  ;;  %v3243_v63 = vpop.f32.mrf.mxu3  ;;  %v3966_v23 = vor.u32 %v3964_v51, %v3962_v49  ;;  %v22551_v49 = vld [vmem:[#allocation3 + $0x14] sm:$0xff]  }
 0x2ce   :  { %v3282_v58 = vadd.f32 %v3243_v63, %v22243_v52  ;;  %v8274_v52 = vrot.slane %v8273_v33, 1  ;;  %v3970_v63 = vrot.slane %v3968_v22, 1  ;;  %v22553_v33 = vld [vmem:[#allocation3 + $0x10] sm:$0xff]  ;;  %v8277_v18 = vrot.slane %v22551_v49, 1 }
 0x2cf   :  { %26528 = vst [vmem:[#allocation7_spill] sm:$0xff] %v22553_v33  ;;  %v26503_v61 = vrot.slane %v22553_v33, 1  ;;  %v4475_v22 = vshrl.u32 %v22508_v48, 16 }
 0x2d0   :  { %4584 = vmatmul.bf16.gmra.mxu1 %v4466_v41  ;;  %v22498_v25 = vpop.f32.mrf.mxu2  ;;  %v22501_v4 = vadd.f32 %v22429_v40, %v3282_v58  ;;  %v18897_v40 = vld [vmem:[%s26494_s3 + $0xa0] sm:$0xff]  ;;  %v22517_v12 = vsel %vm1267_vm0, %v8274_v52, %v8275_v38  ;;  %v3971_v41 = vsel %vm967_vm1, %v3966_v23, %v3970_v63 }
 0x2d1   :  { %26527 = vst [vmem:[#allocation6_spill] sm:$0xff] %v22517_v12  ;;  %4821 = vmatpush.bf16.msra.mxu3 %v18897_v40  ;;  %v18896_v40 = vld [vmem:[%s26494_s3 + $0x98] sm:$0xff]  ;;  %v18981_v12 = vld [vmem:[%s26494_s3 + $0xc8] sm:$0xff] }
 0x2d2   :  { %v22503_v34 = vpop.f32.mrf.mxu0  ;;  %4081 = vmatmul.bf16.gmra.mxu3 %v3963_v55  ;;  %v22557_v55 = vld [vmem:[#allocation2 + $0x70] sm:$0xff] }
 0x2d3   :  { %v4162_v21 = vrot.slane %v22557_v55, 1 }
 0x2d5   :  { %v22510_v11 = vpop.f32.mrf.mxu1  ;;  %4689 = vmatmul.bf16.gmra.mxu2 %v22435_v39  ;;  %v3246_v59 = vpop.f32.mrf.mxu3  ;;  %4822 = vmatpush.bf16.msra.mxu3 %v18896_v40 }
 0x2d6   :  { %v3283_v47 = vadd.f32 %v3246_v59, %v22251_v5  ;;  %v18905_v5 = vld [vmem:[%s26494_s3 + $0xe0] sm:$0xff] }
 0x2d7   :  { %4969 = vmatpush.bf16.msra.mxu0 %v18905_v5 }
 0x2d8   :  { %v22523_v20 = vpop.f32.mrf.mxu2  ;;  %v22526_v44 = vadd.f32 %v22445_v35, %v3283_v47  ;;  %v22569_v47 = vsel %vm1267_vm0, %v8275_v38, %v8277_v18 }
 0x2d9   :  { %26529 = vst [vmem:[#allocation8_spill] sm:$0xff] %v22569_v47 }
 0x2da   :  { %v22528_v3 = vpop.f32.mrf.mxu0 }
 0x2db   :  { %4970 = vmatpush.bf16.msra.mxu0 %v18904_v9  ;;  %v18895_v9 = vld [vmem:[%s26494_s3 + $0x90] sm:$0xff] }
 0x2dc   :  { %4823 = vmatpush.bf16.msra.mxu3 %v18895_v9 }
 0x2dd   :  { %v22536_v32 = vpop.f32.mrf.mxu1  ;;  %4249 = vmatmul.bf16.gmra.mxu0 %v4161_v26  ;;  %v3248_v35 = vpop.f32.mrf.mxu3 }
 0x2de   :  { %v3284_v19 = vadd.f32 %v3248_v35, %v22265_v45  ;;  %v22555_v45 = vld [vmem:[#allocation3 + $0x18] sm:$0xff] }
 0x2df   :  { %v8851_v16 = vrot.slane %v22555_v45, 1  ;;  %v3704_v45 = vadd.f32 %v22453_v56, %v22481_v30  ;;  %v18923_v56 = vld [vmem:[%s26494_s3 + $0x170] sm:$0xff] }
 0x2e0   :  { %4589 = vmatmul.bf16.gmra.mxu1 %v4474_v2  ;;  %v22540_v10 = vpop.f32.mrf.mxu2  ;;  %v22543_v58 = vadd.f32 %v22461_v13, %v3284_v19  ;;  %v22559_v13 = vld [vmem:[#allocation2 + $0xa0] sm:$0xff]   ;;  %v3972_v19 = vshrl.u32 %v22464_v60, 16  ;;  %v3976_v2 = vshll.u32 %v22506_v7, 16  ;;  %5390 = vmatpush.bf16.msra.mxu2 %v18923_v56 }
 0x2e1   :  { %v4479_v5 = vshll.u32 %v22559_v13, 16  ;;  %v22580_v26 = vsel %vm1267_vm0, %v26503_v61, %v8851_v16  ;;  %v22603_v61 = vadd.f32 %v22478_v54, %v3704_v45  ;;  %v20913_v54 = vld [vmem:[#allocation3 + $0x1c] sm:$0xff]   ;;  %v4483_v45 = vshrl.u32 %v22559_v13, 16 }
 0x2e2   :  { %v22548_v62 = vpop.f32.mrf.mxu0  ;;  %4086 = vmatmul.bf16.gmra.mxu3 %v3971_v41  ;;  %26530 = vst [vmem:[#allocation9_spill] sm:$0xff] %v22580_v26  ;;  %v4477_v41 = vor.u32 %v4475_v22, %v4473_v57  ;;  %v3974_v60 = vor.u32 %v3972_v19, %v3970_v63 }
 0x2e3   :  { %v4481_v49 = vrot.slane %v4479_v5, 1  ;;  %v22620_v5 = vld [vmem:[#allocation2 + $0xa8] sm:$0xff]  }
 0x2e5   :  { %v22562_v52 = vpop.f32.mrf.mxu1  ;;  %4694 = vmatmul.bf16.gmra.mxu2 %v22466_v17  ;;  %v3251_v59 = vpop.f32.mrf.mxu3  ;;  %v4482_v57 = vsel %vm967_vm1, %v4477_v41, %v4481_v49 }
 0x2e6   :  { %v3285_v51 = vadd.f32 %v3251_v59, %v22276_v27  ;;  %v18916_v27 = vld [vmem:[%s26494_s3 + $0x138] sm:$0xff] }
 0x2e7   :  { %5231 = vmatpush.bf16.msra.mxu1 %v18916_v27  ;;  %v3705_v27 = vadd.f32 %v22468_v29, %v22501_v4 }
 0x2e8   :  { %v22582_v38 = vpop.f32.mrf.mxu2  ;;  %v22585_v35 = vadd.f32 %v22483_v1, %v3285_v51  ;;  %v4163_v1 = vsel %vm1267_vm0, %v4160_v42, %v4162_v21  ;;  %v3978_v51 = vrot.slane %v3976_v2, 1  ;;  %v22627_v2 = vld [vmem:[#allocation2 + $0x78] sm:$0xff] }
 0x2e9   :  { %v22633_v41 = vadd.f32 %v22498_v25, %v3705_v27 }
 0x2ea   :  { %v22590_v23 = vpop.f32.mrf.mxu0  ;;  %v3979_v63 = vsel %vm967_vm1, %v3974_v60, %v3978_v51 }
 0x2ed   :  { %v22600_v59 = vpop.f32.mrf.mxu1  ;;  %4254 = vmatmul.bf16.gmra.mxu0 %v4163_v1  ;;  %v3253_v40 = vpop.f32.mrf.mxu3 }
 0x2ee   :  { %v3286_v26 = vadd.f32 %v3253_v40, %v22291_v53  ;;  %v22618_v53 = vld [vmem:[#allocation3 + $0x20] sm:$0xff]  ;;  %v4487_v40 = vshll.u32 %v22620_v5, 16 }
 0x2ef   :  { %v8853_v29 = vrot.slane %v22618_v53, 1  ;;  %v4485_v53 = vor.u32 %v4483_v45, %v4481_v49 }
 0x2f0   :  { %4594 = vmatmul.bf16.gmra.mxu1 %v4482_v57  ;;  %v22607_v22 = vpop.f32.mrf.mxu2  ;;  %v22610_v42 = vadd.f32 %v22503_v34, %v3286_v26  ;;  %v8279_v34 = vrot.slane %v20913_v54, 1  ;;  %v3984_v54 = vshll.u32 %v22557_v55, 16  ;;  %v4489_v27 = vrot.slane %v4487_v40, 1  ;;  %v22686_v40 = vld [vmem:[#allocation2 + $0xb0] sm:$0xff]  }
 0x2f1   :  { %v22643_v60 = vsel %vm1267_vm0, %v8851_v16, %v8853_v29  ;;  %v18903_v16 = vld [vmem:[%s26494_s3 + $0xd0] sm:$0xff] }
 0x2f2   :  { %v22615_v30 = vpop.f32.mrf.mxu0  ;;  %4091 = vmatmul.bf16.gmra.mxu3 %v3979_v63  ;;  %v22636_v1 = vsel %vm1267_vm0, %v8277_v18, %v8279_v34  ;;  %26532 = vst [vmem:[#allocation11_spill] sm:$0xff] %v22643_v60  ;;  %v18915_v18 = vld [vmem:[%s26494_s3 + $0x130] sm:$0xff]  ;;  %v3980_v63 = vshrl.u32 %v22506_v7, 16  ;;  %4971 = vmatpush.bf16.msra.mxu0 %v18903_v16  ;;  %v3986_v60 = vrot.slane %v3984_v54, 1  ;;  %v4490_v49 = vsel %vm967_vm1, %v4485_v53, %v4489_v27  ;;  %v18894_v54 = vld [vmem:[%s26494_s3 + $0x88] sm:$0xff] }
 0x2f3   :  { %26531 = vst [vmem:[#allocation10_spill] sm:$0xff] %v22636_v1  ;;  %5232 = vmatpush.bf16.msra.mxu1 %v18915_v18  ;;  %4824 = vmatpush.bf16.msra.mxu3 %v18894_v54 }
 0x2f4   :  { %v3982_v7 = vor.u32 %v3980_v63, %v3978_v51 }
 0x2f5   :  { %v22624_v26 = vpop.f32.mrf.mxu1  ;;  %4699 = vmatmul.bf16.gmra.mxu2 %v22508_v48  ;;  %v3256_v19 = vpop.f32.mrf.mxu3 }
 0x2f6   :  { %v3287_v4 = vadd.f32 %v3256_v19, %v22304_v6  ;;  %v4164_v6 = vrot.slane %v22627_v2, 1  ;;  %v3706_v19 = vadd.f32 %v22493_v14, %v22526_v44  ;;  %v18922_v14 = vld [vmem:[%s26494_s3 + $0x168] sm:$0xff]  ;;  %v3987_v51 = vsel %vm967_vm1, %v3982_v7, %v3986_v60 }
 0x2f7   :  { %5391 = vmatpush.bf16.msra.mxu2 %v18922_v14 }
 0x2f8   :  { %v22645_v57 = vpop.f32.mrf.mxu2  ;;  %v22648_v25 = vadd.f32 %v22528_v3, %v3287_v4  ;;  %v4165_v3 = vsel %vm1267_vm0, %v4162_v21, %v4164_v6  ;;  %v22667_v33 = vadd.f32 %v22523_v20, %v3706_v19  ;;  %v22682_v20 = vld [vmem:[#allocation3 + $0x24] sm:$0xff]   ;;  %v4495_v19 = vshll.u32 %v22686_v40, 16 }
 0x2fa   :  { %v22653_v56 = vpop.f32.mrf.mxu0 }
 0x2fd   :  { %v22664_v9 = vpop.f32.mrf.mxu1  ;;  %4259 = vmatmul.bf16.gmra.mxu0 %v4165_v3  ;;  %v3258_v4 = vpop.f32.mrf.mxu3  ;;  %v4491_v3 = vshrl.u32 %v22620_v5, 16 }
 0x2fe   :  { %v3288_v1 = vadd.f32 %v3258_v4, %v22324_v15  ;;  %v22684_v15 = vld [vmem:[#allocation3 + $0x28] sm:$0xff]  ;;  %v22709_v4 = vld [vmem:[#allocation2 + $0x80] sm:$0xff] }
 0x300   :  { %4599 = vmatmul.bf16.gmra.mxu1 %v4490_v49  ;;  %v22671_v45 = vpop.f32.mrf.mxu2  ;;  %v22674_v21 = vadd.f32 %v22548_v62, %v3288_v1  ;;  %v3707_v62 = vadd.f32 %v22510_v11, %v22543_v58  ;;  %v26506_v1 = vrot.slane %v22682_v20, 1  ;;  %v26505_v11 = vrot.slane %v22684_v15, 1  ;;  %v18902_v49 = vld [vmem:[%s26494_s3 + $0xc8] sm:$0xff] }
 0x301   :  { %4972 = vmatpush.bf16.msra.mxu0 %v18902_v49 }
 0x302   :  { %v22679_v44 = vpop.f32.mrf.mxu0  ;;  %4096 = vmatmul.bf16.gmra.mxu3 %v3987_v51  ;;  %v22698_v16 = vadd.f32 %v22540_v10, %v3707_v62  ;;  %v22703_v53 = vsel %vm1267_vm0, %v8279_v34, %v26506_v1  ;;  %v22714_v10 = vsel %vm1267_vm0, %v8853_v29, %v26505_v11  ;;  %v4166_v51 = vrot.slane %v22709_v4, 1 }
 0x303   :  { %26533 = vst [vmem:[#allocation12_spill] sm:$0xff] %v22703_v53  ;;  %v3988_v29 = vshrl.u32 %v22557_v55, 16  ;;  %v4493_v62 = vor.u32 %v4491_v3, %v4489_v27  ;;  %v3708_v11 = vadd.f32 %v22536_v32, %v22585_v35  ;;  %v18913_v35 = vld [vmem:[%s26494_s3 + $0x120] sm:$0xff] }
 0x304   :  { %26534 = vst [vmem:[#allocation13_spill] sm:$0xff] %v22714_v10  ;;  %v4167_v54 = vsel %vm1267_vm0, %v4164_v6, %v4166_v51  ;;  %v3884_v10 = vld [vmem:[#allocation2 + $0x88] sm:$0x1] }
 0x305   :  { %v22691_v18 = vpop.f32.mrf.mxu1  ;;  %4704 = vmatmul.bf16.gmra.mxu2 %v22559_v13  ;;  %v3261_v63 = vpop.f32.mrf.mxu3  ;;  %v3990_v27 = vor.u32 %v3988_v29, %v3986_v60  ;;  %v22741_v3 = vadd.f32 %v22582_v38, %v3708_v11  ;;  %v3934_v49 = vunpack.c.l.b16 %v3884_v10  ;;  %v18921_v38 = vld [vmem:[%s26494_s3 + $0x160] sm:$0xff]  ;;  %v22759_v11 = vld [vmem:[#allocation3 + $0x2c] sm:$0xff]   ;;  %v3709_v29 = vadd.f32 %v22562_v52, %v22610_v42 }
 0x306   :  { %v3289_v58 = vadd.f32 %v3261_v63, %v22335_v46  ;;  %v18914_v46 = vld [vmem:[%s26494_s3 + $0x128] sm:$0xff]  ;;  %v4497_v63 = vrot.slane %v4495_v19, 1  ;;  %v22761_v10 = vld [vmem:[#allocation3 + $0x30] sm:$0xff]  ;;  %5392 = vmatpush.bf16.msra.mxu2 %v18921_v38  ;;  %v4499_v38 = vshrl.u32 %v22686_v40, 16 }
 0x307   :  { %5233 = vmatpush.bf16.msra.mxu1 %v18914_v46  ;;  %v18920_v52 = vld [vmem:[%s26494_s3 + $0x158] sm:$0xff]  ;;  %v22783_v42 = vadd.f32 %v22607_v22, %v3709_v29  ;;  %v26537_v22 = vrot.slane %v22684_v15, 1 }
 0x308   :  { %v22716_v7 = vpop.f32.mrf.mxu2  ;;  %v22719_v34 = vadd.f32 %v22590_v23, %v3289_v58  ;;  %v18901_v23 = vld [vmem:[%s26494_s3 + $0xc0] sm:$0xff]  ;;  %v3992_v58 = vshll.u32 %v22627_v2, 16  ;;  %v4498_v46 = vsel %vm967_vm1, %v4493_v62, %v4497_v63  ;;  %v26508_v62 = vrot.slane %v22759_v11, 1 }
 0x309   :  { %4973 = vmatpush.bf16.msra.mxu0 %v18901_v23 }
 0x30a   :  { %v22727_v14 = vpop.f32.mrf.mxu0  ;;  %v3994_v6 = vrot.slane %v3992_v58, 1  ;;  %5393 = vmatpush.bf16.msra.mxu2 %v18920_v52  ;;  %v3710_v52 = vadd.f32 %v22600_v59, %v22648_v25 }
 0x30b   :  { %5234 = vmatpush.bf16.msra.mxu1 %v18913_v35 }
 0x30c   :  { %v3995_v60 = vsel %vm967_vm1, %v3990_v27, %v3994_v6  ;;  %v18893_v27 = vld [vmem:[%s26494_s3 + $0x80] sm:$0xff] }
 0x30d   :  { %v22738_v1 = vpop.f32.mrf.mxu1  ;;  %4264 = vmatmul.bf16.gmra.mxu0 %v4167_v54  ;;  %v3263_v55 = vpop.f32.mrf.mxu3  ;;  %v22770_v54 = vld [vmem:[#allocation2 + $0xb8] sm:$0xff]   ;;  %4825 = vmatpush.bf16.msra.mxu3 %v18893_v27  ;;  %v3996_v27 = vshrl.u32 %v22627_v2, 16  ;;  %v18918_v2 = vld [vmem:[%s26494_s3 + $0x148] sm:$0xff] }
 0x30e   :  { %v3290_v19 = vadd.f32 %v3263_v55, %v22353_v50  ;;  %v18912_v55 = vld [vmem:[%s26494_s3 + $0x118] sm:$0xff] }
 0x30f   :  { %5235 = vmatpush.bf16.msra.mxu1 %v18912_v55  ;;  %v18919_v55 = vld [vmem:[%s26494_s3 + $0x150] sm:$0xff] }
 0x310   :  { %4604 = vmatmul.bf16.gmra.mxu1 %v4498_v46  ;;  %v22745_v53 = vpop.f32.mrf.mxu2  ;;  %v22748_v32 = vadd.f32 %v22615_v30, %v3290_v19  ;;  %v22763_v30 = vpack.c.b16 %v3934_v49, %v3934_v49  ;;  %v26535_v19 = vrot.slane %v22682_v20, 1  ;;  %v26507_v49 = vrot.slane %v22761_v10, 1  ;;  %5394 = vmatpush.bf16.msra.mxu2 %v18919_v55 }
 0x312   :  { %v22756_v50 = vpop.f32.mrf.mxu0  ;;  %4101 = vmatmul.bf16.gmra.mxu3 %v3995_v60  ;;  %v22790_v46 = vsel %vm1267_vm0, %v26535_v19, %v26508_v62  ;;  %v4168_v60 = vrot.slane %v22763_v30, 1  ;;  %v22801_v29 = vsel %vm1267_vm0, %v26537_v22, %v26507_v49  ;;  %v4501_v22 = vor.u32 %v4499_v38, %v4497_v63  ;;  %v4387_v38 = vld [vmem:[#allocation2 + $0xc0] sm:$0x1] }
 0x313   :  { %26536 = vst [vmem:[#allocation14_spill] sm:$0xff] %v22790_v46  ;;  %v3998_v63 = vor.u32 %v3996_v27, %v3994_v6  ;;  %v4437_v55 = vunpack.c.l.b16 %v4387_v38  ;;  %v18909_v6 = vld [vmem:[%s26494_s3 + $0x100] sm:$0xff] }
 0x314   :  { %26538 = vst [vmem:[#allocation15_spill] sm:$0xff] %v22801_v29  ;;  %v4169_v49 = vsel %vm1267_vm0, %v4166_v51, %v4168_v60  ;;  %v18910_v29 = vld [vmem:[%s26494_s3 + $0x108] sm:$0xff]  ;;  %v22831_v60 = vadd.f32 %v22645_v57, %v3710_v52  ;;  %5395 = vmatpush.bf16.msra.mxu2 %v18918_v2 }
 0x315   :  { %v22768_v23 = vpop.f32.mrf.mxu1  ;;  %4709 = vmatmul.bf16.gmra.mxu2 %v22620_v5  ;;  %v3266_v58 = vpop.f32.mrf.mxu3  ;;  %v22858_v2 = vpack.c.b16 %v4437_v55, %v4437_v55  ;;  %v19766_v55 = vunpack.c.h.b16 %v22424_v43 }
 0x316   :  { %v3291_v35 = vadd.f32 %v3266_v58, %v22372_v8  ;;  %v4503_v8 = vshll.u32 %v22770_v54, 16  ;;  %v18911_v58 = vld [vmem:[%s26494_s3 + $0x110] sm:$0xff] }
 0x317   :  { %5236 = vmatpush.bf16.msra.mxu1 %v18911_v58  ;;  %v4511_v43 = vshll.u32 %v22858_v2, 16 }
 0x318   :  { %v22803_v20 = vpop.f32.mrf.mxu2  ;;  %v22806_v19 = vadd.f32 %v22653_v56, %v3291_v35  ;;  %v4000_v56 = vshll.u32 %v22709_v4, 16  ;;  %v4505_v62 = vrot.slane %v4503_v8, 1 }
 0x31a   :  { %v22815_v15 = vpop.f32.mrf.mxu0  ;;  %v4506_v25 = vsel %vm967_vm1, %v4501_v22, %v4505_v62  ;;  %v22849_v22 = vld [vmem:[#allocation3 + $0x34] sm:$0xff]  }
 0x31b   :  { %5237 = vmatpush.bf16.msra.mxu1 %v18910_v29  ;;  %v3711_v29 = vadd.f32 %v22624_v26, %v22674_v21  ;;  %v26539_v26 = vrot.slane %v22759_v11, 1 }
 0x31d   :  { %v22822_v35 = vpop.f32.mrf.mxu1  ;;  %4269 = vmatmul.bf16.gmra.mxu0 %v4169_v49  ;;  %v3268_v51 = vpop.f32.mrf.mxu3  ;;  %v4002_v49 = vrot.slane %v4000_v56, 1  ;;  %v26509_v56 = vrot.slane %v22849_v22, 1  ;;  %v22865_v38 = vadd.f32 %v22671_v45, %v3711_v29  ;;  %v26541_v45 = vrot.slane %v22761_v10, 1 }
 0x31e   :  { %v3292_v59 = vadd.f32 %v3268_v51, %v22393_v31  ;;  %v18917_v31 = vld [vmem:[%s26494_s3 + $0x140] sm:$0xff] }
 0x31f   :  { %v4003_v27 = vsel %vm967_vm1, %v3998_v63, %v4002_v49  ;;  %5238 = vmatpush.bf16.msra.mxu1 %v18909_v6  ;;  %5396 = vmatpush.bf16.msra.mxu2 %v18917_v31  ;;  %v18932_v63 = vld [vmem:[%s26494_s3 + $0x1b8] sm:$0xff]  ;;  %v22872_v21 = vsel %vm1267_vm0, %v26539_v26, %v26509_v56  ;;  %v4507_v6 = vshrl.u32 %v22770_v54, 16  ;;  %v5031_v31 = vld [vmem:[#allocation2 + $0x84] sm:$0xf]  ;;  %v4008_v26 = vshll.u32 %v22763_v30, 16 }
 0x320   :  { %4609 = vmatmul.bf16.gmra.mxu1 %v4506_v25  ;;  %v22835_v8 = vpop.f32.mrf.mxu2  ;;  %v22838_v58 = vadd.f32 %v22679_v44, %v3292_v59  ;;  %v22851_v44 = vld [vmem:[#allocation3 + $0x38] sm:$0xff]  ;;  %26540 = vst [vmem:[#allocation16_spill] sm:$0xff] %v22872_v21  ;;  %5537 = vmatpush.bf16.msrb.mxu3 %v18932_v63  ;;  %v4004_v63 = vshrl.u32 %v22709_v4, 16  ;;  %v5081_v21 = vunpack.c.l.b16 %v5031_v31 }
 0x321   :  { %v26510_v59 = vrot.slane %v22851_v44, 1  ;;  %v4509_v10 = vor.u32 %v4507_v6, %v4505_v62  ;;  %v4010_v47 = vrot.slane %v4008_v26, 1 }
 0x322   :  { %v22846_v57 = vpop.f32.mrf.mxu0  ;;  %4106 = vmatmul.bf16.gmra.mxu3 %v4003_v27  ;;  %v4006_v46 = vor.u32 %v4004_v63, %v4002_v49  ;;  %v22916_v49 = vld [vmem:[#allocation2 + $0x8c] sm:$0xff]   ;;  %v5296_v63 = vld [vmem:[#allocation2 + $0x84] sm:$0xe] }
 0x323   :  { %v22883_v27 = vsel %vm1267_vm0, %v26541_v45, %v26510_v59  ;;  %v3712_v45 = vadd.f32 %v22664_v9, %v22719_v34 }
 0x324   :  { %26542 = vst [vmem:[#allocation17_spill] sm:$0xff] %v22883_v27 }
 0x325   :  { %v22856_v52 = vpop.f32.mrf.mxu1  ;;  %4714 = vmatmul.bf16.gmra.mxu2 %v22686_v40  ;;  %v3271_v51 = vpop.f32.mrf.mxu3  ;;  %v22904_v4 = vadd.f32 %v22716_v7, %v3712_v45  ;;  %v5115_v45 = vshll.u32 %v22916_v49, 16 }
 0x326   :  { %v3293_v25 = vadd.f32 %v3271_v51, %v22411_v37  ;;  %v19769_v37 = vunpack.c.l.b16 %v22435_v39 }
 0x328   :  { %v22885_v11 = vpop.f32.mrf.mxu2  ;;  %v22888_v29 = vadd.f32 %v22727_v14, %v3293_v25  ;;  %v4902_v56 = vpack.c.b16 %v19769_v37, %v19766_v55  ;;  %v4513_v14 = vrot.slane %v4511_v43, 1  ;;  %v18947_v25 = vld [vmem:[%s26494_s3 + $0x1f8] sm:$0xff]  ;;  %v5098_v6 = vpack.c.b16 %v19769_v37, %v5081_v21  ;;  %v4725_v43 = vld [vmem:[#allocation2 + $0x80] sm:$0xe] }
 0x329   :  { %5802 = vmatpush.bf16.msrb.mxu0 %v18947_v25  ;;  %v18931_v25 = vld [vmem:[%s26494_s3 + $0x1b0] sm:$0xff] }
 0x32a   :  { %v22892_v51 = vpop.f32.mrf.mxu0  ;;  %v4514_v62 = vsel %vm967_vm1, %v4509_v10, %v4513_v14  ;;  %v5110_v7 = vshll.u32 %v5098_v6, 16  ;;  %5538 = vmatpush.bf16.msrb.mxu3 %v18931_v25 }
 0x32c   :  { %v5112_v10 = vrot.slane %v5110_v7, 1 }
 0x32d   :  { %v22898_v59 = vpop.f32.mrf.mxu1  ;;  %4974 = vmatmul.bf16.vlgmr.msra.gmra.mxu0 %v4902_v56  ;;  %v3273_v27 = vpop.f32.mrf.mxu3  ;;  %v4011_v56 = vsel %vm967_vm1, %v4006_v46, %v4010_v47  ;;  %v5108_v46 = vshrl.u32 %v5098_v6, 16  ;;  %v3714_v6 = vadd.f32 %v22738_v1, %v22806_v19 }
 0x32e   :  { %v3294_v30 = vadd.f32 %v3273_v27, %v22427_v0  ;;  %v3713_v0 = vadd.f32 %v22691_v18, %v22748_v32  ;;  %v5314_v32 = vunpack.c.l.b16 %v5296_v63  ;;  %v4746_v63 = vrot.slane %v22435_v39, 1 }
 0x330   :  { %4614 = vmatmul.bf16.gmra.mxu1 %v4514_v62  ;;  %v22908_v9 = vpop.f32.mrf.mxu2  ;;  %v22911_v34 = vadd.f32 %v22756_v50, %v3294_v30  ;;  %v4743_v50 = vunpack.c.l.b16 %v4725_v43  ;;  %v22924_v26 = vadd.f32 %v22745_v53, %v3713_v0  ;;  %v20661_v62 = vld [vmem:[#allocation2 + $0x8c] sm:$0xff]   ;;  %v5315_v43 = vpack.c.b16 %v19769_v37, %v5314_v32 }
 0x332   :  { %v22914_v31 = vpop.f32.mrf.mxu0  ;;  %4111 = vmatmul.bf16.gmra.mxu3 %v4011_v56  ;;  %v4744_v53 = vpack.c.b16 %v19766_v55, %v4743_v50  ;;  %v5113_v56 = vor.u32 %v5112_v10, %v5108_v46  ;;  %v22945_v55 = vadd.f32 %v22803_v20, %v3714_v6  ;;  %v5316_v37 = vrot.slane %v5315_v43, 1  ;;  %v22958_v20 = vld [vmem:[#allocation2 + $0x94] sm:$0xff]   ;;  %v18930_v43 = vld [vmem:[%s26494_s3 + $0x1a8] sm:$0xff] }
 0x333   :  { %v5317_v46 = vrot.slane %v22916_v49, 1  ;;  %5539 = vmatpush.bf16.msrb.mxu3 %v18930_v43 }
 0x335   :  { %v22920_v21 = vpop.f32.mrf.mxu1  ;;  %4719 = vmatmul.bf16.gmra.mxu2 %v22770_v54  ;;  %v3276_v27 = vpop.f32.mrf.mxu3 }
 0x336   :  { %v3295_v47 = vadd.f32 %v3276_v27, %v22443_v24  ;;  %v5117_v24 = vrot.slane %v5115_v45, 1  ;;  %v4745_v27 = vrot.slane %v4744_v53, 1  ;;  %v5318_v45 = vsel %vm1267_vm0, %v5316_v37, %v5317_v46 }
 0x337   :  { %v5119_v53 = vshrl.u32 %v22916_v49, 16 }
 0x338   :  { %v22928_v14 = vpop.f32.mrf.mxu2  ;;  %v22931_v18 = vadd.f32 %v22815_v15, %v3295_v47  ;;  %v18946_v15 = vld [vmem:[%s26494_s3 + $0x1f0] sm:$0xff]  ;;  %v5118_v47 = vsel %vm967_vm1, %v5113_v56, %v5117_v24  ;;  %v4747_v39 = vsel %vm1267_vm0, %v4745_v27, %v4746_v63 }
 0x339   :  { %5803 = vmatpush.bf16.msrb.mxu0 %v18946_v15  ;;  %v20663_v15 = vld [vmem:[#allocation2 + $0x94] sm:$0xff]  }
 0x33a   :  { %v22936_v30 = vpop.f32.mrf.mxu0 }
 0x33d   :  { %v4580_v7 = vpop.f32.mrf.mxu1  ;;  %4979 = vmatmul.bf16.gmra.mxu0 %v20661_v62  ;;  %v3278_v0 = vpop.f32.mrf.mxu3  ;;  %v5123_v62 = vshll.u32 %v22958_v20, 16 }
 0x33e   :  { %v3296_v50 = vadd.f32 %v3278_v0, %v22459_v36  ;;  %v3715_v36 = vadd.f32 %v22768_v23, %v22838_v58  ;;  %v5121_v0 = vor.u32 %v5119_v53, %v5117_v24  ;;  %v22986_v24 = vld [vmem:[%s26495_s4] ss:$0 sm:$0xff] }
 0x33f   :  { %v5125_v27 = vrot.slane %v5123_v62, 1  ;;  %v22997_v62 = vld [vmem:[#allocation2 + $0x9c] sm:$0xff]  }
 0x340   :  { %5239 = vmatmul.bf16.vlgmr.msra.gmra.mxu1 %v5118_v47  ;;  %v22949_v1 = vpop.f32.mrf.mxu2  ;;  %v22952_v19 = vadd.f32 %v22846_v57, %v3296_v50  ;;  %v22964_v57 = vadd.f32 %v22835_v8, %v3715_v36  ;;  %v4748_v47 = vrot.slane %v22466_v17, 1 }
 0x341   :  { %v5126_v37 = vsel %vm967_vm1, %v5121_v0, %v5125_v27 }
 0x342   :  { %v22955_v10 = vpop.f32.mrf.mxu0  ;;  %4826 = vmatmul.bf16.vlgmr.msra.gmra.mxu3 %v4747_v39 }
 0x345   :  { %v4582_v32 = vpop.f32.mrf.mxu1  ;;  %5397 = vmatmul.bf16.vlgmr.msra.gmra.mxu2 %v5318_v45  ;;  %v4077_v25 = vpop.f32.mrf.mxu3  ;;  %v5319_v45 = vrot.slane %v22958_v20, 1 }
 0x346   :  { %v4117_v6 = vadd.f32 %v4077_v25, %v22603_v61  ;;  %v18945_v61 = vld [vmem:[%s26494_s3 + $0x1e8] sm:$0xff] }
 0x347   :  { %5804 = vmatpush.bf16.msrb.mxu0 %v18945_v61  ;;  %v5320_v43 = vsel %vm1267_vm0, %v5317_v46, %v5319_v45 }
 0x348   :  { %v4685_v56 = vpop.f32.mrf.mxu2  ;;  %v4275_v8 = vadd.f32 %v22892_v51, %v4117_v6 }
 0x349   :  { %v22972_v23 = vadd.f32 %v4685_v56, %v4580_v7 }
 0x34a   :  { %v22974_v58 = vpop.f32.mrf.mxu0  ;;  %v4291_v51 = vadd.f32 %v22986_v24, %v4275_v8  ;;  %v5131_v8 = vshll.u32 %v22997_v62, 16 }
 0x34c   :  { %v4307_v56 = vmax.f32 %v4291_v51, 0.0 }
 0x34d   :  { %v4585_v49 = vpop.f32.mrf.mxu1  ;;  %4984 = vmatmul.bf16.gmra.mxu0 %v20663_v15  ;;  %v4079_v50 = vpop.f32.mrf.mxu3 }
 0x34e   :  { %v4118_v7 = vadd.f32 %v4079_v50, %v22633_v41  ;;  %v4749_v41 = vsel %vm1267_vm0, %v4746_v63, %v4748_v47  ;;  %v3716_v63 = vadd.f32 %v22822_v35, %v22888_v29 }
 0x350   :  { %5244 = vmatmul.bf16.gmra.mxu1 %v5126_v37  ;;  %v4687_v39 = vpop.f32.mrf.mxu2  ;;  %v4276_v36 = vadd.f32 %v22914_v31, %v4118_v7  ;;  %v18929_v7 = vld [vmem:[%s26494_s3 + $0x1a0] sm:$0xff]  ;;  %v23009_v46 = vadd.f32 %v22885_v11, %v3716_v63  ;;  %v4750_v11 = vrot.slane %v22508_v48, 1 }
 0x351   :  { %v22991_v25 = vadd.f32 %v4687_v39, %v4582_v32  ;;  %v5127_v32 = vshrl.u32 %v22958_v20, 16  ;;  %v20665_v20 = vld [vmem:[#allocation2 + $0x9c] sm:$0xff]   ;;  %5540 = vmatpush.bf16.msrb.mxu3 %v18929_v7 }
 0x352   :  { %v22993_v17 = vpop.f32.mrf.mxu0  ;;  %v4292_v53 = vadd.f32 %v22986_v24, %v4276_v36  ;;  %4831 = vmatmul.bf16.gmra.mxu3 %v4749_v41  ;;  %v5133_v36 = vrot.slane %v5131_v8, 1 }
 0x353   :  { %v5129_v39 = vor.u32 %v5127_v32, %v5125_v27  ;;  %v3717_v27 = vadd.f32 %v22856_v52, %v22911_v34  ;;  %v23036_v52 = vld [vmem:[#allocation2 + $0xa4] sm:$0xff]  }
 0x354   :  { %v4308_v6 = vmax.f32 %v4292_v53, 0.0 }
 0x355   :  { %v4587_v15 = vpop.f32.mrf.mxu1  ;;  %5402 = vmatmul.bf16.gmra.mxu2 %v5320_v43  ;;  %v4082_v31 = vpop.f32.mrf.mxu3  ;;  %v5134_v53 = vsel %vm967_vm1, %v5129_v39, %v5133_v36  ;;  %v5321_v43 = vrot.slane %v22997_v62, 1 }
 0x356   :  { %v19726_v0 = vpack.c.bf16 %v4308_v6, %v4307_v56  ;;  %v4119_v50 = vadd.f32 %v4082_v31, %v22667_v33  ;;  %v18944_v33 = vld [vmem:[%s26494_s3 + $0x1e0] sm:$0xff]  ;;  %v23028_v31 = vadd.f32 %v22908_v9, %v3717_v27 }
 0x357   :  { %5805 = vmatpush.bf16.msrb.mxu0 %v18944_v33  ;;  %v20667_v33 = vld [vmem:[#allocation2 + $0xa4] sm:$0xff]  }
 0x358   :  { %20284 = vst [vmem:[#allocation3 + $0x40] sm:$0xff] %v19726_v0   ;;  %v4690_v61 = vpop.f32.mrf.mxu2  ;;  %v4277_v35 = vadd.f32 %v22936_v30, %v4119_v50  ;;  %v4751_v0 = vsel %vm1267_vm0, %v4748_v47, %v4750_v11  ;;  %v5139_v50 = vshll.u32 %v23036_v52, 16 }
 0x359   :  { %v23011_v37 = vadd.f32 %v4690_v61, %v4585_v49 }
 0x35a   :  { %v23013_v51 = vpop.f32.mrf.mxu0  ;;  %v4293_v30 = vadd.f32 %v22986_v24, %v4277_v35 }
 0x35c   :  { %v4309_v34 = vmax.f32 %v4293_v30, 0.0  ;;  %v4752_v30 = vrot.slane %v22559_v13, 1 }
 0x35d   :  { %v4590_v29 = vpop.f32.mrf.mxu1  ;;  %4989 = vmatmul.bf16.gmra.mxu0 %v20665_v20  ;;  %v4084_v41 = vpop.f32.mrf.mxu3  ;;  %v18971_v20 = vld [vmem:[%s26494_s3 + $0x78] sm:$0xff] }
 0x35e   :  { %v4120_v49 = vadd.f32 %v4084_v41, %v22698_v16  ;;  %6241 = vmatpush.bf16.msrb.mxu2 %v18971_v20 }
 0x360   :  { %5249 = vmatmul.bf16.gmra.mxu1 %v5134_v53  ;;  %v4692_v56 = vpop.f32.mrf.mxu2  ;;  %v4278_v6 = vadd.f32 %v22955_v10, %v4120_v49  ;;  %v5322_v10 = vsel %vm1267_vm0, %v5319_v45, %v5321_v43  ;;  %v18928_v45 = vld [vmem:[%s26494_s3 + $0x198] sm:$0xff]  ;;  %v5141_v49 = vrot.slane %v5139_v50, 1 }
 0x361   :  { %v23030_v48 = vadd.f32 %v4692_v56, %v4587_v15  ;;  %v5135_v15 = vshrl.u32 %v22997_v62, 16  ;;  %v18955_v62 = vld [vmem:[%s26494_s3 + $0x238] sm:$0xff]  ;;  %5541 = vmatpush.bf16.msrb.mxu3 %v18928_v45  ;;  %v3718_v56 = vadd.f32 %v22898_v59, %v22931_v18  ;;  %v23076_v18 = vld [vmem:[#allocation2 + $0xac] sm:$0xff]  }
 0x362   :  { %v23032_v16 = vpop.f32.mrf.mxu0  ;;  %v4294_v32 = vadd.f32 %v22986_v24, %v4278_v6  ;;  %4836 = vmatmul.bf16.gmra.mxu3 %v4751_v0  ;;  %5960 = vmatpush.bf16.msrb.mxu1 %v18955_v62  ;;  %v20669_v62 = vld [vmem:[#allocation2 + $0xac] sm:$0xff]  }
 0x363   :  { %v5137_v41 = vor.u32 %v5135_v15, %v5133_v36 }
 0x364   :  { %v4310_v8 = vmax.f32 %v4294_v32, 0.0 }
 0x365   :  { %v4592_v63 = vpop.f32.mrf.mxu1  ;;  %5407 = vmatmul.bf16.gmra.mxu2 %v5322_v10  ;;  %v4087_v61 = vpop.f32.mrf.mxu3  ;;  %v5142_v6 = vsel %vm967_vm1, %v5137_v41, %v5141_v49 }
 0x366   :  { %v19731_v9 = vpack.c.bf16 %v4310_v8, %v4309_v34  ;;  %v4121_v47 = vadd.f32 %v4087_v61, %v22741_v3  ;;  %v5323_v8 = vrot.slane %v23036_v52, 1 }
 0x368   :  { %20285 = vst [vmem:[#allocation3 + $0x48] sm:$0xff] %v19731_v9   ;;  %v4695_v7 = vpop.f32.mrf.mxu2  ;;  %v4279_v3 = vadd.f32 %v22974_v58, %v4121_v47  ;;  %v23065_v58 = vadd.f32 %v22928_v14, %v3718_v56  ;;  %v5324_v9 = vsel %vm1267_vm0, %v5321_v43, %v5323_v8  ;;  %v18970_v43 = vld [vmem:[%s26494_s3 + $0x70] sm:$0xff] }
 0x369   :  { %v23048_v39 = vadd.f32 %v4695_v7, %v4590_v29  ;;  %v18943_v29 = vld [vmem:[%s26494_s3 + $0x1d8] sm:$0xff]  ;;  %v5143_v7 = vshrl.u32 %v23036_v52, 16  ;;  %6242 = vmatpush.bf16.msrb.mxu2 %v18970_v43 }
 0x36a   :  { %v23050_v35 = vpop.f32.mrf.mxu0  ;;  %5806 = vmatpush.bf16.msrb.mxu0 %v18943_v29  ;;  %v4295_v0 = vadd.f32 %v22986_v24, %v4279_v3 }
 0x36c   :  { %v4311_v14 = vmax.f32 %v4295_v0, 0.0  ;;  %v5325_v0 = vrot.slane %v23076_v18, 1 }
 0x36d   :  { %v4595_v53 = vpop.f32.mrf.mxu1  ;;  %4994 = vmatmul.bf16.gmra.mxu0 %v20667_v33  ;;  %v4089_v27 = vpop.f32.mrf.mxu3  ;;  %v5145_v33 = vor.u32 %v5143_v7, %v5141_v49  ;;  %v18969_v7 = vld [vmem:[%s26494_s3 + $0x68] sm:$0xff] }
 0x36e   :  { %v4122_v36 = vadd.f32 %v4089_v27, %v22783_v42  ;;  %v4753_v42 = vsel %vm1267_vm0, %v4750_v11, %v4752_v30  ;;  %v5147_v11 = vshll.u32 %v23076_v18, 16  ;;  %v4754_v27 = vrot.slane %v22620_v5, 1  ;;  %6243 = vmatpush.bf16.msrb.mxu2 %v18969_v7  ;;  %v18952_v7 = vld [vmem:[%s26494_s3 + $0x220] sm:$0xff] }
 0x370   :  { %5254 = vmatmul.bf16.gmra.mxu1 %v5142_v6  ;;  %v4697_v32 = vpop.f32.mrf.mxu2  ;;  %v4280_v34 = vadd.f32 %v22993_v17, %v4122_v36  ;;  %v5149_v41 = vrot.slane %v5147_v11, 1 }
 0x371   :  { %v23070_v13 = vadd.f32 %v4697_v32, %v4592_v63  ;;  %v3719_v63 = vadd.f32 %v22920_v21, %v22952_v19  ;;  %v18927_v21 = vld [vmem:[%s26494_s3 + $0x190] sm:$0xff] }
 0x372   :  { %v23072_v10 = vpop.f32.mrf.mxu0  ;;  %v4296_v59 = vadd.f32 %v22986_v24, %v4280_v34  ;;  %4841 = vmatmul.bf16.gmra.mxu3 %v4753_v42  ;;  %v5150_v36 = vsel %vm967_vm1, %v5145_v33, %v5149_v41  ;;  %v4755_v42 = vsel %vm1267_vm0, %v4752_v30, %v4754_v27 }
 0x373   :  { %v23084_v47 = vadd.f32 %v22949_v1, %v3719_v63  ;;  %v18954_v1 = vld [vmem:[%s26494_s3 + $0x230] sm:$0xff]  ;;  %5542 = vmatpush.bf16.msrb.mxu3 %v18927_v21 }
 0x374   :  { %v4312_v61 = vmax.f32 %v4296_v59, 0.0  ;;  %5961 = vmatpush.bf16.msrb.mxu1 %v18954_v1 }
 0x375   :  { %v4597_v15 = vpop.f32.mrf.mxu1  ;;  %5412 = vmatmul.bf16.gmra.mxu2 %v5324_v9  ;;  %v4092_v17 = vpop.f32.mrf.mxu3  ;;  %v23117_v9 = vld [vmem:[#allocation2 + $0xb4] sm:$0xff]  }
 0x376   :  { %v19736_v50 = vpack.c.bf16 %v4312_v61, %v4311_v14  ;;  %v4123_v45 = vadd.f32 %v4092_v17, %v22831_v60  ;;  %v5326_v14 = vsel %vm1267_vm0, %v5323_v8, %v5325_v0  ;;  %v5155_v30 = vshll.u32 %v23117_v9, 16  ;;  %v18926_v8 = vld [vmem:[%s26494_s3 + $0x188] sm:$0xff] }
 0x377   :  { %5543 = vmatpush.bf16.msrb.mxu3 %v18926_v8 }
 0x378   :  { %20286 = vst [vmem:[#allocation3 + $0x50] sm:$0xff] %v19736_v50   ;;  %v4700_v20 = vpop.f32.mrf.mxu2  ;;  %v4281_v60 = vadd.f32 %v23013_v51, %v4123_v45  ;;  %v20671_v45 = vld [vmem:[#allocation2 + $0xb4] sm:$0xff]   ;;  %v5157_v1 = vrot.slane %v5155_v30, 1 }
 0x379   :  { %v23093_v19 = vadd.f32 %v4700_v20, %v4595_v53  ;;  %v18942_v53 = vld [vmem:[%s26494_s3 + $0x1d0] sm:$0xff] }
 0x37a   :  { %v23095_v52 = vpop.f32.mrf.mxu0  ;;  %5807 = vmatpush.bf16.msrb.mxu0 %v18942_v53  ;;  %v4297_v49 = vadd.f32 %v22986_v24, %v4281_v60  ;;  %v4756_v60 = vrot.slane %v22686_v40, 1 }
 0x37d   :  { %v4600_v3 = vpop.f32.mrf.mxu1  ;;  %4999 = vmatmul.bf16.gmra.mxu0 %v20669_v62  ;;  %v4094_v29 = vpop.f32.mrf.mxu3  ;;  %v18941_v62 = vld [vmem:[%s26494_s3 + $0x1c8] sm:$0xff] }
 0x37e   :  { %v4124_v56 = vadd.f32 %v4094_v29, %v22865_v38  ;;  %v4313_v38 = vmax.f32 %v4297_v49, 0.0  ;;  %v19822_v29 = vunpack.c.h.b16 %v22770_v54  ;;  %5808 = vmatpush.bf16.msrb.mxu0 %v18941_v62 }
 0x380   :  { %5259 = vmatmul.bf16.gmra.mxu1 %v5150_v36  ;;  %v4702_v6 = vpop.f32.mrf.mxu2  ;;  %v4282_v51 = vadd.f32 %v23032_v16, %v4124_v56 }
 0x381   :  { %v23110_v32 = vadd.f32 %v4702_v6, %v4597_v15  ;;  %v5151_v15 = vshrl.u32 %v23076_v18, 16  ;;  %v18953_v18 = vld [vmem:[%s26494_s3 + $0x228] sm:$0xff] }
 0x382   :  { %v23112_v34 = vpop.f32.mrf.mxu0  ;;  %v4298_v5 = vadd.f32 %v22986_v24, %v4282_v51  ;;  %4846 = vmatmul.bf16.gmra.mxu3 %v4755_v42  ;;  %5962 = vmatpush.bf16.msrb.mxu1 %v18953_v18  ;;  %v4757_v42 = vsel %vm1267_vm0, %v4754_v27, %v4756_v60 }
 0x384   :  { %v4314_v59 = vmax.f32 %v4298_v5, 0.0 }
 0x385   :  { %v4602_v61 = vpop.f32.mrf.mxu1  ;;  %5417 = vmatmul.bf16.gmra.mxu2 %v5326_v14  ;;  %v4097_v16 = vpop.f32.mrf.mxu3 }
 0x386   :  { %v19741_v17 = vpack.c.bf16 %v4314_v59, %v4313_v38  ;;  %v4125_v50 = vadd.f32 %v4097_v16, %v22904_v4  ;;  %v5153_v4 = vor.u32 %v5151_v15, %v5149_v41  ;;  %v5327_v38 = vrot.slane %v23117_v9, 1  ;;  %5963 = vmatpush.bf16.msrb.mxu1 %v18952_v7 }
 0x387   :  { %v5159_v15 = vshrl.u32 %v23117_v9, 16  ;;  %v18948_v9 = vld [vmem:[%s26494_s3 + $0x200] sm:$0xff] }
 0x388   :  { %20287 = vst [vmem:[#allocation3 + $0x58] sm:$0xff] %v19741_v17   ;;  %v4705_v63 = vpop.f32.mrf.mxu2  ;;  %v4283_v43 = vadd.f32 %v23050_v35, %v4125_v50  ;;  %v5158_v41 = vsel %vm967_vm1, %v5153_v4, %v5157_v1  ;;  %v18940_v35 = vld [vmem:[%s26494_s3 + $0x1c0] sm:$0xff] }
 0x389   :  { %v23128_v11 = vadd.f32 %v4705_v63, %v4600_v3  ;;  %v23140_v3 = vld [vmem:[#allocation2 + $0xc0] sm:$0xf]  ;;  %5809 = vmatpush.bf16.msrb.mxu0 %v18940_v35  ;;  %v5047_v35 = vld [vmem:[#allocation2 + $0xc4] sm:$0x1] }
 0x38a   :  { %v23130_v20 = vpop.f32.mrf.mxu0  ;;  %v4299_v56 = vadd.f32 %v22986_v24, %v4283_v43  ;;  %v26512_v6 = vunpack.c.l.b16 %v23140_v3  ;;  %v20672_v4 = vld [vmem:[#allocation2 + $0xbc] sm:$0xff]  ;;  %v5161_v43 = vor.u32 %v5159_v15, %v5157_v1 }
 0x38c   :  { %v23162_v59 = vpack.c.b16 %v26512_v6, %v19822_v29 }
 0x38d   :  { %v4605_v21 = vpop.f32.mrf.mxu1  ;;  %5004 = vmatmul.bf16.gmra.mxu0 %v20671_v45  ;;  %v4099_v33 = vpop.f32.mrf.mxu3  ;;  %v18925_v45 = vld [vmem:[%s26494_s3 + $0x180] sm:$0xff] }
 0x38e   :  { %v4126_v53 = vadd.f32 %v4099_v33, %v22924_v26  ;;  %v5163_v63 = vshll.u32 %v23162_v59, 16  ;;  %5544 = vmatpush.bf16.msrb.mxu3 %v18925_v45 }
 0x390   :  { %5264 = vmatmul.bf16.gmra.mxu1 %v5158_v41  ;;  %v4707_v36 = vpop.f32.mrf.mxu2  ;;  %v4284_v49 = vadd.f32 %v23072_v10, %v4126_v53  ;;  %v4315_v10 = vmax.f32 %v4299_v56, 0.0  ;;  %v5165_v62 = vrot.slane %v5163_v63, 1  ;;  %v20342_v41 = vld [vmem:[#allocation2 + $0x88] sm:$0xff]  }
 0x391   :  { %v23151_v51 = vadd.f32 %v4707_v36, %v4602_v61  ;;  %v5328_v61 = vsel %vm1267_vm0, %v5325_v0, %v5327_v38  ;;  %v18968_v0 = vld [vmem:[%s26494_s3 + $0x60] sm:$0xff]  ;;  %v18950_v36 = vld [vmem:[%s26494_s3 + $0x210] sm:$0xff] }
 0x392   :  { %v23153_v26 = vpop.f32.mrf.mxu0  ;;  %v4300_v5 = vadd.f32 %v22986_v24, %v4284_v49  ;;  %4851 = vmatmul.bf16.gmra.mxu3 %v4757_v42  ;;  %6244 = vmatpush.bf16.msrb.mxu2 %v18968_v0  ;;  %v5166_v56 = vsel %vm967_vm1, %v5161_v43, %v5165_v62  ;;  %v4758_v49 = vrot.slane %v22770_v54, 1  ;;  %v23196_v42 = vld [vmem:[#allocation2 + $0x90] sm:$0xff]  ;;  %v18965_v0 = vld [vmem:[%s26494_s3 + $0x48] sm:$0xff] }
 0x394   :  { %v4316_v14 = vmax.f32 %v4300_v5, 0.0  ;;  %v18966_v5 = vld [vmem:[%s26494_s3 + $0x50] sm:$0xff]  ;;  %v4759_v63 = vsel %vm1267_vm0, %v4756_v60, %v4758_v49 }
 0x395   :  { %v4607_v16 = vpop.f32.mrf.mxu1  ;;  %5422 = vmatmul.bf16.gmra.mxu2 %v5328_v61  ;;  %v4102_v17 = vpop.f32.mrf.mxu3  ;;  %v5329_v61 = vrot.slane %v23162_v59, 1 }
 0x396   :  { %v19746_v27 = vpack.c.bf16 %v4316_v14, %v4315_v10  ;;  %v4127_v30 = vadd.f32 %v4102_v17, %v22945_v55  ;;  %v18951_v55 = vld [vmem:[%s26494_s3 + $0x218] sm:$0xff]  ;;  %v5097_v17 = vunpack.c.l.b16 %v5047_v35 }
 0x397   :  { %5964 = vmatpush.bf16.msrb.mxu1 %v18951_v55  ;;  %v5330_v60 = vsel %vm1267_vm0, %v5327_v38, %v5329_v61  ;;  %v18964_v38 = vld [vmem:[%s26494_s3 + $0x40] sm:$0xff] }
 0x398   :  { %20288 = vst [vmem:[#allocation3 + $0x60] sm:$0xff] %v19746_v27   ;;  %v4710_v50 = vpop.f32.mrf.mxu2  ;;  %v4285_v33 = vadd.f32 %v23095_v52, %v4127_v30  ;;  %v5681_v52 = vshll.u32 %v20342_v41, 16  ;;  %v5679_v30 = vshrl.u32 %v20342_v41, 16  ;;  %v5106_v43 = vpack.c.b16 %v5097_v17, %v5097_v17 }
 0x399   :  { %v23176_v8 = vadd.f32 %v4710_v50, %v4605_v21  ;;  %v18967_v21 = vld [vmem:[%s26494_s3 + $0x58] sm:$0xff] }
 0x39a   :  { %v23178_v18 = vpop.f32.mrf.mxu0  ;;  %6245 = vmatpush.bf16.msrb.mxu2 %v18967_v21  ;;  %v5683_v7 = vrot.slane %v5681_v52, 1 }
 0x39b   :  { %5965 = vmatpush.bf16.msrb.mxu1 %v18950_v36  ;;  %v18979_v36 = vld [vmem:[%s26494_s3 + $0xb8] sm:$0xff] }
 0x39c   :  { %6432 = vmatpush.bf16.msra.mxu3 %v18979_v36 }
 0x39d   :  { %v4610_v53 = vpop.f32.mrf.mxu1  ;;  %5009 = vmatmul.bf16.gmra.mxu0 %v20672_v4  ;;  %v4104_v29 = vpop.f32.mrf.mxu3 }
 0x39e   :  { %v4128_v1 = vadd.f32 %v4104_v29, %v22964_v57  ;;  %v4301_v57 = vadd.f32 %v22986_v24, %v4285_v33  ;;  %6246 = vmatpush.bf16.msrb.mxu2 %v18966_v5  ;;  %v5684_v33 = vor.u32 %v5683_v7, %v5679_v30  ;;  %v4760_v30 = vrot.slane %v22858_v2, 1  ;;  %v20343_v2 = vld [vmem:[#allocation2 + $0x88] sm:$0xf0] }
 0x3a0   :  { %5269 = vmatmul.bf16.gmra.mxu1 %v5166_v56  ;;  %v4712_v10 = vpop.f32.mrf.mxu2  ;;  %v4286_v14 = vadd.f32 %v23112_v34, %v4128_v1  ;;  %v18949_v34 = vld [vmem:[%s26494_s3 + $0x208] sm:$0xff]  ;;  %v4317_v40 = vmax.f32 %v4301_v57, 0.0  ;;  %v5167_v1 = vshrl.u32 %v23162_v59, 16  ;;  %v5171_v56 = vshll.u32 %v5106_v43, 16 }
 0x3a1   :  { %v23204_v27 = vadd.f32 %v4712_v10, %v4607_v16  ;;  %v5686_v16 = vshll.u32 %v23196_v42, 16  ;;  %5966 = vmatpush.bf16.msrb.mxu1 %v18949_v34 }
 0x3a2   :  { %v23206_v15 = vpop.f32.mrf.mxu0  ;;  %v4302_v50 = vadd.f32 %v22986_v24, %v4286_v14  ;;  %4856 = vmatmul.bf16.gmra.mxu3 %v4759_v63  ;;  %6247 = vmatpush.bf16.msrb.mxu2 %v18965_v0  ;;  %v5169_v57 = vor.u32 %v5167_v1, %v5165_v62  ;;  %v5173_v63 = vrot.slane %v5171_v56, 1  ;;  %v23249_v62 = vld [vmem:[#allocation2 + $0x98] sm:$0xff] }
 0x3a3   :  { %v5688_v41 = vrot.slane %v5686_v16, 1 }
 0x3a4   :  { %v4318_v45 = vmax.f32 %v4302_v50, 0.0  ;;  %v5174_v34 = vsel %vm967_vm1, %v5169_v57, %v5173_v63 }
 0x3a5   :  { %v4612_v4 = vpop.f32.mrf.mxu1  ;;  %5427 = vmatmul.bf16.gmra.mxu2 %v5330_v60  ;;  %v4107_v55 = vpop.f32.mrf.mxu3  ;;  %5967 = vmatpush.bf16.msrb.mxu1 %v18948_v9  ;;  %v5689_v10 = vsel %vm967_vm1, %v5684_v33, %v5688_v41  ;;  %v5331_v60 = vrot.slane %v5106_v43, 1  ;;  %v5694_v33 = vshll.u32 %v23249_v62, 16  ;;  %v8003_v43 = vld [vmem:[#allocation3 + $0x44] sm:$0x1]  ;;  %v23269_v9 = vld [vmem:[#allocation2 + $0xc0] sm:$0xff]  }
 0x3a6   :  { %v19751_v21 = vpack.c.bf16 %v4318_v45, %v4317_v40  ;;  %v4129_v35 = vadd.f32 %v4107_v55, %v23009_v46  ;;  %v18987_v46 = vld [vmem:[%s26494_s3 + $0xf8] sm:$0xff]  ;;  %6248 = vmatpush.bf16.msrb.mxu2 %v18964_v38  ;;  %v20390_v55 = vld [vmem:[#allocation3 + $0x38] sm:$0xff]   ;;  %v18978_v38 = vld [vmem:[%s26494_s3 + $0xb0] sm:$0xff] }
 0x3a7   :  { %6544 = vmatpush.bf16.msra.mxu0 %v18987_v46  ;;  %v5332_v54 = vsel %vm1267_vm0, %v5329_v61, %v5331_v60  ;;  %v19978_v36 = vunpack.c.h.b16 %v20390_v55  ;;  %v8054_v46 = vunpack.c.l.b16 %v8003_v43  ;;  %v5696_v59 = vrot.slane %v5694_v33, 1  ;;  %6433 = vmatpush.bf16.msra.mxu3 %v18978_v38 }
 0x3a8   :  { %20289 = vst [vmem:[#allocation3 + $0x68] sm:$0xff] %v19751_v21   ;;  %v4715_v29 = vpop.f32.mrf.mxu2  ;;  %v4287_v14 = vadd.f32 %v23130_v20, %v4129_v35  ;;  %v4761_v20 = vsel %vm1267_vm0, %v4758_v49, %v4760_v30  ;;  %v5690_v21 = vshrl.u32 %v23196_v42, 16 }
 0x3a9   :  { %v23237_v52 = vadd.f32 %v4715_v29, %v4610_v53  ;;  %v20344_v29 = vld [vmem:[#allocation2 + $0x88] sm:$0xe] }
 0x3aa   :  { %v23239_v5 = vpop.f32.mrf.mxu0  ;;  %v4303_v7 = vadd.f32 %v22986_v24, %v4287_v14  ;;  %v5692_v14 = vor.u32 %v5690_v21, %v5688_v41  ;;  %v18986_v41 = vld [vmem:[%s26494_s3 + $0xf0] sm:$0xff]  ;;  %v6154_v21 = vshrl.u32 %v23269_v9, 16 }
 0x3ab   :  { %6545 = vmatpush.bf16.msra.mxu0 %v18986_v41 }
 0x3ad   :  { %v4615_v17 = vpop.f32.mrf.mxu1  ;;  %5810 = vmatmul.bf16.vlgmr.msrb.gmra.mxu0 %v5689_v10  ;;  %v4109_v53 = vpop.f32.mrf.mxu3  ;;  %v20345_v10 = vor.u32 %v20344_v29, %v20343_v2 }
 0x3ae   :  { %v4130_v50 = vadd.f32 %v4109_v53, %v23028_v31 }
 0x3b0   :  { %5274 = vmatmul.bf16.gmra.mxu1 %v5174_v34  ;;  %v4717_v16 = vpop.f32.mrf.mxu2  ;;  %v4288_v0 = vadd.f32 %v23153_v26, %v4130_v50  ;;  %v23263_v26 = vld [vmem:[#allocation3 + $0x40] sm:$0xff]   ;;  %v6156_v50 = vshll.u32 %v23269_v9, 16 }
 0x3b1   :  { %v23253_v40 = vadd.f32 %v4717_v16, %v4612_v4  ;;  %26543 = vst [vmem:[#allocation18_spill] sm:$0xff] %v23263_v26  ;;  %v4319_v4 = vmax.f32 %v4303_v7, 0.0  ;;  %v26511_v1 = vunpack.c.l.b16 %v23263_v26  ;;  %v23287_v7 = vpack.c.b16 %v8054_v46, %v8054_v46 }
 0x3b2   :  { %v23258_v45 = vpop.f32.mrf.mxu0  ;;  %v4304_v31 = vadd.f32 %v22986_v24, %v4288_v0  ;;  %4861 = vmatmul.bf16.gmra.mxu3 %v4761_v20  ;;  %v5887_v16 = vrot.slane %v20345_v10, 1  ;;  %v5888_v0 = vrot.slane %v23196_v42, 1  ;;  %v23290_v20 = vld [vmem:[#allocation2 + $0xc8] sm:$0xff]   ;;  %v6158_v33 = vrot.slane %v6156_v50, 1  ;;  %v20336_v42 = vld [vmem:[#allocation2 + $0x90] sm:$0xff]  }
 0x3b3   :  { %v23276_v61 = vpack.c.b16 %v26511_v1, %v19978_v36  ;;  %26545 = vst [vmem:[#allocation20_spill] sm:$0xff] %v23287_v7  ;;  %v6161_v60 = vshll.u32 %v23290_v20, 16  ;;  %v23309_v36 = vld [vmem:[#allocation2 + $0xa0] sm:$0xff] }
 0x3b4   :  { %v4320_v35 = vmax.f32 %v4304_v31, 0.0  ;;  %v19093_v31 = vld [vmem:[#allocation3 + $0x40] sm:$0xff] }
 0x3b5   :  { %v4617_v49 = vpop.f32.mrf.mxu1  ;;  %5432 = vmatmul.bf16.gmra.mxu2 %v5332_v54  ;;  %v4112_v56 = vpop.f32.mrf.mxu3  ;;  %26544 = vst [vmem:[#allocation19_spill] sm:$0xff] %v23276_v61  ;;  %v8289_v54 = vrot.slane %v23287_v7, 1  ;;  %v6163_v38 = vrot.slane %v6161_v60, 1  ;;  %v8577_v60 = vld [vmem:[#allocation3 + $0x48] sm:$0x1] }
 0x3b6   :  { %v19756_v57 = vpack.c.bf16 %v4320_v35, %v4319_v4  ;;  %v4131_v53 = vadd.f32 %v4112_v56, %v23065_v58  ;;  %v5697_v58 = vsel %vm967_vm1, %v5692_v14, %v5696_v59  ;;  %v26546_v4 = vrot.slane %v22849_v22, 1 }
 0x3b7   :  { %v8861_v56 = vrot.slane %v19093_v31, 1  ;;  %v6159_v14 = vor.u32 %v6158_v33, %v6154_v21  ;;  %v5698_v31 = vshrl.u32 %v23249_v62, 16  ;;  %v8628_v21 = vunpack.c.l.b16 %v8577_v60  ;;  %v18977_v33 = vld [vmem:[%s26494_s3 + $0xa8] sm:$0xff] }
 0x3b8   :  { %20290 = vst [vmem:[#allocation3 + $0x70] sm:$0xff] %v19756_v57   ;;  %v4720_v63 = vpop.f32.mrf.mxu2  ;;  %v4289_v2 = vadd.f32 %v23178_v18, %v4131_v53  ;;  %v5889_v18 = vsel %vm1267_vm0, %v5887_v16, %v5888_v0  ;;  %v20960_v16 = vld [vmem:[#allocation2 + $0x88] sm:$0xff]   ;;  %6434 = vmatpush.bf16.msra.mxu3 %v18977_v33  ;;  %v6165_v60 = vshrl.u32 %v23290_v20, 16 }
 0x3b9   :  { %v23280_v34 = vadd.f32 %v4720_v63, %v4615_v17  ;;  %v8287_v17 = vrot.slane %v23276_v61, 1  ;;  %v18993_v61 = vld [vmem:[%s26494_s3 + $0x128] sm:$0xff] }
 0x3ba   :  { %v23282_v30 = vpop.f32.mrf.mxu0  ;;  %v4305_v22 = vadd.f32 %v22986_v24, %v4289_v2 }
 0x3bb   :  { %v23302_v35 = vsel %vm1267_vm0, %v26546_v4, %v8287_v17  ;;  %v23312_v46 = vsel %vm1267_vm0, %v8287_v17, %v8289_v54  ;;  %v23338_v54 = vpack.c.b16 %v8628_v21, %v8628_v21 }
 0x3bc   :  { %26547 = vst [vmem:[#allocation21_spill] sm:$0xff] %v23302_v35  ;;  %v18982_v35 = vld [vmem:[%s26494_s3 + $0xd0] sm:$0xff] }
 0x3bd   :  { %v23296_v55 = vpop.f32.mrf.mxu1  ;;  %5815 = vmatmul.bf16.gmra.mxu0 %v5697_v58  ;;  %v4114_v29 = vpop.f32.mrf.mxu3  ;;  %26548 = vst [vmem:[#allocation22_spill] sm:$0xff] %v23312_v46  ;;  %v5702_v58 = vshll.u32 %v23309_v36, 16 }
 0x3be   :  { %v4132_v43 = vadd.f32 %v4114_v29, %v23084_v47  ;;  %v26549_v47 = vrot.slane %v22851_v44, 1  ;;  %v6164_v44 = vsel %vm967_vm1, %v6159_v14, %v6163_v38  ;;  %26551 = vst [vmem:[#allocation24_spill] sm:$0xff] %v23338_v54  ;;  %v8863_v14 = vrot.slane %v23338_v54, 1 }
 0x3c0   :  { %5968 = vmatmul.bf16.vlgmr.msrb.gmra.mxu1 %v5889_v18  ;;  %v4722_v57 = vpop.f32.mrf.mxu2  ;;  %v4290_v10 = vadd.f32 %v23206_v15, %v4132_v43  ;;  %v23319_v63 = vsel %vm1267_vm0, %v26549_v47, %v8861_v56  ;;  %v4321_v15 = vmax.f32 %v4305_v22, 0.0  ;;  %v5700_v43 = vor.u32 %v5698_v31, %v5696_v59  ;;  %v18985_v59 = vld [vmem:[%s26494_s3 + $0xe8] sm:$0xff] }
 0x3c1   :  { %26550 = vst [vmem:[#allocation23_spill] sm:$0xff] %v23319_v63  ;;  %v23321_v53 = vadd.f32 %v4722_v57, %v4617_v49  ;;  %v5704_v18 = vrot.slane %v5702_v58, 1  ;;  %v18961_v31 = vld [vmem:[%s26494_s3 + $0x28] sm:$0xff]  ;;  %6546 = vmatpush.bf16.msra.mxu0 %v18985_v59 }
 0x3c2   :  { %v23323_v50 = vpop.f32.mrf.mxu0  ;;  %v4306_v41 = vadd.f32 %v22986_v24, %v4290_v10  ;;  %5545 = vmatmul.bf16.vlgmr.msrb.gmra.mxu3 %v20960_v16  ;;  %v18963_v24 = vld [vmem:[%s26494_s3 + $0x38] sm:$0xff]  ;;  %v18962_v10 = vld [vmem:[%s26494_s3 + $0x30] sm:$0xff]  ;;  %v23358_v16 = vsel %vm1267_vm0, %v8861_v56, %v8863_v14  ;;  %v18976_v14 = vld [vmem:[%s26494_s3 + $0xa0] sm:$0xff] }
 0x3c3   :  { %6322 = vmatpush.bf16.msra.mxu2 %v18963_v24  ;;  %26552 = vst [vmem:[#allocation25_spill] sm:$0xff] %v23358_v16  ;;  %v6167_v24 = vor.u32 %v6165_v60, %v6163_v38  ;;  %v18959_v38 = vld [vmem:[%s26494_s3 + $0x18] sm:$0xff]  ;;  %6435 = vmatpush.bf16.msra.mxu3 %v18976_v14 }
 0x3c4   :  { %v4322_v17 = vmax.f32 %v4306_v41, 0.0  ;;  %v5890_v41 = vrot.slane %v23249_v62, 1 }
 0x3c5   :  { %v23329_v2 = vpop.f32.mrf.mxu1  ;;  %6249 = vmatmul.bf16.vlgmr.msrb.gmra.mxu2 %v6164_v44  ;;  %v4827_v49 = vpop.f32.mrf.mxu3  ;;  %v23372_v44 = vld [vmem:[#allocation2 + $0xa8] sm:$0xff] }
 0x3c6   :  { %v19761_v29 = vpack.c.bf16 %v4322_v17, %v4321_v15  ;;  %v4867_v4 = vadd.f32 %v4827_v49, %v22972_v23  ;;  %v23351_v23 = vld [vmem:[#allocation2 + $0xd0] sm:$0xff]   ;;  %v5891_v56 = vsel %vm1267_vm0, %v5888_v0, %v5890_v41  ;;  %v5706_v0 = vshrl.u32 %v23309_v36, 16 }
 0x3c7   :  { %6323 = vmatpush.bf16.msra.mxu2 %v18962_v10  ;;  %v6169_v15 = vshll.u32 %v23351_v23, 16 }
 0x3c8   :  { %20291 = vst [vmem:[#allocation3 + $0x78] sm:$0xff] %v19761_v29   ;;  %v23340_v22 = vpop.f32.mrf.mxu2  ;;  %v23343_v57 = vadd.f32 %v23239_v5, %v4867_v4  ;;  %v5705_v5 = vsel %vm967_vm1, %v5700_v43, %v5704_v18  ;;  %v18960_v29 = vld [vmem:[%s26494_s3 + $0x20] sm:$0xff]  ;;  %v5710_v4 = vshll.u32 %v23372_v44, 16 }
 0x3c9   :  { %v6171_v33 = vrot.slane %v6169_v15, 1 }
 0x3ca   :  { %v23349_v47 = vpop.f32.mrf.mxu0 }
 0x3cb   :  { %6324 = vmatpush.bf16.msra.mxu2 %v18961_v31  ;;  %v6172_v43 = vsel %vm967_vm1, %v6167_v24, %v6171_v33  ;;  %v5712_v31 = vrot.slane %v5710_v4, 1  ;;  %v23411_v24 = vld [vmem:[#allocation2 + $0xd8] sm:$0xff]  }
 0x3cd   :  { %v23364_v58 = vpop.f32.mrf.mxu1  ;;  %5820 = vmatmul.bf16.gmra.mxu0 %v5705_v5  ;;  %v4829_v17 = vpop.f32.mrf.mxu3  ;;  %v5708_v5 = vor.u32 %v5706_v0, %v5704_v18  ;;  %v6177_v0 = vshll.u32 %v23411_v24, 16 }
 0x3ce   :  { %v4868_v62 = vadd.f32 %v4829_v17, %v22991_v25  ;;  %v18958_v17 = vld [vmem:[%s26494_s3 + $0x10] sm:$0xff] }
 0x3cf   :  { %6325 = vmatpush.bf16.msra.mxu2 %v18960_v29  ;;  %v5713_v18 = vsel %vm967_vm1, %v5708_v5, %v5712_v31  ;;  %v6179_v5 = vrot.slane %v6177_v0, 1  ;;  %v19167_v0 = vld [vmem:[#allocation3 + $0x58] sm:$0xff] }
 0x3d0   :  { %5973 = vmatmul.bf16.gmra.mxu1 %v5891_v56  ;;  %v23374_v21 = vpop.f32.mrf.mxu2  ;;  %v23377_v49 = vadd.f32 %v23258_v45, %v4868_v62  ;;  %v18984_v56 = vld [vmem:[%s26494_s3 + $0xe0] sm:$0xff]  ;;  %v10572_v16 = vrot.slane %v19167_v0, 1 }
 0x3d1   :  { %6547 = vmatpush.bf16.msra.mxu0 %v18984_v56 }
 0x3d2   :  { %v23382_v25 = vpop.f32.mrf.mxu0  ;;  %5550 = vmatmul.bf16.gmra.mxu3 %v20336_v42  ;;  %v6173_v42 = vshrl.u32 %v23351_v23, 16 }
 0x3d3   :  { %6326 = vmatpush.bf16.msra.mxu2 %v18959_v38 }
 0x3d5   :  { %v23387_v10 = vpop.f32.mrf.mxu1  ;;  %6254 = vmatmul.bf16.gmra.mxu2 %v6172_v43  ;;  %v4832_v45 = vpop.f32.mrf.mxu3 }
 0x3d6   :  { %v4869_v59 = vadd.f32 %v4832_v45, %v23011_v37  ;;  %v5892_v37 = vrot.slane %v23309_v36, 1  ;;  %v23422_v45 = vld [vmem:[#allocation2 + $0xb0] sm:$0xff] }
 0x3d7   :  { %6327 = vmatpush.bf16.msra.mxu2 %v18958_v17  ;;  %v18956_v17 = vld [vmem:[%s26494_s3] sm:$0xff] }
 0x3d8   :  { %v23396_v60 = vpop.f32.mrf.mxu2  ;;  %v23399_v15 = vadd.f32 %v23282_v30, %v4869_v59  ;;  %v18957_v30 = vld [vmem:[%s26494_s3 + $0x8] sm:$0xff]  ;;  %v5893_v43 = vsel %vm1267_vm0, %v5890_v41, %v5892_v37  ;;  %v6175_v59 = vor.u32 %v6173_v42, %v6171_v33  ;;  %v5714_v41 = vshrl.u32 %v23372_v44, 16 }
 0x3da   :  { %v23404_v62 = vpop.f32.mrf.mxu0  ;;  %v5716_v1 = vor.u32 %v5714_v41, %v5712_v31 }
 0x3db   :  { %6328 = vmatpush.bf16.msra.mxu2 %v18957_v30  ;;  %v5718_v30 = vshll.u32 %v23422_v45, 16 }
 0x3dd   :  { %v23416_v29 = vpop.f32.mrf.mxu1  ;;  %5825 = vmatmul.bf16.gmra.mxu0 %v5713_v18  ;;  %v4834_v4 = vpop.f32.mrf.mxu3  ;;  %v6113_v18 = vld [vmem:[#allocation2 + $0xe0] sm:$0x1]  ;;  %v5720_v6 = vrot.slane %v5718_v30, 1 }
 0x3de   :  { %v4870_v36 = vadd.f32 %v4834_v4, %v23030_v48  ;;  %v20337_v48 = vld [vmem:[#allocation2 + $0x98] sm:$0xff]   ;;  %v6147_v42 = vunpack.c.l.b16 %v6113_v18 }
 0x3df   :  { %6329 = vmatpush.bf16.msra.mxu2 %v18956_v17  ;;  %v23436_v4 = vld [vmem:[#allocation3 + $0x50] sm:$0xff]  ;;  %v5721_v41 = vsel %vm967_vm1, %v5716_v1, %v5720_v6 }
 0x3e0   :  { %5978 = vmatmul.bf16.gmra.mxu1 %v5893_v43  ;;  %v23424_v38 = vpop.f32.mrf.mxu2  ;;  %v23427_v14 = vadd.f32 %v23323_v50, %v4870_v36  ;;  %26553 = vst [vmem:[#allocation26_spill] sm:$0xff] %v23436_v4  ;;  %v6180_v50 = vsel %vm967_vm1, %v6175_v59, %v6179_v5  ;;  %v18975_v43 = vld [vmem:[%s26494_s3 + $0x98] sm:$0xff]  ;;  %v26513_v17 = vrot.slane %v23436_v4, 1  ;;  %v23451_v18 = vpack.c.b16 %v6147_v42, %v6147_v42 }
 0x3e1   :  { %6436 = vmatpush.bf16.msra.mxu3 %v18975_v43  ;;  %v6181_v42 = vshrl.u32 %v23411_v24, 16  ;;  %v5722_v4 = vshrl.u32 %v23422_v45, 16 }
 0x3e2   :  { %v23432_v56 = vpop.f32.mrf.mxu0  ;;  %5555 = vmatmul.bf16.gmra.mxu3 %v20337_v48  ;;  %v23464_v31 = vsel %vm1267_vm0, %v26513_v17, %v10572_v16  ;;  %v6185_v0 = vshll.u32 %v23451_v18, 16 }
 0x3e3   :  { %26554 = vst [vmem:[#allocation27_spill] sm:$0xff] %v23464_v31  ;;  %v6183_v1 = vor.u32 %v6181_v42, %v6179_v5  ;;  %v23481_v31 = vld [vmem:[#allocation2 + $0xb8] sm:$0xff]  ;;  %v18974_v5 = vld [vmem:[%s26494_s3 + $0x90] sm:$0xff] }
 0x3e5   :  { %v23439_v33 = vpop.f32.mrf.mxu1  ;;  %6259 = vmatmul.bf16.gmra.mxu2 %v6180_v50  ;;  %v4837_v36 = vpop.f32.mrf.mxu3  ;;  %v18995_v50 = vld [vmem:[%s26494_s3 + $0x138] sm:$0xff]  ;;  %6437 = vmatpush.bf16.msra.mxu3 %v18974_v5 }
 0x3e6   :  { %v4871_v48 = vadd.f32 %v4837_v36, %v23048_v39  ;;  %v18983_v39 = vld [vmem:[%s26494_s3 + $0xd8] sm:$0xff]  ;;  %6717 = vmatpush.bf16.msra.mxu1 %v18995_v50  ;;  %v6187_v50 = vrot.slane %v6185_v0, 1  ;;  %v5724_v0 = vor.u32 %v5722_v4, %v5720_v6  ;;  %v5896_v6 = vrot.slane %v23422_v45, 1  ;;  %v20339_v45 = vld [vmem:[#allocation2 + $0xa8] sm:$0xff]  }
 0x3e7   :  { %6548 = vmatpush.bf16.msra.mxu0 %v18983_v39 }
 0x3e8   :  { %v23446_v63 = vpop.f32.mrf.mxu2  ;;  %v23449_v59 = vadd.f32 %v23349_v47, %v4871_v48  ;;  %v5894_v47 = vrot.slane %v23372_v44, 1 }
 0x3ea   :  { %v23456_v46 = vpop.f32.mrf.mxu0  ;;  %v5895_v48 = vsel %vm1267_vm0, %v5892_v37, %v5894_v47  ;;  %v19168_v37 = vld [vmem:[#allocation3 + $0x60] sm:$0xff] }
 0x3eb   :  { %6549 = vmatpush.bf16.msra.mxu0 %v18982_v35  ;;  %v5730_v35 = vshrl.u32 %v23481_v31, 16 }
 0x3ed   :  { %v23468_v30 = vpop.f32.mrf.mxu1  ;;  %5830 = vmatmul.bf16.gmra.mxu0 %v5721_v41  ;;  %v4839_v36 = vpop.f32.mrf.mxu3  ;;  %v20338_v41 = vld [vmem:[#allocation2 + $0xa0] sm:$0xff]  }
 0x3ee   :  { %v4872_v43 = vadd.f32 %v4839_v36, %v23070_v13  ;;  %v6188_v13 = vsel %vm967_vm1, %v6183_v1, %v6187_v50  ;;  %v18994_v50 = vld [vmem:[%s26494_s3 + $0x130] sm:$0xff] }
 0x3ef   :  { %6718 = vmatpush.bf16.msra.mxu1 %v18994_v50  ;;  %v23521_v50 = vld [vmem:[#allocation2 + $0xc0] sm:$0xff]  ;;  %6550 = vmatpush.bf16.msra.mxu0 %v18981_v12 }
 0x3f0   :  { %5983 = vmatmul.bf16.gmra.mxu1 %v5895_v48  ;;  %v23474_v17 = vpop.f32.mrf.mxu2  ;;  %v23477_v44 = vadd.f32 %v23382_v25, %v4872_v43  ;;  %v5726_v25 = vshll.u32 %v23481_v31, 16  ;;  %v10574_v43 = vrot.slane %v19168_v37, 1 }
 0x3f2   :  { %v23479_v39 = vpop.f32.mrf.mxu0  ;;  %5560 = vmatmul.bf16.gmra.mxu3 %v20338_v41  ;;  %v5728_v54 = vrot.slane %v5726_v25, 1  ;;  %v5897_v25 = vsel %vm1267_vm0, %v5894_v47, %v5896_v6  ;;  %v5734_v47 = vshll.u32 %v23521_v50, 16 }
 0x3f3   :  { %6719 = vmatpush.bf16.msra.mxu1 %v18993_v61 }
 0x3f5   :  { %v23485_v36 = vpop.f32.mrf.mxu1  ;;  %6264 = vmatmul.bf16.gmra.mxu2 %v6188_v13  ;;  %v4842_v48 = vpop.f32.mrf.mxu3 }
 0x3f6   :  { %v4873_v42 = vadd.f32 %v4842_v48, %v23093_v19  ;;  %v23506_v19 = vsel %vm1267_vm0, %v10572_v16, %v10574_v43 }
 0x3f7   :  { %26555 = vst [vmem:[#allocation28_spill] sm:$0xff] %v23506_v19 }
 0x3f8   :  { %v23492_v41 = vpop.f32.mrf.mxu2  ;;  %v23495_v1 = vadd.f32 %v23404_v62, %v4873_v42  ;;  %v5729_v62 = vsel %vm967_vm1, %v5724_v0, %v5728_v54 }
 0x3fa   :  { %v23500_v13 = vpop.f32.mrf.mxu0 }
 0x3fd   :  { %v23510_v4 = vpop.f32.mrf.mxu1  ;;  %5835 = vmatmul.bf16.gmra.mxu0 %v5729_v62  ;;  %v4844_v37 = vpop.f32.mrf.mxu3  ;;  %v23526_v62 = vld [vmem:[#allocation3 + $0x68] sm:$0xff] }
 0x3fe   :  { %v4874_v48 = vadd.f32 %v4844_v37, %v23110_v32  ;;  %v19003_v37 = vld [vmem:[%s26494_s3 + $0x178] sm:$0xff]  ;;  %v10576_v19 = vrot.slane %v23526_v62, 1 }
 0x3ff   :  { %6835 = vmatpush.bf16.msrb.mxu2 %v19003_v37  ;;  %v19001_v37 = vld [vmem:[%s26494_s3 + $0x168] sm:$0xff] }
 0x400   :  { %5988 = vmatmul.bf16.gmra.mxu1 %v5897_v25  ;;  %v23514_v5 = vpop.f32.mrf.mxu2  ;;  %v23517_v16 = vadd.f32 %v23432_v56, %v4874_v48  ;;  %v18973_v56 = vld [vmem:[%s26494_s3 + $0x88] sm:$0xff]  ;;  %v5732_v25 = vor.u32 %v5730_v35, %v5728_v54  ;;  %v5736_v35 = vrot.slane %v5734_v47, 1  ;;  %v23555_v62 = vsel %vm1267_vm0, %v10574_v43, %v10576_v19 }
 0x401   :  { %6438 = vmatpush.bf16.msra.mxu3 %v18973_v56  ;;  %26557 = vst [vmem:[#allocation30_spill] sm:$0xff] %v23555_v62  ;;  %v5898_v43 = vrot.slane %v23481_v31, 1 }
 0x402   :  { %v23519_v42 = vpop.f32.mrf.mxu0  ;;  %5565 = vmatmul.bf16.gmra.mxu3 %v20339_v45  ;;  %v5618_v45 = vld [vmem:[#allocation2 + $0xc8] sm:$0x1] }
 0x403   :  { %v5668_v56 = vunpack.c.l.b16 %v5618_v45  ;;  %v5899_v61 = vsel %vm1267_vm0, %v5896_v6, %v5898_v43  ;;  %v20340_v6 = vld [vmem:[#allocation2 + $0xb0] sm:$0xff]  }
 0x405   :  { %v23524_v0 = vpop.f32.mrf.mxu1  ;;  %6330 = vmatmul.bf16.vlgmr.msra.gmra.mxu2 %v23269_v9  ;;  %v4847_v32 = vpop.f32.mrf.mxu3  ;;  %v23569_v62 = vpack.c.b16 %v5668_v56, %v5668_v56  ;;  %v19170_v56 = vld [vmem:[#allocation3 + $0x70] sm:$0xff] }
 0x406   :  { %26556 = vst [vmem:[#allocation29_spill] sm:$0xff] %v23524_v0  ;;  %v4875_v48 = vadd.f32 %v4847_v32, %v23128_v11  ;;  %v19002_v11 = vld [vmem:[%s26494_s3 + $0x170] sm:$0xff]  ;;  %v5737_v32 = vsel %vm967_vm1, %v5732_v25, %v5736_v35  ;;  %v10578_v28 = vrot.slane %v19170_v56, 1  ;;  %v18989_v56 = vld [vmem:[%s26494_s3 + $0x108] sm:$0xff] }
 0x407   :  { %6836 = vmatpush.bf16.msrb.mxu2 %v19002_v11  ;;  %v18992_v11 = vld [vmem:[%s26494_s3 + $0x120] sm:$0xff]  ;;  %v18998_v0 = vld [vmem:[%s26494_s3 + $0x150] sm:$0xff] }
 0x408   :  { %v23538_v26 = vpop.f32.mrf.mxu2  ;;  %v23541_v7 = vadd.f32 %v23456_v46, %v4875_v48  ;;  %v18980_v46 = vld [vmem:[%s26494_s3 + $0xc0] sm:$0xff]  ;;  %6720 = vmatpush.bf16.msra.mxu1 %v18992_v11 }
 0x409   :  { %6551 = vmatpush.bf16.msra.mxu0 %v18980_v46  ;;  %v5738_v46 = vshrl.u32 %v23521_v50, 16 }
 0x40a   :  { %v23552_v54 = vpop.f32.mrf.mxu0 }
 0x40b   :  { %6837 = vmatpush.bf16.msrb.mxu2 %v19001_v37 }
 0x40d   :  { %v23564_v48 = vpop.f32.mrf.mxu1  ;;  %5840 = vmatmul.bf16.gmra.mxu0 %v5737_v32  ;;  %v4849_v47 = vpop.f32.mrf.mxu3  ;;  %v5742_v32 = vshll.u32 %v23569_v62, 16 }
 0x40e   :  { %26558 = vst [vmem:[#allocation31_spill] sm:$0xff] %v23564_v48  ;;  %v4876_v12 = vadd.f32 %v4849_v47, %v23151_v51  ;;  %v19000_v51 = vld [vmem:[%s26494_s3 + $0x160] sm:$0xff]  ;;  %v18991_v47 = vld [vmem:[%s26494_s3 + $0x118] sm:$0xff] }
 0x40f   :  { %6838 = vmatpush.bf16.msrb.mxu2 %v19000_v51  ;;  %v5740_v51 = vor.u32 %v5738_v46, %v5736_v35  ;;  %6721 = vmatpush.bf16.msra.mxu1 %v18991_v47  ;;  %v23613_v35 = vsel %vm1267_vm0, %v10576_v19, %v10578_v28 }
 0x410   :  { %5993 = vmatmul.bf16.gmra.mxu1 %v5899_v61  ;;  %v23571_v25 = vpop.f32.mrf.mxu2  ;;  %v23574_v45 = vadd.f32 %v23479_v39, %v4876_v12  ;;  %v18972_v12 = vld [vmem:[%s26494_s3 + $0x80] sm:$0xff]  ;;  %v18999_v61 = vld [vmem:[%s26494_s3 + $0x158] sm:$0xff]  ;;  %26561 = vst [vmem:[#allocation34_spill] sm:$0xff] %v23613_v35 }
 0x411   :  { %26559 = vst [vmem:[#allocation32_spill] sm:$0xff] %v23571_v25  ;;  %6439 = vmatpush.bf16.msra.mxu3 %v18972_v12  ;;  %v18990_v25 = vld [vmem:[%s26494_s3 + $0x110] sm:$0xff] }
 0x412   :  { %v23582_v31 = vpop.f32.mrf.mxu0  ;;  %5570 = vmatmul.bf16.gmra.mxu3 %v20340_v6  ;;  %v5744_v6 = vrot.slane %v5742_v32, 1 }
 0x413   :  { %6839 = vmatpush.bf16.msrb.mxu2 %v18999_v61  ;;  %6722 = vmatpush.bf16.msra.mxu1 %v18990_v25 }
 0x414   :  { %v5745_v46 = vsel %vm967_vm1, %v5740_v51, %v5744_v6  ;;  %v19011_v51 = vld [vmem:[%s26494_s3 + $0x1b8] sm:$0xff]  ;;  %v23646_v6 = vld [vmem:[#allocation3 + $0x78] sm:$0xff] }
 0x415   :  { %v23586_v39 = vpop.f32.mrf.mxu1  ;;  %6335 = vmatmul.bf16.gmra.mxu2 %v23290_v20  ;;  %v4852_v37 = vpop.f32.mrf.mxu3  ;;  %26564 = vst [vmem:[#allocation37_spill] sm:$0xff] %v23646_v6  ;;  %6947 = vmatpush.bf16.msrb.mxu3 %v19011_v51 }
 0x416   :  { %26560 = vst [vmem:[#allocation33_spill] sm:$0xff] %v23586_v39  ;;  %v4877_v11 = vadd.f32 %v4852_v37, %v23176_v8  ;;  %v18997_v37 = vld [vmem:[%s26494_s3 + $0x148] sm:$0xff] }
 0x417   :  { %6840 = vmatpush.bf16.msrb.mxu2 %v18998_v0  ;;  %6723 = vmatpush.bf16.msra.mxu1 %v18989_v56  ;;  %v18996_v0 = vld [vmem:[%s26494_s3 + $0x140] sm:$0xff]  ;;  %v19870_v56 = vunpack.c.h.b16 %v23269_v9 }
 0x418   :  { %v23599_v39 = vpop.f32.mrf.mxu2  ;;  %v23602_v48 = vadd.f32 %v23500_v13, %v4877_v11  ;;  %v5900_v13 = vrot.slane %v23521_v50, 1  ;;  %v18988_v50 = vld [vmem:[%s26494_s3 + $0x100] sm:$0xff] }
 0x41a   :  { %v23610_v8 = vpop.f32.mrf.mxu0  ;;  %v5901_v12 = vsel %vm1267_vm0, %v5898_v43, %v5900_v13 }
 0x41b   :  { %6841 = vmatpush.bf16.msrb.mxu2 %v18997_v37  ;;  %6724 = vmatpush.bf16.msra.mxu1 %v18988_v50  ;;  %v6581_v37 = vld [vmem:[#allocation2 + $0xc4] sm:$0xf] }
 0x41d   :  { %v23616_v32 = vpop.f32.mrf.mxu1  ;;  %5845 = vmatmul.bf16.gmra.mxu0 %v5745_v46  ;;  %v4854_v47 = vpop.f32.mrf.mxu3 }
 0x41e   :  { %26562 = vst [vmem:[#allocation35_spill] sm:$0xff] %v23616_v32  ;;  %v4878_v19 = vadd.f32 %v4854_v47, %v23204_v27  ;;  %v20961_v27 = vld [vmem:[#allocation2 + $0xb8] sm:$0xff]  }
 0x41f   :  { %6842 = vmatpush.bf16.msrb.mxu2 %v18996_v0  ;;  %v5454_v0 = vld [vmem:[#allocation2 + $0xc4] sm:$0xf] }
 0x420   :  { %5998 = vmatmul.bf16.gmra.mxu1 %v5901_v12  ;;  %v23627_v25 = vpop.f32.mrf.mxu2  ;;  %v23630_v61 = vadd.f32 %v23519_v42, %v4878_v19  ;;  %v19873_v12 = vunpack.c.l.b16 %v23290_v20 }
 0x422   :  { %v23638_v11 = vpop.f32.mrf.mxu0  ;;  %5575 = vmatmul.bf16.gmra.mxu3 %v20961_v27  ;;  %v26522_v27 = vrot.slane %v23646_v6, 1  ;;  %v6488_v35 = vpack.c.b16 %v19873_v12, %v19870_v56 }
 0x424   :  { %v23663_v9 = vsel %vm1267_vm0, %v10578_v28, %v26522_v27 }
 0x425   :  { %v23640_v43 = vpop.f32.mrf.mxu1  ;;  %6340 = vmatmul.bf16.gmra.mxu2 %v23351_v23  ;;  %v4857_v42 = vpop.f32.mrf.mxu3  ;;  %26566 = vst [vmem:[#allocation39_spill] sm:$0xff] %v23663_v9  ;;  %v6754_v9 = vld [vmem:[#allocation2 + $0xc4] sm:$0xe] }
 0x426   :  { %26563 = vst [vmem:[#allocation36_spill] sm:$0xff] %v23640_v43  ;;  %v4879_v46 = vadd.f32 %v4857_v42, %v23237_v52  ;;  %v5902_v43 = vrot.slane %v23569_v62, 1  ;;  %v6615_v52 = vunpack.c.l.b16 %v6581_v37  ;;  %v19010_v62 = vld [vmem:[%s26494_s3 + $0x1b0] sm:$0xff]  ;;  %v19022_v37 = vld [vmem:[%s26494_s3 + $0x1f8] sm:$0xff] }
 0x427   :  { %6948 = vmatpush.bf16.msrb.mxu3 %v19010_v62  ;;  %7120 = vmatpush.bf16.msrb.mxu0 %v19022_v37 }
 0x428   :  { %v23650_v47 = vpop.f32.mrf.mxu2  ;;  %v23653_v19 = vadd.f32 %v23552_v54, %v4879_v46  ;;  %v5472_v54 = vunpack.c.l.b16 %v5454_v0  ;;  %v6624_v32 = vpack.c.b16 %v19873_v12, %v6615_v52  ;;  %v26570_v0 = vunpack.c.l.b16 %v23140_v3 }
 0x429   :  { %26565 = vst [vmem:[#allocation38_spill] sm:$0xff] %v23650_v47  ;;  %v5903_v47 = vsel %vm1267_vm0, %v5900_v13, %v5902_v43  ;;  %v23684_v43 = vld [vmem:[#allocation2 + $0xcc] sm:$0xff]  }
 0x42a   :  { %v23656_v50 = vpop.f32.mrf.mxu0  ;;  %v6632_v52 = vshll.u32 %v6624_v32, 16  ;;  %v6630_v3 = vshrl.u32 %v6624_v32, 16  ;;  %v6637_v62 = vshll.u32 %v23684_v43, 16  ;;  %v19021_v32 = vld [vmem:[%s26494_s3 + $0x1f0] sm:$0xff] }
 0x42b   :  { %7121 = vmatpush.bf16.msrb.mxu0 %v19021_v32 }
 0x42d   :  { %v23665_v42 = vpop.f32.mrf.mxu1  ;;  %6552 = vmatmul.bf16.vlgmr.msra.gmra.mxu0 %v6488_v35  ;;  %v4859_v51 = vpop.f32.mrf.mxu3 }
 0x42e   :  { %26567 = vst [vmem:[#allocation40_spill] sm:$0xff] %v23665_v42  ;;  %v4880_v46 = vadd.f32 %v4859_v51, %v23253_v40  ;;  %v5480_v40 = vpack.c.b16 %v5472_v54, %v26570_v0  ;;  %v6351_v51 = vld [vmem:[#allocation2 + $0xc0] sm:$0xe]  ;;  %v6634_v54 = vrot.slane %v6632_v52, 1  ;;  %v20705_v42 = vld [vmem:[#allocation2 + $0xcc] sm:$0xff]  }
 0x430   :  { %6003 = vmatmul.bf16.gmra.mxu1 %v5903_v47  ;;  %v23675_v28 = vpop.f32.mrf.mxu2  ;;  %v23678_v35 = vadd.f32 %v23582_v31, %v4880_v46  ;;  %v6369_v31 = vunpack.c.l.b16 %v6351_v51 }
 0x431   :  { %26568 = vst [vmem:[#allocation41_spill] sm:$0xff] %v23675_v28  ;;  %v6635_v28 = vor.u32 %v6634_v54, %v6630_v3  ;;  %v19008_v3 = vld [vmem:[%s26494_s3 + $0x1a0] sm:$0xff]  ;;  %v26524_v54 = vrot.slane %v23684_v43, 1 }
 0x432   :  { %26569 = vst [vmem:[#allocation42_spill] sm:$0xff] %v23678_v35  ;;  %v23682_v13 = vpop.f32.mrf.mxu0  ;;  %5580 = vmatmul.bf16.gmra.mxu3 %v5480_v40  ;;  %v6772_v40 = vunpack.c.l.b16 %v6754_v9  ;;  %v6639_v35 = vrot.slane %v6637_v62, 1 }
 0x434   :  { %v6773_v51 = vpack.c.b16 %v19873_v12, %v6772_v40  ;;  %v19019_v40 = vld [vmem:[%s26494_s3 + $0x1e0] sm:$0xff] }
 0x435   :  { %v23686_v27 = vpop.f32.mrf.mxu1  ;;  %6345 = vmatmul.bf16.gmra.mxu2 %v23411_v24  ;;  %v4862_v47 = vpop.f32.mrf.mxu3 }
 0x436   :  { %26571 = vst [vmem:[#allocation43_spill] sm:$0xff] %v23686_v27  ;;  %v4881_v46 = vadd.f32 %v4862_v47, %v23280_v34  ;;  %v6370_v27 = vpack.c.b16 %v19870_v56, %v6369_v31  ;;  %v19009_v34 = vld [vmem:[%s26494_s3 + $0x1a8] sm:$0xff]  ;;  %v6372_v47 = vrot.slane %v23290_v20, 1  ;;  %v6640_v31 = vsel %vm967_vm1, %v6635_v28, %v6639_v35 }
 0x437   :  { %6949 = vmatpush.bf16.msrb.mxu3 %v19009_v34 }
 0x438   :  { %v23691_v37 = vpop.f32.mrf.mxu2  ;;  %v23694_v0 = vadd.f32 %v23610_v8, %v4881_v46  ;;  %v6371_v9 = vrot.slane %v6370_v27, 1  ;;  %v19020_v46 = vld [vmem:[%s26494_s3 + $0x1e8] sm:$0xff] }
 0x439   :  { %7122 = vmatpush.bf16.msrb.mxu0 %v19020_v46 }
 0x43a   :  { %v23696_v6 = vpop.f32.mrf.mxu0  ;;  %v6373_v62 = vsel %vm1267_vm0, %v6371_v9, %v6372_v47 }
 0x43b   :  { %6950 = vmatpush.bf16.msrb.mxu3 %v19008_v3  ;;  %v20707_v3 = vld [vmem:[#allocation2 + $0xd4] sm:$0xff]  }
 0x43d   :  { %v5969_v52 = vpop.f32.mrf.mxu1  ;;  %6557 = vmatmul.bf16.gmra.mxu0 %v20705_v42  ;;  %v4864_v8 = vpop.f32.mrf.mxu3  ;;  %v6774_v42 = vrot.slane %v6773_v51, 1 }
 0x43e   :  { %v4882_v56 = vadd.f32 %v4864_v8, %v23321_v53  ;;  %v5280_v53 = vadd.f32 %v23296_v55, %v23343_v57  ;;  %7123 = vmatpush.bf16.msrb.mxu0 %v19019_v40  ;;  %v6641_v8 = vshrl.u32 %v23684_v43, 16  ;;  %v19030_v40 = vld [vmem:[%s26494_s3 + $0x238] sm:$0xff] }
 0x43f   :  { %v6776_v34 = vsel %vm1267_vm0, %v6774_v42, %v26524_v54  ;;  %7238 = vmatpush.bf16.msrb.mxu1 %v19030_v40 }
 0x440   :  { %6725 = vmatmul.bf16.vlgmr.msra.gmra.mxu1 %v6640_v31  ;;  %v23713_v12 = vpop.f32.mrf.mxu2  ;;  %v23716_v27 = vadd.f32 %v23638_v11, %v4882_v56  ;;  %v23729_v11 = vld [vmem:[#allocation2 + $0xd4] sm:$0xff]   ;;  %v5438_v55 = vadd.f32 %v23340_v22, %v5280_v53  ;;  %v5281_v31 = vadd.f32 %v23329_v2, %v23377_v49  ;;  %v6643_v22 = vor.u32 %v6641_v8, %v6639_v35  ;;  %v23755_v49 = vld [vmem:[#allocation2 + $0xe0] sm:$0xf] }
 0x441   :  { %v6645_v9 = vshll.u32 %v23729_v11, 16  ;;  %v19007_v2 = vld [vmem:[%s26494_s3 + $0x198] sm:$0xff]  ;;  %v19017_v8 = vld [vmem:[%s26494_s3 + $0x1d0] sm:$0xff]  ;;  %v6777_v40 = vrot.slane %v23729_v11, 1 }
 0x442   :  { %v23721_v28 = vpop.f32.mrf.mxu0  ;;  %6440 = vmatmul.bf16.vlgmr.msra.gmra.mxu3 %v6373_v62  ;;  %v19018_v62 = vld [vmem:[%s26494_s3 + $0x1d8] sm:$0xff]  ;;  %v5439_v35 = vadd.f32 %v23374_v21, %v5281_v31  ;;  %v26525_v31 = vunpack.c.l.b16 %v23755_v49 }
 0x443   :  { %v23744_v53 = vrot.slane %v6645_v9, 1  ;;  %7124 = vmatpush.bf16.msrb.mxu0 %v19018_v62  ;;  %6951 = vmatpush.bf16.msrb.mxu3 %v19007_v2  ;;  %v19045_v62 = vld [vmem:[%s26496_s5 + $0x70] sm:$0xff]  ;;  %v5282_v2 = vadd.f32 %v23364_v58, %v23399_v15  ;;  %v23802_v58 = vld [vmem:[%s26495_s4] ss:$0 sm:$0xff] }
 0x445   :  { %v5971_v57 = vpop.f32.mrf.mxu1  ;;  %6843 = vmatmul.bf16.vlgmr.msrb.gmra.mxu2 %v6776_v34  ;;  %v5546_v32 = vpop.f32.mrf.mxu3  ;;  %v6648_v21 = vsel %vm967_vm1, %v6643_v22, %v23744_v53 }
 0x446   :  { %v5586_v51 = vadd.f32 %v5546_v32, %v5438_v55  ;;  %v6374_v32 = vrot.slane %v23351_v23, 1 }
 0x447   :  { %7125 = vmatpush.bf16.msrb.mxu0 %v19017_v8 }
 0x448   :  { %v23737_v56 = vpop.f32.mrf.mxu2  ;;  %v5851_v42 = vadd.f32 %v23656_v50, %v5586_v51  ;;  %v19046_v50 = vld [vmem:[%s26496_s5 + $0x78] sm:$0xff]  ;;  %v19894_v51 = vunpack.c.h.b16 %v23411_v24 }
 0x449   :  { %7525 = vmatpush.bf16.msra.mxu2 %v19046_v50  ;;  %v19028_v50 = vld [vmem:[%s26494_s3 + $0x228] sm:$0xff] }
 0x44a   :  { %v23741_v46 = vpop.f32.mrf.mxu0  ;;  %v6009_v9 = vadd.f32 %v5969_v52, %v5851_v42  ;;  %v19006_v52 = vld [vmem:[%s26494_s3 + $0x190] sm:$0xff]  ;;  %v23807_v20 = vpack.c.b16 %v26525_v31, %v19894_v51 }
 0x44b   :  { %6952 = vmatpush.bf16.msrb.mxu3 %v19006_v52  ;;  %v19015_v52 = vld [vmem:[%s26494_s3 + $0x1c0] sm:$0xff] }
 0x44c   :  { %v6025_v15 = vadd.f32 %v23802_v58, %v6009_v9 }
 0x44d   :  { %v23761_v34 = vpop.f32.mrf.mxu1  ;;  %6562 = vmatmul.bf16.gmra.mxu0 %v20707_v3  ;;  %v5548_v55 = vpop.f32.mrf.mxu3  ;;  %v19029_v3 = vld [vmem:[%s26494_s3 + $0x230] sm:$0xff]  ;;  %7526 = vmatpush.bf16.msra.mxu2 %v19045_v62  ;;  %v6649_v62 = vshrl.u32 %v23729_v11, 16 }
 0x44e   :  { %v5587_v54 = vadd.f32 %v5548_v55, %v5439_v35  ;;  %7239 = vmatpush.bf16.msrb.mxu1 %v19029_v3  ;;  %v6375_v55 = vsel %vm1267_vm0, %v6372_v47, %v6374_v32  ;;  %v19044_v47 = vld [vmem:[%s26496_s5 + $0x68] sm:$0xff] }
 0x450   :  { %6730 = vmatmul.bf16.gmra.mxu1 %v6648_v21  ;;  %v23780_v42 = vpop.f32.mrf.mxu2  ;;  %v5852_v22 = vadd.f32 %v23682_v13, %v5587_v54  ;;  %v19016_v13 = vld [vmem:[%s26494_s3 + $0x1c8] sm:$0xff]  ;;  %v26572_v21 = vrot.slane %v23684_v43, 1  ;;  %v6653_v43 = vshll.u32 %v23807_v20, 16 }
 0x451   :  { %7126 = vmatpush.bf16.msrb.mxu0 %v19016_v13  ;;  %7527 = vmatpush.bf16.msra.mxu2 %v19044_v47  ;;  %v20708_v13 = vld [vmem:[#allocation2 + $0xdc] sm:$0xff] }
 0x452   :  { %v23789_v35 = vpop.f32.mrf.mxu0  ;;  %v6010_v54 = vadd.f32 %v5971_v57, %v5852_v22  ;;  %6445 = vmatmul.bf16.gmra.mxu3 %v6375_v55  ;;  %v6778_v3 = vsel %vm1267_vm0, %v26572_v21, %v6777_v40  ;;  %v5440_v57 = vadd.f32 %v23396_v60, %v5282_v2  ;;  %7240 = vmatpush.bf16.msrb.mxu1 %v19028_v50  ;;  %v6041_v22 = vmax.f32 %v6025_v15, 0.0  ;;  %v19027_v47 = vld [vmem:[%s26494_s3 + $0x220] sm:$0xff] }
 0x453   :  { %v5283_v60 = vadd.f32 %v23387_v10, %v23427_v14  ;;  %v6651_v15 = vor.u32 %v6649_v62, %v23744_v53  ;;  %v6589_v10 = vld [vmem:[#allocation2 + $0xe4] sm:$0x1]  ;;  %v19005_v14 = vld [vmem:[%s26494_s3 + $0x188] sm:$0xff] }
 0x454   :  { %v6026_v8 = vadd.f32 %v23802_v58, %v6010_v54  ;;  %v20376_v53 = vld [vmem:[#allocation2 + $0xc8] sm:$0xff]   ;;  %6953 = vmatpush.bf16.msrb.mxu3 %v19005_v14  ;;  %v6779_v14 = vrot.slane %v23807_v20, 1 }
 0x455   :  { %v5976_v9 = vpop.f32.mrf.mxu1  ;;  %6848 = vmatmul.bf16.gmra.mxu2 %v6778_v3  ;;  %v5551_v51 = vpop.f32.mrf.mxu3  ;;  %7127 = vmatpush.bf16.msrb.mxu0 %v19015_v52  ;;  %v19043_v3 = vld [vmem:[%s26496_s5 + $0x60] sm:$0xff]  ;;  %v6376_v52 = vrot.slane %v23411_v24, 1 }
 0x456   :  { %v6042_v55 = vmax.f32 %v6026_v8, 0.0  ;;  %v5588_v54 = vadd.f32 %v5551_v51, %v5440_v57  ;;  %v23832_v8 = vrot.slane %v6653_v43, 1  ;;  %7241 = vmatpush.bf16.msrb.mxu1 %v19027_v47  ;;  %v19026_v51 = vld [vmem:[%s26494_s3 + $0x218] sm:$0xff]  ;;  %7528 = vmatpush.bf16.msra.mxu2 %v19043_v3  ;;  %v6623_v43 = vunpack.c.l.b16 %v6589_v10 }
 0x457   :  { %v6377_v10 = vsel %vm1267_vm0, %v6374_v32, %v6376_v52  ;;  %v6780_v32 = vsel %vm1267_vm0, %v6777_v40, %v6779_v14 }
 0x458   :  { %v19830_v21 = vpack.c.bf16 %v6042_v55, %v6041_v22  ;;  %v23824_v31 = vpop.f32.mrf.mxu2  ;;  %v5853_v50 = vadd.f32 %v23696_v6, %v5588_v54  ;;  %v5441_v6 = vadd.f32 %v23424_v38, %v5283_v60  ;;  %v19042_v22 = vld [vmem:[%s26496_s5 + $0x58] sm:$0xff]  ;;  %v6656_v54 = vsel %vm967_vm1, %v6651_v15, %v23832_v8 }
 0x459   :  { %v7035_v60 = vshll.u32 %v20376_v53, 16 }
 0x45a   :  { %v23828_v2 = vpop.f32.mrf.mxu0  ;;  %20346 = vst [vmem:[#allocation3 + $0x80] sm:$0xff] %v19830_v21   ;;  %v6011_v38 = vadd.f32 %v23761_v34, %v5853_v50  ;;  %v23856_v21 = vld [vmem:[#allocation2 + $0xd0] sm:$0xff]  ;;  %v5284_v34 = vadd.f32 %v23416_v29, %v23449_v59  ;;  %7242 = vmatpush.bf16.msrb.mxu1 %v19026_v51  ;;  %7529 = vmatpush.bf16.msra.mxu2 %v19042_v22  ;;  %v7033_v51 = vshrl.u32 %v20376_v53, 16 }
 0x45b   :  { %v19025_v50 = vld [vmem:[%s26494_s3 + $0x210] sm:$0xff]  ;;  %v23878_v29 = vpack.c.b16 %v6623_v43, %v6623_v43 }
 0x45c   :  { %v19041_v59 = vld [vmem:[%s26496_s5 + $0x50] sm:$0xff] }
 0x45d   :  { %v23844_v57 = vpop.f32.mrf.mxu1  ;;  %6567 = vmatmul.bf16.gmra.mxu0 %v20708_v13  ;;  %v5553_v62 = vpop.f32.mrf.mxu3  ;;  %v19004_v13 = vld [vmem:[%s26494_s3 + $0x180] sm:$0xff] }
 0x45e   :  { %v5589_v55 = vadd.f32 %v5553_v62, %v5441_v6  ;;  %6954 = vmatpush.bf16.msrb.mxu3 %v19004_v13  ;;  %v7037_v62 = vrot.slane %v7035_v60, 1  ;;  %7243 = vmatpush.bf16.msrb.mxu1 %v19025_v50 }
 0x45f   :  { %7530 = vmatpush.bf16.msra.mxu2 %v19041_v59 }
 0x460   :  { %6735 = vmatmul.bf16.gmra.mxu1 %v6656_v54  ;;  %v23861_v47 = vpop.f32.mrf.mxu2  ;;  %v5854_v3 = vadd.f32 %v23721_v28, %v5589_v55  ;;  %v6027_v28 = vadd.f32 %v23802_v58, %v6011_v38  ;;  %v7040_v55 = vshll.u32 %v23856_v21, 16  ;;  %v19024_v38 = vld [vmem:[%s26494_s3 + $0x208] sm:$0xff]  ;;  %v6657_v54 = vshrl.u32 %v23807_v20, 16 }
 0x461   :  { %v7038_v11 = vor.u32 %v7037_v62, %v7033_v51  ;;  %v19023_v51 = vld [vmem:[%s26494_s3 + $0x200] sm:$0xff]  ;;  %v5287_v20 = vadd.f32 %v23485_v36, %v23517_v16 }
 0x462   :  { %v23870_v15 = vpop.f32.mrf.mxu0  ;;  %v6012_v6 = vadd.f32 %v5976_v9, %v5854_v3  ;;  %6450 = vmatmul.bf16.gmra.mxu3 %v6377_v10  ;;  %v5442_v9 = vadd.f32 %v23446_v63, %v5284_v34  ;;  %v6043_v43 = vmax.f32 %v6027_v28, 0.0  ;;  %v6661_v3 = vshll.u32 %v23878_v29, 16  ;;  %v19040_v63 = vld [vmem:[%s26496_s5 + $0x48] sm:$0xff]  ;;  %7244 = vmatpush.bf16.msrb.mxu1 %v19024_v38  ;;  %v19039_v62 = vld [vmem:[%s26496_s5 + $0x40] sm:$0xff] }
 0x463   :  { %v7042_v40 = vrot.slane %v7040_v55, 1  ;;  %v5285_v10 = vadd.f32 %v23439_v33, %v23477_v44  ;;  %v6659_v59 = vor.u32 %v6657_v54, %v23832_v8  ;;  %7531 = vmatpush.bf16.msra.mxu2 %v19040_v63  ;;  %v19038_v33 = vld [vmem:[%s26496_s5 + $0x38] sm:$0xff]  ;;  %v19037_v54 = vld [vmem:[%s26496_s5 + $0x30] sm:$0xff]  ;;  %v5445_v16 = vadd.f32 %v23514_v5, %v5287_v20  ;;  %v19052_v5 = vld [vmem:[%s26496_s5 + $0xa8] sm:$0xff] }
 0x464   :  { %v6028_v23 = vadd.f32 %v23802_v58, %v6012_v6  ;;  %7630 = vmatpush.bf16.msra.mxu3 %v19038_v33 }
 0x465   :  { %v5981_v22 = vpop.f32.mrf.mxu1  ;;  %6853 = vmatmul.bf16.gmra.mxu2 %v6780_v32  ;;  %v5556_v53 = vpop.f32.mrf.mxu3  ;;  %v7043_v44 = vsel %vm967_vm1, %v7038_v11, %v7042_v40  ;;  %v6378_v32 = vrot.slane %v23451_v18, 1 }
 0x466   :  { %v6044_v60 = vmax.f32 %v6028_v23, 0.0  ;;  %v5590_v13 = vadd.f32 %v5556_v53, %v5442_v9  ;;  %v6663_v23 = vrot.slane %v6661_v3, 1  ;;  %7245 = vmatpush.bf16.msrb.mxu1 %v19023_v51 }
 0x467   :  { %7532 = vmatpush.bf16.msra.mxu2 %v19039_v62  ;;  %v6379_v63 = vsel %vm1267_vm0, %v6376_v52, %v6378_v32 }
 0x468   :  { %v19835_v34 = vpack.c.bf16 %v6044_v60, %v6043_v43  ;;  %v23899_v50 = vpop.f32.mrf.mxu2  ;;  %v5855_v28 = vadd.f32 %v23741_v46, %v5590_v13  ;;  %v5443_v46 = vadd.f32 %v23474_v17, %v5285_v10  ;;  %v6664_v53 = vsel %vm967_vm1, %v6659_v59, %v6663_v23  ;;  %v19054_v17 = vld [vmem:[%s26496_s5 + $0xb8] sm:$0xff]  ;;  %7631 = vmatpush.bf16.msra.mxu3 %v19037_v54  ;;  %v19053_v54 = vld [vmem:[%s26496_s5 + $0xb0] sm:$0xff] }
 0x469   :  { %v23927_v43 = vld [vmem:[#allocation2 + $0xd8] sm:$0xff]  ;;  %v5286_v13 = vadd.f32 %v23468_v30, %v23495_v1  ;;  %7773 = vmatpush.bf16.msra.mxu0 %v19054_v17  ;;  %v7044_v10 = vshrl.u32 %v23856_v21, 16 }
 0x46a   :  { %v23903_v6 = vpop.f32.mrf.mxu0  ;;  %20347 = vst [vmem:[#allocation3 + $0x88] sm:$0xff] %v19835_v34   ;;  %v6013_v9 = vadd.f32 %v23844_v57, %v5855_v28  ;;  %v6781_v57 = vrot.slane %v23878_v29, 1  ;;  %v20377_v29 = vld [vmem:[#allocation2 + $0xc8] sm:$0xf0]  ;;  %v20378_v28 = vld [vmem:[#allocation2 + $0xc8] sm:$0xe] }
 0x46b   :  { %v5444_v24 = vadd.f32 %v23492_v41, %v5286_v13  ;;  %v20379_v62 = vor.u32 %v20378_v28, %v20377_v29  ;;  %v7046_v33 = vor.u32 %v7044_v10, %v7042_v40  ;;  %v19036_v40 = vld [vmem:[%s26496_s5 + $0x28] sm:$0xff]  ;;  %v19035_v10 = vld [vmem:[%s26496_s5 + $0x20] sm:$0xff] }
 0x46c   :  { %v6029_v11 = vadd.f32 %v23802_v58, %v6013_v9  ;;  %v6782_v1 = vsel %vm1267_vm0, %v6779_v14, %v6781_v57  ;;  %7632 = vmatpush.bf16.msra.mxu3 %v19036_v40 }
 0x46d   :  { %v5984_v55 = vpop.f32.mrf.mxu1  ;;  %7128 = vmatmul.bf16.vlgmr.msrb.gmra.mxu0 %v7043_v44  ;;  %v5558_v8 = vpop.f32.mrf.mxu3  ;;  %v7177_v9 = vrot.slane %v20379_v62, 1  ;;  %v7052_v62 = vshrl.u32 %v23927_v43, 16 }
 0x46e   :  { %v5591_v38 = vadd.f32 %v5558_v8, %v5443_v46  ;;  %v6045_v23 = vmax.f32 %v6029_v11, 0.0  ;;  %v23948_v46 = vld [vmem:[#allocation3] sm:$0xff]   ;;  %7774 = vmatpush.bf16.msra.mxu0 %v19053_v54 }
 0x46f   :  { %v7402_v28 = vshrl.u32 %v23948_v46, 16 }
 0x470   :  { %6740 = vmatmul.bf16.gmra.mxu1 %v6664_v53  ;;  %v23929_v60 = vpop.f32.mrf.mxu2  ;;  %v5856_v18 = vadd.f32 %v23789_v35, %v5591_v38  ;;  %v7048_v35 = vshll.u32 %v23927_v43, 16  ;;  %v7178_v38 = vrot.slane %v23856_v21, 1  ;;  %v7404_v53 = vshll.u32 %v23948_v46, 16  ;;  %7633 = vmatpush.bf16.msra.mxu3 %v19035_v10  ;;  %v26575_v21 = vld [vmem:[#allocation31_spill] sm:$0xff] }
 0x472   :  { %v23935_v3 = vpop.f32.mrf.mxu0  ;;  %v6014_v34 = vadd.f32 %v5981_v22, %v5856_v18  ;;  %6455 = vmatmul.bf16.gmra.mxu3 %v6379_v63  ;;  %v7050_v44 = vrot.slane %v7048_v35, 1  ;;  %v7179_v11 = vsel %vm1267_vm0, %v7177_v9, %v7178_v38  ;;  %v23981_v35 = vld [vmem:[#allocation2 + $0xe0] sm:$0xff]  ;;  %7775 = vmatpush.bf16.msra.mxu0 %v19052_v5  ;;  %v6992_v5 = vld [vmem:[#allocation2 + $0xe8] sm:$0x1] }
 0x473   :  { %v7026_v10 = vunpack.c.l.b16 %v6992_v5 }
 0x474   :  { %v6030_v30 = vadd.f32 %v23802_v58, %v6014_v34  ;;  %v7051_v36 = vsel %vm967_vm1, %v7046_v33, %v7050_v44  ;;  %v7406_v34 = vrot.slane %v7404_v53, 1  ;;  %v7056_v33 = vshll.u32 %v23981_v35, 16 }
 0x475   :  { %v5986_v52 = vpop.f32.mrf.mxu1  ;;  %6858 = vmatmul.bf16.gmra.mxu2 %v6782_v1  ;;  %v5561_v59 = vpop.f32.mrf.mxu3  ;;  %v5288_v1 = vadd.f32 %v23510_v4, %v23541_v7  ;;  %v7054_v40 = vor.u32 %v7052_v62, %v7050_v44  ;;  %v19050_v44 = vld [vmem:[%s26496_s5 + $0x98] sm:$0xff] }
 0x476   :  { %v6046_v22 = vmax.f32 %v6030_v30, 0.0  ;;  %v5592_v51 = vadd.f32 %v5561_v59, %v5444_v24  ;;  %v19051_v59 = vld [vmem:[%s26496_s5 + $0xa0] sm:$0xff]  ;;  %v7058_v54 = vrot.slane %v7056_v33, 1 }
 0x477   :  { %7776 = vmatpush.bf16.msra.mxu0 %v19051_v59 }
 0x478   :  { %v19840_v8 = vpack.c.bf16 %v6046_v22, %v6045_v23  ;;  %v23950_v32 = vpop.f32.mrf.mxu2  ;;  %v5857_v41 = vadd.f32 %v23828_v2, %v5592_v51  ;;  %v23969_v2 = vld [vmem:[#allocation3 + $0x8] sm:$0xff]   ;;  %v7407_v51 = vor.u32 %v7406_v34, %v7402_v28  ;;  %v7180_v34 = vrot.slane %v23927_v43, 1 }
 0x479   :  { %v7409_v18 = vshll.u32 %v23969_v2, 16  ;;  %v26574_v28 = vld [vmem:[#allocation32_spill] sm:$0xff] }
 0x47a   :  { %v23954_v14 = vpop.f32.mrf.mxu0  ;;  %20348 = vst [vmem:[#allocation3 + $0x90] sm:$0xff] %v19840_v8   ;;  %v6015_v13 = vadd.f32 %v5984_v55, %v5857_v41  ;;  %v5446_v8 = vadd.f32 %v23538_v26, %v5288_v1  ;;  %v24010_v26 = vld [vmem:[#allocation3 + $0x10] sm:$0xff]   ;;  %v7181_v33 = vsel %vm1267_vm0, %v7178_v38, %v7180_v34  ;;  %v19060_v38 = vld [vmem:[%s26496_s5 + $0xe8] sm:$0xff]  ;;  %v19057_v43 = vld [vmem:[%s26496_s5 + $0xd0] sm:$0xff] }
 0x47b   :  { %v23987_v30 = vrot.slane %v7409_v18, 1  ;;  %v26573_v18 = vld [vmem:[#allocation29_spill] sm:$0xff]  ;;  %v7417_v59 = vshll.u32 %v24010_v26, 16  ;;  %7777 = vmatpush.bf16.msra.mxu0 %v19050_v44 }
 0x47c   :  { %v6031_v23 = vadd.f32 %v23802_v58, %v6015_v13 }
 0x47d   :  { %v23967_v17 = vpop.f32.mrf.mxu1  ;;  %7133 = vmatmul.bf16.gmra.mxu0 %v7051_v36  ;;  %v5563_v57 = vpop.f32.mrf.mxu3  ;;  %v7412_v4 = vsel %vm967_vm1, %v7407_v51, %v23987_v30  ;;  %v19049_v51 = vld [vmem:[%s26496_s5 + $0x90] sm:$0xff] }
 0x47e   :  { %v5593_v63 = vadd.f32 %v5563_v57, %v5445_v16  ;;  %v6047_v9 = vmax.f32 %v6031_v23, 0.0  ;;  %v5289_v57 = vadd.f32 %v26573_v18, %v23574_v45  ;;  %v19062_v45 = vld [vmem:[%s26496_s5 + $0xf8] sm:$0xff] }
 0x47f   :  { %7922 = vmatpush.bf16.msra.mxu1 %v19062_v45  ;;  %7778 = vmatpush.bf16.msra.mxu0 %v19049_v51  ;;  %v26576_v51 = vld [vmem:[#allocation33_spill] sm:$0xff] }
 0x480   :  { %7246 = vmatmul.bf16.vlgmr.msrb.gmra.mxu1 %v7179_v11  ;;  %v23983_v29 = vpop.f32.mrf.mxu2  ;;  %v5858_v55 = vadd.f32 %v23870_v15, %v5593_v63  ;;  %v20964_v15 = vld [vmem:[#allocation2 + $0xc8] sm:$0xff]  }
 0x482   :  { %v23991_v24 = vpop.f32.mrf.mxu0  ;;  %v6016_v22 = vadd.f32 %v5986_v52, %v5858_v55  ;;  %6955 = vmatmul.bf16.vlgmr.msrb.gmra.mxu3 %v20964_v15  ;;  %v19034_v55 = vld [vmem:[%s26496_s5 + $0x18] sm:$0xff] }
 0x483   :  { %7634 = vmatpush.bf16.msra.mxu3 %v19034_v55 }
 0x484   :  { %v6032_v7 = vadd.f32 %v23802_v58, %v6016_v22  ;;  %v24028_v22 = vpack.c.b16 %v7026_v10, %v7026_v10 }
 0x485   :  { %v5991_v20 = vpop.f32.mrf.mxu1  ;;  %7533 = vmatmul.bf16.vlgmr.msra.gmra.mxu2 %v7412_v4  ;;  %v5566_v41 = vpop.f32.mrf.mxu3  ;;  %v19033_v4 = vld [vmem:[%s26496_s5 + $0x10] sm:$0xff] }
 0x486   :  { %v6048_v52 = vmax.f32 %v6032_v7, 0.0  ;;  %v5594_v53 = vadd.f32 %v5566_v41, %v5446_v8  ;;  %v19061_v7 = vld [vmem:[%s26496_s5 + $0xf0] sm:$0xff] }
 0x487   :  { %7923 = vmatpush.bf16.msra.mxu1 %v19061_v7  ;;  %7635 = vmatpush.bf16.msra.mxu3 %v19033_v4  ;;  %v7182_v4 = vrot.slane %v23981_v35, 1 }
 0x488   :  { %v19845_v36 = vpack.c.bf16 %v6048_v52, %v6047_v9  ;;  %v6331_v16 = vpop.f32.mrf.mxu2  ;;  %v5859_v11 = vadd.f32 %v23903_v6, %v5594_v53  ;;  %v5447_v6 = vadd.f32 %v26574_v28, %v5289_v57  ;;  %v24047_v9 = vrot.slane %v7417_v59, 1 }
 0x489   :  { %v24006_v13 = vadd.f32 %v6331_v16, %v23737_v56  ;;  %v7059_v56 = vsel %vm967_vm1, %v7054_v40, %v7058_v54  ;;  %v5290_v52 = vadd.f32 %v26575_v21, %v23602_v48  ;;  %v7064_v16 = vshll.u32 %v24028_v22, 16  ;;  %v19048_v48 = vld [vmem:[%s26496_s5 + $0x88] sm:$0xff] }
 0x48a   :  { %v24008_v63 = vpop.f32.mrf.mxu0  ;;  %20349 = vst [vmem:[#allocation3 + $0x98] sm:$0xff] %v19845_v36   ;;  %v6017_v15 = vadd.f32 %v23967_v17, %v5859_v11  ;;  %v7413_v17 = vshrl.u32 %v23969_v2, 16  ;;  %v20374_v36 = vld [vmem:[#allocation2 + $0xd0] sm:$0xff]   ;;  %7779 = vmatpush.bf16.msra.mxu0 %v19048_v48 }
 0x48b   :  { %v5448_v44 = vadd.f32 %v23599_v39, %v5290_v52  ;;  %7924 = vmatpush.bf16.msra.mxu1 %v19060_v38  ;;  %v7066_v55 = vrot.slane %v7064_v16, 1 }
 0x48c   :  { %v6033_v18 = vadd.f32 %v23802_v58, %v6017_v15  ;;  %v7415_v11 = vor.u32 %v7413_v17, %v23987_v30  ;;  %v5291_v15 = vadd.f32 %v26576_v51, %v23630_v61  ;;  %v19032_v61 = vld [vmem:[%s26496_s5 + $0x8] sm:$0xff] }
 0x48d   :  { %v24025_v1 = vpop.f32.mrf.mxu1  ;;  %7138 = vmatmul.bf16.gmra.mxu0 %v7059_v56  ;;  %v5568_v23 = vpop.f32.mrf.mxu3  ;;  %7636 = vmatpush.bf16.msra.mxu3 %v19032_v61  ;;  %v26579_v61 = vld [vmem:[#allocation42_spill] sm:$0xff] }
 0x48e   :  { %v5595_v62 = vadd.f32 %v5568_v23, %v5447_v6  ;;  %v7420_v5 = vsel %vm967_vm1, %v7415_v11, %v24047_v9  ;;  %v6049_v30 = vmax.f32 %v6033_v18, 0.0  ;;  %v7421_v18 = vshrl.u32 %v24010_v26, 16 }
 0x490   :  { %7251 = vmatmul.bf16.gmra.mxu1 %v7181_v33  ;;  %v6333_v8 = vpop.f32.mrf.mxu2  ;;  %v5860_v41 = vadd.f32 %v23935_v3, %v5595_v62  ;;  %v7060_v3 = vshrl.u32 %v23981_v35, 16  ;;  %v24081_v33 = vld [vmem:[#allocation3 + $0x18] sm:$0xff]  }
 0x491   :  { %v24055_v53 = vadd.f32 %v6333_v8, %v23780_v42  ;;  %v19059_v8 = vld [vmem:[%s26496_s5 + $0xe0] sm:$0xff]  ;;  %v7425_v17 = vshll.u32 %v24081_v33, 16  ;;  %v7429_v35 = vshrl.u32 %v24081_v33, 16 }
 0x492   :  { %v24057_v40 = vpop.f32.mrf.mxu0  ;;  %v6018_v57 = vadd.f32 %v5991_v20, %v5860_v41  ;;  %6960 = vmatmul.bf16.gmra.mxu3 %v20374_v36  ;;  %v7062_v10 = vor.u32 %v7060_v3, %v7058_v54  ;;  %v19047_v20 = vld [vmem:[%s26496_s5 + $0x80] sm:$0xff]  ;;  %7925 = vmatpush.bf16.msra.mxu1 %v19059_v8  ;;  %v7679_v36 = vld [vmem:[#allocation3] sm:$0xe] }
 0x493   :  { %7780 = vmatpush.bf16.msra.mxu0 %v19047_v20  ;;  %v19031_v3 = vld [vmem:[%s26496_s5] sm:$0xff] }
 0x494   :  { %v6034_v42 = vadd.f32 %v23802_v58, %v6018_v57  ;;  %v7067_v54 = vsel %vm967_vm1, %v7062_v10, %v7066_v55  ;;  %v24109_v57 = vrot.slane %v7425_v17, 1  ;;  %7637 = vmatpush.bf16.msra.mxu3 %v19031_v3  ;;  %v7423_v10 = vor.u32 %v7421_v18, %v24047_v9  ;;  %v26581_v18 = vld [vmem:[#allocation41_spill] sm:$0xff] }
 0x495   :  { %v5996_v45 = vpop.f32.mrf.mxu1  ;;  %7538 = vmatmul.bf16.gmra.mxu2 %v7420_v5  ;;  %v5571_v56 = vpop.f32.mrf.mxu3  ;;  %v19922_v5 = vunpack.c.h.b16 %v23948_v46 }
 0x496   :  { %v6050_v28 = vmax.f32 %v6034_v42, 0.0  ;;  %v5596_v6 = vadd.f32 %v5571_v56, %v5448_v44  ;;  %v7428_v20 = vsel %vm967_vm1, %v7423_v10, %v24109_v57 }
 0x498   :  { %v19850_v59 = vpack.c.bf16 %v6050_v28, %v6049_v30  ;;  %v6336_v23 = vpop.f32.mrf.mxu2  ;;  %v5861_v7 = vadd.f32 %v23954_v14, %v5596_v6  ;;  %v19058_v14 = vld [vmem:[%s26496_s5 + $0xd8] sm:$0xff]  ;;  %v19056_v6 = vld [vmem:[%s26496_s5 + $0xc8] sm:$0xff] }
 0x499   :  { %v24076_v39 = vadd.f32 %v6336_v23, %v23824_v31  ;;  %v5449_v31 = vadd.f32 %v23627_v25, %v5291_v15  ;;  %v7183_v25 = vsel %vm1267_vm0, %v7180_v34, %v7182_v4  ;;  %7926 = vmatpush.bf16.msra.mxu1 %v19058_v14  ;;  %v7701_v15 = vrot.slane %v23969_v2, 1 }
 0x49a   :  { %v24078_v62 = vpop.f32.mrf.mxu0  ;;  %20350 = vst [vmem:[#allocation3 + $0xa0] sm:$0xff] %v19850_v59   ;;  %v6019_v52 = vadd.f32 %v24025_v1, %v5861_v7  ;;  %v26577_v1 = vld [vmem:[#allocation35_spill] sm:$0xff]  ;;  %v7184_v14 = vrot.slane %v24028_v22, 1  ;;  %v19070_v22 = vld [vmem:[%s26496_s5 + $0x138] sm:$0xff] }
 0x49b   :  { %v5292_v11 = vadd.f32 %v26577_v1, %v23653_v19  ;;  %v20965_v19 = vld [vmem:[#allocation2 + $0xd8] sm:$0xff]   ;;  %8188 = vmatpush.bf16.msrb.mxu2 %v19070_v22 }
 0x49c   :  { %v6035_v44 = vadd.f32 %v23802_v58, %v6019_v52 }
 0x49d   :  { %v24092_v41 = vpop.f32.mrf.mxu1  ;;  %7143 = vmatmul.bf16.gmra.mxu0 %v7067_v54  ;;  %v5573_v21 = vpop.f32.mrf.mxu3  ;;  %7927 = vmatpush.bf16.msra.mxu1 %v19057_v43  ;;  %v6872_v54 = vld [vmem:[#allocation2 + $0xe4] sm:$0xf]  ;;  %v7185_v43 = vsel %vm1267_vm0, %v7182_v4, %v7184_v14  ;;  %v26584_v14 = vld [vmem:[#allocation43_spill] sm:$0xff] }
 0x49e   :  { %v5597_v38 = vadd.f32 %v5573_v21, %v5449_v31  ;;  %v26580_v31 = vld [vmem:[#allocation36_spill] sm:$0xff]  ;;  %v6890_v3 = vunpack.c.l.b16 %v6872_v54 }
 0x49f   :  { %v5293_v17 = vadd.f32 %v26580_v31, %v26579_v61 }
 0x4a0   :  { %7256 = vmatmul.bf16.gmra.mxu1 %v7183_v25  ;;  %v6338_v16 = vpop.f32.mrf.mxu2  ;;  %v5862_v48 = vadd.f32 %v23991_v24, %v5597_v38  ;;  %v7698_v24 = vunpack.c.l.b16 %v7679_v36  ;;  %v24142_v25 = vld [vmem:[#allocation3 + $0x20] sm:$0xff]  }
 0x4a1   :  { %v24117_v34 = vadd.f32 %v6338_v16, %v23861_v47  ;;  %v26578_v47 = vld [vmem:[#allocation38_spill] sm:$0xff]  ;;  %7928 = vmatpush.bf16.msra.mxu1 %v19056_v6  ;;  %v5451_v1 = vadd.f32 %v26581_v18, %v5293_v17  ;;  %v26585_v18 = vld [vmem:[#allocation5_spill] sm:$0xff] }
 0x4a2   :  { %v24119_v42 = vpop.f32.mrf.mxu0  ;;  %v6020_v56 = vadd.f32 %v5996_v45, %v5862_v48  ;;  %6965 = vmatmul.bf16.gmra.mxu3 %v20965_v19  ;;  %v5450_v30 = vadd.f32 %v26578_v47, %v5292_v11  ;;  %v7699_v9 = vpack.c.b16 %v19922_v5, %v7698_v24  ;;  %v6051_v45 = vmax.f32 %v6035_v44, 0.0  ;;  %v19055_v16 = vld [vmem:[%s26496_s5 + $0xc0] sm:$0xff] }
 0x4a3   :  { %v7433_v24 = vshll.u32 %v24142_v25, 16  ;;  %v26582_v19 = vunpack.c.l.b16 %v23755_v49 }
 0x4a4   :  { %v6036_v55 = vadd.f32 %v23802_v58, %v6020_v56  ;;  %v7700_v38 = vrot.slane %v7699_v9, 1 }
 0x4a5   :  { %v6001_v28 = vpop.f32.mrf.mxu1  ;;  %7543 = vmatmul.bf16.gmra.mxu2 %v7428_v20  ;;  %v5576_v59 = vpop.f32.mrf.mxu3  ;;  %7929 = vmatpush.bf16.msra.mxu1 %v19055_v16  ;;  %v7435_v4 = vrot.slane %v7433_v24, 1  ;;  %v19085_v16 = vld [vmem:[%s26496_s5 + $0x1b0] sm:$0xff] }
 0x4a6   :  { %v6052_v23 = vmax.f32 %v6036_v55, 0.0  ;;  %v5598_v51 = vadd.f32 %v5576_v59, %v5450_v30  ;;  %v7702_v48 = vsel %vm1267_vm0, %v7700_v38, %v7701_v15  ;;  %v6894_v55 = vpack.c.b16 %v6890_v3, %v26582_v19  ;;  %v26583_v30 = vld [vmem:[#allocation40_spill] sm:$0xff] }
 0x4a7   :  { %v5294_v6 = vadd.f32 %v26583_v30, %v23694_v0  ;;  %v19069_v59 = vld [vmem:[%s26496_s5 + $0x130] sm:$0xff]  ;;  %v5295_v38 = vadd.f32 %v26584_v14, %v23716_v27 }
 0x4a8   :  { %v19855_v7 = vpack.c.bf16 %v6052_v23, %v6051_v45  ;;  %v6341_v8 = vpop.f32.mrf.mxu2  ;;  %v5863_v36 = vadd.f32 %v24008_v63, %v5598_v51  ;;  %v19086_v63 = vld [vmem:[%s26496_s5 + $0x1b8] sm:$0xff]  ;;  %8189 = vmatpush.bf16.msrb.mxu2 %v19069_v59 }
 0x4a9   :  { %v24138_v21 = vadd.f32 %v6341_v8, %v23899_v50  ;;  %v19078_v50 = vld [vmem:[%s26496_s5 + $0x178] sm:$0xff]  ;;  %8496 = vmatpush.bf16.msrb.mxu0 %v19086_v63  ;;  %v5452_v51 = vadd.f32 %v23691_v37, %v5294_v6  ;;  %v5453_v27 = vadd.f32 %v23713_v12, %v5295_v38 }
 0x4aa   :  { %v24140_v52 = vpop.f32.mrf.mxu0  ;;  %20351 = vst [vmem:[#allocation3 + $0xa8] sm:$0xff] %v19855_v7   ;;  %8347 = vmatpush.bf16.msrb.mxu3 %v19078_v50  ;;  %v6021_v56 = vadd.f32 %v24092_v41, %v5863_v36  ;;  %v24196_v3 = vld [vmem:[#allocation3 + $0x28] sm:$0xff]  }
 0x4ab   :  { %v20721_v38 = vld [vmem:[#allocation3 + $0xc] sm:$0xff]  }
 0x4ac   :  { %v6037_v9 = vadd.f32 %v23802_v58, %v6021_v56  ;;  %v7437_v56 = vshrl.u32 %v24142_v25, 16 }
 0x4ad   :  { %v6004_v11 = vpop.f32.mrf.mxu1  ;;  %7781 = vmatmul.bf16.vlgmr.msra.gmra.mxu0 %v7702_v48  ;;  %v5578_v44 = vpop.f32.mrf.mxu3  ;;  %v7441_v48 = vshll.u32 %v24196_v3, 16 }
 0x4ae   :  { %v5599_v10 = vadd.f32 %v5578_v44, %v5451_v1  ;;  %v6053_v8 = vmax.f32 %v6037_v9, 0.0  ;;  %8497 = vmatpush.bf16.msrb.mxu0 %v19085_v16  ;;  %v7858_v1 = vpack.c.b16 %v26585_v18, %v19922_v5 }
 0x4af   :  { %v7443_v12 = vrot.slane %v7441_v48, 1 }
 0x4b0   :  { %7261 = vmatmul.bf16.gmra.mxu1 %v7185_v43  ;;  %v6343_v20 = vpop.f32.mrf.mxu2  ;;  %v5864_v47 = vadd.f32 %v24057_v40, %v5599_v10  ;;  %v7431_v40 = vor.u32 %v7429_v35, %v24109_v57  ;;  %v7703_v57 = vrot.slane %v24010_v26, 1  ;;  %v19172_v43 = vld [vmem:[#allocation3 + $0x80] sm:$0xff] }
 0x4b1   :  { %v24176_v41 = vadd.f32 %v6343_v20, %v23929_v60  ;;  %v19077_v60 = vld [vmem:[%s26496_s5 + $0x170] sm:$0xff]  ;;  %v19068_v10 = vld [vmem:[%s26496_s5 + $0x128] sm:$0xff]  ;;  %v10582_v5 = vrot.slane %v19172_v43, 1 }
 0x4b2   :  { %v24178_v49 = vpop.f32.mrf.mxu0  ;;  %v6022_v45 = vadd.f32 %v6001_v28, %v5864_v47  ;;  %6970 = vmatmul.bf16.gmra.mxu3 %v6894_v55  ;;  %v7436_v0 = vsel %vm967_vm1, %v7431_v40, %v7435_v4  ;;  %v7704_v50 = vsel %vm1267_vm0, %v7701_v15, %v7703_v57  ;;  %v7439_v47 = vor.u32 %v7437_v56, %v7435_v4  ;;  %v19076_v4 = vld [vmem:[%s26496_s5 + $0x168] sm:$0xff] }
 0x4b3   :  { %8348 = vmatpush.bf16.msrb.mxu3 %v19077_v60  ;;  %8190 = vmatpush.bf16.msrb.mxu2 %v19068_v10  ;;  %v7707_v56 = vrot.slane %v24142_v25, 1 }
 0x4b4   :  { %v6038_v23 = vadd.f32 %v23802_v58, %v6022_v45  ;;  %v10300_v45 = vld [vmem:[#allocation3 + $0x88] sm:$0x1] }
 0x4b5   :  { %v6006_v54 = vpop.f32.mrf.mxu1  ;;  %7548 = vmatmul.bf16.gmra.mxu2 %v7436_v0  ;;  %v5581_v7 = vpop.f32.mrf.mxu3  ;;  %v7705_v0 = vrot.slane %v24081_v33, 1 }
 0x4b6   :  { %v6054_v61 = vmax.f32 %v6038_v23, 0.0  ;;  %v5600_v28 = vadd.f32 %v5581_v7, %v5452_v51  ;;  %v10350_v51 = vunpack.c.l.b16 %v10300_v45 }
 0x4b7   :  { %8349 = vmatpush.bf16.msrb.mxu3 %v19076_v4 }
 0x4b8   :  { %v19860_v31 = vpack.c.bf16 %v6054_v61, %v6053_v8  ;;  %v6346_v17 = vpop.f32.mrf.mxu2  ;;  %v5865_v22 = vadd.f32 %v24078_v62, %v5600_v28  ;;  %v24245_v8 = vld [vmem:[#allocation3 + $0x30] sm:$0xff]   ;;  %v19084_v61 = vld [vmem:[%s26496_s5 + $0x1a8] sm:$0xff]  ;;  %v24250_v28 = vpack.c.b16 %v10350_v51, %v10350_v51 }
 0x4b9   :  { %v24192_v37 = vadd.f32 %v6346_v17, %v23950_v32  ;;  %8498 = vmatpush.bf16.msrb.mxu0 %v19084_v61  ;;  %v7453_v4 = vshrl.u32 %v24245_v8, 16 }
 0x4ba   :  { %v24194_v36 = vpop.f32.mrf.mxu0  ;;  %20352 = vst [vmem:[#allocation3 + $0xb0] sm:$0xff] %v19860_v31   ;;  %v6023_v24 = vadd.f32 %v6004_v11, %v5865_v22  ;;  %v10584_v31 = vrot.slane %v24250_v28, 1 }
 0x4bc   :  { %v6039_v11 = vadd.f32 %v23802_v58, %v6023_v24  ;;  %v24260_v16 = vsel %vm1267_vm0, %v10582_v5, %v10584_v31  ;;  %v19074_v31 = vld [vmem:[%s26496_s5 + $0x158] sm:$0xff] }
 0x4bd   :  { %v24206_v32 = vpop.f32.mrf.mxu1  ;;  %7786 = vmatmul.bf16.gmra.mxu0 %v7704_v50  ;;  %v5583_v63 = vpop.f32.mrf.mxu3  ;;  %v7445_v50 = vshrl.u32 %v24196_v3, 16 }
 0x4be   :  { %v5601_v62 = vadd.f32 %v5583_v63, %v5453_v27  ;;  %v19067_v27 = vld [vmem:[%s26496_s5 + $0x120] sm:$0xff] }
 0x4bf   :  { %v7447_v63 = vor.u32 %v7445_v50, %v7443_v12  ;;  %8191 = vmatpush.bf16.msrb.mxu2 %v19067_v27  ;;  %v19101_v27 = vld [vmem:[%s26496_s5 + $0x1f8] sm:$0xff] }
 0x4c0   :  { %7930 = vmatmul.bf16.vlgmr.msra.gmra.mxu1 %v7858_v1  ;;  %v6348_v44 = vpop.f32.mrf.mxu2  ;;  %v5866_v15 = vadd.f32 %v24119_v42, %v5601_v62  ;;  %v26586_v42 = vld [vmem:[#allocation37_spill] sm:$0xff] }
 0x4c1   :  { %v24218_v19 = vadd.f32 %v6348_v44, %v23983_v29  ;;  %v26587_v35 = vrot.slane %v26586_v42, 1  ;;  %v7444_v29 = vsel %vm967_vm1, %v7439_v47, %v7443_v12  ;;  %v19066_v62 = vld [vmem:[%s26496_s5 + $0x118] sm:$0xff]  ;;  %v19075_v44 = vld [vmem:[%s26496_s5 + $0x160] sm:$0xff]  ;;  %v19064_v47 = vld [vmem:[%s26496_s5 + $0x108] sm:$0xff]  ;;  %8762 = vmatpush.bf16.msrb.mxu1 %v19101_v27 }
 0x4c2   :  { %v24220_v55 = vpop.f32.mrf.mxu0  ;;  %v6024_v20 = vadd.f32 %v6006_v54, %v5866_v15  ;;  %7638 = vmatmul.bf16.vlgmr.msra.gmra.mxu3 %v23948_v46  ;;  %v6055_v46 = vmax.f32 %v6039_v11, 0.0  ;;  %v24301_v42 = vld [vmem:[#allocation3 + $0x38] sm:$0xff]  }
 0x4c3   :  { %v24227_v30 = vsel %vm1267_vm0, %v26587_v35, %v10582_v5  ;;  %8192 = vmatpush.bf16.msrb.mxu2 %v19066_v62  ;;  %8350 = vmatpush.bf16.msrb.mxu3 %v19075_v44  ;;  %v19065_v5 = vld [vmem:[%s26496_s5 + $0x110] sm:$0xff]  ;;  %v7457_v35 = vshll.u32 %v24301_v42, 16 }
 0x4c4   :  { %v6040_v6 = vadd.f32 %v23802_v58, %v6024_v20  ;;  %v19083_v20 = vld [vmem:[%s26496_s5 + $0x1a0] sm:$0xff] }
 0x4c5   :  { %v24231_v59 = vpop.f32.mrf.mxu1  ;;  %7553 = vmatmul.bf16.gmra.mxu2 %v7444_v29  ;;  %v6441_v9 = vpop.f32.mrf.mxu3  ;;  %8499 = vmatpush.bf16.msrb.mxu0 %v19083_v20  ;;  %v20723_v29 = vld [vmem:[#allocation3 + $0x14] sm:$0xff]   ;;  %v7459_v45 = vrot.slane %v7457_v35, 1  ;;  %v7987_v20 = vld [vmem:[#allocation3 + $0x4] sm:$0xf] }
 0x4c6   :  { %v6056_v40 = vmax.f32 %v6040_v6, 0.0  ;;  %v6461_v23 = vadd.f32 %v6441_v9, %v24006_v13  ;;  %v7706_v13 = vsel %vm1267_vm0, %v7703_v57, %v7705_v0 }
 0x4c7   :  { %8193 = vmatpush.bf16.msrb.mxu2 %v19065_v5  ;;  %8351 = vmatpush.bf16.msrb.mxu3 %v19074_v31  ;;  %v19082_v5 = vld [vmem:[%s26496_s5 + $0x198] sm:$0xff] }
 0x4c8   :  { %v19865_v58 = vpack.c.bf16 %v6056_v40, %v6055_v46  ;;  %v24238_v54 = vpop.f32.mrf.mxu2  ;;  %v24241_v7 = vadd.f32 %v24140_v52, %v6461_v23  ;;  %v7449_v52 = vshll.u32 %v24245_v8, 16  ;;  %v19063_v46 = vld [vmem:[%s26496_s5 + $0x100] sm:$0xff]  ;;  %v7340_v23 = vld [vmem:[#allocation3 + $0x40] sm:$0x1] }
 0x4c9   :  { %v7391_v61 = vunpack.c.l.b16 %v7340_v23  ;;  %8500 = vmatpush.bf16.msrb.mxu0 %v19082_v5  ;;  %v19081_v5 = vld [vmem:[%s26496_s5 + $0x190] sm:$0xff] }
 0x4ca   :  { %v24243_v60 = vpop.f32.mrf.mxu0  ;;  %20353 = vst [vmem:[#allocation3 + $0xb8] sm:$0xff] %v19865_v58   ;;  %v7451_v57 = vrot.slane %v7449_v52, 1 }
 0x4cb   :  { %8194 = vmatpush.bf16.msrb.mxu2 %v19064_v47 }
 0x4cc   :  { %v7452_v1 = vsel %vm967_vm1, %v7447_v63, %v7451_v57  ;;  %v6746_v63 = vadd.f32 %v24206_v32, %v24241_v7  ;;  %v7461_v7 = vshrl.u32 %v24301_v42, 16 }
 0x4cd   :  { %v24254_v17 = vpop.f32.mrf.mxu1  ;;  %7791 = vmatmul.bf16.gmra.mxu0 %v7706_v13  ;;  %v24257_v14 = vpop.f32.mrf.mxu3 }
 0x4ce   :  { %8501 = vmatpush.bf16.msrb.mxu0 %v19081_v5 }
 0x4cf   :  { %8195 = vmatpush.bf16.msrb.mxu2 %v19063_v46 }
 0x4d0   :  { %7935 = vmatmul.bf16.gmra.mxu1 %v20721_v38  ;;  %v24262_v22 = vpop.f32.mrf.mxu2  ;;  %v7709_v38 = vrot.slane %v24196_v3, 1 }
 0x4d2   :  { %v24268_v48 = vpop.f32.mrf.mxu0  ;;  %7643 = vmatmul.bf16.gmra.mxu3 %v23969_v2 }
 0x4d5   :  { %v24272_v43 = vpop.f32.mrf.mxu1  ;;  %7558 = vmatmul.bf16.gmra.mxu2 %v7452_v1  ;;  %v6446_v24 = vpop.f32.mrf.mxu3 }
 0x4d6   :  { %v6463_v15 = vadd.f32 %v6446_v24, %v24076_v39  ;;  %v7708_v39 = vsel %vm1267_vm0, %v7705_v0, %v7707_v56  ;;  %v7455_v0 = vor.u32 %v7453_v4, %v7451_v57  ;;  %v24328_v57 = vpack.c.b16 %v7391_v61, %v7391_v61 }
 0x4d7   :  { %v7710_v24 = vsel %vm1267_vm0, %v7707_v56, %v7709_v38 }
 0x4d8   :  { %v24282_v12 = vpop.f32.mrf.mxu2  ;;  %v24285_v10 = vadd.f32 %v24194_v36, %v6463_v15  ;;  %v7460_v51 = vsel %vm967_vm1, %v7455_v0, %v7459_v45  ;;  %v20725_v15 = vld [vmem:[#allocation3 + $0x1c] sm:$0xff]   ;;  %v7711_v0 = vrot.slane %v24245_v8, 1 }
 0x4da   :  { %v24290_v11 = vpop.f32.mrf.mxu0  ;;  %v7712_v31 = vsel %vm1267_vm0, %v7709_v38, %v7711_v0 }
 0x4dd   :  { %v24299_v36 = vpop.f32.mrf.mxu1  ;;  %7796 = vmatmul.bf16.gmra.mxu0 %v7708_v39  ;;  %v24304_v6 = vpop.f32.mrf.mxu3  ;;  %v7463_v39 = vor.u32 %v7461_v7, %v7459_v45 }
 0x4e0   :  { %7940 = vmatmul.bf16.gmra.mxu1 %v20723_v29  ;;  %v24306_v9 = vpop.f32.mrf.mxu2  ;;  %v8038_v29 = vunpack.c.l.b16 %v7987_v20 }
 0x4e2   :  { %v24312_v40 = vpop.f32.mrf.mxu0  ;;  %7648 = vmatmul.bf16.gmra.mxu3 %v24010_v26  ;;  %v8055_v23 = vpack.c.b16 %v26585_v18, %v8038_v29  ;;  %v6748_v18 = vadd.f32 %v24254_v17, %v24285_v10  ;;  %v6462_v17 = vadd.f32 %v24257_v14, %v24055_v53  ;;  %v7713_v53 = vrot.slane %v24301_v42, 1 }
 0x4e4   :  { %v8065_v38 = vshrl.u32 %v8055_v23, 16  ;;  %v6574_v20 = vadd.f32 %v24178_v49, %v6462_v17  ;;  %v19099_v49 = vld [vmem:[%s26496_s5 + $0x1e8] sm:$0xff] }
 0x4e5   :  { %v24316_v58 = vpop.f32.mrf.mxu1  ;;  %7563 = vmatmul.bf16.gmra.mxu2 %v7460_v51  ;;  %v6451_v13 = vpop.f32.mrf.mxu3 }
 0x4e6   :  { %v6465_v52 = vadd.f32 %v6451_v13, %v24138_v21  ;;  %v6864_v21 = vadd.f32 %v24238_v54, %v6746_v63  ;;  %v19073_v13 = vld [vmem:[%s26496_s5 + $0x150] sm:$0xff]  ;;  %v24376_v63 = vadd.f32 %v24282_v12, %v6748_v18  ;;  %v24409_v18 = vld [vmem:[#allocation3 + $0x14] sm:$0xff]  }
 0x4e7   :  { %8352 = vmatpush.bf16.msrb.mxu3 %v19073_v13  ;;  %v7714_v13 = vsel %vm1267_vm0, %v7711_v0, %v7713_v53 }
 0x4e8   :  { %v24323_v50 = vpop.f32.mrf.mxu2  ;;  %v24326_v26 = vadd.f32 %v24243_v60, %v6465_v52  ;;  %v7465_v60 = vshll.u32 %v24328_v57, 16 }
 0x4ea   :  { %v24335_v1 = vpop.f32.mrf.mxu0  ;;  %v7467_v54 = vrot.slane %v7465_v60, 1  ;;  %v20727_v60 = vld [vmem:[#allocation3 + $0x24] sm:$0xff]  }
 0x4ec   :  { %v7468_v47 = vsel %vm967_vm1, %v7463_v39, %v7467_v54 }
 0x4ed   :  { %v24339_v62 = vpop.f32.mrf.mxu1  ;;  %7801 = vmatmul.bf16.gmra.mxu0 %v7710_v24  ;;  %v24342_v44 = vpop.f32.mrf.mxu3 }
 0x4f0   :  { %7945 = vmatmul.bf16.gmra.mxu1 %v20725_v15  ;;  %v24347_v32 = vpop.f32.mrf.mxu2 }
 0x4f2   :  { %v24350_v56 = vpop.f32.mrf.mxu0  ;;  %7653 = vmatmul.bf16.gmra.mxu3 %v24081_v33  ;;  %v8067_v33 = vshll.u32 %v8055_v23, 16 }
 0x4f4   :  { %v8069_v15 = vrot.slane %v8067_v33, 1 }
 0x4f5   :  { %v24354_v35 = vpop.f32.mrf.mxu1  ;;  %7568 = vmatmul.bf16.gmra.mxu2 %v7468_v47  ;;  %v6456_v4 = vpop.f32.mrf.mxu3 }
 0x4f6   :  { %v6467_v46 = vadd.f32 %v6456_v4, %v24192_v37  ;;  %v19100_v37 = vld [vmem:[%s26496_s5 + $0x1f0] sm:$0xff]  ;;  %v8070_v54 = vor.u32 %v8069_v15, %v8065_v38 }
 0x4f7   :  { %8763 = vmatpush.bf16.msrb.mxu1 %v19100_v37 }
 0x4f8   :  { %v24359_v51 = vpop.f32.mrf.mxu2  ;;  %v24362_v61 = vadd.f32 %v24290_v11, %v6467_v46  ;;  %v20967_v11 = vld [vmem:[#allocation3 + $0xc] sm:$0xff]   ;;  %v6747_v46 = vadd.f32 %v24231_v59, %v6574_v20 }
 0x4f9   :  { %v8072_v27 = vshll.u32 %v20967_v11, 16  ;;  %v8076_v17 = vshrl.u32 %v20967_v11, 16 }
 0x4fa   :  { %v24364_v45 = vpop.f32.mrf.mxu0  ;;  %v6865_v37 = vadd.f32 %v24262_v22, %v6747_v46  ;;  %v6464_v22 = vadd.f32 %v24304_v6, %v24117_v34 }
 0x4fb   :  { %v8074_v7 = vrot.slane %v8072_v27, 1  ;;  %8764 = vmatpush.bf16.msrb.mxu1 %v19099_v49  ;;  %v7715_v49 = vrot.slane %v24328_v57, 1  ;;  %v6752_v57 = vadd.f32 %v24339_v62, %v24362_v61  ;;  %v20731_v62 = vld [vmem:[#allocation3 + $0x34] sm:$0xff]  }
 0x4fd   :  { %v7247_v52 = vpop.f32.mrf.mxu1  ;;  %7806 = vmatmul.bf16.gmra.mxu0 %v7712_v31  ;;  %v24378_v24 = vpop.f32.mrf.mxu3  ;;  %v8075_v39 = vsel %vm967_vm1, %v8070_v54, %v8074_v7  ;;  %v24431_v54 = vld [vmem:[%s26495_s4] ss:$0 sm:$0xff]  ;;  %v8078_v20 = vor.u32 %v8076_v17, %v8074_v7 }
 0x500   :  { %7950 = vmatmul.bf16.gmra.mxu1 %v20727_v60  ;;  %v24385_v10 = vpop.f32.mrf.mxu2  ;;  %v20729_v60 = vld [vmem:[#allocation3 + $0x2c] sm:$0xff]  }
 0x502   :  { %v24387_v12 = vpop.f32.mrf.mxu0  ;;  %7658 = vmatmul.bf16.gmra.mxu3 %v24142_v25  ;;  %v19072_v25 = vld [vmem:[%s26496_s5 + $0x148] sm:$0xff] }
 0x503   :  { %8353 = vmatpush.bf16.msrb.mxu3 %v19072_v25 }
 0x505   :  { %v7249_v47 = vpop.f32.mrf.mxu1  ;;  %8196 = vmatmul.bf16.vlgmr.msrb.gmra.mxu2 %v8075_v39  ;;  %v6956_v29 = vpop.f32.mrf.mxu3 }
 0x506   :  { %v6976_v4 = vadd.f32 %v6956_v29, %v6864_v21  ;;  %v6750_v21 = vadd.f32 %v24299_v36, %v24326_v26  ;;  %v19080_v36 = vld [vmem:[%s26496_s5 + $0x188] sm:$0xff] }
 0x507   :  { %8502 = vmatpush.bf16.msrb.mxu0 %v19080_v36 }
 0x508   :  { %v24393_v14 = vpop.f32.mrf.mxu2  ;;  %v7149_v33 = vadd.f32 %v24335_v1, %v6976_v4  ;;  %v8080_v1 = vshll.u32 %v24409_v18, 16  ;;  %v24413_v31 = vadd.f32 %v24323_v50, %v6750_v21 }
 0x50a   :  { %v24396_v23 = vpop.f32.mrf.mxu0  ;;  %v7267_v15 = vadd.f32 %v7247_v52, %v7149_v33  ;;  %v8082_v50 = vrot.slane %v8080_v1, 1  ;;  %v19079_v52 = vld [vmem:[%s26496_s5 + $0x180] sm:$0xff] }
 0x50b   :  { %8503 = vmatpush.bf16.msrb.mxu0 %v19079_v52 }
 0x50c   :  { %v7275_v34 = vadd.f32 %v24431_v54, %v7267_v15  ;;  %v8083_v39 = vsel %vm967_vm1, %v8078_v20, %v8082_v50  ;;  %v24463_v15 = vadd.f32 %v24359_v51, %v6752_v57  ;;  %v19096_v51 = vld [vmem:[%s26496_s5 + $0x1d0] sm:$0xff]  ;;  %v19095_v20 = vld [vmem:[%s26496_s5 + $0x1c8] sm:$0xff] }
 0x50d   :  { %v7252_v59 = vpop.f32.mrf.mxu1  ;;  %7811 = vmatmul.bf16.gmra.mxu0 %v7714_v13  ;;  %v6958_v27 = vpop.f32.mrf.mxu3  ;;  %v19098_v13 = vld [vmem:[%s26496_s5 + $0x1e0] sm:$0xff] }
 0x50e   :  { %v6977_v5 = vadd.f32 %v6958_v27, %v6865_v37  ;;  %v7283_v46 = vmax.f32 %v7275_v34, 0.0  ;;  %v7716_v37 = vsel %vm1267_vm0, %v7713_v53, %v7715_v49  ;;  %v24456_v27 = vld [vmem:[#allocation3 + $0x1c] sm:$0xff]   ;;  %8765 = vmatpush.bf16.msrb.mxu1 %v19098_v13 }
 0x50f   :  { %v20732_v13 = vld [vmem:[#allocation3 + $0x3c] sm:$0xff] }
 0x510   :  { %7955 = vmatmul.bf16.gmra.mxu1 %v20729_v60  ;;  %v24420_v26 = vpop.f32.mrf.mxu2  ;;  %v7150_v0 = vadd.f32 %v24350_v56, %v6977_v5  ;;  %v6576_v56 = vadd.f32 %v24220_v55, %v6464_v22  ;;  %v19097_v60 = vld [vmem:[%s26496_s5 + $0x1d8] sm:$0xff] }
 0x512   :  { %v24426_v38 = vpop.f32.mrf.mxu0  ;;  %v7268_v6 = vadd.f32 %v7249_v47, %v7150_v0  ;;  %7663 = vmatmul.bf16.gmra.mxu3 %v24196_v3  ;;  %v6749_v3 = vadd.f32 %v24272_v43, %v6576_v56  ;;  %v8084_v0 = vshrl.u32 %v24409_v18, 16  ;;  %8766 = vmatpush.bf16.msrb.mxu1 %v19097_v60  ;;  %v19108_v60 = vld [vmem:[%s26496_s5 + $0x230] sm:$0xff] }
 0x514   :  { %v7276_v11 = vadd.f32 %v24431_v54, %v7268_v6  ;;  %v6867_v43 = vadd.f32 %v24306_v9, %v6749_v3  ;;  %v6466_v9 = vadd.f32 %v24342_v44, %v24176_v41  ;;  %v8086_v6 = vor.u32 %v8084_v0, %v8082_v50 }
 0x515   :  { %v7254_v29 = vpop.f32.mrf.mxu1  ;;  %8201 = vmatmul.bf16.gmra.mxu2 %v8083_v39  ;;  %v6961_v4 = vpop.f32.mrf.mxu3 }
 0x516   :  { %v7284_v33 = vmax.f32 %v7276_v11, 0.0  ;;  %v6978_v25 = vadd.f32 %v6961_v4, %v24376_v63  ;;  %v19071_v63 = vld [vmem:[%s26496_s5 + $0x140] sm:$0xff]  ;;  %v6578_v41 = vadd.f32 %v24268_v48, %v6466_v9  ;;  %8767 = vmatpush.bf16.msrb.mxu1 %v19096_v51 }
 0x517   :  { %8354 = vmatpush.bf16.msrb.mxu3 %v19071_v63 }
 0x518   :  { %v19902_v47 = vpack.c.bf16 %v7284_v33, %v7283_v46  ;;  %v24440_v7 = vpop.f32.mrf.mxu2  ;;  %v7151_v21 = vadd.f32 %v24364_v45, %v6978_v25  ;;  %v8088_v45 = vshll.u32 %v24456_v27, 16  ;;  %v6751_v48 = vadd.f32 %v24316_v58, %v6578_v41  ;;  %v19094_v33 = vld [vmem:[%s26496_s5 + $0x1c0] sm:$0xff]  ;;  %v19109_v25 = vld [vmem:[%s26496_s5 + $0x238] sm:$0xff] }
 0x519   :  { %v19117_v58 = vld [vmem:[%s26496_s5 + $0x38] sm:$0xff]  ;;  %8921 = vmatpush.bf16.msra.mxu2 %v19109_v25 }
 0x51a   :  { %v24443_v55 = vpop.f32.mrf.mxu0  ;;  %20380 = vst [vmem:[#allocation3 + $0xc0] sm:$0xff] %v19902_v47   ;;  %v7269_v61 = vadd.f32 %v7252_v59, %v7151_v21  ;;  %v8090_v17 = vrot.slane %v8088_v45, 1  ;;  %8768 = vmatpush.bf16.msrb.mxu1 %v19095_v20  ;;  %v6869_v49 = vadd.f32 %v24347_v32, %v6751_v48  ;;  %9358 = vmatpush.bf16.msra.mxu0 %v19117_v58 }
 0x51c   :  { %v7277_v59 = vadd.f32 %v24431_v54, %v7269_v61 }
 0x51d   :  { %v7257_v1 = vpop.f32.mrf.mxu1  ;;  %7816 = vmatmul.bf16.gmra.mxu0 %v7716_v37  ;;  %v6963_v5 = vpop.f32.mrf.mxu3  ;;  %v6468_v37 = vadd.f32 %v24378_v24, %v24218_v19  ;;  %8922 = vmatpush.bf16.msra.mxu2 %v19108_v60 }
 0x51e   :  { %v6979_v53 = vadd.f32 %v6963_v5, %v6867_v43  ;;  %v7285_v11 = vmax.f32 %v7277_v59, 0.0  ;;  %8769 = vmatpush.bf16.msrb.mxu1 %v19094_v33  ;;  %v20972_v59 = vld [vmem:[#allocation3 + $0x10] sm:$0xff] }
 0x51f   :  { %v6580_v19 = vadd.f32 %v24312_v40, %v6468_v37 }
 0x520   :  { %7960 = vmatmul.bf16.gmra.mxu1 %v20731_v62  ;;  %v7541_v36 = vpop.f32.mrf.mxu2  ;;  %v7152_v22 = vadd.f32 %v24387_v12, %v6979_v53  ;;  %v8091_v12 = vsel %vm967_vm1, %v8086_v6, %v8090_v17  ;;  %v20433_v62 = vld [vmem:[#allocation3 + $0x8] sm:$0xff]  }
 0x521   :  { %v8641_v9 = vshll.u32 %v20433_v62, 16  ;;  %v6753_v41 = vadd.f32 %v24354_v35, %v6580_v19  ;;  %v19115_v19 = vld [vmem:[%s26496_s5 + $0x28] sm:$0xff] }
 0x522   :  { %v24472_v52 = vpop.f32.mrf.mxu0  ;;  %v7270_v34 = vadd.f32 %v7254_v29, %v7152_v22  ;;  %7668 = vmatmul.bf16.gmra.mxu3 %v24245_v8  ;;  %v19124_v22 = vld [vmem:[%s26496_s5 + $0x70] sm:$0xff] }
 0x524   :  { %v7278_v44 = vadd.f32 %v24431_v54, %v7270_v34  ;;  %v8646_v34 = vshll.u32 %v20972_v59, 16 }
 0x525   :  { %v7259_v18 = vpop.f32.mrf.mxu1  ;;  %8206 = vmatmul.bf16.gmra.mxu2 %v8091_v12  ;;  %v6966_v56 = vpop.f32.mrf.mxu3 }
 0x526   :  { %v7286_v39 = vmax.f32 %v7278_v44, 0.0  ;;  %v6980_v50 = vadd.f32 %v6966_v56, %v24413_v31  ;;  %v19125_v31 = vld [vmem:[%s26496_s5 + $0x78] sm:$0xff]  ;;  %v8643_v44 = vrot.slane %v8641_v9, 1  ;;  %v8639_v56 = vshrl.u32 %v20433_v62, 16 }
 0x527   :  { %9253 = vmatpush.bf16.msra.mxu3 %v19125_v31 }
 0x528   :  { %v19907_v29 = vpack.c.bf16 %v7286_v39, %v7285_v11  ;;  %v7544_v8 = vpop.f32.mrf.mxu2  ;;  %v7153_v46 = vadd.f32 %v24396_v23, %v6980_v50  ;;  %v24501_v23 = vld [vmem:[#allocation3 + $0x24] sm:$0xff]   ;;  %v8648_v11 = vrot.slane %v8646_v34, 1  ;;  %v6871_v39 = vadd.f32 %v24385_v10, %v6753_v41  ;;  %v19107_v10 = vld [vmem:[%s26496_s5 + $0x228] sm:$0xff] }
 0x529   :  { %v8096_v3 = vshll.u32 %v24501_v23, 16  ;;  %v8644_v35 = vor.u32 %v8643_v44, %v8639_v56  ;;  %v8100_v58 = vshrl.u32 %v24501_v23, 16  ;;  %8923 = vmatpush.bf16.msra.mxu2 %v19107_v10  ;;  %v26590_v10 = vld [vmem:[#allocation19_spill] sm:$0xff] }
 0x52a   :  { %v24484_v4 = vpop.f32.mrf.mxu0  ;;  %20381 = vst [vmem:[#allocation3 + $0xc8] sm:$0xff] %v19907_v29   ;;  %v7271_v63 = vadd.f32 %v7257_v1, %v7153_v46  ;;  %v20973_v29 = vld [vmem:[#allocation3 + $0x2c] sm:$0xff]  }
 0x52b   :  { %v8098_v45 = vrot.slane %v8096_v3, 1  ;;  %9254 = vmatpush.bf16.msra.mxu3 %v19124_v22  ;;  %v8104_v8 = vshll.u32 %v20973_v29, 16  ;;  %v8649_v25 = vsel %vm967_vm1, %v8644_v35, %v8648_v11 }
 0x52c   :  { %v7279_v1 = vadd.f32 %v24431_v54, %v7271_v63  ;;  %v26588_v63 = vld [vmem:[#allocation6_spill] sm:$0xff] }
 0x52d   :  { %v7262_v47 = vpop.f32.mrf.mxu1  ;;  %8504 = vmatmul.bf16.vlgmr.msrb.gmra.mxu0 %v23969_v2  ;;  %v6968_v21 = vpop.f32.mrf.mxu3  ;;  %v8092_v2 = vshrl.u32 %v24456_v27, 16 }
 0x52e   :  { %v6981_v57 = vadd.f32 %v6968_v21, %v6869_v49  ;;  %v7287_v0 = vmax.f32 %v7279_v1, 0.0  ;;  %v8106_v49 = vrot.slane %v8104_v8, 1 }
 0x52f   :  { %v8094_v53 = vor.u32 %v8092_v2, %v8090_v17 }
 0x530   :  { %7965 = vmatmul.bf16.gmra.mxu1 %v20732_v13  ;;  %v7546_v32 = vpop.f32.mrf.mxu2  ;;  %v7154_v43 = vadd.f32 %v24426_v38, %v6981_v57 }
 0x531   :  { %v8099_v38 = vsel %vm967_vm1, %v8094_v53, %v8098_v45  ;;  %v19123_v32 = vld [vmem:[%s26496_s5 + $0x68] sm:$0xff] }
 0x532   :  { %v24511_v5 = vpop.f32.mrf.mxu0  ;;  %v7272_v61 = vadd.f32 %v7259_v18, %v7154_v43  ;;  %7673 = vmatmul.bf16.gmra.mxu3 %v24301_v42  ;;  %v19116_v18 = vld [vmem:[%s26496_s5 + $0x30] sm:$0xff] }
 0x533   :  { %9359 = vmatpush.bf16.msra.mxu0 %v19116_v18  ;;  %9255 = vmatpush.bf16.msra.mxu3 %v19123_v32  ;;  %v26589_v18 = vld [vmem:[#allocation8_spill] sm:$0xff] }
 0x534   :  { %v7280_v24 = vadd.f32 %v24431_v54, %v7272_v61 }
 0x535   :  { %v7264_v27 = vpop.f32.mrf.mxu1  ;;  %8211 = vmatmul.bf16.gmra.mxu2 %v8099_v38  ;;  %v6971_v36 = vpop.f32.mrf.mxu3 }
 0x536   :  { %v7288_v51 = vmax.f32 %v7280_v24, 0.0  ;;  %v6982_v17 = vadd.f32 %v6971_v36, %v24463_v15  ;;  %v20427_v15 = vld [vmem:[#allocation3 + $0x10] sm:$0xff]   ;;  %v8650_v24 = vshrl.u32 %v20972_v59, 16  ;;  %v8108_v59 = vshrl.u32 %v20973_v29, 16 }
 0x537   :  { %9360 = vmatpush.bf16.msra.mxu0 %v19115_v19  ;;  %v20975_v36 = vld [vmem:[#allocation3 + $0x34] sm:$0xff]  }
 0x538   :  { %v19912_v40 = vpack.c.bf16 %v7288_v51, %v7287_v0  ;;  %v7549_v6 = vpop.f32.mrf.mxu2  ;;  %v7155_v20 = vadd.f32 %v24443_v55, %v6982_v17  ;;  %v8652_v9 = vor.u32 %v8650_v24, %v8648_v11  ;;  %v8112_v22 = vshll.u32 %v20975_v36, 16  ;;  %v19122_v11 = vld [vmem:[%s26496_s5 + $0x60] sm:$0xff] }
 0x539   :  { %v19106_v6 = vld [vmem:[%s26496_s5 + $0x220] sm:$0xff]  ;;  %v8110_v44 = vor.u32 %v8108_v59, %v8106_v49  ;;  %9256 = vmatpush.bf16.msra.mxu3 %v19122_v11  ;;  %v19120_v11 = vld [vmem:[%s26496_s5 + $0x50] sm:$0xff] }
 0x53a   :  { %v24523_v12 = vpop.f32.mrf.mxu0  ;;  %20382 = vst [vmem:[#allocation3 + $0xd0] sm:$0xff] %v19912_v40   ;;  %v7273_v46 = vadd.f32 %v7262_v47, %v7155_v20  ;;  %v8102_v47 = vor.u32 %v8100_v58, %v8098_v45  ;;  %v20974_v45 = vld [vmem:[#allocation3 + $0x18] sm:$0xff]  ;;  %v8114_v40 = vrot.slane %v8112_v22, 1  ;;  %8924 = vmatpush.bf16.msra.mxu2 %v19106_v6  ;;  %v26592_v6 = vld [vmem:[#allocation20_spill] sm:$0xff] }
 0x53b   :  { %v8654_v62 = vshll.u32 %v20974_v45, 16  ;;  %v19103_v58 = vld [vmem:[%s26496_s5 + $0x208] sm:$0xff] }
 0x53c   :  { %v7281_v21 = vadd.f32 %v24431_v54, %v7273_v46  ;;  %v8107_v37 = vsel %vm967_vm1, %v8102_v47, %v8106_v49 }
 0x53d   :  { %v24530_v50 = vpop.f32.mrf.mxu1  ;;  %8509 = vmatmul.bf16.gmra.mxu0 %v20427_v15  ;;  %v6973_v48 = vpop.f32.mrf.mxu3  ;;  %v8656_v38 = vrot.slane %v8654_v62, 1  ;;  %v19121_v62 = vld [vmem:[%s26496_s5 + $0x58] sm:$0xff] }
 0x53e   :  { %v6983_v33 = vadd.f32 %v6973_v48, %v6871_v39  ;;  %v7289_v43 = vmax.f32 %v7281_v21, 0.0  ;;  %v20976_v39 = vld [vmem:[#allocation3 + $0x20] sm:$0xff]  ;;  %9257 = vmatpush.bf16.msra.mxu3 %v19121_v62 }
 0x53f   :  { %v8657_v51 = vsel %vm967_vm1, %v8652_v9, %v8656_v38  ;;  %v8662_v35 = vshll.u32 %v20976_v39, 16  ;;  %v19104_v48 = vld [vmem:[%s26496_s5 + $0x210] sm:$0xff]  ;;  %v19113_v9 = vld [vmem:[%s26496_s5 + $0x18] sm:$0xff]  ;;  %v8666_v22 = vshrl.u32 %v20976_v39, 16 }
 0x540   :  { %8770 = vmatmul.bf16.vlgmr.msrb.gmra.mxu1 %v8649_v25  ;;  %v24533_v31 = vpop.f32.mrf.mxu2  ;;  %v7156_v55 = vadd.f32 %v24472_v52, %v6983_v33  ;;  %v19114_v33 = vld [vmem:[%s26496_s5 + $0x20] sm:$0xff]  ;;  %v8658_v25 = vshrl.u32 %v20974_v45, 16 }
 0x541   :  { %9361 = vmatpush.bf16.msra.mxu0 %v19114_v33  ;;  %v20978_v39 = vld [vmem:[#allocation3 + $0x30] sm:$0xff]  ;;  %v19112_v33 = vld [vmem:[%s26496_s5 + $0x10] sm:$0xff] }
 0x542   :  { %v7789_v3 = vpop.f32.mrf.mxu0  ;;  %v7274_v13 = vadd.f32 %v7264_v27, %v7156_v55  ;;  %8355 = vmatmul.bf16.vlgmr.msrb.gmra.mxu3 %v26588_v63  ;;  %v20428_v27 = vld [vmem:[#allocation3 + $0x18] sm:$0xff]   ;;  %v8664_v55 = vrot.slane %v8662_v35, 1  ;;  %v8660_v49 = vor.u32 %v8658_v25, %v8656_v38  ;;  %v8116_v63 = vshrl.u32 %v20975_v36, 16 }
 0x543   :  { %v8120_v3 = vshll.u32 %v26590_v10, 16  ;;  %v8678_v35 = vshll.u32 %v20978_v39, 16  ;;  %9258 = vmatpush.bf16.msra.mxu3 %v19120_v11  ;;  %v20981_v11 = vld [vmem:[#allocation3 + $0x40] sm:$0xff] }
 0x544   :  { %v7282_v57 = vadd.f32 %v24431_v54, %v7274_v13  ;;  %v8665_v13 = vsel %vm967_vm1, %v8660_v49, %v8664_v55  ;;  %v8118_v32 = vor.u32 %v8116_v63, %v8114_v40 }
 0x545   :  { %v24544_v52 = vpop.f32.mrf.mxu1  ;;  %8216 = vmatmul.bf16.gmra.mxu2 %v8107_v37  ;;  %v7639_v23 = vpop.f32.mrf.mxu3  ;;  %v19102_v37 = vld [vmem:[%s26496_s5 + $0x200] sm:$0xff]  ;;  %9362 = vmatpush.bf16.msra.mxu0 %v19113_v9 }
 0x546   :  { %v7290_v2 = vmax.f32 %v7282_v57, 0.0  ;;  %v7640_v60 = vadd.f32 %v7639_v23, %v24393_v14  ;;  %v8122_v57 = vrot.slane %v8120_v3, 1 }
 0x548   :  { %v19917_v1 = vpack.c.bf16 %v7290_v2, %v7289_v43  ;;  %v24550_v61 = vpop.f32.mrf.mxu2  ;;  %v24553_v54 = vadd.f32 %v24484_v4, %v7640_v60  ;;  %v26591_v43 = vld [vmem:[#allocation10_spill] sm:$0xff]  ;;  %v8123_v2 = vsel %vm967_vm1, %v8118_v32, %v8122_v57  ;;  %v26595_v32 = vld [vmem:[#allocation7_spill] sm:$0xff] }
 0x549   :  { %9363 = vmatpush.bf16.msra.mxu0 %v19112_v33  ;;  %v19128_v33 = vld [vmem:[%s26496_s5 + $0x90] sm:$0xff] }
 0x54a   :  { %v7792_v53 = vpop.f32.mrf.mxu0  ;;  %20383 = vst [vmem:[#allocation3 + $0xd8] sm:$0xff] %v19917_v1   ;;  %v24603_v1 = vadd.f32 %v24530_v50, %v24553_v54  ;;  %v20430_v54 = vld [vmem:[#allocation3 + $0x28] sm:$0xff]  }
 0x54b   :  { %v20977_v53 = vld [vmem:[#allocation3 + $0x28] sm:$0xff] }
 0x54c   :  { %v8670_v19 = vshll.u32 %v20977_v53, 16  ;;  %v8674_v25 = vshrl.u32 %v20977_v53, 16  ;;  %v20979_v53 = vld [vmem:[#allocation3 + $0x38] sm:$0xff] }
 0x54d   :  { %v24558_v14 = vpop.f32.mrf.mxu1  ;;  %8514 = vmatmul.bf16.gmra.mxu0 %v20428_v27  ;;  %v7641_v0 = vpop.f32.mrf.mxu3  ;;  %v19133_v27 = vld [vmem:[%s26496_s5 + $0xb8] sm:$0xff] }
 0x54e   :  { %v7642_v4 = vadd.f32 %v7641_v0, %v24420_v26  ;;  %v8115_v26 = vsel %vm967_vm1, %v8110_v44, %v8114_v40  ;;  %v8672_v50 = vrot.slane %v8670_v19, 1  ;;  %9500 = vmatpush.bf16.msra.mxu1 %v19133_v27  ;;  %v8124_v40 = vshrl.u32 %v26590_v10, 16 }
 0x550   :  { %8775 = vmatmul.bf16.gmra.mxu1 %v8657_v51  ;;  %v24562_v17 = vpop.f32.mrf.mxu2  ;;  %v7823_v34 = vadd.f32 %v24511_v5, %v7642_v4  ;;  %v19105_v5 = vld [vmem:[%s26496_s5 + $0x218] sm:$0xff]  ;;  %v8668_v4 = vor.u32 %v8666_v22, %v8664_v55  ;;  %v8680_v55 = vrot.slane %v8678_v35, 1  ;;  %v19131_v22 = vld [vmem:[%s26496_s5 + $0xa8] sm:$0xff] }
 0x551   :  { %8925 = vmatpush.bf16.msra.mxu2 %v19105_v5 }
 0x552   :  { %v7794_v41 = vpop.f32.mrf.mxu0  ;;  %8360 = vmatmul.bf16.gmra.mxu3 %v26589_v18  ;;  %v24614_v36 = vadd.f32 %v24544_v52, %v7823_v34  ;;  %v8673_v59 = vsel %vm967_vm1, %v8668_v4, %v8672_v50  ;;  %v8126_v18 = vor.u32 %v8124_v40, %v8122_v57 }
 0x553   :  { %v8128_v41 = vshll.u32 %v26592_v6, 16 }
 0x555   :  { %v7938_v20 = vpop.f32.mrf.mxu1  ;;  %8221 = vmatmul.bf16.gmra.mxu2 %v8115_v26  ;;  %v7644_v56 = vpop.f32.mrf.mxu3  ;;  %v8130_v34 = vrot.slane %v8128_v41, 1  ;;  %v26593_v26 = vld [vmem:[#allocation12_spill] sm:$0xff] }
 0x556   :  { %v7645_v15 = vadd.f32 %v7644_v56, %v24440_v7  ;;  %v20429_v7 = vld [vmem:[#allocation3 + $0x20] sm:$0xff]   ;;  %8926 = vmatpush.bf16.msra.mxu2 %v19104_v48 }
 0x557   :  { %v8131_v20 = vsel %vm967_vm1, %v8126_v18, %v8130_v34  ;;  %v19130_v18 = vld [vmem:[%s26496_s5 + $0xa0] sm:$0xff] }
 0x558   :  { %v7559_v29 = vpop.f32.mrf.mxu2  ;;  %v24578_v8 = vadd.f32 %v24523_v12, %v7645_v15 }
 0x55a   :  { %v7797_v46 = vpop.f32.mrf.mxu0  ;;  %8927 = vmatpush.bf16.msra.mxu2 %v19103_v58  ;;  %v24630_v15 = vadd.f32 %v24558_v14, %v24578_v8  ;;  %v20434_v58 = vld [vmem:[#allocation3 + $0x8] sm:$0xf0]  ;;  %v20435_v14 = vld [vmem:[#allocation3 + $0x8] sm:$0xe] }
 0x55b   :  { %v19132_v46 = vld [vmem:[%s26496_s5 + $0xb0] sm:$0xff] }
 0x55c   :  { %9501 = vmatpush.bf16.msra.mxu1 %v19132_v46 }
 0x55d   :  { %v7941_v12 = vpop.f32.mrf.mxu1  ;;  %8519 = vmatmul.bf16.gmra.mxu0 %v20429_v7  ;;  %v7646_v21 = vpop.f32.mrf.mxu3  ;;  %v20431_v7 = vld [vmem:[#allocation3 + $0x30] sm:$0xff]  }
 0x55e   :  { %8928 = vmatpush.bf16.msra.mxu2 %v19102_v37  ;;  %v8676_v12 = vor.u32 %v8674_v25, %v8672_v50  ;;  %v20436_v21 = vor.u32 %v20435_v14, %v20434_v58  ;;  %v26594_v37 = vld [vmem:[#allocation14_spill] sm:$0xff]  ;;  %v19111_v50 = vld [vmem:[%s26496_s5 + $0x8] sm:$0xff]  ;;  %v8690_v14 = vshrl.u32 %v20979_v53, 16 }
 0x55f   :  { %9364 = vmatpush.bf16.msra.mxu0 %v19111_v50  ;;  %v8698_v50 = vshrl.u32 %v20981_v11, 16 }
 0x560   :  { %8780 = vmatmul.bf16.gmra.mxu1 %v8665_v13  ;;  %v7561_v47 = vpop.f32.mrf.mxu2  ;;  %v8681_v3 = vsel %vm967_vm1, %v8676_v12, %v8680_v55  ;;  %v8848_v57 = vrot.slane %v20436_v21, 1 }
 0x561   :  { %9502 = vmatpush.bf16.msra.mxu1 %v19131_v22 }
 0x562   :  { %v24594_v23 = vpop.f32.mrf.mxu0  ;;  %8365 = vmatmul.bf16.gmra.mxu3 %v26591_v43  ;;  %v26596_v43 = vrot.slane %v26595_v32, 1 }
 0x565   :  { %v7943_v60 = vpop.f32.mrf.mxu1  ;;  %8226 = vmatmul.bf16.gmra.mxu2 %v8123_v2  ;;  %v7649_v45 = vpop.f32.mrf.mxu3  ;;  %v8850_v2 = vsel %vm1267_vm0, %v8848_v57, %v26596_v43  ;;  %9503 = vmatpush.bf16.msra.mxu1 %v19130_v18  ;;  %v19141_v57 = vld [vmem:[%s26496_s5 + $0xf8] sm:$0xff]  ;;  %v26602_v43 = vld [vmem:[#allocation11_spill] sm:$0xff] }
 0x566   :  { %v19119_v45 = vld [vmem:[%s26496_s5 + $0x48] sm:$0xff]  ;;  %9648 = vmatpush.bf16.msrb.mxu2 %v19141_v57  ;;  %v26605_v18 = vld [vmem:[#allocation13_spill] sm:$0xff] }
 0x567   :  { %9259 = vmatpush.bf16.msra.mxu3 %v19119_v45  ;;  %v19139_v57 = vld [vmem:[%s26496_s5 + $0xe8] sm:$0xff] }
 0x568   :  { %v7564_v24 = vpop.f32.mrf.mxu2 }
 0x56a   :  { %v24605_v38 = vpop.f32.mrf.mxu0 }
 0x56d   :  { %v7946_v0 = vpop.f32.mrf.mxu1  ;;  %8524 = vmatmul.bf16.gmra.mxu0 %v20430_v54  ;;  %v7651_v51 = vpop.f32.mrf.mxu3 }
 0x570   :  { %8785 = vmatmul.bf16.gmra.mxu1 %v8673_v59  ;;  %v7566_v44 = vpop.f32.mrf.mxu2 }
 0x572   :  { %v24619_v52 = vpop.f32.mrf.mxu0  ;;  %8370 = vmatmul.bf16.gmra.mxu3 %v26593_v26 }
 0x575   :  { %v24623_v56 = vpop.f32.mrf.mxu1  ;;  %8231 = vmatmul.bf16.gmra.mxu2 %v8131_v20  ;;  %v7654_v5 = vpop.f32.mrf.mxu3  ;;  %v19129_v20 = vld [vmem:[%s26496_s5 + $0x98] sm:$0xff] }
 0x576   :  { %9504 = vmatpush.bf16.msra.mxu1 %v19129_v20 }
 0x578   :  { %v24632_v29 = vpop.f32.mrf.mxu2 }
 0x57a   :  { %v7807_v48 = vpop.f32.mrf.mxu0  ;;  %9505 = vmatpush.bf16.msra.mxu1 %v19128_v33 }
 0x57d   :  { %v24640_v8 = vpop.f32.mrf.mxu1  ;;  %8529 = vmatmul.bf16.gmra.mxu0 %v20431_v7  ;;  %v7656_v49 = vpop.f32.mrf.mxu3 }
 0x57e   :  { %v7657_v10 = vadd.f32 %v7656_v49, %v24533_v31 }
 0x580   :  { %8790 = vmatmul.bf16.gmra.mxu1 %v8681_v3  ;;  %v24644_v13 = vpop.f32.mrf.mxu2  ;;  %v7829_v47 = vadd.f32 %v24594_v23, %v7657_v10  ;;  %v8686_v23 = vshll.u32 %v20979_v53, 16 }
 0x582   :  { %v7809_v63 = vpop.f32.mrf.mxu0  ;;  %8375 = vmatmul.bf16.gmra.mxu3 %v26594_v37  ;;  %v8688_v54 = vrot.slane %v8686_v23, 1  ;;  %v24697_v25 = vadd.f32 %v24623_v56, %v7829_v47  ;;  %v19126_v47 = vld [vmem:[%s26496_s5 + $0x80] sm:$0xff]  ;;  %v26601_v37 = vld [vmem:[#allocation21_spill] sm:$0xff] }
 0x584   :  { %v8692_v10 = vor.u32 %v8690_v14, %v8688_v54 }
 0x585   :  { %v24651_v60 = vpop.f32.mrf.mxu1  ;;  %8929 = vmatmul.bf16.vlgmr.msra.gmra.mxu2 %v8850_v2  ;;  %v7659_v31 = vpop.f32.mrf.mxu3 }
 0x586   :  { %v7660_v62 = vadd.f32 %v7659_v31, %v24550_v61  ;;  %v8682_v61 = vshrl.u32 %v20978_v39, 16  ;;  %v8694_v39 = vshll.u32 %v20981_v11, 16  ;;  %v19149_v31 = vld [vmem:[%s26496_s5 + $0x138] sm:$0xff] }
 0x588   :  { %v8197_v19 = vpop.f32.mrf.mxu2  ;;  %v24658_v24 = vadd.f32 %v24605_v38, %v7660_v62  ;;  %v19110_v38 = vld [vmem:[%s26496_s5] sm:$0xff]  ;;  %v8696_v12 = vrot.slane %v8694_v39, 1  ;;  %v26603_v62 = vld [vmem:[#allocation24_spill] sm:$0xff] }
 0x589   :  { %v24661_v27 = vadd.f32 %v8197_v19, %v24603_v1  ;;  %v8684_v1 = vor.u32 %v8682_v61, %v8680_v55  ;;  %9365 = vmatpush.bf16.msra.mxu0 %v19110_v38  ;;  %v26599_v55 = vld [vmem:[#allocation18_spill] sm:$0xff]  ;;  %v8702_v53 = vshll.u32 %v26603_v62, 16 }
 0x58a   :  { %v7812_v9 = vpop.f32.mrf.mxu0  ;;  %v26600_v7 = vunpack.c.l.b16 %v26599_v55  ;;  %v8697_v21 = vsel %vm967_vm1, %v8692_v10, %v8696_v12  ;;  %v24720_v45 = vadd.f32 %v24640_v8, %v24658_v24  ;;  %v8700_v24 = vor.u32 %v8698_v50, %v8696_v12 }
 0x58b   :  { %v8689_v59 = vsel %vm967_vm1, %v8684_v1, %v8688_v54  ;;  %v19157_v9 = vld [vmem:[%s26496_s5 + $0x178] sm:$0xff]  ;;  %v8704_v61 = vrot.slane %v8702_v53, 1  ;;  %v24731_v54 = vld [vmem:[#allocation3 + $0x40] sm:$0xff]  }
 0x58c   :  { %v9132_v20 = vshll.u32 %v24731_v54, 16  ;;  %v19155_v53 = vld [vmem:[%s26496_s5 + $0x168] sm:$0xff] }
 0x58d   :  { %v7956_v0 = vpop.f32.mrf.mxu1  ;;  %8534 = vmatmul.bf16.gmra.mxu0 %v24301_v42  ;;  %v7661_v4 = vpop.f32.mrf.mxu3  ;;  %v26597_v42 = vld [vmem:[#allocation16_spill] sm:$0xff] }
 0x58e   :  { %v7662_v51 = vadd.f32 %v7661_v4, %v24562_v17  ;;  %v26598_v17 = vld [vmem:[#allocation9_spill] sm:$0xff]  ;;  %10071 = vmatpush.bf16.msrb.mxu0 %v19157_v9  ;;  %v8705_v0 = vsel %vm967_vm1, %v8700_v24, %v8704_v61  ;;  %v9134_v33 = vrot.slane %v9132_v20, 1  ;;  %v24819_v20 = vld [vmem:[#allocation3 + $0x58] sm:$0xff]  }
 0x590   :  { %8795 = vmatmul.bf16.gmra.mxu1 %v8689_v59  ;;  %v8199_v40 = vpop.f32.mrf.mxu2  ;;  %v7831_v6 = vadd.f32 %v24619_v52, %v7662_v51  ;;  %v20980_v52 = vld [vmem:[#allocation3 + $0x40] sm:$0xff]   ;;  %v26604_v59 = vld [vmem:[#allocation22_spill] sm:$0xff] }
 0x591   :  { %v24677_v41 = vadd.f32 %v8199_v40, %v24614_v36  ;;  %v19118_v36 = vld [vmem:[%s26496_s5 + $0x40] sm:$0xff]  ;;  %v8431_v5 = vunpack.c.h.b16 %v20980_v52  ;;  %v9407_v51 = vld [vmem:[#allocation3 + $0x40] sm:$0xe]  ;;  %v19986_v40 = vunpack.c.h.b16 %v24731_v54 }
 0x592   :  { %v7814_v44 = vpop.f32.mrf.mxu0  ;;  %8380 = vmatmul.bf16.gmra.mxu3 %v26597_v42  ;;  %v24729_v22 = vadd.f32 %v24651_v60, %v7831_v6  ;;  %v19140_v60 = vld [vmem:[%s26496_s5 + $0xf0] sm:$0xff] }
 0x593   :  { %9260 = vmatpush.bf16.msra.mxu3 %v19118_v36  ;;  %v8439_v58 = vpack.c.b16 %v8431_v5, %v26600_v7  ;;  %9649 = vmatpush.bf16.msrb.mxu2 %v19140_v60  ;;  %v9425_v44 = vunpack.c.l.b16 %v9407_v51  ;;  %v9130_v7 = vshrl.u32 %v24731_v54, 16 }
 0x595   :  { %v7958_v34 = vpop.f32.mrf.mxu1  ;;  %8934 = vmatmul.bf16.gmra.mxu2 %v26598_v17  ;;  %v7664_v26 = vpop.f32.mrf.mxu3  ;;  %v9426_v5 = vpack.c.b16 %v19986_v40, %v9425_v44  ;;  %v9135_v10 = vor.u32 %v9134_v33, %v9130_v7 }
 0x596   :  { %v19148_v34 = vld [vmem:[%s26496_s5 + $0x130] sm:$0xff] }
 0x597   :  { %9913 = vmatpush.bf16.msrb.mxu3 %v19149_v31  ;;  %v24751_v26 = vld [vmem:[#allocation3 + $0x48] sm:$0xff]   ;;  %9650 = vmatpush.bf16.msrb.mxu2 %v19139_v57 }
 0x598   :  { %v8202_v35 = vpop.f32.mrf.mxu2  ;;  %v9137_v39 = vshll.u32 %v24751_v26, 16  ;;  %v9141_v61 = vshrl.u32 %v24751_v26, 16 }
 0x599   :  { %v24691_v48 = vadd.f32 %v8202_v35, %v24630_v15  ;;  %v19127_v15 = vld [vmem:[%s26496_s5 + $0x88] sm:$0xff]  ;;  %v19156_v35 = vld [vmem:[%s26496_s5 + $0x170] sm:$0xff] }
 0x59a   :  { %v7817_v46 = vpop.f32.mrf.mxu0  ;;  %9506 = vmatpush.bf16.msra.mxu1 %v19127_v15  ;;  %10072 = vmatpush.bf16.msrb.mxu0 %v19156_v35  ;;  %v9139_v14 = vrot.slane %v9137_v39, 1  ;;  %v9153_v39 = vshll.u32 %v24819_v20, 16  ;;  %v19136_v35 = vld [vmem:[%s26496_s5 + $0xd0] sm:$0xff] }
 0x59b   :  { %9914 = vmatpush.bf16.msrb.mxu3 %v19148_v34  ;;  %v19137_v34 = vld [vmem:[%s26496_s5 + $0xd8] sm:$0xff] }
 0x59d   :  { %v7961_v49 = vpop.f32.mrf.mxu1  ;;  %8539 = vmatmul.bf16.gmra.mxu0 %v8439_v58  ;;  %v7666_v3 = vpop.f32.mrf.mxu3 }
 0x59e   :  { %9507 = vmatpush.bf16.msra.mxu1 %v19126_v47  ;;  %v9140_v47 = vsel %vm967_vm1, %v9135_v10, %v9139_v14  ;;  %10073 = vmatpush.bf16.msrb.mxu0 %v19155_v53 }
 0x5a0   :  { %8800 = vmatmul.bf16.gmra.mxu1 %v8697_v21  ;;  %v8204_v63 = vpop.f32.mrf.mxu2 }
 0x5a2   :  { %v24705_v56 = vpop.f32.mrf.mxu0  ;;  %8385 = vmatmul.bf16.gmra.mxu3 %v26601_v37  ;;  %v26606_v37 = vld [vmem:[#allocation15_spill] sm:$0xff] }
 0x5a5   :  { %v7963_v32 = vpop.f32.mrf.mxu1  ;;  %8939 = vmatmul.bf16.gmra.mxu2 %v26602_v43  ;;  %v7669_v2 = vpop.f32.mrf.mxu3 }
 0x5a8   :  { %v8207_v23 = vpop.f32.mrf.mxu2 }
 0x5aa   :  { %v24723_v19 = vpop.f32.mrf.mxu0 }
 0x5ad   :  { %v24733_v8 = vpop.f32.mrf.mxu1  ;;  %9366 = vmatmul.bf16.vlgmr.msra.gmra.mxu0 %v24731_v54  ;;  %v7671_v38 = vpop.f32.mrf.mxu3  ;;  %v19143_v54 = vld [vmem:[%s26496_s5 + $0x108] sm:$0xff] }
 0x5ae   :  { %v9143_v38 = vor.u32 %v9141_v61, %v9139_v14  ;;  %v9155_v14 = vrot.slane %v9153_v39, 1  ;;  %v9157_v61 = vshrl.u32 %v24819_v20, 16  ;;  %v19144_v39 = vld [vmem:[%s26496_s5 + $0x110] sm:$0xff] }
 0x5b0   :  { %8805 = vmatmul.bf16.gmra.mxu1 %v8705_v0  ;;  %v8209_v1 = vpop.f32.mrf.mxu2 }
 0x5b2   :  { %v24737_v4 = vpop.f32.mrf.mxu0  ;;  %8390 = vmatmul.bf16.gmra.mxu3 %v26604_v59  ;;  %v19138_v59 = vld [vmem:[%s26496_s5 + $0xe0] sm:$0xff] }
 0x5b3   :  { %9651 = vmatpush.bf16.msrb.mxu2 %v19138_v59 }
 0x5b5   :  { %v24744_v6 = vpop.f32.mrf.mxu1  ;;  %8944 = vmatmul.bf16.gmra.mxu2 %v26605_v18  ;;  %v7674_v42 = vpop.f32.mrf.mxu3  ;;  %v26607_v18 = vld [vmem:[#allocation17_spill] sm:$0xff] }
 0x5b6   :  { %v7675_v17 = vadd.f32 %v7674_v42, %v24632_v29  ;;  %v9428_v29 = vrot.slane %v24751_v26, 1 }
 0x5b7   :  { %9652 = vmatpush.bf16.msrb.mxu2 %v19137_v34 }
 0x5b8   :  { %v8212_v36 = vpop.f32.mrf.mxu2  ;;  %v7836_v52 = vadd.f32 %v7817_v46, %v7675_v17  ;;  %v9427_v46 = vrot.slane %v9426_v5, 1 }
 0x5ba   :  { %v24756_v11 = vpop.f32.mrf.mxu0  ;;  %v9429_v49 = vsel %vm1267_vm0, %v9427_v46, %v9428_v29  ;;  %v7985_v17 = vadd.f32 %v24733_v8, %v7836_v52  ;;  %v9432_v8 = vrot.slane %v24819_v20, 1  ;;  %v19135_v52 = vld [vmem:[%s26496_s5 + $0xc8] sm:$0xff] }
 0x5bb   :  { %9653 = vmatpush.bf16.msrb.mxu2 %v19136_v35 }
 0x5bd   :  { %v24763_v55 = vpop.f32.mrf.mxu1  ;;  %9371 = vmatmul.bf16.gmra.mxu0 %v24751_v26  ;;  %v7676_v58 = vpop.f32.mrf.mxu3 }
 0x5be   :  { %v7677_v12 = vadd.f32 %v7676_v58, %v24644_v13 }
 0x5bf   :  { %9654 = vmatpush.bf16.msrb.mxu2 %v19135_v52 }
 0x5c0   :  { %9508 = vmatmul.bf16.vlgmr.msra.gmra.mxu1 %v9429_v49  ;;  %v8214_v15 = vpop.f32.mrf.mxu2  ;;  %v7837_v3 = vadd.f32 %v24705_v56, %v7677_v12  ;;  %v24785_v56 = vld [vmem:[#allocation3 + $0x50] sm:$0xff]  }
 0x5c1   :  { %v24771_v21 = vadd.f32 %v8214_v15, %v24697_v25  ;;  %v19147_v25 = vld [vmem:[%s26496_s5 + $0x128] sm:$0xff]  ;;  %v9145_v62 = vshll.u32 %v24785_v56, 16  ;;  %v9430_v23 = vrot.slane %v24785_v56, 1  ;;  %v9149_v7 = vshrl.u32 %v24785_v56, 16 }
 0x5c2   :  { %v8512_v63 = vpop.f32.mrf.mxu0  ;;  %9261 = vmatmul.bf16.vlgmr.msra.gmra.mxu3 %v9140_v47  ;;  %v24829_v33 = vadd.f32 %v24744_v6, %v7837_v3  ;;  %v19134_v3 = vld [vmem:[%s26496_s5 + $0xc0] sm:$0xff]  ;;  %v26608_v47 = vld [vmem:[#allocation23_spill] sm:$0xff] }
 0x5c3   :  { %9915 = vmatpush.bf16.msrb.mxu3 %v19147_v25  ;;  %v9431_v24 = vsel %vm1267_vm0, %v9428_v29, %v9430_v23  ;;  %v19154_v29 = vld [vmem:[%s26496_s5 + $0x160] sm:$0xff]  ;;  %v9433_v12 = vsel %vm1267_vm0, %v9430_v23, %v9432_v8  ;;  %9655 = vmatpush.bf16.msrb.mxu2 %v19134_v3  ;;  %v24848_v25 = vld [vmem:[#allocation3 + $0x60] sm:$0xff]  }
 0x5c4   :  { %10074 = vmatpush.bf16.msrb.mxu0 %v19154_v29  ;;  %v9434_v53 = vrot.slane %v24848_v25, 1  ;;  %v19164_v3 = vld [vmem:[%s26496_s5 + $0x1b0] sm:$0xff] }
 0x5c5   :  { %v24777_v13 = vpop.f32.mrf.mxu1  ;;  %8949 = vmatmul.bf16.gmra.mxu2 %v26606_v37  ;;  %v24780_v32 = vpop.f32.mrf.mxu3  ;;  %v19145_v37 = vld [vmem:[%s26496_s5 + $0x118] sm:$0xff] }
 0x5c8   :  { %v8217_v43 = vpop.f32.mrf.mxu2 }
 0x5c9   :  { %v24788_v2 = vadd.f32 %v8217_v43, %v24720_v45  ;;  %v9147_v45 = vrot.slane %v9145_v62, 1  ;;  %v9161_v62 = vshll.u32 %v24848_v25, 16 }
 0x5ca   :  { %v8515_v31 = vpop.f32.mrf.mxu0 }
 0x5cb   :  { %v9148_v60 = vsel %vm967_vm1, %v9143_v38, %v9147_v45  ;;  %v9151_v6 = vor.u32 %v9149_v7, %v9147_v45  ;;  %v9435_v38 = vsel %vm1267_vm0, %v9432_v8, %v9434_v53 }
 0x5cd   :  { %v24795_v9 = vpop.f32.mrf.mxu1  ;;  %9376 = vmatmul.bf16.gmra.mxu0 %v24785_v56  ;;  %v24798_v50 = vpop.f32.mrf.mxu3  ;;  %v9156_v15 = vsel %vm967_vm1, %v9151_v6, %v9155_v14 }
 0x5d0   :  { %9513 = vmatmul.bf16.gmra.mxu1 %v9431_v24  ;;  %v8219_v0 = vpop.f32.mrf.mxu2  ;;  %v9163_v24 = vrot.slane %v9161_v62, 1 }
 0x5d1   :  { %v24803_v1 = vadd.f32 %v8219_v0, %v24729_v22  ;;  %v19146_v22 = vld [vmem:[%s26496_s5 + $0x120] sm:$0xff]  ;;  %v9159_v0 = vor.u32 %v9157_v61, %v9155_v14 }
 0x5d2   :  { %v8517_v51 = vpop.f32.mrf.mxu0  ;;  %9266 = vmatmul.bf16.gmra.mxu3 %v9148_v60  ;;  %v19153_v60 = vld [vmem:[%s26496_s5 + $0x158] sm:$0xff] }
 0x5d3   :  { %9916 = vmatpush.bf16.msrb.mxu3 %v19146_v22  ;;  %v19165_v51 = vld [vmem:[%s26496_s5 + $0x1b8] sm:$0xff]  ;;  %10075 = vmatpush.bf16.msrb.mxu0 %v19153_v60 }
 0x5d4   :  { %10219 = vmatpush.bf16.msrb.mxu1 %v19165_v51  ;;  %v26609_v22 = vld [vmem:[#allocation25_spill] sm:$0xff] }
 0x5d5   :  { %v8778_v44 = vpop.f32.mrf.mxu1  ;;  %8954 = vmatmul.bf16.gmra.mxu2 %v26607_v18  ;;  %v24810_v42 = vpop.f32.mrf.mxu3  ;;  %v9164_v18 = vsel %vm967_vm1, %v9159_v0, %v9163_v24 }
 0x5d7   :  { %9917 = vmatpush.bf16.msrb.mxu3 %v19145_v37 }
 0x5d8   :  { %v8222_v36 = vpop.f32.mrf.mxu2  ;;  %10220 = vmatpush.bf16.msrb.mxu1 %v19164_v3 }
 0x5da   :  { %v8520_v5 = vpop.f32.mrf.mxu0 }
 0x5db   :  { %v24869_v5 = vld [vmem:[#allocation3 + $0x68] sm:$0xff]   ;;  %9918 = vmatpush.bf16.msrb.mxu3 %v19144_v39 }
 0x5dc   :  { %v9169_v52 = vshll.u32 %v24869_v5, 16  ;;  %v9173_v51 = vshrl.u32 %v24869_v5, 16 }
 0x5dd   :  { %v8781_v46 = vpop.f32.mrf.mxu1  ;;  %9381 = vmatmul.bf16.gmra.mxu0 %v24819_v20  ;;  %v8363_v58 = vpop.f32.mrf.mxu3 }
 0x5de   :  { %v9436_v46 = vrot.slane %v24869_v5, 1  ;;  %v9165_v58 = vshrl.u32 %v24848_v25, 16 }
 0x5df   :  { %9919 = vmatpush.bf16.msrb.mxu3 %v19143_v54  ;;  %v19161_v54 = vld [vmem:[%s26496_s5 + $0x198] sm:$0xff] }
 0x5e0   :  { %9518 = vmatmul.bf16.gmra.mxu1 %v9433_v12  ;;  %v8224_v49 = vpop.f32.mrf.mxu2  ;;  %v9171_v12 = vrot.slane %v9169_v52, 1  ;;  %v9437_v6 = vsel %vm1267_vm0, %v9434_v53, %v9436_v46 }
 0x5e1   :  { %v8396_v49 = vadd.f32 %v24780_v32, %v24661_v27 }
 0x5e2   :  { %v24838_v10 = vpop.f32.mrf.mxu0  ;;  %9271 = vmatmul.bf16.gmra.mxu3 %v9156_v15  ;;  %v9167_v15 = vor.u32 %v9165_v58, %v9163_v24 }
 0x5e3   :  { %v8545_v27 = vadd.f32 %v24723_v19, %v8396_v49  ;;  %v24916_v19 = vld [vmem:[%s26497_s6] ss:$0 sm:$0xff] }
 0x5e5   :  { %v8783_v63 = vpop.f32.mrf.mxu1  ;;  %8959 = vmatmul.bf16.gmra.mxu2 %v26608_v47  ;;  %v8366_v57 = vpop.f32.mrf.mxu3  ;;  %v8811_v61 = vadd.f32 %v24763_v55, %v8545_v27 }
 0x5e6   :  { %v19152_v63 = vld [vmem:[%s26496_s5 + $0x150] sm:$0xff] }
 0x5e7   :  { %10076 = vmatpush.bf16.msrb.mxu0 %v19152_v63  ;;  %v24945_v63 = vld [vmem:[#allocation3 + $0x78] sm:$0xff]  }
 0x5e8   :  { %v8227_v43 = vpop.f32.mrf.mxu2 }
 0x5e9   :  { %v9172_v43 = vsel %vm967_vm1, %v9167_v15, %v9171_v12 }
 0x5ea   :  { %v24850_v31 = vpop.f32.mrf.mxu0 }
 0x5ed   :  { %v8786_v23 = vpop.f32.mrf.mxu1  ;;  %9386 = vmatmul.bf16.gmra.mxu0 %v24848_v25  ;;  %v8368_v45 = vpop.f32.mrf.mxu3 }
 0x5ee   :  { %v24908_v23 = vld [vmem:[#allocation3 + $0x70] sm:$0xff]  }
 0x5ef   :  { %v9438_v0 = vrot.slane %v24908_v23, 1 }
 0x5f0   :  { %9523 = vmatmul.bf16.gmra.mxu1 %v9435_v38  ;;  %v8229_v59 = vpop.f32.mrf.mxu2  ;;  %v9177_v38 = vshll.u32 %v24908_v23, 16 }
 0x5f2   :  { %v24863_v44 = vpop.f32.mrf.mxu0  ;;  %9276 = vmatmul.bf16.gmra.mxu3 %v9164_v18  ;;  %v9179_v18 = vrot.slane %v9177_v38, 1 }
 0x5f5   :  { %v24866_v34 = vpop.f32.mrf.mxu1  ;;  %8964 = vmatmul.bf16.gmra.mxu2 %v26609_v22  ;;  %v8371_v36 = vpop.f32.mrf.mxu3  ;;  %v9439_v22 = vsel %vm1267_vm0, %v9436_v46, %v9438_v0 }
 0x5f6   :  { %v8398_v36 = vadd.f32 %v24810_v42, %v24691_v48  ;;  %v19150_v48 = vld [vmem:[%s26496_s5 + $0x140] sm:$0xff] }
 0x5f8   :  { %v8232_v35 = vpop.f32.mrf.mxu2 }
 0x5f9   :  { %v24874_v29 = vadd.f32 %v8232_v35, %v7985_v17  ;;  %v24886_v17 = vunpack.c.l.b16 %v24751_v26  ;;  %v19163_v35 = vld [vmem:[%s26496_s5 + $0x1a8] sm:$0xff] }
 0x5fa   :  { %v8530_v8 = vpop.f32.mrf.mxu0  ;;  %10221 = vmatpush.bf16.msrb.mxu1 %v19163_v35 }
 0x5fb   :  { %v9584_v32 = vpack.c.b16 %v24886_v17, %v19986_v40  ;;  %v19151_v8 = vld [vmem:[%s26496_s5 + $0x148] sm:$0xff] }
 0x5fc   :  { %10077 = vmatpush.bf16.msrb.mxu0 %v19151_v8 }
 0x5fd   :  { %v24878_v7 = vpop.f32.mrf.mxu1  ;;  %9391 = vmatmul.bf16.gmra.mxu0 %v24869_v5  ;;  %v24882_v14 = vpop.f32.mrf.mxu3 }
 0x600   :  { %9528 = vmatmul.bf16.gmra.mxu1 %v9437_v6  ;;  %v8234_v47 = vpop.f32.mrf.mxu2  ;;  %10078 = vmatpush.bf16.msrb.mxu0 %v19150_v48 }
 0x601   :  { %v24897_v57 = vadd.f32 %v8234_v47, %v24829_v33  ;;  %v8397_v33 = vadd.f32 %v24798_v50, %v24677_v41  ;;  %v24947_v47 = vld [vmem:[#allocation3 + $0x7c] sm:$0xf] }
 0x602   :  { %v8532_v37 = vpop.f32.mrf.mxu0  ;;  %9281 = vmatmul.bf16.gmra.mxu3 %v9172_v43  ;;  %v19162_v43 = vld [vmem:[%s26496_s5 + $0x1a0] sm:$0xff] }
 0x603   :  { %v8546_v41 = vadd.f32 %v24737_v4, %v8397_v33  ;;  %v9175_v4 = vor.u32 %v9173_v51, %v9171_v12  ;;  %v20765_v12 = vld [vmem:[#allocation3 + $0x4c] sm:$0xff]   ;;  %10222 = vmatpush.bf16.msrb.mxu1 %v19162_v43  ;;  %v9069_v51 = vld [vmem:[#allocation3 + $0x80] sm:$0x1] }
 0x604   :  { %v9119_v8 = vunpack.c.l.b16 %v9069_v51 }
 0x605   :  { %v24904_v62 = vpop.f32.mrf.mxu1  ;;  %9656 = vmatmul.bf16.vlgmr.msrb.gmra.mxu2 %v9584_v32  ;;  %v24906_v53 = vpop.f32.mrf.mxu3  ;;  %v8812_v39 = vadd.f32 %v24777_v13, %v8546_v41  ;;  %v9180_v46 = vsel %vm967_vm1, %v9175_v4, %v9179_v18  ;;  %v8547_v13 = vadd.f32 %v24756_v11, %v8398_v36  ;;  %v19142_v11 = vld [vmem:[%s26496_s5 + $0x100] sm:$0xff] }
 0x606   :  { %9920 = vmatpush.bf16.msrb.mxu3 %v19142_v11 }
 0x607   :  { %v8813_v37 = vadd.f32 %v24795_v9, %v8547_v13  ;;  %v9440_v9 = vrot.slane %v24945_v63, 1  ;;  %10223 = vmatpush.bf16.msrb.mxu1 %v19161_v54  ;;  %v9128_v13 = vpack.c.b16 %v9119_v8, %v9119_v8  ;;  %v9189_v54 = vshrl.u32 %v24945_v63, 16 }
 0x608   :  { %v8930_v40 = vpop.f32.mrf.mxu2 }
 0x609   :  { %v8970_v45 = vadd.f32 %v8930_v40, %v8811_v61  ;;  %v9185_v61 = vshll.u32 %v24945_v63, 16  ;;  %v9193_v11 = vshll.u32 %v9128_v13, 16 }
 0x60a   :  { %v8535_v24 = vpop.f32.mrf.mxu0 }
 0x60b   :  { %v8989_v55 = vadd.f32 %v24916_v19, %v8970_v45  ;;  %v9181_v24 = vshrl.u32 %v24908_v23, 16 }
 0x60d   :  { %v8796_v50 = vpop.f32.mrf.mxu1  ;;  %9396 = vmatmul.bf16.gmra.mxu0 %v24908_v23  ;;  %v9005_v60 = vmax.f32 %v8989_v55, 0.0  ;;  %v24927_v59 = vpop.f32.mrf.mxu3  ;;  %v9187_v55 = vrot.slane %v9185_v61, 1 }
 0x60e   :  { %v9441_v50 = vsel %vm1267_vm0, %v9438_v0, %v9440_v9  ;;  %v19159_v0 = vld [vmem:[%s26496_s5 + $0x188] sm:$0xff] }
 0x60f   :  { %9021 = vst [vmem:[#allocation4] sm:$0xff] %v9005_v60  ;;  %v9183_v60 = vor.u32 %v9181_v24, %v9179_v18 }
 0x610   :  { %9533 = vmatmul.bf16.gmra.mxu1 %v9439_v22  ;;  %v8932_v52 = vpop.f32.mrf.mxu2  ;;  %v19160_v22 = vld [vmem:[%s26496_s5 + $0x190] sm:$0xff] }
 0x611   :  { %v8971_v58 = vadd.f32 %v8932_v52, %v8812_v39  ;;  %v9978_v39 = vld [vmem:[#allocation3 + $0x44] sm:$0xe]  ;;  %v9188_v35 = vsel %vm967_vm1, %v9183_v60, %v9187_v55  ;;  %10224 = vmatpush.bf16.msrb.mxu1 %v19160_v22  ;;  %v20767_v52 = vld [vmem:[#allocation3 + $0x54] sm:$0xff]  }
 0x612   :  { %v8537_v6 = vpop.f32.mrf.mxu0  ;;  %9286 = vmatmul.bf16.gmra.mxu3 %v9180_v46  ;;  %v9996_v18 = vunpack.c.l.b16 %v9978_v39  ;;  %v20769_v39 = vld [vmem:[#allocation3 + $0x5c] sm:$0xff]  }
 0x613   :  { %v8990_v42 = vadd.f32 %v24916_v19, %v8971_v58  ;;  %v24976_v58 = vld [vmem:[#allocation3 + $0x4c] sm:$0xff]  }
 0x614   :  { %v9997_v48 = vpack.c.b16 %v24886_v17, %v9996_v18 }
 0x615   :  { %v8798_v49 = vpop.f32.mrf.mxu1  ;;  %v9006_v15 = vmax.f32 %v8990_v42, 0.0  ;;  %9661 = vmatmul.bf16.gmra.mxu2 %v20765_v12  ;;  %v8381_v3 = vpop.f32.mrf.mxu3  ;;  %10225 = vmatpush.bf16.msrb.mxu1 %v19159_v0  ;;  %v9999_v42 = vrot.slane %v24976_v58, 1  ;;  %v19158_v12 = vld [vmem:[%s26496_s5 + $0x180] sm:$0xff]  ;;  %v8403_v0 = vadd.f32 %v24882_v14, %v24771_v21 }
 0x616   :  { %v19180_v49 = vld [vmem:[%s26496_s5 + $0x1f8] sm:$0xff]  ;;  %v9998_v43 = vrot.slane %v9997_v48, 1 }
 0x617   :  { %9022 = vst [vmem:[#allocation4 + $0x8] sm:$0xff] %v9006_v15  ;;  %v19188_v15 = vld [vmem:[%s26496_s5 + $0x238] sm:$0xff]  ;;  %10484 = vmatpush.bf16.msra.mxu2 %v19180_v49 }
 0x618   :  { %v8935_v27 = vpop.f32.mrf.mxu2  ;;  %10642 = vmatpush.bf16.msra.mxu3 %v19188_v15 }
 0x619   :  { %v8972_v32 = vadd.f32 %v8935_v27, %v8813_v37  ;;  %10226 = vmatpush.bf16.msrb.mxu1 %v19158_v12  ;;  %v9442_v27 = vrot.slane %v9128_v13, 1  ;;  %v9797_v13 = vshll.u32 %v24976_v58, 16  ;;  %v8552_v12 = vadd.f32 %v24838_v10, %v8403_v0  ;;  %v19203_v10 = vld [vmem:[%s26496_s5 + $0x70] sm:$0xff] }
 0x61a   :  { %v24956_v33 = vpop.f32.mrf.mxu0 }
 0x61b   :  { %v8991_v40 = vadd.f32 %v24916_v19, %v8972_v32  ;;  %v10000_v32 = vsel %vm1267_vm0, %v9998_v43, %v9999_v42  ;;  %v9443_v24 = vsel %vm1267_vm0, %v9440_v9, %v9442_v27  ;;  %v9799_v43 = vrot.slane %v9797_v13, 1 }
 0x61c   :  { %v8818_v27 = vadd.f32 %v24866_v34, %v8552_v12  ;;  %v25033_v34 = vld [vmem:[#allocation3 + $0x5c] sm:$0xff]  }
 0x61d   :  { %v8801_v45 = vpop.f32.mrf.mxu1  ;;  %9401 = vmatmul.bf16.gmra.mxu0 %v24945_v63  ;;  %v9007_v38 = vmax.f32 %v8991_v40, 0.0  ;;  %v8383_v41 = vpop.f32.mrf.mxu3 }
 0x61e   :  { %v9195_v45 = vrot.slane %v9193_v11, 1  ;;  %v9191_v41 = vor.u32 %v9189_v54, %v9187_v55  ;;  %v8404_v11 = vadd.f32 %v24906_v53, %v24788_v2  ;;  %v20771_v53 = vld [vmem:[#allocation3 + $0x64] sm:$0xff]  }
 0x61f   :  { %9023 = vst [vmem:[#allocation4 + $0x10] sm:$0xff] %v9007_v38  ;;  %v9713_v38 = vld [vmem:[#allocation3 + $0x44] sm:$0xf] }
 0x620   :  { %9538 = vmatmul.bf16.gmra.mxu1 %v9441_v50  ;;  %v8937_v36 = vpop.f32.mrf.mxu2  ;;  %v19204_v50 = vld [vmem:[%s26496_s5 + $0x78] sm:$0xff]  ;;  %v9196_v60 = vsel %vm967_vm1, %v9191_v41, %v9195_v45 }
 0x621   :  { %v9763_v36 = vunpack.c.l.b16 %v9713_v38  ;;  %10971 = vmatpush.bf16.msra.mxu0 %v19204_v50 }
 0x622   :  { %v24970_v4 = vpop.f32.mrf.mxu0  ;;  %9291 = vmatmul.bf16.gmra.mxu3 %v9188_v35  ;;  %v25000_v35 = vld [vmem:[#allocation3 + $0x54] sm:$0xff]  }
 0x623   :  { %v9780_v8 = vpack.c.b16 %v24886_v17, %v9763_v36  ;;  %v19186_v36 = vld [vmem:[%s26496_s5 + $0x228] sm:$0xff]  ;;  %v9805_v0 = vshll.u32 %v25000_v35, 16 }
 0x625   :  { %v8803_v6 = vpop.f32.mrf.mxu1  ;;  %9666 = vmatmul.bf16.gmra.mxu2 %v20767_v52  ;;  %v8386_v46 = vpop.f32.mrf.mxu3  ;;  %v10001_v52 = vrot.slane %v25000_v35, 1  ;;  %v9792_v18 = vshll.u32 %v9780_v8, 16  ;;  %10972 = vmatpush.bf16.msra.mxu0 %v19203_v10  ;;  %v19177_v10 = vld [vmem:[%s26496_s5 + $0x1e0] sm:$0xff] }
 0x626   :  { %v19179_v6 = vld [vmem:[%s26496_s5 + $0x1f0] sm:$0xff] }
 0x627   :  { %v19187_v46 = vld [vmem:[%s26496_s5 + $0x230] sm:$0xff]  ;;  %10485 = vmatpush.bf16.msra.mxu2 %v19179_v6  ;;  %v10002_v21 = vsel %vm1267_vm0, %v9999_v42, %v10001_v52  ;;  %v9794_v14 = vrot.slane %v9792_v18, 1 }
 0x628   :  { %v8940_v3 = vpop.f32.mrf.mxu2  ;;  %10643 = vmatpush.bf16.msra.mxu3 %v19187_v46 }
 0x629   :  { %v9790_v3 = vshrl.u32 %v9780_v8, 16 }
 0x62a   :  { %v24989_v37 = vpop.f32.mrf.mxu0 }
 0x62c   :  { %10644 = vmatpush.bf16.msra.mxu3 %v19186_v36 }
 0x62d   :  { %v24992_v61 = vpop.f32.mrf.mxu1  ;;  %10079 = vmatmul.bf16.vlgmr.msrb.gmra.mxu0 %v10000_v32  ;;  %v8388_v40 = vpop.f32.mrf.mxu3  ;;  %v9795_v32 = vor.u32 %v9794_v14, %v9790_v3 }
 0x62f   :  { %v9800_v45 = vsel %vm967_vm1, %v9795_v32, %v9799_v43 }
 0x630   :  { %9543 = vmatmul.bf16.gmra.mxu1 %v9443_v24  ;;  %v8942_v51 = vpop.f32.mrf.mxu2  ;;  %v8553_v24 = vadd.f32 %v24850_v31, %v8404_v11  ;;  %v10003_v31 = vrot.slane %v25033_v34, 1  ;;  %v20773_v11 = vld [vmem:[#allocation3 + $0x6c] sm:$0xff]  }
 0x631   :  { %v8405_v51 = vadd.f32 %v24927_v59, %v24803_v1 }
 0x632   :  { %v9369_v22 = vpop.f32.mrf.mxu0  ;;  %9296 = vmatmul.bf16.gmra.mxu3 %v9196_v60  ;;  %v8819_v60 = vadd.f32 %v24878_v7, %v8553_v24  ;;  %v10004_v59 = vsel %vm1267_vm0, %v10001_v52, %v10003_v31  ;;  %v19176_v24 = vld [vmem:[%s26496_s5 + $0x1d8] sm:$0xff] }
 0x633   :  { %v19178_v22 = vld [vmem:[%s26496_s5 + $0x1e8] sm:$0xff]  ;;  %v8554_v1 = vadd.f32 %v24863_v44, %v8405_v51 }
 0x634   :  { %10486 = vmatpush.bf16.msra.mxu2 %v19178_v22  ;;  %v19202_v44 = vld [vmem:[%s26496_s5 + $0x68] sm:$0xff]  ;;  %v19201_v22 = vld [vmem:[%s26496_s5 + $0x60] sm:$0xff] }
 0x635   :  { %v25003_v9 = vpop.f32.mrf.mxu1  ;;  %9671 = vmatmul.bf16.gmra.mxu2 %v20769_v39  ;;  %v25005_v55 = vpop.f32.mrf.mxu3  ;;  %v8820_v13 = vadd.f32 %v24904_v62, %v8554_v1  ;;  %10973 = vmatpush.bf16.msra.mxu0 %v19202_v44  ;;  %v9817_v44 = vshrl.u32 %v25033_v34, 16 }
 0x638   :  { %v8945_v17 = vpop.f32.mrf.mxu2  ;;  %10487 = vmatpush.bf16.msra.mxu2 %v19177_v10  ;;  %v25126_v10 = vld [vmem:[#allocation3 + $0x74] sm:$0xff]  }
 0x639   :  { %v9801_v17 = vshrl.u32 %v24976_v58, 16  ;;  %10974 = vmatpush.bf16.msra.mxu0 %v19201_v22  ;;  %v25153_v22 = vld [vmem:[#allocation3 + $0x80] sm:$0xff]  }
 0x63a   :  { %v9372_v48 = vpop.f32.mrf.mxu0 }
 0x63b   :  { %v9807_v48 = vrot.slane %v9805_v0, 1  ;;  %v9803_v12 = vor.u32 %v9801_v17, %v9799_v43 }
 0x63c   :  { %10488 = vmatpush.bf16.msra.mxu2 %v19176_v24 }
 0x63d   :  { %v25019_v49 = vpop.f32.mrf.mxu1  ;;  %10084 = vmatmul.bf16.gmra.mxu0 %v10002_v21  ;;  %v25021_v15 = vpop.f32.mrf.mxu3  ;;  %v9808_v3 = vsel %vm967_vm1, %v9803_v12, %v9807_v48 }
 0x640   :  { %10227 = vmatmul.bf16.vlgmr.msrb.gmra.mxu1 %v24751_v26  ;;  %v8947_v42 = vpop.f32.mrf.mxu2 }
 0x641   :  { %v8977_v54 = vadd.f32 %v8947_v42, %v8818_v27  ;;  %v25062_v27 = vld [vmem:[#allocation3 + $0x64] sm:$0xff]   ;;  %v19185_v42 = vld [vmem:[%s26496_s5 + $0x220] sm:$0xff] }
 0x642   :  { %v9374_v40 = vpop.f32.mrf.mxu0  ;;  %9921 = vmatmul.bf16.vlgmr.msrb.gmra.mxu3 %v9800_v45  ;;  %v10005_v32 = vrot.slane %v25062_v27, 1  ;;  %v9813_v45 = vshll.u32 %v25033_v34, 16  ;;  %v9821_v17 = vshll.u32 %v25062_v27, 16 }
 0x643   :  { %v8996_v2 = vadd.f32 %v24916_v19, %v8977_v54  ;;  %10645 = vmatpush.bf16.msra.mxu3 %v19185_v42 }
 0x645   :  { %v9511_v26 = vpop.f32.mrf.mxu1  ;;  %v9012_v38 = vmax.f32 %v8996_v2, 0.0  ;;  %9676 = vmatmul.bf16.gmra.mxu2 %v20771_v53  ;;  %v9262_v41 = vpop.f32.mrf.mxu3  ;;  %v10006_v2 = vsel %vm1267_vm0, %v10003_v31, %v10005_v32 }
 0x646   :  { %v25036_v50 = vadd.f32 %v24989_v37, %v9262_v41  ;;  %v9815_v41 = vrot.slane %v9813_v45, 1 }
 0x647   :  { %9028 = vst [vmem:[#allocation4 + $0x38] sm:$0xff] %v9012_v38  ;;  %v9809_v38 = vshrl.u32 %v25000_v35, 16  ;;  %v20775_v35 = vld [vmem:[#allocation3 + $0x74] sm:$0xff]  }
 0x648   :  { %v8950_v39 = vpop.f32.mrf.mxu2 }
 0x649   :  { %v8978_v8 = vadd.f32 %v8950_v39, %v8819_v60  ;;  %v9811_v51 = vor.u32 %v9809_v38, %v9807_v48  ;;  %v19175_v60 = vld [vmem:[%s26496_s5 + $0x1d0] sm:$0xff]  ;;  %v19196_v48 = vld [vmem:[%s26496_s5 + $0x38] sm:$0xff] }
 0x64a   :  { %v9377_v37 = vpop.f32.mrf.mxu0  ;;  %10489 = vmatpush.bf16.msra.mxu2 %v19175_v60  ;;  %11076 = vmatpush.bf16.msra.mxu1 %v19196_v48 }
 0x64b   :  { %v8997_v7 = vadd.f32 %v24916_v19, %v8978_v8  ;;  %v9816_v39 = vsel %vm967_vm1, %v9811_v51, %v9815_v41  ;;  %v25092_v8 = vld [vmem:[#allocation3 + $0x6c] sm:$0xff]  }
 0x64c   :  { %v10007_v1 = vrot.slane %v25092_v8, 1  ;;  %v25150_v51 = vld [vmem:[#allocation3 + $0x50] sm:$0xff] }
 0x64d   :  { %v9514_v18 = vpop.f32.mrf.mxu1  ;;  %10089 = vmatmul.bf16.gmra.mxu0 %v10004_v59  ;;  %v9013_v6 = vmax.f32 %v8997_v7, 0.0  ;;  %v9264_v46 = vpop.f32.mrf.mxu3  ;;  %v19173_v7 = vld [vmem:[%s26496_s5 + $0x1c0] sm:$0xff]  ;;  %v19184_v59 = vld [vmem:[%s26496_s5 + $0x218] sm:$0xff]  ;;  %v10368_v60 = vshll.u32 %v25150_v51, 16 }
 0x64e   :  { %v25105_v18 = vadd.f32 %v25019_v49, %v25036_v50  ;;  %10646 = vmatpush.bf16.msra.mxu3 %v19184_v59  ;;  %v10008_v12 = vsel %vm1267_vm0, %v10005_v32, %v10007_v1  ;;  %v20776_v32 = vld [vmem:[#allocation3 + $0x7c] sm:$0xff] }
 0x64f   :  { %9029 = vst [vmem:[#allocation4 + $0x40] sm:$0xff] %v9013_v6 }
 0x650   :  { %10232 = vmatmul.bf16.gmra.mxu1 %v24785_v56  ;;  %v8952_v21 = vpop.f32.mrf.mxu2 }
 0x651   :  { %v8979_v14 = vadd.f32 %v8952_v21, %v8820_v13  ;;  %v19200_v13 = vld [vmem:[%s26496_s5 + $0x58] sm:$0xff]  ;;  %v9823_v21 = vrot.slane %v9821_v17, 1  ;;  %v10370_v17 = vrot.slane %v10368_v60, 1  ;;  %v19181_v60 = vld [vmem:[%s26496_s5 + $0x200] sm:$0xff] }
 0x652   :  { %v25058_v52 = vpop.f32.mrf.mxu0  ;;  %9926 = vmatmul.bf16.gmra.mxu3 %v9808_v3  ;;  %10975 = vmatpush.bf16.msra.mxu0 %v19200_v13  ;;  %v8410_v3 = vadd.f32 %v25005_v55, %v24874_v29  ;;  %v19183_v29 = vld [vmem:[%s26496_s5 + $0x210] sm:$0xff]  ;;  %v8411_v55 = vadd.f32 %v25021_v15, %v24897_v57 }
 0x653   :  { %v8998_v58 = vadd.f32 %v24916_v19, %v8979_v14  ;;  %10647 = vmatpush.bf16.msra.mxu3 %v19183_v29 }
 0x655   :  { %v9516_v62 = vpop.f32.mrf.mxu1  ;;  %v9014_v56 = vmax.f32 %v8998_v58, 0.0  ;;  %9681 = vmatmul.bf16.gmra.mxu2 %v20773_v11  ;;  %v9267_v43 = vpop.f32.mrf.mxu3  ;;  %v9819_v58 = vor.u32 %v9817_v44, %v9815_v41 }
 0x656   :  { %v8559_v43 = vadd.f32 %v24956_v33, %v8410_v3  ;;  %v10009_v33 = vrot.slane %v25126_v10, 1 }
 0x657   :  { %9030 = vst [vmem:[#allocation4 + $0x48] sm:$0xff] %v9014_v56  ;;  %v9824_v56 = vsel %vm967_vm1, %v9819_v58, %v9823_v21 }
 0x658   :  { %v8955_v54 = vpop.f32.mrf.mxu2  ;;  %v8825_v42 = vadd.f32 %v24992_v61, %v8559_v43  ;;  %v8560_v61 = vadd.f32 %v24970_v4, %v8411_v55  ;;  %v10010_v38 = vsel %vm1267_vm0, %v10007_v1, %v10009_v33  ;;  %v19198_v43 = vld [vmem:[%s26496_s5 + $0x48] sm:$0xff] }
 0x659   :  { %v20487_v54 = vld [vmem:[#allocation3 + $0x48] sm:$0xff]   ;;  %v20983_v55 = vld [vmem:[#allocation3 + $0x58] sm:$0xff] }
 0x65a   :  { %v25071_v40 = vpop.f32.mrf.mxu0  ;;  %v10363_v57 = vshll.u32 %v20487_v54, 16 }
 0x65c   :  { %v10365_v1 = vrot.slane %v10363_v57, 1 }
 0x65d   :  { %v9519_v53 = vpop.f32.mrf.mxu1  ;;  %10094 = vmatmul.bf16.gmra.mxu0 %v10006_v2  ;;  %v9269_v26 = vpop.f32.mrf.mxu3 }
 0x65e   :  { %v9829_v53 = vshll.u32 %v25092_v8, 16  ;;  %v19195_v26 = vld [vmem:[%s26496_s5 + $0x30] sm:$0xff] }
 0x65f   :  { %11077 = vmatpush.bf16.msra.mxu1 %v19195_v26 }
 0x660   :  { %10237 = vmatmul.bf16.gmra.mxu1 %v24819_v20  ;;  %v8957_v36 = vpop.f32.mrf.mxu2  ;;  %v19174_v20 = vld [vmem:[%s26496_s5 + $0x1c8] sm:$0xff]  ;;  %v9831_v4 = vrot.slane %v9829_v53, 1  ;;  %v10372_v53 = vshrl.u32 %v25150_v51, 16  ;;  %v19192_v51 = vld [vmem:[%s26496_s5 + $0x18] sm:$0xff] }
 0x661   :  { %10490 = vmatpush.bf16.msra.mxu2 %v19174_v20  ;;  %v21012_v36 = vld [vmem:[#allocation3 + $0x7c] sm:$0xf0]  }
 0x662   :  { %v25086_v31 = vpop.f32.mrf.mxu0  ;;  %9931 = vmatmul.bf16.gmra.mxu3 %v9816_v39 }
 0x665   :  { %v25094_v37 = vpop.f32.mrf.mxu1  ;;  %9686 = vmatmul.bf16.gmra.mxu2 %v20775_v35  ;;  %v9272_v0 = vpop.f32.mrf.mxu3  ;;  %v9825_v35 = vshrl.u32 %v25062_v27, 16 }
 0x666   :  { %10491 = vmatpush.bf16.msra.mxu2 %v19173_v7  ;;  %v8826_v7 = vadd.f32 %v25003_v9, %v8560_v61  ;;  %v19193_v61 = vld [vmem:[%s26496_s5 + $0x20] sm:$0xff] }
 0x667   :  { %v9827_v59 = vor.u32 %v9825_v35, %v9823_v21  ;;  %v19182_v21 = vld [vmem:[%s26496_s5 + $0x208] sm:$0xff] }
 0x668   :  { %v8960_v6 = vpop.f32.mrf.mxu2  ;;  %10648 = vmatpush.bf16.msra.mxu3 %v19182_v21 }
 0x66a   :  { %v9387_v46 = vpop.f32.mrf.mxu0 }
 0x66b   :  { %v10361_v46 = vshrl.u32 %v20487_v54, 16  ;;  %v9729_v54 = vld [vmem:[#allocation3 + $0x84] sm:$0x1] }
 0x66c   :  { %10649 = vmatpush.bf16.msra.mxu3 %v19181_v60 }
 0x66d   :  { %v25115_v49 = vpop.f32.mrf.mxu1  ;;  %10099 = vmatmul.bf16.gmra.mxu0 %v10008_v12  ;;  %v9274_v50 = vpop.f32.mrf.mxu3  ;;  %v9832_v12 = vsel %vm967_vm1, %v9827_v59, %v9831_v4  ;;  %v20984_v59 = vld [vmem:[#allocation3 + $0x60] sm:$0xff] }
 0x66e   :  { %v25119_v14 = vadd.f32 %v25058_v52, %v9274_v50  ;;  %v10366_v50 = vor.u32 %v10365_v1, %v10361_v46  ;;  %v19191_v1 = vld [vmem:[%s26496_s5 + $0x10] sm:$0xff]  ;;  %v19190_v46 = vld [vmem:[%s26496_s5 + $0x8] sm:$0xff] }
 0x670   :  { %10242 = vmatmul.bf16.gmra.mxu1 %v24848_v25  ;;  %v8962_v11 = vpop.f32.mrf.mxu2  ;;  %v10371_v44 = vsel %vm967_vm1, %v10366_v50, %v10370_v17  ;;  %v10380_v50 = vshrl.u32 %v20983_v55, 16 }
 0x672   :  { %v9389_v62 = vpop.f32.mrf.mxu0  ;;  %9936 = vmatmul.bf16.gmra.mxu3 %v9824_v56  ;;  %v19194_v56 = vld [vmem:[%s26496_s5 + $0x28] sm:$0xff] }
 0x673   :  { %v9837_v62 = vshll.u32 %v25126_v10, 16  ;;  %11078 = vmatpush.bf16.msra.mxu1 %v19194_v56 }
 0x675   :  { %v25128_v34 = vpop.f32.mrf.mxu1  ;;  %9691 = vmatmul.bf16.gmra.mxu2 %v20776_v32  ;;  %v9277_v52 = vpop.f32.mrf.mxu3  ;;  %v25185_v32 = vadd.f32 %v25094_v37, %v25119_v14  ;;  %v9779_v14 = vunpack.c.l.b16 %v9729_v54 }
 0x676   :  { %v25134_v25 = vadd.f32 %v25071_v40, %v9277_v52  ;;  %v19199_v40 = vld [vmem:[%s26496_s5 + $0x50] sm:$0xff] }
 0x677   :  { %10976 = vmatpush.bf16.msra.mxu0 %v19199_v40  ;;  %11079 = vmatpush.bf16.msra.mxu1 %v19193_v61 }
 0x678   :  { %v8965_v45 = vpop.f32.mrf.mxu2 }
 0x679   :  { %v8984_v24 = vadd.f32 %v8965_v45, %v8825_v42  ;;  %v10376_v42 = vshll.u32 %v20983_v55, 16 }
 0x67a   :  { %v9392_v2 = vpop.f32.mrf.mxu0 }
 0x67b   :  { %v9003_v15 = vadd.f32 %v24916_v19, %v8984_v24  ;;  %10977 = vmatpush.bf16.msra.mxu0 %v19198_v43  ;;  %v9833_v24 = vshrl.u32 %v25092_v8, 16  ;;  %v9839_v2 = vrot.slane %v9837_v62, 1  ;;  %v10378_v26 = vrot.slane %v10376_v42, 1  ;;  %11080 = vmatpush.bf16.msra.mxu1 %v19192_v51 }
 0x67c   :  { %v25200_v8 = vpack.c.b16 %v9779_v14, %v9779_v14 }
 0x67d   :  { %v9529_v41 = vpop.f32.mrf.mxu1  ;;  %10104 = vmatmul.bf16.gmra.mxu0 %v10010_v38  ;;  %v9019_v39 = vmax.f32 %v9003_v15, 0.0  ;;  %v9279_v20 = vpop.f32.mrf.mxu3  ;;  %v9835_v37 = vor.u32 %v9833_v24, %v9831_v4  ;;  %v10374_v15 = vor.u32 %v10372_v53, %v10370_v17  ;;  %v10382_v21 = vor.u32 %v10380_v50, %v10378_v26  ;;  %v19228_v24 = vld [vmem:[%s26496_s5 + $0x138] sm:$0xff]  ;;  %v19227_v50 = vld [vmem:[%s26496_s5 + $0x130] sm:$0xff] }
 0x67e   :  { %v25157_v0 = vadd.f32 %v25086_v31, %v9279_v20  ;;  %v25164_v31 = vor.u32 %v21012_v36, %v24947_v47  ;;  %v25211_v36 = vadd.f32 %v25115_v49, %v25134_v25  ;;  %v9853_v14 = vshll.u32 %v25200_v8, 16 }
 0x67f   :  { %9035 = vst [vmem:[#allocation4 + $0x70] sm:$0xff] %v9019_v39  ;;  %v9840_v57 = vsel %vm967_vm1, %v9835_v37, %v9839_v2  ;;  %v10013_v39 = vrot.slane %v25200_v8, 1  ;;  %11081 = vmatpush.bf16.msra.mxu1 %v19191_v1 }
 0x680   :  { %10247 = vmatmul.bf16.gmra.mxu1 %v24869_v5  ;;  %v8967_v6 = vpop.f32.mrf.mxu2  ;;  %v10011_v58 = vrot.slane %v25164_v31, 1  ;;  %v9845_v4 = vshll.u32 %v25164_v31, 16  ;;  %v9849_v37 = vshrl.u32 %v25164_v31, 16  ;;  %v25269_v31 = vld [vmem:[#allocation3 + $0x90] sm:$0xff]  }
 0x681   :  { %v8985_v48 = vadd.f32 %v8967_v6, %v8826_v7  ;;  %v25222_v7 = vadd.f32 %v25128_v34, %v25157_v0  ;;  %v10384_v6 = vshll.u32 %v20984_v59, 16 }
 0x682   :  { %v9394_v13 = vpop.f32.mrf.mxu0  ;;  %9941 = vmatmul.bf16.gmra.mxu3 %v9832_v12  ;;  %v10012_v52 = vsel %vm1267_vm0, %v10009_v33, %v10011_v58  ;;  %v10014_v49 = vsel %vm1267_vm0, %v10011_v58, %v10013_v39  ;;  %v25231_v12 = vld [vmem:[#allocation3 + $0x80] sm:$0xff]  }
 0x683   :  { %v9004_v27 = vadd.f32 %v24916_v19, %v8985_v48  ;;  %v9841_v48 = vshrl.u32 %v25126_v10, 16  ;;  %v9847_v13 = vrot.slane %v9845_v4, 1  ;;  %11082 = vmatpush.bf16.msra.mxu1 %v19190_v46  ;;  %v19189_v10 = vld [vmem:[%s26496_s5] sm:$0xff]  ;;  %v19211_v39 = vld [vmem:[%s26496_s5 + $0xb0] sm:$0xff] }
 0x685   :  { %v9531_v9 = vpop.f32.mrf.mxu1  ;;  %v9020_v3 = vmax.f32 %v9004_v27, 0.0  ;;  %10492 = vmatmul.bf16.vlgmr.msra.gmra.mxu2 %v10371_v44  ;;  %v9282_v5 = vpop.f32.mrf.mxu3  ;;  %v9843_v34 = vor.u32 %v9841_v48, %v9839_v2  ;;  %v10386_v27 = vrot.slane %v10384_v6, 1  ;;  %v25234_v44 = vld [vmem:[#allocation3 + $0x88] sm:$0xff]  }
 0x686   :  { %v10850_v5 = vshll.u32 %v25231_v12, 16  ;;  %v10855_v58 = vshll.u32 %v25234_v44, 16  ;;  %v20489_v48 = vld [vmem:[#allocation3 + $0x48] sm:$0xe] }
 0x687   :  { %9036 = vst [vmem:[#allocation4 + $0x78] sm:$0xff] %v9020_v3  ;;  %v9848_v3 = vsel %vm967_vm1, %v9843_v34, %v9847_v13  ;;  %11083 = vmatpush.bf16.msra.mxu1 %v19189_v10 }
 0x688   :  { %v9657_v11 = vpop.f32.mrf.mxu2  ;;  %v10852_v43 = vrot.slane %v10850_v5, 1  ;;  %v10857_v55 = vrot.slane %v10855_v58, 1 }
 0x689   :  { %v25172_v19 = vadd.f32 %v9657_v11, %v25105_v18  ;;  %v19197_v18 = vld [vmem:[%s26496_s5 + $0x40] sm:$0xff]  ;;  %v10387_v11 = vsel %vm967_vm1, %v10382_v21, %v10386_v27 }
 0x68a   :  { %v25174_v47 = vpop.f32.mrf.mxu0  ;;  %10978 = vmatpush.bf16.msra.mxu0 %v19197_v18 }
 0x68d   :  { %v9534_v29 = vpop.f32.mrf.mxu1  ;;  %10109 = vmatmul.bf16.gmra.mxu0 %v10012_v52  ;;  %v9284_v45 = vpop.f32.mrf.mxu3  ;;  %v19220_v52 = vld [vmem:[%s26496_s5 + $0xf8] sm:$0xff] }
 0x68e   :  { %v10848_v29 = vshrl.u32 %v25231_v12, 16  ;;  %11366 = vmatpush.bf16.msrb.mxu3 %v19220_v52  ;;  %11631 = vmatpush.bf16.msrb.mxu0 %v19228_v24  ;;  %v26610_v52 = vld [vmem:[#allocation26_spill] sm:$0xff] }
 0x690   :  { %10252 = vmatmul.bf16.gmra.mxu1 %v24908_v23  ;;  %v9659_v33 = vpop.f32.mrf.mxu2  ;;  %v10379_v23 = vsel %vm967_vm1, %v10374_v15, %v10378_v26  ;;  %v10853_v45 = vor.u32 %v10852_v43, %v10848_v29  ;;  %v9855_v15 = vrot.slane %v9853_v14, 1  ;;  %v26611_v29 = vrot.slane %v26610_v52, 1  ;;  %v19218_v14 = vld [vmem:[%s26496_s5 + $0xe8] sm:$0xff] }
 0x691   :  { %v20985_v33 = vld [vmem:[#allocation3 + $0x68] sm:$0xff] }
 0x692   :  { %v25194_v40 = vpop.f32.mrf.mxu0  ;;  %9946 = vmatmul.bf16.gmra.mxu3 %v9840_v57  ;;  %v10858_v2 = vsel %vm967_vm1, %v10853_v45, %v10857_v55  ;;  %v10392_v53 = vshll.u32 %v20985_v33, 16  ;;  %v9851_v57 = vor.u32 %v9849_v37, %v9847_v13  ;;  %11632 = vmatpush.bf16.msrb.mxu0 %v19227_v50  ;;  %v10396_v21 = vshrl.u32 %v20985_v33, 16 }
 0x694   :  { %v9856_v51 = vsel %vm967_vm1, %v9851_v57, %v9855_v15 }
 0x695   :  { %v9536_v38 = vpop.f32.mrf.mxu1  ;;  %10497 = vmatmul.bf16.gmra.mxu2 %v10379_v23  ;;  %v9287_v41 = vpop.f32.mrf.mxu3 }
 0x696   :  { %v10388_v38 = vshrl.u32 %v20984_v59, 16  ;;  %v10394_v41 = vrot.slane %v10392_v53, 1  ;;  %v10859_v59 = vshrl.u32 %v25234_v44, 16 }
 0x698   :  { %v9662_v20 = vpop.f32.mrf.mxu2  ;;  %v10398_v45 = vor.u32 %v10396_v21, %v10394_v41  ;;  %v20988_v21 = vld [vmem:[#allocation3 + $0x80] sm:$0xff] }
 0x69a   :  { %v25214_v35 = vpop.f32.mrf.mxu0 }
 0x69d   :  { %v25225_v25 = vpop.f32.mrf.mxu1  ;;  %10114 = vmatmul.bf16.gmra.mxu0 %v10014_v49  ;;  %v9289_v17 = vpop.f32.mrf.mxu3 }
 0x69e   :  { %v20488_v17 = vld [vmem:[#allocation3 + $0x48] sm:$0xf0] }
 0x6a0   :  { %10257 = vmatmul.bf16.gmra.mxu1 %v24945_v63  ;;  %v9664_v0 = vpop.f32.mrf.mxu2  ;;  %v19212_v63 = vld [vmem:[%s26496_s5 + $0xb8] sm:$0xff] }
 0x6a1   :  { %11218 = vmatpush.bf16.msrb.mxu2 %v19212_v63  ;;  %v10861_v0 = vor.u32 %v10859_v59, %v10857_v55 }
 0x6a2   :  { %v9404_v9 = vpop.f32.mrf.mxu0  ;;  %9951 = vmatmul.bf16.gmra.mxu3 %v9848_v3  ;;  %v20986_v3 = vld [vmem:[#allocation3 + $0x70] sm:$0xff] }
 0x6a3   :  { %v10400_v5 = vshll.u32 %v20986_v3, 16 }
 0x6a5   :  { %v25246_v62 = vpop.f32.mrf.mxu1  ;;  %10502 = vmatmul.bf16.gmra.mxu2 %v10387_v11  ;;  %v9292_v56 = vpop.f32.mrf.mxu3  ;;  %v10402_v58 = vrot.slane %v10400_v5, 1  ;;  %v25297_v11 = vld [vmem:[#allocation3 + $0x98] sm:$0xff]  }
 0x6a6   :  { %v25252_v18 = vadd.f32 %v25174_v47, %v9292_v56  ;;  %11219 = vmatpush.bf16.msrb.mxu2 %v19211_v39  ;;  %v10871_v24 = vshll.u32 %v25297_v11, 16  ;;  %v10875_v50 = vshrl.u32 %v25297_v11, 16 }
 0x6a8   :  { %v9667_v42 = vpop.f32.mrf.mxu2  ;;  %v25315_v33 = vadd.f32 %v25225_v25, %v25252_v18  ;;  %v10873_v57 = vrot.slane %v10871_v24, 1  ;;  %v19205_v24 = vld [vmem:[%s26496_s5 + $0x80] sm:$0xff] }
 0x6a9   :  { %v19210_v42 = vld [vmem:[%s26496_s5 + $0xa8] sm:$0xff] }
 0x6aa   :  { %v25255_v54 = vpop.f32.mrf.mxu0  ;;  %11220 = vmatpush.bf16.msrb.mxu2 %v19210_v42  ;;  %v10877_v5 = vor.u32 %v10875_v50, %v10873_v57  ;;  %v25365_v42 = vld [vmem:[#allocation3 + $0xa8] sm:$0xff]  }
 0x6ad   :  { %v25263_v47 = vpop.f32.mrf.mxu1  ;;  %10979 = vmatmul.bf16.vlgmr.msra.gmra.mxu0 %v10858_v2  ;;  %v9294_v26 = vpop.f32.mrf.mxu3  ;;  %v10403_v2 = vsel %vm967_vm1, %v10398_v45, %v10402_v58 }
 0x6ae   :  { %v25266_v61 = vadd.f32 %v25194_v40, %v9294_v26  ;;  %v10390_v40 = vor.u32 %v10388_v38, %v10386_v27  ;;  %v10867_v26 = vshrl.u32 %v25269_v31, 16 }
 0x6b0   :  { %10262 = vmatmul.bf16.gmra.mxu1 %v25153_v22  ;;  %v9669_v23 = vpop.f32.mrf.mxu2  ;;  %v10863_v22 = vshll.u32 %v25269_v31, 16  ;;  %v10395_v20 = vsel %vm967_vm1, %v10390_v40, %v10394_v41  ;;  %v25327_v25 = vadd.f32 %v25246_v62, %v25266_v61  ;;  %v19209_v62 = vld [vmem:[%s26496_s5 + $0xa0] sm:$0xff] }
 0x6b1   :  { %v25272_v8 = vadd.f32 %v9669_v23, %v25185_v32  ;;  %v19219_v32 = vld [vmem:[%s26496_s5 + $0xf0] sm:$0xff]  ;;  %11221 = vmatpush.bf16.msrb.mxu2 %v19209_v62 }
 0x6b2   :  { %v10082_v60 = vpop.f32.mrf.mxu0  ;;  %9956 = vmatmul.bf16.gmra.mxu3 %v9856_v51  ;;  %v10865_v6 = vrot.slane %v10863_v22, 1  ;;  %v19226_v51 = vld [vmem:[%s26496_s5 + $0x128] sm:$0xff]  ;;  %v10404_v22 = vshrl.u32 %v20986_v3, 16 }
 0x6b3   :  { %11367 = vmatpush.bf16.msrb.mxu3 %v19219_v32  ;;  %11633 = vmatpush.bf16.msrb.mxu0 %v19226_v51  ;;  %v20987_v60 = vld [vmem:[#allocation3 + $0x78] sm:$0xff] }
 0x6b4   :  { %v10866_v27 = vsel %vm967_vm1, %v10861_v0, %v10865_v6  ;;  %v10869_v41 = vor.u32 %v10867_v26, %v10865_v6  ;;  %v10408_v39 = vshll.u32 %v20987_v60, 16  ;;  %v10406_v61 = vor.u32 %v10404_v22, %v10402_v58  ;;  %v26612_v32 = vld [vmem:[#allocation27_spill] sm:$0xff] }
 0x6b5   :  { %v9546_v4 = vpop.f32.mrf.mxu1  ;;  %10507 = vmatmul.bf16.gmra.mxu2 %v10395_v20  ;;  %v9297_v1 = vpop.f32.mrf.mxu3  ;;  %v10416_v58 = vshll.u32 %v20988_v21, 16 }
 0x6b6   :  { %v25284_v49 = vadd.f32 %v25214_v35, %v9297_v1  ;;  %v20490_v35 = vor.u32 %v20489_v48, %v20488_v17  ;;  %v10410_v20 = vrot.slane %v10408_v39, 1  ;;  %v25331_v4 = vld [vmem:[#allocation3 + $0xa0] sm:$0xff]   ;;  %v19208_v48 = vld [vmem:[%s26496_s5 + $0x98] sm:$0xff] }
 0x6b7   :  { %11368 = vmatpush.bf16.msrb.mxu3 %v19218_v14  ;;  %v10879_v59 = vshll.u32 %v25331_v4, 16  ;;  %11222 = vmatpush.bf16.msrb.mxu2 %v19208_v48  ;;  %v19236_v39 = vld [vmem:[%s26496_s5 + $0x178] sm:$0xff]  ;;  %v26614_v48 = vld [vmem:[#allocation30_spill] sm:$0xff] }
 0x6b8   :  { %v9672_v46 = vpop.f32.mrf.mxu2  ;;  %v10411_v6 = vsel %vm967_vm1, %v10406_v61, %v10410_v20  ;;  %v25349_v0 = vadd.f32 %v25263_v47, %v25284_v49  ;;  %v19206_v49 = vld [vmem:[%s26496_s5 + $0x88] sm:$0xff]  ;;  %11789 = vmatpush.bf16.msrb.mxu1 %v19236_v39  ;;  %v10420_v61 = vshrl.u32 %v20988_v21, 16  ;;  %v19235_v21 = vld [vmem:[%s26496_s5 + $0x170] sm:$0xff] }
 0x6b9   :  { %v25288_v13 = vadd.f32 %v9672_v46, %v25211_v36  ;;  %v10569_v36 = vrot.slane %v20490_v35, 1 }
 0x6ba   :  { %v10085_v34 = vpop.f32.mrf.mxu0 }
 0x6bb   :  { %v10571_v55 = vsel %vm1267_vm0, %v10569_v36, %v26611_v29  ;;  %v19217_v34 = vld [vmem:[%s26496_s5 + $0xe0] sm:$0xff]  ;;  %v10412_v29 = vshrl.u32 %v20987_v60, 16 }
 0x6bc   :  { %11369 = vmatpush.bf16.msrb.mxu3 %v19217_v34  ;;  %v19225_v36 = vld [vmem:[%s26496_s5 + $0x120] sm:$0xff]  ;;  %11790 = vmatpush.bf16.msrb.mxu1 %v19235_v21 }
 0x6bd   :  { %v25294_v9 = vpop.f32.mrf.mxu1  ;;  %10984 = vmatmul.bf16.gmra.mxu0 %v10866_v27  ;;  %v9299_v10 = vpop.f32.mrf.mxu3  ;;  %v10881_v27 = vrot.slane %v10879_v59, 1  ;;  %v25401_v59 = vld [vmem:[#allocation3 + $0xb0] sm:$0xff]  }
 0x6be   :  { %v19207_v10 = vld [vmem:[%s26496_s5 + $0x90] sm:$0xff]  ;;  %11634 = vmatpush.bf16.msrb.mxu0 %v19225_v36 }
 0x6bf   :  { %v10882_v47 = vsel %vm967_vm1, %v10877_v5, %v10881_v27  ;;  %11223 = vmatpush.bf16.msrb.mxu2 %v19207_v10  ;;  %v11125_v5 = vld [vmem:[#allocation3 + $0x80] sm:$0xe] }
 0x6c0   :  { %11084 = vmatmul.bf16.vlgmr.msra.gmra.mxu1 %v25231_v12  ;;  %v9674_v63 = vpop.f32.mrf.mxu2 }
 0x6c1   :  { %v25300_v56 = vadd.f32 %v9674_v63, %v25222_v7 }
 0x6c2   :  { %v10087_v43 = vpop.f32.mrf.mxu0  ;;  %10650 = vmatmul.bf16.vlgmr.msra.gmra.mxu3 %v10571_v55  ;;  %v10418_v55 = vrot.slane %v10416_v58, 1  ;;  %v20050_v58 = vunpack.c.h.b16 %v25231_v12  ;;  %v19257_v12 = vld [vmem:[%s26496_s5 + $0x1e8] sm:$0xff] }
 0x6c3   :  { %11224 = vmatpush.bf16.msrb.mxu2 %v19206_v49 }
 0x6c5   :  { %v10230_v37 = vpop.f32.mrf.mxu1  ;;  %10512 = vmatmul.bf16.gmra.mxu2 %v10403_v2  ;;  %v9922_v7 = vpop.f32.mrf.mxu3  ;;  %v10414_v2 = vor.u32 %v10412_v29, %v10410_v20 }
 0x6c6   :  { %v9962_v53 = vadd.f32 %v9922_v7, %v25172_v19  ;;  %v10874_v19 = vsel %vm967_vm1, %v10869_v41, %v10873_v57  ;;  %v26613_v37 = vld [vmem:[#allocation28_spill] sm:$0xff]  ;;  %v10887_v7 = vshll.u32 %v25365_v42, 16  ;;  %v19216_v57 = vld [vmem:[%s26496_s5 + $0xd8] sm:$0xff] }
 0x6c7   :  { %11225 = vmatpush.bf16.msrb.mxu2 %v19205_v24  ;;  %v10419_v14 = vsel %vm967_vm1, %v10414_v2, %v10418_v55  ;;  %11370 = vmatpush.bf16.msrb.mxu3 %v19216_v57  ;;  %v26615_v57 = vld [vmem:[#allocation34_spill] sm:$0xff] }
 0x6c8   :  { %v9677_v15 = vpop.f32.mrf.mxu2  ;;  %v25320_v23 = vadd.f32 %v25255_v54, %v9962_v53  ;;  %v10889_v41 = vrot.slane %v10887_v7, 1  ;;  %v25436_v7 = vld [vmem:[#allocation3 + $0xb8] sm:$0xff]  }
 0x6ca   :  { %v10090_v38 = vpop.f32.mrf.mxu0  ;;  %v25382_v15 = vadd.f32 %v25294_v9, %v25320_v23 }
 0x6cb   :  { %v10883_v38 = vshrl.u32 %v25331_v4, 16 }
 0x6cd   :  { %v10233_v18 = vpop.f32.mrf.mxu1  ;;  %10989 = vmatmul.bf16.gmra.mxu0 %v10874_v19  ;;  %v9924_v40 = vpop.f32.mrf.mxu3  ;;  %v10885_v60 = vor.u32 %v10883_v38, %v10881_v27  ;;  %v10903_v38 = vshll.u32 %v25436_v7, 16 }
 0x6ce   :  { %v19224_v40 = vld [vmem:[%s26496_s5 + $0x118] sm:$0xff] }
 0x6cf   :  { %v10890_v9 = vsel %vm967_vm1, %v10885_v60, %v10889_v41  ;;  %11635 = vmatpush.bf16.msrb.mxu0 %v19224_v40  ;;  %v10905_v60 = vrot.slane %v10903_v38, 1  ;;  %v10787_v40 = vld [vmem:[#allocation3 + $0xc0] sm:$0x1] }
 0x6d0   :  { %11089 = vmatmul.bf16.gmra.mxu1 %v25234_v44  ;;  %v9679_v54 = vpop.f32.mrf.mxu2 }
 0x6d2   :  { %v25333_v1 = vpop.f32.mrf.mxu0  ;;  %10655 = vmatmul.bf16.gmra.mxu3 %v26612_v32 }
 0x6d5   :  { %v10235_v46 = vpop.f32.mrf.mxu1  ;;  %10517 = vmatmul.bf16.gmra.mxu2 %v10411_v6  ;;  %v9927_v17 = vpop.f32.mrf.mxu3 }
 0x6d6   :  { %v10422_v17 = vor.u32 %v10420_v61, %v10418_v55 }
 0x6d8   :  { %v9682_v35 = vpop.f32.mrf.mxu2 }
 0x6da   :  { %v25352_v3 = vpop.f32.mrf.mxu0 }
 0x6dd   :  { %v10238_v63 = vpop.f32.mrf.mxu1  ;;  %10994 = vmatmul.bf16.gmra.mxu0 %v10882_v47  ;;  %v9929_v43 = vpop.f32.mrf.mxu3 }
 0x6de   :  { %v11143_v43 = vunpack.c.l.b16 %v11125_v5 }
 0x6e0   :  { %11094 = vmatmul.bf16.gmra.mxu1 %v25269_v31  ;;  %v9684_v52 = vpop.f32.mrf.mxu2  ;;  %v11144_v55 = vpack.c.b16 %v20050_v58, %v11143_v43  ;;  %v11431_v43 = vld [vmem:[#allocation3 + $0x84] sm:$0xf] }
 0x6e2   :  { %v25367_v45 = vpop.f32.mrf.mxu0  ;;  %10660 = vmatmul.bf16.gmra.mxu3 %v26613_v37  ;;  %v11146_v37 = vrot.slane %v25234_v44, 1 }
 0x6e5   :  { %v25375_v53 = vpop.f32.mrf.mxu1  ;;  %10522 = vmatmul.bf16.gmra.mxu2 %v10419_v14  ;;  %v9932_v26 = vpop.f32.mrf.mxu3 }
 0x6e6   :  { %v11145_v26 = vrot.slane %v11144_v55, 1  ;;  %v11481_v55 = vunpack.c.l.b16 %v11431_v43 }
 0x6e8   :  { %v9687_v51 = vpop.f32.mrf.mxu2 }
 0x6e9   :  { %v25386_v19 = vadd.f32 %v9687_v51, %v25315_v33  ;;  %v10424_v33 = vshll.u32 %v24250_v28, 16  ;;  %v10895_v28 = vshll.u32 %v25401_v59, 16 }
 0x6ea   :  { %v10100_v18 = vpop.f32.mrf.mxu0 }
 0x6eb   :  { %v10426_v32 = vrot.slane %v10424_v33, 1  ;;  %v10897_v35 = vrot.slane %v10895_v28, 1  ;;  %v19214_v18 = vld [vmem:[%s26496_s5 + $0xc8] sm:$0xff] }
 0x6ed   :  { %v25395_v23 = vpop.f32.mrf.mxu1  ;;  %10999 = vmatmul.bf16.gmra.mxu0 %v10890_v9  ;;  %v9934_v54 = vpop.f32.mrf.mxu3 }
 0x6ee   :  { %v9967_v22 = vadd.f32 %v9934_v54, %v25272_v8  ;;  %v10427_v8 = vsel %vm967_vm1, %v10422_v17, %v10426_v32  ;;  %v19234_v54 = vld [vmem:[%s26496_s5 + $0x168] sm:$0xff]  ;;  %v10837_v32 = vunpack.c.l.b16 %v10787_v40  ;;  %v19259_v40 = vld [vmem:[%s26496_s5 + $0x1f8] sm:$0xff] }
 0x6ef   :  { %11791 = vmatpush.bf16.msrb.mxu1 %v19234_v54 }
 0x6f0   :  { %11099 = vmatmul.bf16.gmra.mxu1 %v25297_v11  ;;  %v9689_v20 = vpop.f32.mrf.mxu2  ;;  %v10125_v62 = vadd.f32 %v25333_v1, %v9967_v22  ;;  %v19215_v1 = vld [vmem:[%s26496_s5 + $0xd0] sm:$0xff]  ;;  %v19222_v22 = vld [vmem:[%s26496_s5 + $0x108] sm:$0xff]  ;;  %v25463_v28 = vpack.c.b16 %v10837_v32, %v10837_v32 }
 0x6f1   :  { %v25404_v6 = vadd.f32 %v9689_v20, %v25327_v25  ;;  %v10891_v25 = vshrl.u32 %v25365_v42, 16  ;;  %11371 = vmatpush.bf16.msrb.mxu3 %v19215_v1  ;;  %v26616_v1 = vld [vmem:[#allocation39_spill] sm:$0xff] }
 0x6f2   :  { %v10102_v46 = vpop.f32.mrf.mxu0  ;;  %10665 = vmatmul.bf16.gmra.mxu3 %v26614_v48  ;;  %v25456_v20 = vadd.f32 %v25375_v53, %v10125_v62  ;;  %v11148_v53 = vrot.slane %v25269_v31, 1  ;;  %v19232_v31 = vld [vmem:[%s26496_s5 + $0x158] sm:$0xff] }
 0x6f3   :  { %v10893_v63 = vor.u32 %v10891_v25, %v10889_v41  ;;  %v19221_v46 = vld [vmem:[%s26496_s5 + $0x100] sm:$0xff] }
 0x6f4   :  { %v11149_v25 = vsel %vm1267_vm0, %v11146_v37, %v11148_v53 }
 0x6f5   :  { %v25409_v34 = vpop.f32.mrf.mxu1  ;;  %10527 = vmatmul.bf16.gmra.mxu2 %v10427_v8  ;;  %v9937_v50 = vpop.f32.mrf.mxu3  ;;  %v10898_v52 = vsel %vm967_vm1, %v10893_v63, %v10897_v35  ;;  %11372 = vmatpush.bf16.msrb.mxu3 %v19214_v18  ;;  %v10907_v63 = vshrl.u32 %v25436_v7, 16 }
 0x6f6   :  { %v9968_v27 = vadd.f32 %v9937_v50, %v25288_v13  ;;  %v19223_v13 = vld [vmem:[%s26496_s5 + $0x110] sm:$0xff]  ;;  %v19233_v50 = vld [vmem:[%s26496_s5 + $0x160] sm:$0xff] }
 0x6f7   :  { %11636 = vmatpush.bf16.msrb.mxu0 %v19223_v13  ;;  %11792 = vmatpush.bf16.msrb.mxu1 %v19233_v50  ;;  %v25531_v50 = vld [vmem:[#allocation3 + $0x94] sm:$0xff]  }
 0x6f8   :  { %v9692_v10 = vpop.f32.mrf.mxu2  ;;  %v25417_v36 = vadd.f32 %v25352_v3, %v9968_v27  ;;  %v10911_v27 = vshll.u32 %v25463_v28, 16 }
 0x6f9   :  { %v25420_v47 = vadd.f32 %v9692_v10, %v25349_v0  ;;  %v19213_v10 = vld [vmem:[%s26496_s5 + $0xc0] sm:$0xff] }
 0x6fa   :  { %v10105_v49 = vpop.f32.mrf.mxu0  ;;  %v10913_v21 = vrot.slane %v10911_v27, 1  ;;  %11373 = vmatpush.bf16.msrb.mxu3 %v19213_v10  ;;  %v11152_v27 = vrot.slane %v25331_v4, 1  ;;  %v19243_v10 = vld [vmem:[%s26496_s5 + $0x1b0] sm:$0xff] }
 0x6fb   :  { %11637 = vmatpush.bf16.msrb.mxu0 %v19222_v22  ;;  %v25482_v49 = vadd.f32 %v25395_v23, %v25417_v36  ;;  %11793 = vmatpush.bf16.msrb.mxu1 %v19232_v31 }
 0x6fd   :  { %v10248_v3 = vpop.f32.mrf.mxu1  ;;  %11004 = vmatmul.bf16.gmra.mxu0 %v10898_v52  ;;  %v9939_v0 = vpop.f32.mrf.mxu3 }
 0x6fe   :  { %v9969_v29 = vadd.f32 %v9939_v0, %v25300_v56  ;;  %v11147_v56 = vsel %vm1267_vm0, %v11145_v26, %v11146_v37  ;;  %v10909_v3 = vor.u32 %v10907_v63, %v10905_v60  ;;  %v25488_v0 = vunpack.c.l.b16 %v25234_v44  ;;  %v19230_v37 = vld [vmem:[%s26496_s5 + $0x148] sm:$0xff]  ;;  %v25504_v26 = vld [vmem:[#allocation3 + $0x8c] sm:$0xff]   ;;  %12202 = vmatpush.bf16.msra.mxu3 %v19259_v40 }
 0x6ff   :  { %11638 = vmatpush.bf16.msrb.mxu0 %v19221_v46  ;;  %v19242_v40 = vld [vmem:[%s26496_s5 + $0x1a8] sm:$0xff] }
 0x700   :  { %11104 = vmatmul.bf16.gmra.mxu1 %v25331_v4  ;;  %v9694_v24 = vpop.f32.mrf.mxu2  ;;  %v10127_v2 = vadd.f32 %v25367_v45, %v9969_v29  ;;  %v10899_v45 = vshrl.u32 %v25401_v59, 16  ;;  %v19231_v29 = vld [vmem:[%s26496_s5 + $0x150] sm:$0xff]  ;;  %v10914_v36 = vsel %vm967_vm1, %v10909_v3, %v10913_v21 }
 0x701   :  { %11794 = vmatpush.bf16.msrb.mxu1 %v19231_v29 }
 0x702   :  { %v10107_v14 = vpop.f32.mrf.mxu0  ;;  %10670 = vmatmul.bf16.gmra.mxu3 %v26615_v57  ;;  %v10901_v33 = vor.u32 %v10899_v45, %v10897_v35  ;;  %v25494_v23 = vadd.f32 %v25409_v34, %v10127_v2  ;;  %v11150_v2 = vrot.slane %v25297_v11, 1 }
 0x703   :  { %v11498_v14 = vpack.c.b16 %v25488_v0, %v11481_v55 }
 0x704   :  { %v10906_v61 = vsel %vm967_vm1, %v10901_v33, %v10905_v60  ;;  %v11151_v18 = vsel %vm1267_vm0, %v11148_v53, %v11150_v2 }
 0x705   :  { %v10250_v41 = vpop.f32.mrf.mxu1  ;;  %11226 = vmatmul.bf16.vlgmr.msrb.gmra.mxu2 %v11147_v56  ;;  %v9942_v51 = vpop.f32.mrf.mxu3  ;;  %11795 = vmatpush.bf16.msrb.mxu1 %v19230_v37  ;;  %v11510_v38 = vshll.u32 %v11498_v14, 16  ;;  %v19229_v56 = vld [vmem:[%s26496_s5 + $0x140] sm:$0xff]  ;;  %v11508_v54 = vshrl.u32 %v11498_v14, 16  ;;  %v11717_v37 = vrot.slane %v25504_v26, 1 }
 0x706   :  { %v19244_v41 = vld [vmem:[%s26496_s5 + $0x1b8] sm:$0xff]  ;;  %v11515_v51 = vshll.u32 %v25504_v26, 16 }
 0x707   :  { %11937 = vmatpush.bf16.msra.mxu2 %v19244_v41  ;;  %v11512_v60 = vrot.slane %v11510_v38, 1 }
 0x708   :  { %v25445_v39 = vpop.f32.mrf.mxu2  ;;  %v11517_v22 = vrot.slane %v11515_v51, 1 }
 0x709   :  { %11796 = vmatpush.bf16.msrb.mxu1 %v19229_v56  ;;  %v11513_v46 = vor.u32 %v11512_v60, %v11508_v54  ;;  %v11302_v56 = vpack.c.b16 %v25488_v0, %v20050_v58  ;;  %v25587_v54 = vld [vmem:[%s26497_s6] ss:$0 sm:$0xff] }
 0x70a   :  { %v25447_v9 = vpop.f32.mrf.mxu0 }
 0x70b   :  { %11938 = vmatpush.bf16.msra.mxu2 %v19243_v10 }
 0x70d   :  { %v10253_v17 = vpop.f32.mrf.mxu1  ;;  %11009 = vmatmul.bf16.gmra.mxu0 %v10906_v61  ;;  %v9944_v48 = vpop.f32.mrf.mxu3 }
 0x70e   :  { %v11518_v17 = vsel %vm967_vm1, %v11513_v46, %v11517_v22 }
 0x70f   :  { %11939 = vmatpush.bf16.msra.mxu2 %v19242_v40  ;;  %v19237_v40 = vld [vmem:[%s26496_s5 + $0x180] sm:$0xff] }
 0x710   :  { %11109 = vmatmul.bf16.gmra.mxu1 %v25365_v42  ;;  %v10495_v8 = vpop.f32.mrf.mxu2 }
 0x711   :  { %v19267_v8 = vld [vmem:[%s26496_s5 + $0x238] sm:$0xff] }
 0x712   :  { %v25466_v62 = vpop.f32.mrf.mxu0  ;;  %10675 = vmatmul.bf16.gmra.mxu3 %v26616_v1  ;;  %12360 = vmatpush.bf16.msra.mxu0 %v19267_v8  ;;  %v19265_v8 = vld [vmem:[%s26496_s5 + $0x228] sm:$0xff] }
 0x715   :  { %v10255_v35 = vpop.f32.mrf.mxu1  ;;  %11231 = vmatmul.bf16.gmra.mxu2 %v11149_v25  ;;  %v9947_v5 = vpop.f32.mrf.mxu3 }
 0x716   :  { %v11523_v35 = vshll.u32 %v25531_v50, 16  ;;  %v11696_v5 = vld [vmem:[#allocation3 + $0x84] sm:$0xe] }
 0x717   :  { %v11714_v21 = vunpack.c.l.b16 %v11696_v5  ;;  %v20809_v5 = vld [vmem:[#allocation3 + $0x8c] sm:$0xff]  }
 0x718   :  { %v10498_v13 = vpop.f32.mrf.mxu2 }
 0x719   :  { %v11525_v13 = vrot.slane %v11523_v35, 1  ;;  %v11715_v29 = vpack.c.b16 %v25488_v0, %v11714_v21  ;;  %v11156_v35 = vrot.slane %v25401_v59, 1  ;;  %v19240_v21 = vld [vmem:[%s26496_s5 + $0x198] sm:$0xff] }
 0x71a   :  { %v25485_v52 = vpop.f32.mrf.mxu0 }
 0x71b   :  { %v11716_v14 = vrot.slane %v11715_v29, 1 }
 0x71d   :  { %v25497_v24 = vpop.f32.mrf.mxu1  ;;  %11014 = vmatmul.bf16.gmra.mxu0 %v10914_v36  ;;  %v9949_v44 = vpop.f32.mrf.mxu3 }
 0x720   :  { %11114 = vmatmul.bf16.gmra.mxu1 %v25401_v59  ;;  %v10500_v34 = vpop.f32.mrf.mxu2  ;;  %v19256_v59 = vld [vmem:[%s26496_s5 + $0x1e0] sm:$0xff] }
 0x721   :  { %v19266_v34 = vld [vmem:[%s26496_s5 + $0x230] sm:$0xff] }
 0x722   :  { %v10117_v57 = vpop.f32.mrf.mxu0  ;;  %10680 = vmatmul.bf16.gmra.mxu3 %v24227_v30  ;;  %12361 = vmatpush.bf16.msra.mxu0 %v19266_v34 }
 0x723   :  { %v11718_v57 = vsel %vm1267_vm0, %v11716_v14, %v11717_v37 }
 0x725   :  { %v25516_v45 = vpop.f32.mrf.mxu1  ;;  %11236 = vmatmul.bf16.gmra.mxu2 %v11151_v18  ;;  %v9952_v11 = vpop.f32.mrf.mxu3  ;;  %v10533_v18 = vadd.f32 %v25445_v39, %v25382_v15  ;;  %v11527_v15 = vshrl.u32 %v25531_v50, 16 }
 0x726   :  { %v9974_v33 = vadd.f32 %v9952_v11, %v25386_v19  ;;  %12362 = vmatpush.bf16.msra.mxu0 %v19265_v8  ;;  %v19263_v8 = vld [vmem:[%s26496_s5 + $0x218] sm:$0xff] }
 0x728   :  { %v10503_v30 = vpop.f32.mrf.mxu2  ;;  %v10132_v61 = vadd.f32 %v25447_v9, %v9974_v33 }
 0x72a   :  { %v10980_v32 = vpop.f32.mrf.mxu0  ;;  %v25581_v58 = vadd.f32 %v25497_v24, %v10132_v61  ;;  %v11719_v24 = vrot.slane %v25531_v50, 1 }
 0x72b   :  { %v11529_v32 = vor.u32 %v11527_v15, %v11525_v13 }
 0x72d   :  { %v25524_v48 = vpop.f32.mrf.mxu1  ;;  %11639 = vmatmul.bf16.vlgmr.msrb.gmra.mxu0 %v11518_v17  ;;  %v9954_v53 = vpop.f32.mrf.mxu3 }
 0x72e   :  { %v9975_v19 = vadd.f32 %v9954_v53, %v25404_v6  ;;  %v11153_v6 = vsel %vm1267_vm0, %v11150_v2, %v11152_v27 }
 0x730   :  { %11119 = vmatmul.bf16.gmra.mxu1 %v25436_v7  ;;  %v25533_v9 = vpop.f32.mrf.mxu2  ;;  %v25536_v1 = vadd.f32 %v25466_v62, %v9975_v19  ;;  %v19258_v62 = vld [vmem:[%s26496_s5 + $0x1f0] sm:$0xff] }
 0x731   :  { %12203 = vmatpush.bf16.msra.mxu3 %v19258_v62 }
 0x732   :  { %v10982_v25 = vpop.f32.mrf.mxu0  ;;  %10685 = vmatmul.bf16.gmra.mxu3 %v24260_v16  ;;  %v11519_v16 = vshrl.u32 %v25504_v26, 16  ;;  %v11154_v26 = vrot.slane %v25365_v42, 1  ;;  %v25597_v53 = vadd.f32 %v25516_v45, %v25536_v1  ;;  %v19241_v45 = vld [vmem:[%s26496_s5 + $0x1a0] sm:$0xff] }
 0x733   :  { %v25600_v25 = vld [vmem:[#allocation3 + $0xa4] sm:$0xff]   ;;  %11940 = vmatpush.bf16.msra.mxu2 %v19241_v45 }
 0x734   :  { %v11521_v55 = vor.u32 %v11519_v16, %v11517_v22  ;;  %v11155_v11 = vsel %vm1267_vm0, %v11152_v27, %v11154_v26  ;;  %v11720_v27 = vsel %vm1267_vm0, %v11717_v37, %v11719_v24  ;;  %v11157_v10 = vsel %vm1267_vm0, %v11154_v26, %v11156_v35 }
 0x735   :  { %v10265_v31 = vpop.f32.mrf.mxu1  ;;  %11241 = vmatmul.bf16.gmra.mxu2 %v11153_v6  ;;  %v9957_v63 = vpop.f32.mrf.mxu3  ;;  %12204 = vmatpush.bf16.msra.mxu3 %v19257_v12  ;;  %v11543_v15 = vshrl.u32 %v25600_v25, 16 }
 0x736   :  { %v9976_v4 = vadd.f32 %v9957_v63, %v25420_v47  ;;  %v11526_v44 = vsel %vm967_vm1, %v11521_v55, %v11525_v13  ;;  %v11539_v31 = vshll.u32 %v25600_v25, 16 }
 0x737   :  { %11941 = vmatpush.bf16.msra.mxu2 %v19240_v21  ;;  %v19254_v21 = vld [vmem:[%s26496_s5 + $0x1d0] sm:$0xff] }
 0x738   :  { %v25550_v43 = vpop.f32.mrf.mxu2  ;;  %v25553_v3 = vadd.f32 %v25485_v52, %v9976_v4  ;;  %v25562_v52 = vld [vmem:[#allocation3 + $0x9c] sm:$0xff]   ;;  %v11541_v13 = vrot.slane %v11539_v31, 1 }
 0x739   :  { %v11531_v51 = vshll.u32 %v25562_v52, 16  ;;  %v11535_v16 = vshrl.u32 %v25562_v52, 16  ;;  %12205 = vmatpush.bf16.msra.mxu3 %v19256_v59  ;;  %v11721_v37 = vrot.slane %v25562_v52, 1  ;;  %v25635_v52 = vld [vmem:[#allocation3 + $0xac] sm:$0xff]  }
 0x73a   :  { %v10985_v36 = vpop.f32.mrf.mxu0  ;;  %v25615_v4 = vadd.f32 %v25524_v48, %v25553_v3  ;;  %v19239_v48 = vld [vmem:[%s26496_s5 + $0x190] sm:$0xff]  ;;  %v19264_v3 = vld [vmem:[%s26496_s5 + $0x220] sm:$0xff] }
 0x73b   :  { %v11533_v39 = vrot.slane %v11531_v51, 1  ;;  %11942 = vmatpush.bf16.msra.mxu2 %v19239_v48  ;;  %12363 = vmatpush.bf16.msra.mxu0 %v19264_v3 }
 0x73d   :  { %v11085_v47 = vpop.f32.mrf.mxu1  ;;  %11644 = vmatmul.bf16.gmra.mxu0 %v11526_v44  ;;  %v9959_v2 = vpop.f32.mrf.mxu3  ;;  %v11534_v61 = vsel %vm967_vm1, %v11529_v32, %v11533_v39  ;;  %v11537_v55 = vor.u32 %v11535_v16, %v11533_v39  ;;  %v19283_v32 = vld [vmem:[%s26496_s5 + $0x78] sm:$0xff]  ;;  %v11551_v16 = vshrl.u32 %v25635_v52, 16 }
 0x73e   :  { %v11722_v2 = vsel %vm1267_vm0, %v11719_v24, %v11721_v37  ;;  %12625 = vmatpush.bf16.msra.mxu1 %v19283_v32 }
 0x73f   :  { %v11542_v44 = vsel %vm967_vm1, %v11537_v55, %v11541_v13  ;;  %12364 = vmatpush.bf16.msra.mxu0 %v19263_v8 }
 0x740   :  { %11797 = vmatmul.bf16.vlgmr.msrb.gmra.mxu1 %v11718_v57  ;;  %v25564_v38 = vpop.f32.mrf.mxu2  ;;  %v19238_v57 = vld [vmem:[%s26496_s5 + $0x188] sm:$0xff] }
 0x741   :  { %11943 = vmatpush.bf16.msra.mxu2 %v19238_v57  ;;  %v19262_v57 = vld [vmem:[%s26496_s5 + $0x210] sm:$0xff] }
 0x742   :  { %v10987_v41 = vpop.f32.mrf.mxu0  ;;  %11374 = vmatmul.bf16.vlgmr.msrb.gmra.mxu3 %v11302_v56  ;;  %v11158_v56 = vrot.slane %v25436_v7, 1 }
 0x743   :  { %12365 = vmatpush.bf16.msra.mxu0 %v19262_v57  ;;  %v19278_v57 = vld [vmem:[%s26496_s5 + $0x50] sm:$0xff] }
 0x745   :  { %v11087_v60 = vpop.f32.mrf.mxu1  ;;  %11246 = vmatmul.bf16.gmra.mxu2 %v11155_v11  ;;  %v10651_v42 = vpop.f32.mrf.mxu3  ;;  %v11159_v11 = vsel %vm1267_vm0, %v11156_v35, %v11158_v56  ;;  %v25662_v35 = vld [vmem:[#allocation3 + $0xb4] sm:$0xff]  }
 0x746   :  { %v10691_v0 = vadd.f32 %v10651_v42, %v10533_v18  ;;  %v11547_v18 = vshll.u32 %v25635_v52, 16  ;;  %11944 = vmatpush.bf16.msra.mxu2 %v19237_v40 }
 0x748   :  { %v10513_v33 = vpop.f32.mrf.mxu2  ;;  %v10707_v22 = vadd.f32 %v25587_v54, %v10691_v0  ;;  %v19255_v0 = vld [vmem:[%s26496_s5 + $0x1d8] sm:$0xff]  ;;  %v11549_v39 = vrot.slane %v11547_v18, 1  ;;  %v20815_v18 = vld [vmem:[#allocation3 + $0xa4] sm:$0xff]  }
 0x749   :  { %12206 = vmatpush.bf16.msra.mxu3 %v19255_v0 }
 0x74a   :  { %v10990_v30 = vpop.f32.mrf.mxu0  ;;  %v10723_v46 = vmax.f32 %v10707_v22, 0.0  ;;  %v11553_v55 = vor.u32 %v11551_v16, %v11549_v39 }
 0x74c   :  { %10739 = vst [vmem:[#allocation4 + $0x80] sm:$0xff] %v10723_v46  ;;  %v11723_v46 = vrot.slane %v25600_v25, 1 }
 0x74d   :  { %v11090_v17 = vpop.f32.mrf.mxu1  ;;  %11649 = vmatmul.bf16.gmra.mxu0 %v11534_v61  ;;  %v10653_v19 = vpop.f32.mrf.mxu3  ;;  %v10538_v61 = vadd.f32 %v25533_v9, %v25456_v20  ;;  %v11160_v20 = vrot.slane %v25463_v28, 1  ;;  %v20813_v9 = vld [vmem:[#allocation3 + $0x9c] sm:$0xff]   ;;  %12207 = vmatpush.bf16.msra.mxu3 %v19254_v21 }
 0x74f   :  { %v11161_v45 = vsel %vm1267_vm0, %v11158_v56, %v11160_v20  ;;  %v20106_v56 = vunpack.c.h.b16 %v25436_v7 }
 0x750   :  { %11802 = vmatmul.bf16.gmra.mxu1 %v11720_v27  ;;  %v10515_v50 = vpop.f32.mrf.mxu2 }
 0x751   :  { %v11724_v50 = vsel %vm1267_vm0, %v11721_v37, %v11723_v46  ;;  %v19282_v37 = vld [vmem:[%s26496_s5 + $0x70] sm:$0xff] }
 0x752   :  { %v10992_v6 = vpop.f32.mrf.mxu0  ;;  %11379 = vmatmul.bf16.gmra.mxu3 %v20809_v5  ;;  %12626 = vmatpush.bf16.msra.mxu1 %v19282_v37 }
 0x755   :  { %v11092_v63 = vpop.f32.mrf.mxu1  ;;  %11251 = vmatmul.bf16.gmra.mxu2 %v11157_v10  ;;  %v10656_v1 = vpop.f32.mrf.mxu3  ;;  %v11555_v10 = vshll.u32 %v25662_v35, 16 }
 0x756   :  { %v25608_v62 = vadd.f32 %v11092_v63, %v10987_v41  ;;  %v20811_v41 = vld [vmem:[#allocation3 + $0x94] sm:$0xff]   ;;  %v10539_v63 = vadd.f32 %v25550_v43, %v25482_v49  ;;  %v25679_v49 = vld [vmem:[#allocation3 + $0xc0] sm:$0xf] }
 0x757   :  { %v11496_v3 = vunpack.c.l.b16 %v25679_v49  ;;  %v19302_v49 = vld [vmem:[%s26496_s5 + $0x110] sm:$0xff] }
 0x758   :  { %v10518_v29 = vpop.f32.mrf.mxu2 }
 0x75a   :  { %v10995_v36 = vpop.f32.mrf.mxu0 }
 0x75d   :  { %v11095_v47 = vpop.f32.mrf.mxu1  ;;  %11654 = vmatmul.bf16.gmra.mxu0 %v11542_v44  ;;  %v10658_v14 = vpop.f32.mrf.mxu3 }
 0x75e   :  { %v25629_v34 = vadd.f32 %v11095_v47, %v10990_v30  ;;  %v11545_v30 = vor.u32 %v11543_v15, %v11541_v13  ;;  %v11557_v13 = vrot.slane %v11555_v10, 1  ;;  %v11725_v47 = vrot.slane %v25635_v52, 1  ;;  %v19253_v15 = vld [vmem:[%s26496_s5 + $0x1c8] sm:$0xff] }
 0x75f   :  { %v10540_v14 = vadd.f32 %v25564_v38, %v25494_v23  ;;  %12208 = vmatpush.bf16.msra.mxu3 %v19253_v15  ;;  %v19276_v15 = vld [vmem:[%s26496_s5 + $0x40] sm:$0xff] }
 0x760   :  { %11807 = vmatmul.bf16.gmra.mxu1 %v11722_v2  ;;  %v10520_v26 = vpop.f32.mrf.mxu2  ;;  %v11550_v24 = vsel %vm967_vm1, %v11545_v30, %v11549_v39  ;;  %v11558_v48 = vsel %vm967_vm1, %v11553_v55, %v11557_v13  ;;  %v11726_v52 = vsel %vm1267_vm0, %v11723_v46, %v11725_v47  ;;  %v11559_v39 = vshrl.u32 %v25662_v35, 16 }
 0x762   :  { %v10997_v51 = vpop.f32.mrf.mxu0  ;;  %11384 = vmatmul.bf16.gmra.mxu3 %v20811_v41  ;;  %v11561_v46 = vor.u32 %v11559_v39, %v11557_v13 }
 0x763   :  { %v25696_v51 = vpack.c.b16 %v11496_v3, %v20106_v56 }
 0x765   :  { %v11097_v60 = vpop.f32.mrf.mxu1  ;;  %11256 = vmatmul.bf16.gmra.mxu2 %v11159_v11  ;;  %v10661_v42 = vpop.f32.mrf.mxu3  ;;  %v11563_v40 = vshll.u32 %v25696_v51, 16  ;;  %v11567_v16 = vshrl.u32 %v25696_v51, 16 }
 0x766   :  { %v25643_v12 = vadd.f32 %v11097_v60, %v10992_v6  ;;  %v20990_v42 = vld [vmem:[#allocation3 + $0x88] sm:$0xff]  }
 0x768   :  { %v25649_v33 = vpop.f32.mrf.mxu2 }
 0x76a   :  { %v11000_v22 = vpop.f32.mrf.mxu0 }
 0x76b   :  { %v11565_v22 = vrot.slane %v11563_v40, 1  ;;  %v25747_v40 = vld [vmem:[#allocation3 + $0x90] sm:$0xff] }
 0x76d   :  { %v11100_v17 = vpop.f32.mrf.mxu1  ;;  %11659 = vmatmul.bf16.gmra.mxu0 %v11550_v24  ;;  %v10663_v19 = vpop.f32.mrf.mxu3  ;;  %v19281_v24 = vld [vmem:[%s26496_s5 + $0x68] sm:$0xff]  ;;  %v11566_v8 = vsel %vm967_vm1, %v11561_v46, %v11565_v22  ;;  %v11569_v55 = vor.u32 %v11567_v16, %v11565_v22  ;;  %v25784_v16 = vld [vmem:[#allocation3 + $0xc8] sm:$0xff]  }
 0x76e   :  { %v10696_v27 = vadd.f32 %v10663_v19, %v10538_v61  ;;  %v11727_v61 = vrot.slane %v25662_v35, 1  ;;  %v11447_v17 = vld [vmem:[#allocation3 + $0xc4] sm:$0x1]  ;;  %12627 = vmatpush.bf16.msra.mxu1 %v19281_v24  ;;  %v19260_v35 = vld [vmem:[%s26496_s5 + $0x200] sm:$0xff] }
 0x76f   :  { %v11497_v20 = vunpack.c.l.b16 %v11447_v17 }
 0x770   :  { %11812 = vmatmul.bf16.gmra.mxu1 %v11724_v50  ;;  %v25664_v25 = vpop.f32.mrf.mxu2  ;;  %v10712_v5 = vadd.f32 %v25587_v54, %v10696_v27  ;;  %v19261_v27 = vld [vmem:[%s26496_s5 + $0x208] sm:$0xff] }
 0x771   :  { %12366 = vmatpush.bf16.msra.mxu0 %v19261_v27 }
 0x772   :  { %v11002_v6 = vpop.f32.mrf.mxu0  ;;  %v10728_v31 = vmax.f32 %v10712_v5, 0.0  ;;  %11389 = vmatmul.bf16.gmra.mxu3 %v20813_v9  ;;  %v11728_v9 = vsel %vm1267_vm0, %v11725_v47, %v11727_v61 }
 0x774   :  { %10744 = vst [vmem:[#allocation4 + $0xa8] sm:$0xff] %v10728_v31  ;;  %v20817_v31 = vld [vmem:[#allocation3 + $0xac] sm:$0xff]  }
 0x775   :  { %v11102_v1 = vpop.f32.mrf.mxu1  ;;  %11261 = vmatmul.bf16.gmra.mxu2 %v11161_v45  ;;  %v10666_v59 = vpop.f32.mrf.mxu3  ;;  %12367 = vmatpush.bf16.msra.mxu0 %v19260_v35  ;;  %v20535_v45 = vld [vmem:[#allocation3 + $0x90] sm:$0xff]  }
 0x776   :  { %v10697_v28 = vadd.f32 %v10666_v59, %v10539_v63  ;;  %v25718_v63 = vpack.c.b16 %v11497_v20, %v11497_v20  ;;  %v19280_v59 = vld [vmem:[%s26496_s5 + $0x60] sm:$0xff]  ;;  %v10546_v20 = vadd.f32 %v25664_v25, %v25597_v53  ;;  %v19290_v53 = vld [vmem:[%s26496_s5 + $0xb0] sm:$0xff] }
 0x777   :  { %12628 = vmatpush.bf16.msra.mxu1 %v19280_v59  ;;  %v25777_v59 = vld [vmem:[#allocation3 + $0xc0] sm:$0xff]  }
 0x778   :  { %v25676_v29 = vpop.f32.mrf.mxu2  ;;  %v10713_v36 = vadd.f32 %v25587_v54, %v10697_v28  ;;  %v11571_v13 = vshll.u32 %v25718_v63, 16  ;;  %v11731_v27 = vrot.slane %v25718_v63, 1 }
 0x77a   :  { %v11005_v43 = vpop.f32.mrf.mxu0  ;;  %v10729_v44 = vmax.f32 %v10713_v36, 0.0  ;;  %v19252_v36 = vld [vmem:[%s26496_s5 + $0x1c0] sm:$0xff]  ;;  %v11573_v47 = vrot.slane %v11571_v13, 1  ;;  %v10547_v13 = vadd.f32 %v25676_v29, %v25615_v4 }
 0x77b   :  { %12209 = vmatpush.bf16.msra.mxu3 %v19252_v36 }
 0x77c   :  { %10745 = vst [vmem:[#allocation4 + $0xb0] sm:$0xff] %v10729_v44 }
 0x77d   :  { %v11105_v2 = vpop.f32.mrf.mxu1  ;;  %11664 = vmatmul.bf16.gmra.mxu0 %v11558_v48  ;;  %v10668_v26 = vpop.f32.mrf.mxu3  ;;  %v11729_v48 = vrot.slane %v25696_v51, 1 }
 0x77e   :  { %v10698_v41 = vadd.f32 %v10668_v26, %v10540_v14  ;;  %v11574_v14 = vsel %vm967_vm1, %v11569_v55, %v11573_v47  ;;  %v20541_v55 = vld [vmem:[#allocation3 + $0x88] sm:$0xff]  }
 0x780   :  { %11817 = vmatmul.bf16.gmra.mxu1 %v11726_v52  ;;  %v10530_v23 = vpop.f32.mrf.mxu2  ;;  %v10714_v38 = vadd.f32 %v25587_v54, %v10698_v41  ;;  %v11730_v41 = vsel %vm1267_vm0, %v11727_v61, %v11729_v48  ;;  %v19277_v52 = vld [vmem:[%s26496_s5 + $0x48] sm:$0xff] }
 0x781   :  { %v20819_v23 = vld [vmem:[#allocation3 + $0xb4] sm:$0xff]  }
 0x782   :  { %v11007_v11 = vpop.f32.mrf.mxu0  ;;  %v10730_v60 = vmax.f32 %v10714_v38, 0.0  ;;  %11394 = vmatmul.bf16.gmra.mxu3 %v20815_v18 }
 0x784   :  { %10746 = vst [vmem:[#allocation4 + $0xb8] sm:$0xff] %v10730_v60  ;;  %v20543_v60 = vld [vmem:[#allocation3 + $0x88] sm:$0xe] }
 0x785   :  { %v11107_v7 = vpop.f32.mrf.mxu1  ;;  %11945 = vmatmul.bf16.vlgmr.msra.gmra.mxu2 %v20990_v42  ;;  %v10671_v0 = vpop.f32.mrf.mxu3  ;;  %v20536_v42 = vld [vmem:[#allocation3 + $0x98] sm:$0xff]  }
 0x786   :  { %v10545_v7 = vadd.f32 %v25649_v33, %v25581_v58  ;;  %v12288_v58 = vrot.slane %v25747_v40, 1 }
 0x788   :  { %v11227_v30 = vpop.f32.mrf.mxu2 }
 0x789   :  { %v19299_v30 = vld [vmem:[%s26496_s5 + $0xf8] sm:$0xff] }
 0x78a   :  { %v11010_v32 = vpop.f32.mrf.mxu0  ;;  %12928 = vmatpush.bf16.msrb.mxu3 %v19299_v30 }
 0x78d   :  { %v11110_v19 = vpop.f32.mrf.mxu1  ;;  %11669 = vmatmul.bf16.gmra.mxu0 %v11566_v8  ;;  %v10673_v50 = vpop.f32.mrf.mxu3  ;;  %v19307_v8 = vld [vmem:[%s26496_s5 + $0x138] sm:$0xff] }
 0x78e   :  { %v25712_v5 = vadd.f32 %v11110_v19, %v11005_v43  ;;  %v19279_v43 = vld [vmem:[%s26496_s5 + $0x58] sm:$0xff]  ;;  %13101 = vmatpush.bf16.msrb.mxu0 %v19307_v8 }
 0x78f   :  { %12629 = vmatpush.bf16.msra.mxu1 %v19279_v43  ;;  %v12540_v43 = vshll.u32 %v25777_v59, 16 }
 0x790   :  { %11822 = vmatmul.bf16.gmra.mxu1 %v11728_v9  ;;  %v11229_v6 = vpop.f32.mrf.mxu2 }
 0x791   :  { %v11732_v6 = vsel %vm1267_vm0, %v11729_v48, %v11731_v27  ;;  %v12545_v48 = vshll.u32 %v25784_v16, 16  ;;  %v19297_v27 = vld [vmem:[%s26496_s5 + $0xe8] sm:$0xff] }
 0x792   :  { %v11012_v10 = vpop.f32.mrf.mxu0  ;;  %11399 = vmatmul.bf16.gmra.mxu3 %v20817_v31 }
 0x793   :  { %12630 = vmatpush.bf16.msra.mxu1 %v19278_v57  ;;  %v12542_v57 = vrot.slane %v12540_v43, 1 }
 0x795   :  { %v11112_v1 = vpop.f32.mrf.mxu1  ;;  %11950 = vmatmul.bf16.gmra.mxu2 %v20535_v45  ;;  %v10676_v21 = vpop.f32.mrf.mxu3  ;;  %v20820_v45 = vld [vmem:[#allocation3 + $0xbc] sm:$0xff] }
 0x796   :  { %v25723_v28 = vadd.f32 %v11112_v1, %v11007_v11  ;;  %v20542_v11 = vld [vmem:[#allocation3 + $0x88] sm:$0xf0]  ;;  %v25782_v21 = vld [vmem:[#allocation3 + $0x98] sm:$0xff] }
 0x797   :  { %12631 = vmatpush.bf16.msra.mxu1 %v19277_v52  ;;  %v20544_v22 = vor.u32 %v20543_v60, %v20542_v11  ;;  %v19306_v52 = vld [vmem:[%s26496_s5 + $0x130] sm:$0xff] }
 0x798   :  { %v11232_v37 = vpop.f32.mrf.mxu2  ;;  %13102 = vmatpush.bf16.msrb.mxu0 %v19306_v52  ;;  %v19271_v52 = vld [vmem:[%s26496_s5 + $0x18] sm:$0xff] }
 0x799   :  { %v12287_v17 = vrot.slane %v20544_v22, 1 }
 0x79a   :  { %v11015_v44 = vpop.f32.mrf.mxu0 }
 0x79b   :  { %12632 = vmatpush.bf16.msra.mxu1 %v19276_v15  ;;  %v12289_v50 = vsel %vm1267_vm0, %v12287_v17, %v12288_v58  ;;  %v19298_v44 = vld [vmem:[%s26496_s5 + $0xf0] sm:$0xff] }
 0x79c   :  { %12929 = vmatpush.bf16.msrb.mxu3 %v19298_v44 }
 0x79d   :  { %v11115_v2 = vpop.f32.mrf.mxu1  ;;  %11674 = vmatmul.bf16.gmra.mxu0 %v11574_v14  ;;  %v10678_v26 = vpop.f32.mrf.mxu3  ;;  %v12290_v14 = vrot.slane %v25782_v21, 1 }
 0x79e   :  { %v25738_v56 = vadd.f32 %v11115_v2, %v11010_v32  ;;  %v12081_v2 = vshll.u32 %v20541_v55, 16 }
 0x79f   :  { %v12291_v11 = vsel %vm1267_vm0, %v12288_v58, %v12290_v14  ;;  %v19289_v58 = vld [vmem:[%s26496_s5 + $0xa8] sm:$0xff] }
 0x7a0   :  { %11827 = vmatmul.bf16.gmra.mxu1 %v11730_v41  ;;  %v11234_v51 = vpop.f32.mrf.mxu2  ;;  %v12086_v41 = vshll.u32 %v25747_v40, 16  ;;  %v12083_v60 = vrot.slane %v12081_v2, 1  ;;  %12930 = vmatpush.bf16.msrb.mxu3 %v19297_v27  ;;  %v19288_v2 = vld [vmem:[%s26496_s5 + $0xa0] sm:$0xff] }
 0x7a1   :  { %v25745_v38 = vadd.f32 %v11234_v51, %v25608_v62  ;;  %v19291_v62 = vld [vmem:[%s26496_s5 + $0xb8] sm:$0xff] }
 0x7a2   :  { %v11017_v18 = vpop.f32.mrf.mxu0  ;;  %11404 = vmatmul.bf16.gmra.mxu3 %v20819_v23  ;;  %12816 = vmatpush.bf16.msrb.mxu2 %v19291_v62  ;;  %v12538_v23 = vshrl.u32 %v25777_v59, 16  ;;  %v12088_v15 = vrot.slane %v12086_v41, 1 }
 0x7a3   :  { %v12547_v18 = vrot.slane %v12545_v48, 1 }
 0x7a5   :  { %v11117_v0 = vpop.f32.mrf.mxu1  ;;  %11955 = vmatmul.bf16.gmra.mxu2 %v20536_v42  ;;  %v10681_v39 = vpop.f32.mrf.mxu3 }
 0x7a6   :  { %v10703_v32 = vadd.f32 %v10681_v39, %v10545_v7  ;;  %12817 = vmatpush.bf16.msrb.mxu2 %v19290_v53  ;;  %v12079_v0 = vshrl.u32 %v20541_v55, 16 }
 0x7a8   :  { %v11237_v33 = vpop.f32.mrf.mxu2  ;;  %v10719_v46 = vadd.f32 %v25587_v54, %v10703_v32  ;;  %v12084_v39 = vor.u32 %v12083_v60, %v12079_v0  ;;  %v19270_v0 = vld [vmem:[%s26496_s5 + $0x10] sm:$0xff] }
 0x7a9   :  { %v25763_v24 = vadd.f32 %v11237_v33, %v25629_v34  ;;  %v25808_v33 = vld [vmem:[#allocation3 + $0xa0] sm:$0xff] }
 0x7aa   :  { %v11640_v61 = vpop.f32.mrf.mxu0  ;;  %v10735_v19 = vmax.f32 %v10719_v46, 0.0  ;;  %v12089_v32 = vsel %vm967_vm1, %v12084_v39, %v12088_v15  ;;  %v25810_v46 = vld [vmem:[#allocation3 + $0xd0] sm:$0xff]   ;;  %12818 = vmatpush.bf16.msrb.mxu2 %v19289_v58 }
 0x7ab   :  { %v20538_v61 = vld [vmem:[#allocation3 + $0xa8] sm:$0xff]  }
 0x7ac   :  { %10751 = vst [vmem:[#allocation4 + $0xe0] sm:$0xff] %v10735_v19  ;;  %v19275_v19 = vld [vmem:[%s26496_s5 + $0x38] sm:$0xff] }
 0x7ad   :  { %v11120_v9 = vpop.f32.mrf.mxu1  ;;  %12368 = vmatmul.bf16.vlgmr.msra.gmra.mxu0 %v12289_v50  ;;  %v10683_v34 = vpop.f32.mrf.mxu3  ;;  %v12553_v50 = vshll.u32 %v25810_v46, 16  ;;  %12706 = vmatpush.bf16.msrb.mxu1 %v19275_v19  ;;  %v12098_v19 = vshrl.u32 %v25782_v21, 16 }
 0x7ae   :  { %v10704_v35 = vadd.f32 %v10683_v34, %v10546_v20  ;;  %v12292_v20 = vrot.slane %v25808_v33, 1  ;;  %12819 = vmatpush.bf16.msrb.mxu2 %v19288_v2 }
 0x7b0   :  { %11832 = vmatmul.bf16.gmra.mxu1 %v11732_v6  ;;  %v11239_v31 = vpop.f32.mrf.mxu2  ;;  %v10720_v10 = vadd.f32 %v25587_v54, %v10704_v35  ;;  %v12094_v35 = vshll.u32 %v25782_v21, 16  ;;  %v19274_v6 = vld [vmem:[%s26496_s5 + $0x30] sm:$0xff] }
 0x7b1   :  { %v25775_v63 = vadd.f32 %v11239_v31, %v25643_v12  ;;  %v20537_v12 = vld [vmem:[#allocation3 + $0xa0] sm:$0xff]   ;;  %12707 = vmatpush.bf16.msrb.mxu1 %v19274_v6 }
 0x7b2   :  { %v11642_v1 = vpop.f32.mrf.mxu0  ;;  %v10736_v25 = vmax.f32 %v10720_v10, 0.0  ;;  %11409 = vmatmul.bf16.gmra.mxu3 %v20820_v45  ;;  %v19305_v31 = vld [vmem:[%s26496_s5 + $0x128] sm:$0xff]  ;;  %v12549_v10 = vshrl.u32 %v25784_v16, 16  ;;  %v12555_v45 = vrot.slane %v12553_v50, 1  ;;  %v12096_v43 = vrot.slane %v12094_v35, 1 }
 0x7b3   :  { %v12293_v1 = vsel %vm1267_vm0, %v12290_v14, %v12292_v20  ;;  %13103 = vmatpush.bf16.msrb.mxu0 %v19305_v31  ;;  %v19272_v14 = vld [vmem:[%s26496_s5 + $0x20] sm:$0xff]  ;;  %v12497_v50 = vld [vmem:[#allocation3 + $0xe0] sm:$0x1] }
 0x7b4   :  { %10752 = vst [vmem:[#allocation4 + $0xe8] sm:$0xff] %v10736_v25  ;;  %v12551_v25 = vor.u32 %v12549_v10, %v12547_v18  ;;  %v12100_v35 = vor.u32 %v12098_v19, %v12096_v43  ;;  %v12531_v10 = vunpack.c.l.b16 %v12497_v50  ;;  %v12735_v19 = vld [vmem:[#allocation3 + $0xc0] sm:$0xe] }
 0x7b5   :  { %v11122_v36 = vpop.f32.mrf.mxu1  ;;  %11960 = vmatmul.bf16.gmra.mxu2 %v20537_v12  ;;  %v10686_v37 = vpop.f32.mrf.mxu3 }
 0x7b6   :  { %v10705_v47 = vadd.f32 %v10686_v37, %v10547_v13  ;;  %v19273_v13 = vld [vmem:[%s26496_s5 + $0x28] sm:$0xff]  ;;  %v12090_v36 = vshrl.u32 %v25747_v40, 16  ;;  %v12556_v55 = vsel %vm967_vm1, %v12551_v25, %v12555_v45  ;;  %v25845_v40 = vld [vmem:[#allocation3 + $0xa8] sm:$0xff]  ;;  %v25903_v25 = vld [vmem:[#allocation3 + $0xb0] sm:$0xff] }
 0x7b7   :  { %12708 = vmatpush.bf16.msrb.mxu1 %v19273_v13  ;;  %v25907_v13 = vpack.c.b16 %v12531_v10, %v12531_v10  ;;  %v12118_v50 = vshll.u32 %v25903_v25, 16  ;;  %v12114_v10 = vshrl.u32 %v25845_v40, 16 }
 0x7b8   :  { %v11242_v4 = vpop.f32.mrf.mxu2  ;;  %v10721_v29 = vadd.f32 %v25587_v54, %v10705_v47  ;;  %v12543_v54 = vor.u32 %v12542_v57, %v12538_v23  ;;  %v12092_v37 = vor.u32 %v12090_v36, %v12088_v15  ;;  %v20539_v57 = vld [vmem:[#allocation3 + $0xb0] sm:$0xff]   ;;  %v19286_v15 = vld [vmem:[%s26496_s5 + $0x90] sm:$0xff] }
 0x7b9   :  { %v25847_v4 = vld [vmem:[#allocation3 + $0xd8] sm:$0xff]   ;;  %v19295_v36 = vld [vmem:[%s26496_s5 + $0xd8] sm:$0xff] }
 0x7ba   :  { %v11645_v26 = vpop.f32.mrf.mxu0  ;;  %v10737_v51 = vmax.f32 %v10721_v29, 0.0  ;;  %v12548_v62 = vsel %vm967_vm1, %v12543_v54, %v12547_v18  ;;  %v12097_v48 = vsel %vm967_vm1, %v12092_v37, %v12096_v43  ;;  %v25849_v29 = vld [vmem:[#allocation3 + $0xdc] sm:$0xf]  ;;  %v19296_v23 = vld [vmem:[%s26496_s5 + $0xe0] sm:$0xff]  ;;  %v12561_v18 = vshll.u32 %v25847_v4, 16 }
 0x7bb   :  { %12709 = vmatpush.bf16.msrb.mxu1 %v19272_v14  ;;  %12931 = vmatpush.bf16.msrb.mxu3 %v19296_v23  ;;  %v12296_v37 = vrot.slane %v25903_v25, 1  ;;  %v12565_v14 = vshrl.u32 %v25847_v4, 16 }
 0x7bc   :  { %10753 = vst [vmem:[#allocation4 + $0xf0] sm:$0xff] %v10737_v51  ;;  %v19287_v51 = vld [vmem:[%s26496_s5 + $0x98] sm:$0xff]  ;;  %v12563_v39 = vrot.slane %v12561_v18, 1 }
 0x7bd   :  { %v11798_v7 = vpop.f32.mrf.mxu1  ;;  %12373 = vmatmul.bf16.gmra.mxu0 %v12291_v11  ;;  %v10688_v42 = vpop.f32.mrf.mxu3  ;;  %v12294_v11 = vrot.slane %v25845_v40, 1  ;;  %12820 = vmatpush.bf16.msrb.mxu2 %v19287_v51 }
 0x7be   :  { %v12102_v42 = vshll.u32 %v25808_v33, 16 }
 0x7bf   :  { %12710 = vmatpush.bf16.msrb.mxu1 %v19271_v52  ;;  %12932 = vmatpush.bf16.msrb.mxu3 %v19295_v36  ;;  %v12567_v52 = vor.u32 %v12565_v14, %v12563_v39  ;;  %v12297_v23 = vsel %vm1267_vm0, %v12294_v11, %v12296_v37  ;;  %v19323_v14 = vld [vmem:[%s26496_s5 + $0x1b8] sm:$0xff] }
 0x7c0   :  { %12633 = vmatmul.bf16.vlgmr.msra.gmra.mxu1 %v12548_v62  ;;  %v11244_v22 = vpop.f32.mrf.mxu2  ;;  %v12557_v62 = vshrl.u32 %v25810_v46, 16  ;;  %v12104_v27 = vrot.slane %v12102_v42, 1 }
 0x7c1   :  { %v19304_v22 = vld [vmem:[%s26496_s5 + $0x120] sm:$0xff]  ;;  %12821 = vmatpush.bf16.msrb.mxu2 %v19286_v15 }
 0x7c2   :  { %v25802_v30 = vpop.f32.mrf.mxu0  ;;  %12210 = vmatmul.bf16.vlgmr.msra.gmra.mxu3 %v12089_v32  ;;  %v19285_v32 = vld [vmem:[%s26496_s5 + $0x88] sm:$0xff]  ;;  %13104 = vmatpush.bf16.msrb.mxu0 %v19304_v22  ;;  %v12105_v21 = vsel %vm967_vm1, %v12100_v35, %v12104_v27 }
 0x7c3   :  { %12711 = vmatpush.bf16.msrb.mxu1 %v19270_v0 }
 0x7c5   :  { %v11800_v17 = vpop.f32.mrf.mxu1  ;;  %11965 = vmatmul.bf16.gmra.mxu2 %v20538_v61  ;;  %v11375_v8 = vpop.f32.mrf.mxu3  ;;  %v12559_v61 = vor.u32 %v12557_v62, %v12555_v45 }
 0x7c6   :  { %v19269_v17 = vld [vmem:[%s26496_s5 + $0x8] sm:$0xff]  ;;  %12822 = vmatpush.bf16.msrb.mxu2 %v19285_v32 }
 0x7c7   :  { %12712 = vmatpush.bf16.msrb.mxu1 %v19269_v17 }
 0x7c8   :  { %v11247_v9 = vpop.f32.mrf.mxu2 }
 0x7c9   :  { %v12564_v9 = vsel %vm967_vm1, %v12559_v61, %v12563_v39  ;;  %v25936_v61 = vld [vmem:[#allocation3 + $0xb8] sm:$0xff] }
 0x7ca   :  { %v25820_v34 = vpop.f32.mrf.mxu0 }
 0x7cd   :  { %v11803_v53 = vpop.f32.mrf.mxu1  ;;  %12378 = vmatmul.bf16.gmra.mxu0 %v12293_v1  ;;  %v11377_v12 = vpop.f32.mrf.mxu3 }
 0x7ce   :  { %v19284_v53 = vld [vmem:[%s26496_s5 + $0x80] sm:$0xff] }
 0x7cf   :  { %12823 = vmatpush.bf16.msrb.mxu2 %v19284_v53 }
 0x7d0   :  { %12638 = vmatmul.bf16.gmra.mxu1 %v12556_v55  ;;  %v11249_v44 = vpop.f32.mrf.mxu2  ;;  %v12569_v55 = vshll.u32 %v25907_v13, 16 }
 0x7d2   :  { %v25836_v47 = vpop.f32.mrf.mxu0  ;;  %12215 = vmatmul.bf16.gmra.mxu3 %v12097_v48  ;;  %v12571_v51 = vrot.slane %v12569_v55, 1 }
 0x7d3   :  { %13331 = vmatpush.bf16.msra.mxu2 %v19323_v14  ;;  %v19317_v14 = vld [vmem:[%s26496_s5 + $0x188] sm:$0xff] }
 0x7d4   :  { %v12572_v0 = vsel %vm967_vm1, %v12567_v52, %v12571_v51  ;;  %v12126_v51 = vshll.u32 %v25936_v61, 16 }
 0x7d5   :  { %v25851_v26 = vpop.f32.mrf.mxu1  ;;  %11970 = vmatmul.bf16.gmra.mxu2 %v20539_v57  ;;  %v11380_v41 = vpop.f32.mrf.mxu3 }
 0x7d6   :  { %v12110_v41 = vshll.u32 %v25845_v40, 16 }
 0x7d8   :  { %v11252_v60 = vpop.f32.mrf.mxu2 }
 0x7d9   :  { %v25865_v7 = vadd.f32 %v11252_v60, %v25712_v5  ;;  %v12295_v5 = vsel %vm1267_vm0, %v12292_v20, %v12294_v11 }
 0x7da   :  { %v11655_v54 = vpop.f32.mrf.mxu0 }
 0x7db   :  { %v12112_v54 = vrot.slane %v12110_v41, 1 }
 0x7dd   :  { %v25884_v58 = vpop.f32.mrf.mxu1  ;;  %12383 = vmatmul.bf16.gmra.mxu0 %v12295_v5  ;;  %v11382_v8 = vpop.f32.mrf.mxu3 }
 0x7de   :  { %v11418_v20 = vadd.f32 %v11382_v8, %v25745_v38  ;;  %v19268_v38 = vld [vmem:[%s26496_s5] sm:$0xff]  ;;  %v12298_v8 = vrot.slane %v25936_v61, 1 }
 0x7df   :  { %12713 = vmatpush.bf16.msrb.mxu1 %v19268_v38  ;;  %v12116_v38 = vor.u32 %v12114_v10, %v12112_v54 }
 0x7e0   :  { %12643 = vmatmul.bf16.gmra.mxu1 %v12564_v9  ;;  %v11254_v6 = vpop.f32.mrf.mxu2  ;;  %v11683_v31 = vadd.f32 %v25802_v30, %v11418_v20  ;;  %v20114_v20 = vunpack.c.h.b16 %v25777_v59  ;;  %v12753_v9 = vunpack.c.l.b16 %v12735_v19  ;;  %v12299_v35 = vsel %vm1267_vm0, %v12296_v37, %v12298_v8  ;;  %v19315_v37 = vld [vmem:[%s26496_s5 + $0x178] sm:$0xff] }
 0x7e1   :  { %v25894_v45 = vadd.f32 %v11254_v6, %v25723_v28  ;;  %v20991_v28 = vld [vmem:[#allocation3 + $0xb8] sm:$0xff]  }
 0x7e2   :  { %v11657_v1 = vpop.f32.mrf.mxu0  ;;  %12220 = vmatmul.bf16.gmra.mxu3 %v12105_v21  ;;  %v12754_v21 = vpack.c.b16 %v20114_v20, %v12753_v9  ;;  %v19319_v9 = vld [vmem:[%s26496_s5 + $0x198] sm:$0xff] }
 0x7e3   :  { %v12120_v1 = vrot.slane %v12118_v50, 1  ;;  %13219 = vmatpush.bf16.msra.mxu1 %v19315_v37  ;;  %v19311_v50 = vld [vmem:[%s26496_s5 + $0x158] sm:$0xff] }
 0x7e4   :  { %v12755_v36 = vrot.slane %v12754_v21, 1 }
 0x7e5   :  { %v25905_v30 = vpop.f32.mrf.mxu1  ;;  %11975 = vmatmul.bf16.gmra.mxu2 %v20991_v28  ;;  %v11385_v12 = vpop.f32.mrf.mxu3 }
 0x7e6   :  { %v11419_v43 = vadd.f32 %v11385_v12, %v25763_v24  ;;  %v19303_v24 = vld [vmem:[%s26496_s5 + $0x118] sm:$0xff]  ;;  %v12121_v12 = vsel %vm967_vm1, %v12116_v38, %v12120_v1 }
 0x7e7   :  { %13105 = vmatpush.bf16.msrb.mxu0 %v19303_v24 }
 0x7e8   :  { %v11257_v44 = vpop.f32.mrf.mxu2  ;;  %v25916_v48 = vadd.f32 %v25820_v34, %v11419_v43  ;;  %v11854_v34 = vld [vmem:[#allocation3 + $0xc4] sm:$0xf] }
 0x7e9   :  { %v25920_v2 = vadd.f32 %v11257_v44, %v25738_v56  ;;  %v12106_v56 = vshrl.u32 %v25808_v33, 16  ;;  %v11872_v15 = vunpack.c.l.b16 %v11854_v34  ;;  %v25961_v43 = vld [vmem:[#allocation3 + $0xc0] sm:$0xff] }
 0x7ea   :  { %v11660_v57 = vpop.f32.mrf.mxu0  ;;  %v19293_v44 = vld [vmem:[%s26496_s5 + $0xc8] sm:$0xff]  ;;  %v12300_v41 = vrot.slane %v25961_v43, 1 }
 0x7eb   :  { %v12108_v62 = vor.u32 %v12106_v56, %v12104_v27  ;;  %v11880_v32 = vpack.c.b16 %v11872_v15, %v11496_v3  ;;  %v25949_v3 = vadd.f32 %v25851_v26, %v11683_v31  ;;  %13106 = vmatpush.bf16.msrb.mxu0 %v19302_v49  ;;  %v12756_v26 = vrot.slane %v25784_v16, 1  ;;  %v19301_v34 = vld [vmem:[%s26496_s5 + $0x108] sm:$0xff]  ;;  %v19300_v56 = vld [vmem:[%s26496_s5 + $0x100] sm:$0xff] }
 0x7ec   :  { %v25975_v57 = vadd.f32 %v25884_v58, %v25916_v48  ;;  %v19322_v58 = vld [vmem:[%s26496_s5 + $0x1b0] sm:$0xff]  ;;  %v12122_v15 = vshrl.u32 %v25903_v25, 16  ;;  %v19320_v25 = vld [vmem:[%s26496_s5 + $0x1a0] sm:$0xff] }
 0x7ed   :  { %12388 = vmatmul.bf16.gmra.mxu0 %v12297_v23  ;;  %v11387_v18 = vpop.f32.mrf.mxu3  ;;  %v11813_v60 = vpop.f32.mrf.mxu1  ;;  %v12113_v11 = vsel %vm967_vm1, %v12108_v62, %v12112_v54  ;;  %v12757_v40 = vsel %vm1267_vm0, %v12755_v36, %v12756_v26  ;;  %v19314_v23 = vld [vmem:[%s26496_s5 + $0x170] sm:$0xff]  ;;  %13332 = vmatpush.bf16.msra.mxu2 %v19322_v58  ;;  %v12128_v62 = vrot.slane %v12126_v51, 1  ;;  %v19292_v49 = vld [vmem:[%s26496_s5 + $0xc0] sm:$0xff]  ;;  %v19309_v36 = vld [vmem:[%s26496_s5 + $0x148] sm:$0xff] }
 0x7ee   :  { %v11420_v42 = vadd.f32 %v11387_v18, %v25775_v63  ;;  %v19294_v63 = vld [vmem:[%s26496_s5 + $0xd0] sm:$0xff]  ;;  %v12301_v60 = vsel %vm1267_vm0, %v12298_v8, %v12300_v41  ;;  %13220 = vmatpush.bf16.msra.mxu1 %v19314_v23  ;;  %v26055_v23 = vld [vmem:[#allocation3 + $0xcc] sm:$0xff]  }
 0x7ef   :  { %12933 = vmatpush.bf16.msrb.mxu3 %v19294_v63  ;;  %13107 = vmatpush.bf16.msrb.mxu0 %v19301_v34  ;;  %v12018_v54 = vld [vmem:[#allocation3 + $0xc8] sm:$0x1]  ;;  %v19312_v63 = vld [vmem:[%s26496_s5 + $0x160] sm:$0xff] }
 0x7f0   :  { %12648 = vmatmul.bf16.gmra.mxu1 %v12572_v0  ;;  %v11259_v39 = vpop.f32.mrf.mxu2  ;;  %v11685_v22 = vadd.f32 %v25836_v47, %v11420_v42  ;;  %v19313_v42 = vld [vmem:[%s26496_s5 + $0x168] sm:$0xff] }
 0x7f1   :  { %v12124_v39 = vor.u32 %v12122_v15, %v12120_v1  ;;  %v12965_v1 = vld [vmem:[#allocation3 + $0xc4] sm:$0xf]  ;;  %v19334_v15 = vld [vmem:[%s26496_s5 + $0x1f8] sm:$0xff] }
 0x7f2   :  { %v11662_v5 = vpop.f32.mrf.mxu0  ;;  %12225 = vmatmul.bf16.gmra.mxu3 %v12113_v11  ;;  %v25991_v48 = vadd.f32 %v25905_v30, %v11685_v22  ;;  %v19321_v30 = vld [vmem:[%s26496_s5 + $0x1a8] sm:$0xff]  ;;  %v12068_v22 = vunpack.c.l.b16 %v12018_v54  ;;  %v12758_v11 = vrot.slane %v25810_v46, 1  ;;  %13221 = vmatpush.bf16.msra.mxu1 %v19313_v42 }
 0x7f3   :  { %12934 = vmatpush.bf16.msrb.mxu3 %v19293_v44  ;;  %13108 = vmatpush.bf16.msrb.mxu0 %v19300_v56  ;;  %v19316_v56 = vld [vmem:[%s26496_s5 + $0x180] sm:$0xff] }
 0x7f4   :  { %13333 = vmatpush.bf16.msra.mxu2 %v19321_v30  ;;  %v12759_v8 = vsel %vm1267_vm0, %v12756_v26, %v12758_v11  ;;  %v26034_v26 = vunpack.c.l.b16 %v25784_v16 }
 0x7f5   :  { %11980 = vmatmul.bf16.gmra.mxu2 %v11880_v32  ;;  %v11390_v33 = vpop.f32.mrf.mxu3  ;;  %v11815_v17 = vpop.f32.mrf.mxu1 }
 0x7f6   :  { %v12129_v33 = vsel %vm967_vm1, %v12124_v39, %v12128_v62  ;;  %v26013_v17 = vpack.c.b16 %v12068_v22, %v12068_v22  ;;  %13222 = vmatpush.bf16.msra.mxu1 %v19312_v63 }
 0x7f7   :  { %12935 = vmatpush.bf16.msrb.mxu3 %v19292_v49  ;;  %v19342_v49 = vld [vmem:[%s26496_s5 + $0x238] sm:$0xff] }
 0x7f8   :  { %v11262_v47 = vpop.f32.mrf.mxu2  ;;  %13334 = vmatpush.bf16.msra.mxu2 %v19320_v25  ;;  %v12142_v63 = vshll.u32 %v26013_v17, 16  ;;  %13622 = vmatpush.bf16.msra.mxu0 %v19342_v49  ;;  %v19329_v49 = vld [vmem:[%s26496_s5 + $0x1d0] sm:$0xff] }
 0x7fa   :  { %v25942_v27 = vpop.f32.mrf.mxu0  ;;  %13223 = vmatpush.bf16.msra.mxu1 %v19311_v50  ;;  %v12144_v50 = vrot.slane %v12142_v63, 1 }
 0x7fb   :  { %13504 = vmatpush.bf16.msra.mxu3 %v19334_v15 }
 0x7fc   :  { %13335 = vmatpush.bf16.msra.mxu2 %v19319_v9  ;;  %v26093_v9 = vld [vmem:[#allocation3 + $0xd4] sm:$0xff]  }
 0x7fd   :  { %12393 = vmatmul.bf16.gmra.mxu0 %v12299_v35  ;;  %v11392_v6 = vpop.f32.mrf.mxu3  ;;  %v11818_v31 = vpop.f32.mrf.mxu1  ;;  %v13161_v63 = vrot.slane %v26093_v9, 1 }
 0x7fe   :  { %v12302_v6 = vrot.slane %v26013_v17, 1  ;;  %v19318_v31 = vld [vmem:[%s26496_s5 + $0x190] sm:$0xff] }
 0x800   :  { %12714 = vmatmul.bf16.vlgmr.msrb.gmra.mxu1 %v25777_v59  ;;  %v11264_v53 = vpop.f32.mrf.mxu2  ;;  %13336 = vmatpush.bf16.msra.mxu2 %v19318_v31  ;;  %v19338_v59 = vld [vmem:[%s26496_s5 + $0x218] sm:$0xff] }
 0x801   :  { %v12134_v53 = vshll.u32 %v25961_v43, 16 }
 0x802   :  { %v25958_v28 = vpop.f32.mrf.mxu0  ;;  %12230 = vmatmul.bf16.gmra.mxu3 %v12121_v12  ;;  %v12999_v12 = vunpack.c.l.b16 %v12965_v1 }
 0x803   :  { %v12136_v37 = vrot.slane %v12134_v53, 1 }
 0x804   :  { %v13008_v44 = vpack.c.b16 %v26034_v26, %v12999_v12  ;;  %13337 = vmatpush.bf16.msra.mxu2 %v19317_v14  ;;  %v21014_v14 = vld [vmem:[#allocation3 + $0xdc] sm:$0xf0]  }
 0x805   :  { %12824 = vmatmul.bf16.vlgmr.msrb.gmra.mxu2 %v12757_v40  ;;  %v11395_v55 = vpop.f32.mrf.mxu3  ;;  %v11820_v18 = vpop.f32.mrf.mxu1 }
 0x806   :  { %v12130_v55 = vshrl.u32 %v25936_v61, 16  ;;  %v12760_v61 = vrot.slane %v25847_v4, 1  ;;  %v13014_v39 = vshrl.u32 %v13008_v44, 16 }
 0x808   :  { %v11946_v24 = vpop.f32.mrf.mxu2  ;;  %v12132_v51 = vor.u32 %v12130_v55, %v12128_v62  ;;  %v12761_v42 = vsel %vm1267_vm0, %v12758_v11, %v12760_v61  ;;  %13338 = vmatpush.bf16.msra.mxu2 %v19316_v56  ;;  %v19331_v56 = vld [vmem:[%s26496_s5 + $0x1e0] sm:$0xff] }
 0x80a   :  { %v25978_v52 = vpop.f32.mrf.mxu0  ;;  %v12137_v18 = vsel %vm967_vm1, %v12132_v51, %v12136_v37 }
 0x80d   :  { %12398 = vmatmul.bf16.gmra.mxu0 %v12301_v60  ;;  %v11397_v0 = vpop.f32.mrf.mxu3  ;;  %v26016_v19 = vpop.f32.mrf.mxu1  ;;  %v13016_v60 = vshll.u32 %v13008_v44, 16  ;;  %v26113_v44 = vld [vmem:[#allocation3 + $0xe0] sm:$0xff]  }
 0x80f   :  { %v13018_v0 = vrot.slane %v13016_v60, 1 }
 0x810   :  { %12719 = vmatmul.bf16.gmra.mxu1 %v25784_v16  ;;  %v11948_v5 = vpop.f32.mrf.mxu2 }
 0x812   :  { %v11672_v32 = vpop.f32.mrf.mxu0  ;;  %12235 = vmatmul.bf16.gmra.mxu3 %v12129_v33  ;;  %v13019_v33 = vor.u32 %v13018_v0, %v13014_v39 }
 0x815   :  { %12829 = vmatmul.bf16.gmra.mxu2 %v12759_v8  ;;  %v11400_v47 = vpop.f32.mrf.mxu3  ;;  %v26052_v24 = vpop.f32.mrf.mxu1 }
 0x816   :  { %v11425_v35 = vadd.f32 %v11400_v47, %v25865_v7  ;;  %v19310_v7 = vld [vmem:[%s26496_s5 + $0x150] sm:$0xff] }
 0x817   :  { %13224 = vmatpush.bf16.msra.mxu1 %v19310_v7 }
 0x818   :  { %v26030_v10 = vadd.f32 %v25942_v27, %v11425_v35  ;;  %v11951_v21 = vpop.f32.mrf.mxu2  ;;  %v12303_v27 = vsel %vm1267_vm0, %v12300_v41, %v12302_v6  ;;  %v12762_v35 = vrot.slane %v25907_v13, 1  ;;  %v19341_v13 = vld [vmem:[%s26496_s5 + $0x230] sm:$0xff] }
 0x819   :  { %v13029_v21 = vshll.u32 %v26093_v9, 16  ;;  %13623 = vmatpush.bf16.msra.mxu0 %v19341_v13 }
 0x81a   :  { %v11675_v38 = vpop.f32.mrf.mxu0  ;;  %v12763_v53 = vsel %vm1267_vm0, %v12760_v61, %v12762_v35  ;;  %v26107_v12 = vadd.f32 %v26016_v19, %v26030_v10  ;;  %v13159_v61 = vrot.slane %v26055_v23, 1 }
 0x81b   :  { %13225 = vmatpush.bf16.msra.mxu1 %v19309_v36  ;;  %v13138_v38 = vld [vmem:[#allocation3 + $0xc4] sm:$0xe]  ;;  %v13031_v55 = vrot.slane %v13029_v21, 1 }
 0x81c   :  { %v13156_v31 = vunpack.c.l.b16 %v13138_v38 }
 0x81d   :  { %12403 = vmatmul.bf16.gmra.mxu0 %v12303_v27  ;;  %v11402_v40 = vpop.f32.mrf.mxu3  ;;  %v26079_v32 = vpop.f32.mrf.mxu1  ;;  %v19332_v27 = vld [vmem:[%s26496_s5 + $0x1e8] sm:$0xff] }
 0x81e   :  { %v11426_v41 = vadd.f32 %v11402_v40, %v25894_v45  ;;  %v19308_v45 = vld [vmem:[%s26496_s5 + $0x140] sm:$0xff]  ;;  %v13025_v40 = vshrl.u32 %v26055_v23, 16 }
 0x81f   :  { %13226 = vmatpush.bf16.msra.mxu1 %v19308_v45  ;;  %v19340_v45 = vld [vmem:[%s26496_s5 + $0x228] sm:$0xff] }
 0x820   :  { %12724 = vmatmul.bf16.gmra.mxu1 %v25810_v46  ;;  %v26058_v34 = vadd.f32 %v25958_v28, %v11426_v41  ;;  %v26068_v54 = vpop.f32.mrf.mxu2  ;;  %v13021_v28 = vshll.u32 %v26055_v23, 16  ;;  %v26129_v23 = vor.u32 %v21014_v14, %v25849_v29  ;;  %13624 = vmatpush.bf16.msra.mxu0 %v19340_v45  ;;  %v20568_v45 = vld [vmem:[#allocation3 + $0xc8] sm:$0xf0] }
 0x822   :  { %v11677_v58 = vpop.f32.mrf.mxu0  ;;  %12240 = vmatmul.bf16.gmra.mxu3 %v12137_v18  ;;  %v13023_v22 = vrot.slane %v13021_v28, 1  ;;  %v26126_v28 = vadd.f32 %v26052_v24, %v26058_v34  ;;  %v13037_v24 = vshll.u32 %v26129_v23, 16  ;;  %v13033_v34 = vshrl.u32 %v26093_v9, 16 }
 0x824   :  { %v13024_v25 = vsel %vm967_vm1, %v13019_v33, %v13023_v22  ;;  %v13027_v51 = vor.u32 %v13025_v40, %v13023_v22  ;;  %v13035_v39 = vor.u32 %v13033_v34, %v13031_v55  ;;  %v13039_v22 = vrot.slane %v13037_v24, 1  ;;  %v26158_v33 = vld [vmem:[%s26497_s6] ss:$0 sm:$0xff] }
 0x825   :  { %12834 = vmatmul.bf16.gmra.mxu2 %v12761_v42  ;;  %v11405_v30 = vpop.f32.mrf.mxu3  ;;  %v11830_v1 = vpop.f32.mrf.mxu1  ;;  %v12872_v42 = vpack.c.b16 %v26034_v26, %v20114_v20  ;;  %v19330_v20 = vld [vmem:[%s26496_s5 + $0x1d8] sm:$0xff]  ;;  %v13163_v40 = vrot.slane %v26129_v23, 1 }
 0x826   :  { %v11427_v62 = vadd.f32 %v11405_v30, %v25920_v2  ;;  %v12138_v2 = vshrl.u32 %v25961_v43, 16  ;;  %v13032_v58 = vsel %vm967_vm1, %v13027_v51, %v13031_v55  ;;  %v19339_v30 = vld [vmem:[%s26496_s5 + $0x220] sm:$0xff] }
 0x827   :  { %13625 = vmatpush.bf16.msra.mxu0 %v19339_v30  ;;  %v13164_v51 = vsel %vm1267_vm0, %v13161_v63, %v13163_v40 }
 0x828   :  { %v26077_v5 = vadd.f32 %v25978_v52, %v11427_v62  ;;  %v26083_v8 = vpop.f32.mrf.mxu2  ;;  %v19333_v52 = vld [vmem:[%s26496_s5 + $0x1f0] sm:$0xff]  ;;  %v12140_v17 = vor.u32 %v12138_v2, %v12136_v37  ;;  %v13157_v37 = vpack.c.b16 %v26034_v26, %v13156_v31 }
 0x829   :  { %13505 = vmatpush.bf16.msra.mxu3 %v19333_v52  ;;  %v19336_v52 = vld [vmem:[%s26496_s5 + $0x208] sm:$0xff] }
 0x82a   :  { %v12369_v11 = vpop.f32.mrf.mxu0  ;;  %v12145_v43 = vsel %vm967_vm1, %v12140_v17, %v12144_v50  ;;  %v13158_v19 = vrot.slane %v13157_v37, 1  ;;  %v26148_v26 = vadd.f32 %v26079_v32, %v26077_v5  ;;  %v12973_v5 = vld [vmem:[#allocation3 + $0xe4] sm:$0x1]  ;;  %v13162_v50 = vsel %vm1267_vm0, %v13159_v61, %v13161_v63  ;;  %v20853_v17 = vld [vmem:[#allocation3 + $0xcc] sm:$0xff]  }
 0x82b   :  { %13626 = vmatpush.bf16.msra.mxu0 %v19338_v59  ;;  %v19337_v11 = vld [vmem:[%s26496_s5 + $0x210] sm:$0xff]  ;;  %v13007_v2 = vunpack.c.l.b16 %v12973_v5 }
 0x82c   :  { %v13160_v60 = vsel %vm1267_vm0, %v13158_v19, %v13159_v61  ;;  %v19327_v61 = vld [vmem:[%s26496_s5 + $0x1c0] sm:$0xff] }
 0x82d   :  { %13109 = vmatmul.bf16.vlgmr.msrb.gmra.mxu0 %v13024_v25  ;;  %v11407_v47 = vpop.f32.mrf.mxu3  ;;  %13506 = vmatpush.bf16.msra.mxu3 %v19332_v27  ;;  %v11833_v10 = vpop.f32.mrf.mxu1  ;;  %v13040_v25 = vsel %vm967_vm1, %v13035_v39, %v13039_v22 }
 0x82e   :  { %v20855_v10 = vld [vmem:[#allocation3 + $0xd4] sm:$0xff]  }
 0x82f   :  { %13627 = vmatpush.bf16.msra.mxu0 %v19337_v11 }
 0x830   :  { %12729 = vmatmul.bf16.gmra.mxu1 %v25847_v4  ;;  %v26109_v36 = vpop.f32.mrf.mxu2 }
 0x831   :  { %13507 = vmatpush.bf16.msra.mxu3 %v19331_v56  ;;  %v11990_v56 = vadd.f32 %v26083_v8, %v25975_v57  ;;  %v11991_v8 = vadd.f32 %v26109_v36, %v25991_v48  ;;  %v20567_v48 = vld [vmem:[#allocation3 + $0xc8] sm:$0xff]  }
 0x832   :  { %v12371_v6 = vpop.f32.mrf.mxu0  ;;  %12245 = vmatmul.bf16.gmra.mxu3 %v12145_v43  ;;  %v13012_v43 = vpack.c.b16 %v13007_v2, %v13007_v2 }
 0x833   :  { %13628 = vmatpush.bf16.msra.mxu0 %v19336_v52  ;;  %v19335_v6 = vld [vmem:[%s26496_s5 + $0x200] sm:$0xff] }
 0x834   :  { %v13045_v1 = vshll.u32 %v13012_v43, 16  ;;  %v13165_v39 = vrot.slane %v13012_v43, 1 }
 0x835   :  { %12839 = vmatmul.bf16.gmra.mxu2 %v12763_v53  ;;  %v11410_v7 = vpop.f32.mrf.mxu3  ;;  %v11835_v62 = vpop.f32.mrf.mxu1  ;;  %13508 = vmatpush.bf16.msra.mxu3 %v19330_v20  ;;  %v13041_v53 = vshrl.u32 %v26129_v23, 16 }
 0x836   :  { %v19328_v7 = vld [vmem:[%s26496_s5 + $0x1c8] sm:$0xff]  ;;  %v13047_v27 = vrot.slane %v13045_v1, 1  ;;  %v13166_v63 = vsel %vm1267_vm0, %v13163_v40, %v13165_v39 }
 0x837   :  { %13629 = vmatpush.bf16.msra.mxu0 %v19335_v6  ;;  %v13043_v31 = vor.u32 %v13041_v53, %v13039_v22  ;;  %v13417_v53 = vshrl.u32 %v20567_v48, 16  ;;  %v19326_v40 = vld [vmem:[#allocation3 + $0xe0] sm:$0xff] }
 0x838   :  { %v11961_v0 = vpop.f32.mrf.mxu2 }
 0x839   :  { %13509 = vmatpush.bf16.msra.mxu3 %v19329_v49  ;;  %v13048_v37 = vsel %vm967_vm1, %v13043_v31, %v13047_v27 }
 0x83a   :  { %v12374_v41 = vpop.f32.mrf.mxu0 }
 0x83d   :  { %13114 = vmatmul.bf16.gmra.mxu0 %v13032_v58  ;;  %v11412_v18 = vpop.f32.mrf.mxu3  ;;  %v12634_v9 = vpop.f32.mrf.mxu1  ;;  %13510 = vmatpush.bf16.msra.mxu3 %v19328_v7 }
 0x840   :  { %13227 = vmatmul.bf16.vlgmr.msra.gmra.mxu1 %v13160_v60  ;;  %v11963_v32 = vpop.f32.mrf.mxu2 }
 0x841   :  { %13511 = vmatpush.bf16.msra.mxu3 %v19327_v61  ;;  %v20856_v32 = vld [vmem:[#allocation3 + $0xdc] sm:$0xff] }
 0x842   :  { %v12376_v15 = vpop.f32.mrf.mxu0  ;;  %12936 = vmatmul.bf16.vlgmr.msrb.gmra.mxu3 %v12872_v42 }
 0x845   :  { %13339 = vmatmul.bf16.vlgmr.msra.gmra.mxu2 %v25784_v16  ;;  %v12211_v29 = vpop.f32.mrf.mxu3  ;;  %v26178_v55 = vpop.f32.mrf.mxu1 }
 0x848   :  { %v11966_v21 = vpop.f32.mrf.mxu2 }
 0x84a   :  { %v26150_v16 = vpop.f32.mrf.mxu0 }
 0x84d   :  { %13119 = vmatmul.bf16.gmra.mxu0 %v13040_v25  ;;  %v12213_v47 = vpop.f32.mrf.mxu3  ;;  %v26192_v42 = vpop.f32.mrf.mxu1 }
 0x850   :  { %13232 = vmatmul.bf16.gmra.mxu1 %v13162_v50  ;;  %v11968_v58 = vpop.f32.mrf.mxu2  ;;  %v19325_v50 = vld [vmem:[#allocation3 + $0xd8] sm:$0xff] }
 0x851   :  { %v13564_v49 = vrot.slane %v19325_v50, 1 }
 0x852   :  { %v12381_v35 = vpop.f32.mrf.mxu0  ;;  %12941 = vmatmul.bf16.gmra.mxu3 %v20853_v17  ;;  %v13419_v17 = vshll.u32 %v20567_v48, 16 }
 0x854   :  { %v13421_v1 = vrot.slane %v13419_v17, 1 }
 0x855   :  { %13344 = vmatmul.bf16.gmra.mxu2 %v25810_v46  ;;  %v12216_v38 = vpop.f32.mrf.mxu3  ;;  %v11989_v46 = vadd.f32 %v26068_v54, %v25949_v3  ;;  %v20569_v3 = vld [vmem:[#allocation3 + $0xc8] sm:$0xe]  ;;  %v26188_v54 = vld [vmem:[#allocation3 + $0xd0] sm:$0xff]  ;;  %v26202_v5 = vpop.f32.mrf.mxu1 }
 0x856   :  { %v20570_v0 = vor.u32 %v20569_v3, %v20568_v45  ;;  %v13562_v24 = vrot.slane %v26188_v54, 1  ;;  %v13424_v6 = vshll.u32 %v26188_v54, 16  ;;  %v13422_v31 = vor.u32 %v13421_v1, %v13417_v53 }
 0x858   :  { %v11971_v34 = vpop.f32.mrf.mxu2  ;;  %v13561_v20 = vrot.slane %v20570_v0, 1  ;;  %v13426_v7 = vrot.slane %v13424_v6, 1 }
 0x85a   :  { %v12384_v13 = vpop.f32.mrf.mxu0  ;;  %v13563_v57 = vsel %vm1267_vm0, %v13561_v20, %v13562_v24 }
 0x85b   :  { %v13427_v13 = vsel %vm967_vm1, %v13422_v31, %v13426_v7 }
 0x85d   :  { %13124 = vmatmul.bf16.gmra.mxu0 %v13048_v37  ;;  %v12218_v14 = vpop.f32.mrf.mxu3  ;;  %v12644_v9 = vpop.f32.mrf.mxu1 }
 0x85e   :  { %v12254_v41 = vadd.f32 %v12218_v14, %v11989_v46  ;;  %v13566_v14 = vrot.slane %v19326_v40, 1  ;;  %v13444_v9 = vshrl.u32 %v19326_v40, 16 }
 0x860   :  { %13237 = vmatmul.bf16.gmra.mxu1 %v13164_v51  ;;  %v12412_v19 = vadd.f32 %v12376_v15, %v12254_v41  ;;  %v11973_v2 = vpop.f32.mrf.mxu2  ;;  %v13432_v51 = vshll.u32 %v19325_v50, 16  ;;  %v13567_v61 = vsel %vm1267_vm0, %v13564_v49, %v13566_v14 }
 0x862   :  { %v12386_v18 = vpop.f32.mrf.mxu0  ;;  %v12428_v60 = vadd.f32 %v26158_v33, %v12412_v19  ;;  %12946 = vmatmul.bf16.gmra.mxu3 %v20855_v10  ;;  %v13428_v10 = vshrl.u32 %v26188_v54, 16 }
 0x863   :  { %v13434_v18 = vrot.slane %v13432_v51, 1  ;;  %v19350_v51 = vld [vmem:[%s26498_s7 + $0x38] sm:$0xff] }
 0x864   :  { %v12444_v23 = vmax.f32 %v12428_v60, 0.0  ;;  %v13430_v60 = vor.u32 %v13428_v10, %v13426_v7  ;;  %13834 = vmatpush.bf16.msrb.mxu2 %v19350_v51  ;;  %v19358_v10 = vld [vmem:[%s26498_s7 + $0x78] sm:$0xff]  ;;  %v19380_v51 = vld [vmem:[%s26498_s7 + $0x128] sm:$0xff] }
 0x865   :  { %13349 = vmatmul.bf16.gmra.mxu2 %v25847_v4  ;;  %v12221_v30 = vpop.f32.mrf.mxu3  ;;  %13773 = vmatpush.bf16.msrb.mxu1 %v19358_v10 }
 0x866   :  { %12460 = vst [vmem:[#allocation4 + $0x118] sm:$0xff] %v12444_v23  ;;  %v12255_v15 = vadd.f32 %v12221_v30, %v11990_v56  ;;  %v13435_v56 = vsel %vm967_vm1, %v13430_v60, %v13434_v18  ;;  %v11996_v23 = vadd.f32 %v11971_v34, %v26107_v12  ;;  %v19349_v60 = vld [vmem:[%s26498_s7 + $0x30] sm:$0xff] }
 0x868   :  { %v12413_v29 = vadd.f32 %v26150_v16, %v12255_v15  ;;  %v11976_v21 = vpop.f32.mrf.mxu2  ;;  %v13376_v15 = vld [vmem:[#allocation3 + $0xe8] sm:$0x1]  ;;  %13835 = vmatpush.bf16.msrb.mxu2 %v19349_v60  ;;  %v19371_v60 = vld [vmem:[%s26498_s7 + $0xe0] sm:$0xff] }
 0x86a   :  { %v12389_v59 = vpop.f32.mrf.mxu0  ;;  %v12429_v62 = vadd.f32 %v26158_v33, %v12413_v29 }
 0x86b   :  { %v13410_v59 = vunpack.c.l.b16 %v13376_v15  ;;  %v19356_v15 = vld [vmem:[%s26498_s7 + $0x68] sm:$0xff] }
 0x86c   :  { %v12445_v4 = vmax.f32 %v12429_v62, 0.0  ;;  %v13440_v62 = vshll.u32 %v19326_v40, 16 }
 0x86d   :  { %13630 = vmatmul.bf16.vlgmr.msra.gmra.mxu0 %v13563_v57  ;;  %v12223_v22 = vpop.f32.mrf.mxu3  ;;  %v13436_v57 = vshrl.u32 %v19325_v50, 16 }
 0x86e   :  { %12461 = vst [vmem:[#allocation4 + $0x120] sm:$0xff] %v12445_v4  ;;  %v12256_v11 = vadd.f32 %v12223_v22, %v11991_v8  ;;  %v11997_v8 = vadd.f32 %v11973_v2, %v26126_v28  ;;  %v13415_v22 = vpack.c.b16 %v13410_v59, %v13410_v59  ;;  %v11998_v28 = vadd.f32 %v11976_v21, %v26148_v26 }
 0x870   :  { %13242 = vmatmul.bf16.gmra.mxu1 %v13166_v63  ;;  %v12414_v16 = vadd.f32 %v12381_v35, %v12256_v11  ;;  %v13565_v35 = vsel %vm1267_vm0, %v13562_v24, %v13564_v49  ;;  %v11978_v46 = vpop.f32.mrf.mxu2  ;;  %v13438_v63 = vor.u32 %v13436_v57, %v13434_v18  ;;  %v13568_v34 = vrot.slane %v13415_v22, 1  ;;  %v19346_v57 = vld [vmem:[%s26498_s7 + $0x18] sm:$0xff] }
 0x872   :  { %v12391_v25 = vpop.f32.mrf.mxu0  ;;  %v12430_v47 = vadd.f32 %v26158_v33, %v12414_v16  ;;  %12951 = vmatmul.bf16.gmra.mxu3 %v20856_v32  ;;  %v13442_v16 = vrot.slane %v13440_v62, 1  ;;  %v19355_v62 = vld [vmem:[%s26498_s7 + $0x60] sm:$0xff] }
 0x873   :  { %v13569_v25 = vsel %vm1267_vm0, %v13566_v14, %v13568_v34  ;;  %v19363_v34 = vld [vmem:[%s26498_s7 + $0xa0] sm:$0xff] }
 0x874   :  { %v12446_v52 = vmax.f32 %v12430_v47, 0.0  ;;  %v13443_v48 = vsel %vm967_vm1, %v13438_v63, %v13442_v16  ;;  %v13446_v53 = vor.u32 %v13444_v9, %v13442_v16  ;;  %v19353_v63 = vld [vmem:[%s26498_s7 + $0x50] sm:$0xff] }
 0x875   :  { %v12226_v36 = vpop.f32.mrf.mxu3  ;;  %13354 = vmatmul.bf16.gmra.mxu2 %v26113_v44  ;;  %v12646_v44 = vpop.f32.mrf.mxu1  ;;  %v19345_v16 = vld [vmem:[%s26498_s7 + $0x10] sm:$0xff] }
 0x876   :  { %12462 = vst [vmem:[#allocation4 + $0x128] sm:$0xff] %v12446_v52 }
 0x878   :  { %v11981_v45 = vpop.f32.mrf.mxu2 }
 0x87a   :  { %v12394_v43 = vpop.f32.mrf.mxu0 }
 0x87d   :  { %13635 = vmatmul.bf16.gmra.mxu0 %v13565_v35  ;;  %v12228_v38 = vpop.f32.mrf.mxu3  ;;  %v12649_v58 = vpop.f32.mrf.mxu1 }
 0x880   :  { %v11983_v54 = vpop.f32.mrf.mxu2 }
 0x881   :  { %v19354_v54 = vld [vmem:[%s26498_s7 + $0x58] sm:$0xff] }
 0x882   :  { %v12396_v27 = vpop.f32.mrf.mxu0  ;;  %13512 = vmatmul.bf16.vlgmr.msra.gmra.mxu3 %v13427_v13 }
 0x885   :  { %v12231_v37 = vpop.f32.mrf.mxu3  ;;  %v12651_v24 = vpop.f32.mrf.mxu1 }
 0x886   :  { %v19365_v24 = vld [vmem:[%s26498_s7 + $0xb0] sm:$0xff] }
 0x888   :  { %v12825_v36 = vpop.f32.mrf.mxu2 }
 0x889   :  { %v19351_v36 = vld [vmem:[%s26498_s7 + $0x40] sm:$0xff] }
 0x88a   :  { %v12399_v41 = vpop.f32.mrf.mxu0 }
 0x88d   :  { %13640 = vmatmul.bf16.gmra.mxu0 %v13567_v61  ;;  %v12233_v19 = vpop.f32.mrf.mxu3  ;;  %v12715_v47 = vpop.f32.mrf.mxu1 }
 0x88e   :  { %v19398_v47 = vld [vmem:[%s26498_s7 + $0x1b8] sm:$0xff] }
 0x88f   :  { %14253 = vmatpush.bf16.msrb.mxu0 %v19398_v47 }
 0x890   :  { %v26222_v13 = vpop.f32.mrf.mxu2 }
 0x892   :  { %v12401_v3 = vpop.f32.mrf.mxu0  ;;  %13517 = vmatmul.bf16.gmra.mxu3 %v13435_v56  ;;  %v19366_v56 = vld [vmem:[%s26498_s7 + $0xb8] sm:$0xff] }
 0x893   :  { %13917 = vmatpush.bf16.msrb.mxu3 %v19366_v56  ;;  %v19390_v56 = vld [vmem:[%s26498_s7 + $0x178] sm:$0xff] }
 0x895   :  { %v12236_v30 = vpop.f32.mrf.mxu3  ;;  %v26220_v38 = vpop.f32.mrf.mxu1 }
 0x896   :  { %v12261_v0 = vadd.f32 %v12236_v30, %v11996_v23  ;;  %v19357_v23 = vld [vmem:[%s26498_s7 + $0x70] sm:$0xff] }
 0x897   :  { %13774 = vmatpush.bf16.msrb.mxu1 %v19357_v23  ;;  %13918 = vmatpush.bf16.msrb.mxu3 %v19365_v24  ;;  %v19370_v24 = vld [vmem:[%s26498_s7 + $0xd8] sm:$0xff] }
 0x898   :  { %v12419_v29 = vadd.f32 %v12394_v43, %v12261_v0  ;;  %v13448_v43 = vshll.u32 %v13415_v22, 16  ;;  %v26229_v37 = vpop.f32.mrf.mxu2  ;;  %v19348_v0 = vld [vmem:[%s26498_s7 + $0x28] sm:$0xff] }
 0x899   :  { %13836 = vmatpush.bf16.msrb.mxu2 %v19348_v0 }
 0x89a   :  { %v12404_v20 = vpop.f32.mrf.mxu0  ;;  %v12435_v39 = vadd.f32 %v26158_v33, %v12419_v29  ;;  %v13450_v7 = vrot.slane %v13448_v43, 1  ;;  %v19374_v43 = vld [vmem:[%s26498_s7 + $0xf8] sm:$0xff] }
 0x89b   :  { %13775 = vmatpush.bf16.msrb.mxu1 %v19356_v15 }
 0x89c   :  { %v12451_v4 = vmax.f32 %v12435_v39, 0.0  ;;  %v13451_v26 = vsel %vm967_vm1, %v13446_v53, %v13450_v7  ;;  %v19347_v39 = vld [vmem:[%s26498_s7 + $0x20] sm:$0xff]  ;;  %v19361_v53 = vld [vmem:[%s26498_s7 + $0x90] sm:$0xff] }
 0x89d   :  { %v12238_v11 = vpop.f32.mrf.mxu3  ;;  %13645 = vmatmul.bf16.gmra.mxu0 %v13569_v25  ;;  %v26227_v44 = vpop.f32.mrf.mxu1  ;;  %13837 = vmatpush.bf16.msrb.mxu2 %v19347_v39  ;;  %v19344_v25 = vld [vmem:[%s26498_s7 + $0x8] sm:$0xff]  ;;  %v19373_v7 = vld [vmem:[%s26498_s7 + $0xf0] sm:$0xff] }
 0x89e   :  { %12467 = vst [vmem:[#allocation4 + $0x150] sm:$0xff] %v12451_v4  ;;  %v12262_v12 = vadd.f32 %v12238_v11, %v11997_v8  ;;  %v19364_v4 = vld [vmem:[%s26498_s7 + $0xa8] sm:$0xff]  ;;  %v19377_v39 = vld [vmem:[%s26498_s7 + $0x110] sm:$0xff] }
 0x89f   :  { %13776 = vmatpush.bf16.msrb.mxu1 %v19355_v62  ;;  %13919 = vmatpush.bf16.msrb.mxu3 %v19364_v4  ;;  %v19369_v62 = vld [vmem:[%s26498_s7 + $0xd0] sm:$0xff] }
 0x8a0   :  { %v12420_v32 = vadd.f32 %v12396_v27, %v12262_v12  ;;  %v26238_v61 = vpop.f32.mrf.mxu2 }
 0x8a1   :  { %13838 = vmatpush.bf16.msrb.mxu2 %v19346_v57  ;;  %v12721_v57 = vadd.f32 %v26227_v44, %v26192_v42  ;;  %v19387_v42 = vld [vmem:[%s26498_s7 + $0x160] sm:$0xff] }
 0x8a2   :  { %v12406_v52 = vpop.f32.mrf.mxu0  ;;  %v12436_v50 = vadd.f32 %v26158_v33, %v12420_v32  ;;  %13522 = vmatmul.bf16.gmra.mxu3 %v13443_v48  ;;  %v19352_v32 = vld [vmem:[%s26498_s7 + $0x48] sm:$0xff] }
 0x8a3   :  { %13777 = vmatpush.bf16.msrb.mxu1 %v19354_v54  ;;  %13920 = vmatpush.bf16.msrb.mxu3 %v19363_v34  ;;  %v19388_v54 = vld [vmem:[%s26498_s7 + $0x168] sm:$0xff] }
 0x8a4   :  { %v12452_v2 = vmax.f32 %v12436_v50, 0.0 }
 0x8a5   :  { %v12241_v49 = vpop.f32.mrf.mxu3  ;;  %13839 = vmatpush.bf16.msrb.mxu2 %v19345_v16  ;;  %v19368_v16 = vld [vmem:[%s26498_s7 + $0xc8] sm:$0xff] }
 0x8a6   :  { %12468 = vst [vmem:[#allocation4 + $0x158] sm:$0xff] %v12452_v2  ;;  %v12263_v17 = vadd.f32 %v12241_v49, %v11998_v28  ;;  %v19343_v49 = vld [vmem:[%s26498_s7] sm:$0xff] }
 0x8a7   :  { %13778 = vmatpush.bf16.msrb.mxu1 %v19353_v63  ;;  %v12847_v63 = vadd.f32 %v26229_v37, %v12721_v57  ;;  %v19394_v37 = vld [vmem:[%s26498_s7 + $0x198] sm:$0xff] }
 0x8a8   :  { %v12421_v6 = vadd.f32 %v12399_v41, %v12263_v17  ;;  %v26233_v41 = vpop.f32.mrf.mxu1  ;;  %v12835_v45 = vpop.f32.mrf.mxu2  ;;  %v19362_v17 = vld [vmem:[%s26498_s7 + $0x98] sm:$0xff] }
 0x8a9   :  { %13840 = vmatpush.bf16.msrb.mxu2 %v19344_v25  ;;  %13921 = vmatpush.bf16.msrb.mxu3 %v19362_v17  ;;  %v19379_v45 = vld [vmem:[%s26498_s7 + $0x120] sm:$0xff]  ;;  %v12723_v47 = vadd.f32 %v26233_v41, %v26202_v5  ;;  %v19393_v17 = vld [vmem:[%s26498_s7 + $0x190] sm:$0xff] }
 0x8aa   :  { %v13110_v35 = vpop.f32.mrf.mxu0  ;;  %v12437_v1 = vadd.f32 %v26158_v33, %v12421_v6  ;;  %v19382_v6 = vld [vmem:[%s26498_s7 + $0x138] sm:$0xff]  ;;  %v19375_v25 = vld [vmem:[%s26498_s7 + $0x100] sm:$0xff] }
 0x8ab   :  { %13779 = vmatpush.bf16.msrb.mxu1 %v19352_v32  ;;  %v19397_v35 = vld [vmem:[%s26498_s7 + $0x1b0] sm:$0xff]  ;;  %v19367_v32 = vld [vmem:[%s26498_s7 + $0xc0] sm:$0xff] }
 0x8ac   :  { %v12453_v31 = vmax.f32 %v12437_v1, 0.0  ;;  %14254 = vmatpush.bf16.msrb.mxu0 %v19397_v35 }
 0x8ad   :  { %v12243_v27 = vpop.f32.mrf.mxu3  ;;  %13841 = vmatpush.bf16.msrb.mxu2 %v19343_v49  ;;  %13922 = vmatpush.bf16.msrb.mxu3 %v19361_v53  ;;  %v19385_v49 = vld [vmem:[%s26498_s7 + $0x150] sm:$0xff] }
 0x8ae   :  { %12469 = vst [vmem:[#allocation4 + $0x160] sm:$0xff] %v12453_v31  ;;  %v19381_v31 = vld [vmem:[%s26498_s7 + $0x130] sm:$0xff] }
 0x8af   :  { %13780 = vmatpush.bf16.msrb.mxu1 %v19351_v36 }
 0x8b0   :  { %v12725_v18 = vpop.f32.mrf.mxu1  ;;  %v12837_v20 = vpop.f32.mrf.mxu2 }
 0x8b1   :  { %14085 = vmatpush.bf16.msra.mxu2 %v19382_v6  ;;  %v19359_v18 = vld [vmem:[%s26498_s7 + $0x80] sm:$0xff]  ;;  %v19389_v20 = vld [vmem:[%s26498_s7 + $0x170] sm:$0xff]  ;;  %v19384_v6 = vld [vmem:[%s26498_s7 + $0x148] sm:$0xff] }
 0x8b2   :  { %13527 = vmatmul.bf16.gmra.mxu3 %v13451_v26  ;;  %v26225_v21 = vpop.f32.mrf.mxu0 }
 0x8b3   :  { %14001 = vmatpush.bf16.msra.mxu1 %v19374_v43 }
 0x8b5   :  { %v12246_v40 = vpop.f32.mrf.mxu3  ;;  %14086 = vmatpush.bf16.msra.mxu2 %v19381_v31 }
 0x8b6   :  { %v19360_v40 = vld [vmem:[%s26498_s7 + $0x88] sm:$0xff] }
 0x8b7   :  { %14002 = vmatpush.bf16.msra.mxu1 %v19373_v7  ;;  %13923 = vmatpush.bf16.msrb.mxu3 %v19360_v40 }
 0x8b8   :  { %v12727_v29 = vpop.f32.mrf.mxu1  ;;  %v12840_v12 = vpop.f32.mrf.mxu2 }
 0x8b9   :  { %14087 = vmatpush.bf16.msra.mxu2 %v19380_v51  ;;  %v19378_v29 = vld [vmem:[%s26498_s7 + $0x118] sm:$0xff]  ;;  %v19376_v12 = vld [vmem:[%s26498_s7 + $0x108] sm:$0xff] }
 0x8ba   :  { %v26231_v46 = vpop.f32.mrf.mxu0 }
 0x8bb   :  { %13924 = vmatpush.bf16.msrb.mxu3 %v19359_v18  ;;  %v13683_v18 = vld [vmem:[#allocation4] ss:$56 sm:$0xf] }
 0x8bd   :  { %v12248_v14 = vpop.f32.mrf.mxu3  ;;  %14088 = vmatpush.bf16.msra.mxu2 %v19379_v45 }
 0x8be   :  { %v19372_v14 = vld [vmem:[%s26498_s7 + $0xe8] sm:$0xff] }
 0x8bf   :  { %14003 = vmatpush.bf16.msra.mxu1 %v19372_v14  ;;  %14169 = vmatpush.bf16.msra.mxu3 %v19390_v56  ;;  %v13848_v56 = vld [vmem:[#allocation4 + $0x2] ss:$56 sm:$0xf] }
 0x8c0   :  { %v12730_v22 = vpop.f32.mrf.mxu1  ;;  %v12842_v28 = vpop.f32.mrf.mxu2 }
 0x8c1   :  { %14089 = vmatpush.bf16.msra.mxu2 %v19378_v29 }
 0x8c2   :  { %v26240_v19 = vpop.f32.mrf.mxu0 }
 0x8c3   :  { %14004 = vmatpush.bf16.msra.mxu1 %v19371_v60  ;;  %14170 = vmatpush.bf16.msra.mxu3 %v19389_v20 }
 0x8c5   :  { %v12937_v58 = vpop.f32.mrf.mxu3  ;;  %14090 = vmatpush.bf16.msra.mxu2 %v19377_v39 }
 0x8c6   :  { %v19396_v58 = vld [vmem:[%s26498_s7 + $0x1a8] sm:$0xff] }
 0x8c7   :  { %14255 = vmatpush.bf16.msrb.mxu0 %v19396_v58  ;;  %14005 = vmatpush.bf16.msra.mxu1 %v19370_v24 }
 0x8c8   :  { %v12732_v50 = vpop.f32.mrf.mxu1  ;;  %v13340_v27 = vpop.f32.mrf.mxu2  ;;  %14171 = vmatpush.bf16.msra.mxu3 %v19388_v54 }
 0x8c9   :  { %14091 = vmatpush.bf16.msra.mxu2 %v19376_v12  ;;  %v19383_v27 = vld [vmem:[%s26498_s7 + $0x140] sm:$0xff]  ;;  %v19413_v12 = vld [vmem:[%s26498_s7 + $0x230] sm:$0xff] }
 0x8ca   :  { %v13120_v30 = vpop.f32.mrf.mxu0 }
 0x8cb   :  { %v12718_v30 = vadd.f32 %v26220_v38, %v26178_v55  ;;  %14006 = vmatpush.bf16.msra.mxu1 %v19369_v62 }
 0x8cc   :  { %14172 = vmatpush.bf16.msra.mxu3 %v19387_v42 }
 0x8cd   :  { %v26248_v3 = vpop.f32.mrf.mxu3  ;;  %v12846_v15 = vadd.f32 %v26222_v13, %v12718_v30  ;;  %v19395_v13 = vld [vmem:[%s26498_s7 + $0x1a0] sm:$0xff]  ;;  %14092 = vmatpush.bf16.msra.mxu2 %v19375_v25 }
 0x8ce   :  { %14256 = vmatpush.bf16.msrb.mxu0 %v19395_v13  ;;  %v19406_v13 = vld [vmem:[%s26498_s7 + $0x1f8] sm:$0xff] }
 0x8cf   :  { %v12958_v38 = vadd.f32 %v26248_v3, %v12846_v15  ;;  %14007 = vmatpush.bf16.msra.mxu1 %v19368_v16 }
 0x8d0   :  { %v13228_v1 = vpop.f32.mrf.mxu1  ;;  %v13342_v55 = vpop.f32.mrf.mxu2 }
 0x8d2   :  { %v13122_v8 = vpop.f32.mrf.mxu0  ;;  %14257 = vmatpush.bf16.msrb.mxu0 %v19394_v37 }
 0x8d3   :  { %v13131_v8 = vadd.f32 %v26225_v21, %v12958_v38  ;;  %14008 = vmatpush.bf16.msra.mxu1 %v19367_v32  ;;  %v13932_v32 = vld [vmem:[#allocation4 + $0x8] ss:$56 sm:$0xf] }
 0x8d5   :  { %v26265_v59 = vpop.f32.mrf.mxu3 }
 0x8d6   :  { %v12959_v21 = vadd.f32 %v26265_v59, %v12847_v63  ;;  %v19386_v59 = vld [vmem:[%s26498_s7 + $0x158] sm:$0xff]  ;;  %14258 = vmatpush.bf16.msrb.mxu0 %v19393_v17  ;;  %v19405_v63 = vld [vmem:[%s26498_s7 + $0x1f0] sm:$0xff] }
 0x8d7   :  { %14173 = vmatpush.bf16.msra.mxu3 %v19386_v59 }
 0x8d8   :  { %v13230_v23 = vpop.f32.mrf.mxu1  ;;  %v13345_v34 = vpop.f32.mrf.mxu2 }
 0x8d9   :  { %v13249_v44 = vadd.f32 %v13230_v23, %v13131_v8 }
 0x8da   :  { %v13125_v52 = vpop.f32.mrf.mxu0 }
 0x8db   :  { %v13132_v52 = vadd.f32 %v26231_v46, %v12959_v21  ;;  %14174 = vmatpush.bf16.msra.mxu3 %v19385_v49 }
 0x8dd   :  { %v26282_v11 = vpop.f32.mrf.mxu3 }
 0x8df   :  { %14175 = vmatpush.bf16.msra.mxu3 %v19384_v6 }
 0x8e0   :  { %v13233_v4 = vpop.f32.mrf.mxu1  ;;  %v13347_v35 = vpop.f32.mrf.mxu2 }
 0x8e2   :  { %v13127_v9 = vpop.f32.mrf.mxu0 }
 0x8e3   :  { %v13250_v9 = vadd.f32 %v13233_v4, %v13132_v52  ;;  %14176 = vmatpush.bf16.msra.mxu3 %v19383_v27  ;;  %v14016_v52 = vld [vmem:[#allocation4 + $0x9] ss:$56 sm:$0xf] }
 0x8e5   :  { %v12947_v48 = vpop.f32.mrf.mxu3  ;;  %v13362_v7 = vadd.f32 %v13345_v34, %v13250_v9 }
 0x8e6   :  { %v13361_v48 = vadd.f32 %v13342_v55, %v13249_v44  ;;  %v19412_v44 = vld [vmem:[%s26498_s7 + $0x228] sm:$0xff] }
 0x8e8   :  { %v13235_v5 = vpop.f32.mrf.mxu1  ;;  %v13350_v23 = vpop.f32.mrf.mxu2 }
 0x8ea   :  { %v13631_v10 = vpop.f32.mrf.mxu0 }
 0x8eb   :  { %v13704_v10 = vld [vmem:[#allocation4 + $0x1] ss:$56 sm:$0xf] }
 0x8ed   :  { %v12949_v2 = vpop.f32.mrf.mxu3 }
 0x8ee   :  { %v12848_v2 = vadd.f32 %v26238_v61, %v12723_v47  ;;  %v19392_v61 = vld [vmem:[%s26498_s7 + $0x188] sm:$0xff]  ;;  %v19403_v47 = vld [vmem:[%s26498_s7 + $0x1e0] sm:$0xff] }
 0x8ef   :  { %14259 = vmatpush.bf16.msrb.mxu0 %v19392_v61 }
 0x8f0   :  { %v12960_v46 = vadd.f32 %v26282_v11, %v12848_v2  ;;  %v13352_v21 = vpop.f32.mrf.mxu2  ;;  %v14100_v2 = vld [vmem:[#allocation4 + $0xa] ss:$56 sm:$0xf] }
 0x8f2   :  { %v13633_v3 = vpop.f32.mrf.mxu0  ;;  %v13133_v1 = vadd.f32 %v26240_v19, %v12960_v46  ;;  %v13238_v19 = vpop.f32.mrf.mxu1 }
 0x8f4   :  { %v13251_v51 = vadd.f32 %v13235_v5, %v13133_v1  ;;  %v14184_v5 = vld [vmem:[#allocation4 + $0x10] ss:$56 sm:$0xf] }
 0x8f5   :  { %v12952_v26 = vpop.f32.mrf.mxu3  ;;  %v19410_v1 = vld [vmem:[%s26498_s7 + $0x218] sm:$0xff] }
 0x8f6   :  { %v19391_v26 = vld [vmem:[%s26498_s7 + $0x180] sm:$0xff]  ;;  %v13363_v45 = vadd.f32 %v13347_v35, %v13251_v51  ;;  %v19402_v35 = vld [vmem:[%s26498_s7 + $0x1d8] sm:$0xff] }
 0x8f7   :  { %14260 = vmatpush.bf16.msrb.mxu0 %v19391_v26 }
 0x8f8   :  { %v13355_v9 = vpop.f32.mrf.mxu2 }
 0x8fa   :  { %v13636_v50 = vpop.f32.mrf.mxu0 }
 0x8fd   :  { %v12954_v0 = vpop.f32.mrf.mxu3 }
 0x900   :  { %v13357_v51 = vpop.f32.mrf.mxu2 }
 0x902   :  { %v13638_v40 = vpop.f32.mrf.mxu0 }
 0x905   :  { %v13513_v22 = vpop.f32.mrf.mxu3 }
 0x906   :  { %v13240_v22 = vpop.f32.mrf.mxu1 }
 0x90a   :  { %v13641_v57 = vpop.f32.mrf.mxu0 }
 0x90d   :  { %v13515_v28 = vpop.f32.mrf.mxu3 }
 0x90e   :  { %v13534_v36 = vadd.f32 %v13515_v28, %v13361_v48  ;;  %v19411_v48 = vld [vmem:[%s26498_s7 + $0x220] sm:$0xff] }
 0x910   :  { %v13652_v41 = vadd.f32 %v13633_v3, %v13534_v36  ;;  %v19414_v3 = vld [vmem:[%s26498_s7 + $0x238] sm:$0xff]  ;;  %v13243_v36 = vpop.f32.mrf.mxu1 }
 0x912   :  { %v13660_v43 = vadd.f32 %v26158_v33, %v13652_v41  ;;  %v13643_v59 = vpop.f32.mrf.mxu0 }
 0x914   :  { %v13668_v53 = vmax.f32 %v13660_v43, 0.0 }
 0x915   :  { %v13518_v11 = vpop.f32.mrf.mxu3 }
 0x916   :  { %13676 = vst [vmem:[#allocation4 + $0x188] sm:$0xff] %v13668_v53  ;;  %v13535_v31 = vadd.f32 %v13518_v11, %v13362_v7  ;;  %v19401_v11 = vld [vmem:[%s26498_s7 + $0x1d0] sm:$0xff] }
 0x918   :  { %v13653_v14 = vadd.f32 %v13636_v50, %v13535_v31  ;;  %v19409_v31 = vld [vmem:[%s26498_s7 + $0x210] sm:$0xff]  ;;  %v13245_v26 = vpop.f32.mrf.mxu1 }
 0x919   :  { %v20954_v26 = vld [vmem:[%s26501_s10] ss:$0 sm:$0xff] }
 0x91a   :  { %v13661_v58 = vadd.f32 %v26158_v33, %v13653_v14  ;;  %v13646_v7 = vpop.f32.mrf.mxu0  ;;  %v19408_v14 = vld [vmem:[%s26498_s7 + $0x208] sm:$0xff] }
 0x91c   :  { %v13669_v60 = vmax.f32 %v13661_v58, 0.0 }
 0x91d   :  { %v13520_v30 = vpop.f32.mrf.mxu3  ;;  %v13705_v0 = vld [vmem:[#allocation4 + $0x1] ss:$56 sm:$0xf0]  ;;  %v13684_v15 = vld [vmem:[#allocation4] ss:$56 sm:$0xf0] }
 0x91e   :  { %13677 = vst [vmem:[#allocation4 + $0x190] sm:$0xff] %v13669_v60  ;;  %v13536_v24 = vadd.f32 %v13520_v30, %v13363_v45  ;;  %v13706_v29 = vor.u32 %v13705_v0, %v13704_v10  ;;  %v13685_v20 = vor.u32 %v13684_v15, %v13683_v18  ;;  %v13849_v55 = vld [vmem:[#allocation4 + $0x2] ss:$56 sm:$0xf0] }
 0x91f   :  { %v13850_v38 = vor.u32 %v13849_v55, %v13848_v56  ;;  %v14268_v10 = vld [vmem:[#allocation4 + $0x11] ss:$56 sm:$0xf]  ;;  %v14352_v45 = vld [vmem:[#allocation4 + $0x12] ss:$56 sm:$0xf] }
 0x920   :  { %v13654_v62 = vadd.f32 %v13638_v40, %v13536_v24  ;;  %v13707_v39 = vpack.c.bf16 %v13706_v29, %v13706_v29  ;;  %v13686_v54 = vpack.c.bf16 %v13685_v20, %v13685_v20  ;;  %v19400_v40 = vld [vmem:[%s26498_s7 + $0x1c8] sm:$0xff]  ;;  %v19399_v18 = vld [vmem:[%s26498_s7 + $0x1c0] sm:$0xff] }
 0x921   :  { %v13851_v8 = vpack.c.bf16 %v13850_v38, %v13850_v38  ;;  %v19407_v60 = vld [vmem:[%s26498_s7 + $0x200] sm:$0xff] }
 0x922   :  { %v13662_v4 = vadd.f32 %v26158_v33, %v13654_v62  ;;  %13781 = vmatmul.bf16.vlgmr.msrb.gmra.mxu1 %v13707_v39  ;;  %13842 = vmatmul.bf16.vlgmr.msrb.gmra.mxu2 %v13686_v54  ;;  %v19404_v33 = vld [vmem:[%s26498_s7 + $0x1e8] sm:$0xff]  ;;  %v13648_v23 = vpop.f32.mrf.mxu0 }
 0x923   :  { %13925 = vmatmul.bf16.vlgmr.msrb.gmra.mxu3 %v13851_v8  ;;  %14337 = vmatpush.bf16.msrb.mxu1 %v19406_v13 }
 0x924   :  { %v13670_v16 = vmax.f32 %v13662_v4, 0.0  ;;  %14421 = vmatpush.bf16.msrb.mxu2 %v19414_v3 }
 0x925   :  { %v13523_v42 = vpop.f32.mrf.mxu3  ;;  %v13933_v37 = vld [vmem:[#allocation4 + $0x8] ss:$56 sm:$0xf0]  ;;  %v14017_v34 = vld [vmem:[#allocation4 + $0x9] ss:$56 sm:$0xf0] }
 0x926   :  { %13678 = vst [vmem:[#allocation4 + $0x198] sm:$0xff] %v13670_v16  ;;  %v14101_v25 = vld [vmem:[#allocation4 + $0xa] ss:$56 sm:$0xf0]  ;;  %v13934_v50 = vor.u32 %v13933_v37, %v13932_v32  ;;  %v14018_v28 = vor.u32 %v14017_v34, %v14016_v52  ;;  %v20952_v32 = vld [vmem:[%s26499_s8] ss:$0 sm:$0xff] }
 0x927   :  { %14338 = vmatpush.bf16.msrb.mxu1 %v19405_v63  ;;  %v14102_v17 = vor.u32 %v14101_v25, %v14100_v2 }
 0x928   :  { %14422 = vmatpush.bf16.msrb.mxu2 %v19413_v12  ;;  %v13935_v61 = vpack.c.bf16 %v13934_v50, %v13934_v50  ;;  %v14019_v43 = vpack.c.bf16 %v14018_v28, %v14018_v28  ;;  %v14440_v50 = vlaneseq }
 0x929   :  { %v14103_v53 = vpack.c.bf16 %v14102_v17, %v14102_v17 }
 0x92a   :  { %v14441_v28 = vand.u32 127, %v14440_v50 }
 0x92b   :  { %14339 = vmatpush.bf16.msrb.mxu1 %v19404_v33 }
 0x92c   :  { %14423 = vmatpush.bf16.msrb.mxu2 %v19412_v44  ;;  %vm14442_vm2 = vcmp.lt.s32.totalorder %v14441_v28, 32 }
 0x92d   :  { %v13525_v49 = vpop.f32.mrf.mxu3  ;;  %v14185_v46 = vld [vmem:[#allocation4 + $0x10] ss:$56 sm:$0xf0]  ;;  %v14269_v19 = vld [vmem:[#allocation4 + $0x11] ss:$56 sm:$0xf0] }
 0x92e   :  { %v14186_v41 = vor.u32 %v14185_v46, %v14184_v5  ;;  %v14353_v58 = vld [vmem:[#allocation4 + $0x12] ss:$56 sm:$0xf0]  ;;  %v14270_v30 = vor.u32 %v14269_v19, %v14268_v10  ;;  %v21016_v49 = vmov 0.0  }
 0x92f   :  { %14340 = vmatpush.bf16.msrb.mxu1 %v19403_v47  ;;  %v14354_v0 = vor.u32 %v14353_v58, %v14352_v45  ;;  %v18658_v17 = vsel %vm14442_vm2, 1.0, %v21016_v49 }
 0x930   :  { %14424 = vmatpush.bf16.msrb.mxu2 %v19411_v48  ;;  %v14187_v6 = vpack.c.bf16 %v14186_v41, %v14186_v41  ;;  %v14271_v15 = vpack.c.bf16 %v14270_v30, %v14270_v30 }
 0x931   :  { %v14355_v24 = vpack.c.bf16 %v14354_v0, %v14354_v0 }
 0x932   :  { %14009 = vmatmul.bf16.vlgmr.msra.gmra.mxu1 %v13935_v61  ;;  %14093 = vmatmul.bf16.vlgmr.msra.gmra.mxu2 %v14019_v43 }
 0x933   :  { %14177 = vmatmul.bf16.vlgmr.msra.gmra.mxu3 %v14103_v53  ;;  %14261 = vmatmul.bf16.vlgmr.msrb.gmra.mxu0 %v14187_v6 }
 0x934   :  { %14341 = vmatpush.bf16.msrb.mxu1 %v19402_v35  ;;  %14425 = vmatpush.bf16.msrb.mxu2 %v19410_v1 }
 0x935   :  { %v13528_v27 = vpop.f32.mrf.mxu3 }
 0x938   :  { %14342 = vmatpush.bf16.msrb.mxu1 %v19401_v11  ;;  %14426 = vmatpush.bf16.msrb.mxu2 %v19409_v31  ;;  %v20953_v31 = vld [vmem:[%s26500_s9] ss:$0 sm:$0xff] }
 0x93c   :  { %14343 = vmatpush.bf16.msrb.mxu1 %v19400_v40  ;;  %14427 = vmatpush.bf16.msrb.mxu2 %v19408_v14 }
 0x93d   :  { %v13530_v56 = vpop.f32.mrf.mxu3 }
 0x940   :  { %14344 = vmatpush.bf16.msrb.mxu1 %v19399_v18  ;;  %14428 = vmatpush.bf16.msrb.mxu2 %v19407_v60 }
 0x943   :  { %14345 = vmatmul.bf16.vlgmr.msrb.gmra.mxu1 %v14271_v15  ;;  %14429 = vmatmul.bf16.vlgmr.msrb.gmra.mxu2 %v14355_v24 }
 0x99f   :  { %v13782_v29 = vpop.f32.mrf.mxu1 }
 0x9a5   :  { %v13843_v20 = vpop.f32.mrf.mxu2 }
 0x9a6   :  { %v13926_v55 = vpop.f32.mrf.mxu3  ;;  %v13844_v3 = vadd.f32 %v13843_v20, %v13782_v29 }
 0x9a7   :  { %v13784_v38 = vpop.f32.mrf.mxu1 }
 0x9a8   :  { %v13930_v4 = vadd.f32 %v13926_v55, %v13844_v3 }
 0x9ad   :  { %v13845_v13 = vpop.f32.mrf.mxu2 }
 0x9ae   :  { %v13928_v62 = vpop.f32.mrf.mxu3 }
 0x9af   :  { %v14010_v39 = vpop.f32.mrf.mxu1 }
 0x9b0   :  { %v14262_v54 = vpop.f32.mrf.mxu0  ;;  %v14014_v16 = vadd.f32 %v14010_v39, %v13930_v4 }
 0x9b5   :  { %v14094_v57 = vpop.f32.mrf.mxu2 }
 0x9b6   :  { %v14178_v8 = vpop.f32.mrf.mxu3  ;;  %v14098_v12 = vadd.f32 %v14094_v57, %v14014_v16 }
 0x9b7   :  { %v14012_v22 = vpop.f32.mrf.mxu1 }
 0x9b8   :  { %v14264_v63 = vpop.f32.mrf.mxu0  ;;  %v14182_v33 = vadd.f32 %v14178_v8, %v14098_v12 }
 0x9ba   :  { %v14266_v37 = vadd.f32 %v14262_v54, %v14182_v33 }
 0x9bd   :  { %v14096_v42 = vpop.f32.mrf.mxu2 }
 0x9be   :  { %v14180_v21 = vpop.f32.mrf.mxu3 }
 0x9c0   :  { %v14346_v44 = vpop.f32.mrf.mxu1 }
 0x9c1   :  { %v14350_v34 = vadd.f32 %v14346_v44, %v14266_v37 }
 0x9c6   :  { %v14430_v25 = vpop.f32.mrf.mxu2 }
 0x9c7   :  { %v14434_v59 = vadd.f32 %v14430_v25, %v14350_v34 }
 0x9c8   :  { %v14348_v47 = vpop.f32.mrf.mxu1 }
 0x9c9   :  { %v14439_v52 = vadd.f32 %v20952_v32, %v14434_v59 }
 0x9cb   :  { %14445 = vadd.xlane.f32.xlu0 %v14439_v52 }
 0x9ce   :  { %v14432_v48 = vpop.f32.mrf.mxu2 }
 0xa3e   :  { %v14446_v2 = vpop.xlane.xlu0 %14445 }
 0xa3f   :  { %v14447_v36 = vmul.f32 0.03125, %v14446_v2 }
 0xa41   :  { %v14448_v5 = vsub.f32 %v14439_v52, %v14447_v36 }
 0xa43   :  { %v14449_v46 = vmul.f32 %v18658_v17, %v14448_v5 }
 0xa45   :  { %v14450_v41 = vmul.f32 %v14449_v46, %v14449_v46 }
 0xa47   :  { %14451 = vadd.xlane.f32.xlu0 %v14450_v41 }
 0xaba   :  { %v14452_v9 = vpop.xlane.xlu0 %14451 }
 0xabb   :  { %v14453_v61 = vmul.f32 0.03125, %v14452_v9 }
 0xabd   :  { %v14454_v43 = vadd.f32 1e-05, %v14453_v61 }
 0xabf   :  { %20955 = vrsqrt.f32 %v14454_v43  ;;  %vm14461_vm4 = vweird.f32 %v14454_v43 }
 0xac5   :  { %v20956_v6 = vpop.eup %20955 }
 0xac6   :  { %v14456_v35 = vmul.f32 %v20956_v6, %v14454_v43  ;;  %vm14462_vm3 = vweird.f32 %v20956_v6 }
 0xac7   :  { %vm14463_vm5 = vmor %vm14461_vm4, %vm14462_vm3 }
 0xac8   :  { %v14457_v1 = vmul.f32 %v20956_v6, %v14456_v35 }
 0xaca   :  { %v14458_v53 = vmul.f32 0.5, %v14457_v1 }
 0xacc   :  { %v14459_v7 = vsub.f32 1.5, %v14458_v53 }
 0xace   :  { %v14460_v11 = vmul.f32 %v20956_v6, %v14459_v7 }
 0xad0   :  { %v14464_v27 = vsel %vm14463_vm5, %v20956_v6, %v14460_v11 }
 0xad1   :  { %v14465_v40 = vmul.f32 %v14464_v27, %v14449_v46 }
 0xad3   :  { %v14470_v14 = vmul.f32 %v20953_v31, %v14465_v40 }
 0xad5   :  { %v14475_v51 = vadd.f32 %v20954_v26, %v14470_v14 }
 0xad7   :  { %20957 = vtanh.f32 %v14475_v51 }
 0xadd   :  { %v20958_v19 = vpop.eup %20957 }
 0xade   :  { %14477 = vst [vmem:[%s26502_s11] sm:$0xff] %v20958_v19 }

</bundles_post_ra>
